<compile_context>
chip_gen: v5e
topology: v5e:2x2
jax: 0.10.0
libtpu: 0.0.40
codegen_flags: <defaults>
</compile_context>

<pallas_src>
import functools

import jax
import jax.numpy as jnp
from jax import lax
from jax.experimental import pallas as pl
from jax.experimental.pallas import tpu as pltpu


def _round_up(v, m):
    return ((v + m - 1) // m) * m


# ----------------------------------------------------------------------------
# Pallas kernel: fused matmul (bf16 -> fp32 acc) + per-column affine + ReLU
# ----------------------------------------------------------------------------
def _matmul_affine_kernel(x_ref, w_ref, scale_ref, bias_ref, o_ref, acc_ref,
                          *, apply_relu):
    @pl.when(pl.program_id(1) == 0)
    def _init():
        acc_ref[...] = jnp.zeros_like(acc_ref)

    acc_ref[...] += jnp.dot(x_ref[...], w_ref[...],
                            preferred_element_type=jnp.float32)

    @pl.when(pl.program_id(1) == pl.num_programs(1) - 1)
    def _finalize():
        y = acc_ref[...] * scale_ref[...] + bias_ref[...]   # fp32 epilogue (VPU)
        if apply_relu:
            y = jnp.maximum(y, 0.0)
        o_ref[...] = y.astype(o_ref.dtype)


_VMEM_BUDGET = 20 * 1024 * 1024   # stay under the 32 MiB default scoped VMEM


def _pick_tk(Kp, Np):
    """Largest K-tile (multiple of 128 dividing Kp) whose double-buffered
    weight slab (bf16) stays under half the VMEM budget."""
    units = Kp // 128
    best = 128
    for d in range(1, units + 1):
        if units % d:
            continue
        cand = d * 128
        if 2 * cand * Np * 2 <= _VMEM_BUDGET // 2:
            best = cand
    return best


def _pick_tm(M, tk, Np):
    """Largest M-tile (multiple of 8) whose double-buffered working set fits
    the VMEM budget; split once so the M grid has >= 2 'parallel' steps where
    possible (v7x has 2 TensorCores per chip)."""
    m8 = _round_up(M, 8)
    tm = 8
    for cand in (8, 16, 32, 64, 128, 256, 512, 1024):
        if cand > m8:
            break
        need = (2 * cand * tk * 2          # double-buffered X tile (bf16)
                + 2 * tk * Np * 2          # double-buffered W tile (bf16)
                + cand * Np * 4            # fp32 accumulator scratch
                + 2 * cand * Np * 4)       # double-buffered output tile (f32)
        if need <= _VMEM_BUDGET:
            tm = cand
    if tm >= 16 and _round_up(m8, tm) // tm == 1:
        tm //= 2                           # give both TCs work when grid would be 1
    return tm


def matmul_affine(x, w, scale, bias, *, apply_relu, out_dtype=jnp.float32):
    """relu?((x @ w) * scale + bias).  x:(M,K), w:(K,N), scale/bias:(N,).

    Operands cast to bf16 (fp32 MXU accumulation). K/N zero-padded to multiples
    of 128 for lane-dense unmasked stores; M padded to the chosen tile. The pad
    is sliced off after the call.
    """
    M, K = x.shape
    K2, N = w.shape
    assert K == K2
    Kp, Np = _round_up(K, 128), _round_up(N, 128)

    xb = jnp.pad(x.astype(jnp.bfloat16), ((0, 0), (0, Kp - K)))
    wb = jnp.pad(w.astype(jnp.bfloat16), ((0, Kp - K), (0, Np - N)))
    sc = jnp.pad(jnp.asarray(scale, jnp.float32).reshape(1, N), ((0, 0), (0, Np - N)))
    bs = jnp.pad(jnp.asarray(bias, jnp.float32).reshape(1, N), ((0, 0), (0, Np - N)))

    tk = _pick_tk(Kp, Np)
    tm = _pick_tm(M, tk, Np)
    Mp = _round_up(M, tm)
    xb = jnp.pad(xb, ((0, Mp - M), (0, 0)))

    kernel = functools.partial(_matmul_affine_kernel, apply_relu=apply_relu)
    out = pl.pallas_call(
        kernel,
        out_shape=jax.ShapeDtypeStruct((Mp, Np), out_dtype),
        grid_spec=pltpu.PrefetchScalarGridSpec(
            num_scalar_prefetch=0,
            grid=(Mp // tm, Kp // tk),
            in_specs=[
                pl.BlockSpec((tm, tk), lambda i, k: (i, k)),
                pl.BlockSpec((tk, Np), lambda i, k: (k, 0)),
                pl.BlockSpec((1, Np), lambda i, k: (0, 0)),
                pl.BlockSpec((1, Np), lambda i, k: (0, 0)),
            ],
            out_specs=pl.BlockSpec((tm, Np), lambda i, k: (i, 0)),
            scratch_shapes=[pltpu.VMEM((tm, Np), jnp.float32)],
        ),
        compiler_params=pltpu.CompilerParams(
            dimension_semantics=("parallel", "arbitrary"),
            vmem_limit_bytes=32 * 1024 * 1024),
    )(xb, wb, sc, bs)
    return out[:M, :N]


# ----------------------------------------------------------------------------
# Conv3d (+ eval-mode BatchNorm3d + ReLU), channels-last im2col + fused matmul
# ----------------------------------------------------------------------------
def conv3d_bn_relu_cl(x_cl, w, conv_b, gamma, beta, mean, var, *, stride,
                      padding, eps=1e-5):
    """x_cl: (B, D, H, W, C) channels-last; w: (OC, C, kD, kH, kW) PyTorch layout.
    Returns channels-last (B, Do, Ho, Wo, OC) in bf16."""
    B, D, H, W, C = x_cl.shape
    OC, _, kd, kh, kw = w.shape
    sd, sh, sw = stride
    pd, ph, pw = padding

    xp = jnp.pad(x_cl.astype(jnp.bfloat16),
                 ((0, 0), (pd, pd), (ph, ph), (pw, pw), (0, 0)))
    Do = (D + 2 * pd - kd) // sd + 1
    Ho = (H + 2 * ph - kh) // sh + 1
    Wo = (W + 2 * pw - kw) // sw + 1

    # Channels-last im2col: concat kd*kh*kw shifted slices on the last axis.
    # K ordering is (kd, kh, kw, C) row-major.
    cols = []
    for a in range(kd):
        for b in range(kh):
            for c in range(kw):
                cols.append(
                    xp[:, a:a + sd * Do:sd, b:b + sh * Ho:sh, c:c + sw * Wo:sw, :])
    patches = jnp.concatenate(cols, axis=-1)            # (B, Do, Ho, Wo, kd*kh*kw*C)
    x2d = patches.reshape(B * Do * Ho * Wo, kd * kh * kw * C)

    # Weight (OC, C, kd, kh, kw) -> (kd, kh, kw, C, OC) -> (K, OC) to match K order.
    w2d = jnp.transpose(w, (2, 3, 4, 1, 0)).reshape(kd * kh * kw * C, OC)

    # Fold conv bias + eval-mode BatchNorm into a per-channel affine epilogue.
    bn_scale = gamma / jnp.sqrt(var + eps)
    bn_bias = beta + (conv_b - mean) * bn_scale

    y2d = matmul_affine(x2d, w2d, bn_scale, bn_bias, apply_relu=True,
                        out_dtype=jnp.bfloat16)
    return y2d.reshape(B, Do, Ho, Wo, OC)


def maxpool3d_cl(x, ksize, stride, padding):
    """Channels-last (B, D, H, W, C) max-pool via reduce_window (XLA glue)."""
    kd, kh, kw = ksize
    sd, sh, sw = stride
    pd, ph, pw = padding
    init = jnp.array(-jnp.inf, dtype=x.dtype)
    return lax.reduce_window(
        x, init, lax.max,
        window_dimensions=(1, kd, kh, kw, 1),
        window_strides=(1, sd, sh, sw, 1),
        padding=((0, 0), (pd, pd), (ph, ph), (pw, pw), (0, 0)))


# ----------------------------------------------------------------------------
# Model forward
# ----------------------------------------------------------------------------
def model_forward(x, p):
    """x: (B, T, 3, H, W)  -- same layout the PyTorch forward expects."""
    # PyTorch permutes to NCDHW; we go straight to channels-last (B, D=T, H, W, C).
    x = jnp.transpose(x, (0, 1, 3, 4, 2))

    x = conv3d_bn_relu_cl(x, p["conv1_w"], p["conv1_b"], p["bn1_gamma"],
                          p["bn1_beta"], p["bn1_mean"], p["bn1_var"],
                          stride=(1, 2, 2), padding=(1, 3, 3))
    x = maxpool3d_cl(x, (1, 3, 3), (1, 2, 2), (0, 1, 1))

    x = conv3d_bn_relu_cl(x, p["conv2_w"], p["conv2_b"], p["bn2_gamma"],
                          p["bn2_beta"], p["bn2_mean"], p["bn2_var"],
                          stride=(1, 1, 1), padding=(1, 1, 1))
    x = maxpool3d_cl(x, (2, 2, 2), (2, 2, 2), (0, 0, 0))

    # Restore PyTorch's NCDHW flatten order only once, right before the FC.
    B = x.shape[0]
    x = jnp.transpose(x, (0, 4, 1, 2, 3)).reshape(B, -1)

    # fc: Linear -> ReLU -> Dropout
    # TODO(synk): Dropout(0.5) omitted — inference-mode identity.
    ones_fc = jnp.ones((p["fc_w"].shape[1],), jnp.float32)
    h = matmul_affine(x, p["fc_w"], ones_fc, p["fc_b"], apply_relu=True,
                      out_dtype=jnp.bfloat16)

    # Fused steering + speed heads: one matmul over concatenated weights.
    window_size = p["steer_w"].shape[1]
    head_w = jnp.concatenate([p["steer_w"], p["speed_w"]], axis=1)
    head_b = jnp.concatenate([p["steer_b"], p["speed_b"]], axis=0)
    ones_head = jnp.ones_like(head_b)
    heads = matmul_affine(h, head_w, ones_head, head_b, apply_relu=False,
                          out_dtype=jnp.float32)
    steering = heads[:, :window_size]
    speed = heads[:, window_size:]
    return steering, speed


def conv_output_size(T, H, W):
    # conv1 (s=(1,2,2), p=(1,3,3), k=(3,7,7))
    d, h, w = T, (H + 6 - 7) // 2 + 1, (W + 6 - 7) // 2 + 1
    # pool1 (k=(1,3,3), s=(1,2,2), p=(0,1,1))
    h, w = (h + 2 - 3) // 2 + 1, (w + 2 - 3) // 2 + 1
    # conv2 keeps shape; pool2 halves all dims
    d, h, w = d // 2, h // 2, w // 2
    return 128 * d * h * w


def init_params(key, window_size, fc_in):
    ks = jax.random.split(key, 20)
    p = {}
    p["conv1_w"] = 0.05 * jax.random.normal(ks[0], (64, 3, 3, 7, 7), jnp.float32)
    p["conv1_b"] = 0.05 * jax.random.normal(ks[1], (64,), jnp.float32)
    p["bn1_gamma"] = 1.0 + 0.1 * jax.random.normal(ks[2], (64,), jnp.float32)
    p["bn1_beta"] = 0.1 * jax.random.normal(ks[3], (64,), jnp.float32)
    p["bn1_mean"] = 0.1 * jax.random.normal(ks[4], (64,), jnp.float32)
    p["bn1_var"] = 0.5 + jax.random.uniform(ks[5], (64,), jnp.float32)

    p["conv2_w"] = 0.05 * jax.random.normal(ks[6], (128, 64, 3, 3, 3), jnp.float32)
    p["conv2_b"] = 0.05 * jax.random.normal(ks[7], (128,), jnp.float32)
    p["bn2_gamma"] = 1.0 + 0.1 * jax.random.normal(ks[8], (128,), jnp.float32)
    p["bn2_beta"] = 0.1 * jax.random.normal(ks[9], (128,), jnp.float32)
    p["bn2_mean"] = 0.1 * jax.random.normal(ks[10], (128,), jnp.float32)
    p["bn2_var"] = 0.5 + jax.random.uniform(ks[11], (128,), jnp.float32)

    p["fc_w"] = 0.02 * jax.random.normal(ks[12], (fc_in, 512), jnp.float32)
    p["fc_b"] = 0.02 * jax.random.normal(ks[13], (512,), jnp.float32)
    p["steer_w"] = 0.02 * jax.random.normal(ks[14], (512, window_size), jnp.float32)
    p["steer_b"] = 0.02 * jax.random.normal(ks[15], (window_size,), jnp.float32)
    p["speed_w"] = 0.02 * jax.random.normal(ks[16], (512, window_size), jnp.float32)
    p["speed_b"] = 0.02 * jax.random.normal(ks[17], (window_size,), jnp.float32)
    return p


if __name__ == "__main__":
    # Small shapes consistent with the module: window_size frames of 3xHxW.
    window_size, B, H, W = 4, 2, 16, 32

    key = jax.random.PRNGKey(0)
    kx, kp = jax.random.split(key)
    x = jax.random.normal(kx, (B, window_size, 3, H, W), jnp.float32)

    fc_in = conv_output_size(window_size, H, W)  # 2048 for (4, 16, 32)
    params = init_params(kp, window_size, fc_in)

    steering, speed = jax.jit(model_forward)(x, params)
    jax.block_until_ready((steering, speed))

    assert steering.shape == (B, window_size), steering.shape
    assert speed.shape == (B, window_size), speed.shape
    assert jnp.all(jnp.isfinite(steering)) and jnp.all(jnp.isfinite(speed))
    print("KERNEL_OK")
</pallas_src>

<mosaic_0001>
module attributes {stable_mosaic.version = 11 : i64} {
  func.func @_matmul_affine_kernel(%arg0: i32, %arg1: i32, %arg2: memref<512x512xbf16, #tpu.memory_space<vmem>>, %arg3: memref<512x128xbf16, #tpu.memory_space<vmem>>, %arg4: memref<1x128xf32, #tpu.memory_space<vmem>>, %arg5: memref<1x128xf32, #tpu.memory_space<vmem>>, %arg6: memref<512x128xbf16, #tpu.memory_space<vmem>>, %arg7: memref<512x128xf32, #tpu.memory_space<vmem>>) attributes {dimension_semantics = [#tpu.dimension_semantics<parallel>, #tpu.dimension_semantics<arbitrary>], iteration_bounds = array<i64: 2, 1>, scalar_prefetch = 0 : i64, scratch_operands = 1 : i64, tpu.core_type = #tpu.core_type<tc>, window_params = [{transform_indices = @transform_0, window_bounds = array<i64: 512, 512>}, {transform_indices = @transform_1, window_bounds = array<i64: 512, 128>}, {pipeline_mode = #tpu.pipeline_mode<synchronous>, transform_indices = @transform_2, window_bounds = array<i64: 1, 128>}, {pipeline_mode = #tpu.pipeline_mode<synchronous>, transform_indices = @transform_3, window_bounds = array<i64: 1, 128>}, {transform_indices = @transform_4, window_bounds = array<i64: 512, 128>}]} {
    %c0_i32 = arith.constant 0 : i32
    %0 = arith.cmpi eq, %arg1, %c0_i32 : i32
    %1 = arith.extui %0 : i1 to i32
    %c0_i32_0 = arith.constant 0 : i32
    %2 = arith.cmpi ne, %1, %c0_i32_0 : i32
    scf.if %2 {
      %cst_10 = arith.constant 0.000000e+00 : f32
      %12 = vector.broadcast %cst_10 : f32 to vector<512x128xf32>
      %c0_11 = arith.constant 0 : index
      %c0_12 = arith.constant 0 : index
      %13 = vector.load %arg7[%c0_11, %c0_12] : memref<512x128xf32, #tpu.memory_space<vmem>>, vector<512x128xf32>
      tpu.vector_store %arg7[%c0_11, %c0_12], %12 {strides = array<i32>} : memref<512x128xf32, #tpu.memory_space<vmem>>, vector<512x128xf32>,
    } else {
    }
    %c0 = arith.constant 0 : index
    %c0_1 = arith.constant 0 : index
    %3 = vector.load %arg7[%c0, %c0_1] : memref<512x128xf32, #tpu.memory_space<vmem>>, vector<512x128xf32>
    %c0_2 = arith.constant 0 : index
    %c0_3 = arith.constant 0 : index
    %4 = vector.load %arg2[%c0_2, %c0_3] : memref<512x512xbf16, #tpu.memory_space<vmem>>, vector<512x512xbf16>
    %c0_4 = arith.constant 0 : index
    %c0_5 = arith.constant 0 : index
    %5 = vector.load %arg3[%c0_4, %c0_5] : memref<512x128xbf16, #tpu.memory_space<vmem>>, vector<512x128xbf16>
    %cst = arith.constant dense<0.000000e+00> : vector<512x128xf32>
    %6 = tpu.matmul %4, %5, %cst {dimension_numbers = #tpu.dot_dimension_numbers<[1], [0], [0], [1], [0, 0, 1, 1], [], []>} : vector<512x512xbf16>, vector<512x128xbf16>, vector<512x128xf32> -> vector<512x128xf32>
    %7 = arith.addf %3, %6 : vector<512x128xf32>
    %c0_6 = arith.constant 0 : index
    %c0_7 = arith.constant 0 : index
    %8 = vector.load %arg7[%c0_6, %c0_7] : memref<512x128xf32, #tpu.memory_space<vmem>>, vector<512x128xf32>
    tpu.vector_store %arg7[%c0_6, %c0_7], %7 {strides = array<i32>} : memref<512x128xf32, #tpu.memory_space<vmem>>, vector<512x128xf32>,
    %c0_i32_8 = arith.constant 0 : i32
    %9 = arith.cmpi eq, %arg1, %c0_i32_8 : i32
    %10 = arith.extui %9 : i1 to i32
    %c0_i32_9 = arith.constant 0 : i32
    %11 = arith.cmpi ne, %10, %c0_i32_9 : i32
    scf.if %11 {
      %c0_10 = arith.constant 0 : index
      %c0_11 = arith.constant 0 : index
      %12 = vector.load %arg7[%c0_10, %c0_11] : memref<512x128xf32, #tpu.memory_space<vmem>>, vector<512x128xf32>
      %c0_12 = arith.constant 0 : index
      %c0_13 = arith.constant 0 : index
      %13 = vector.load %arg4[%c0_12, %c0_13] : memref<1x128xf32, #tpu.memory_space<vmem>>, vector<1x128xf32>
      %14 = vector.broadcast %13 : vector<1x128xf32> to vector<512x128xf32>
      %15 = arith.mulf %12, %14 : vector<512x128xf32>
      %c0_14 = arith.constant 0 : index
      %c0_15 = arith.constant 0 : index
      %16 = vector.load %arg5[%c0_14, %c0_15] : memref<1x128xf32, #tpu.memory_space<vmem>>, vector<1x128xf32>
      %17 = vector.broadcast %16 : vector<1x128xf32> to vector<512x128xf32>
      %18 = arith.addf %15, %17 : vector<512x128xf32>
      %cst_16 = arith.constant 0.000000e+00 : f32
      %19 = vector.broadcast %cst_16 : f32 to vector<512x128xf32>
      %20 = arith.maximumf %18, %19 : vector<512x128xf32>
      %21 = arith.truncf %20 : vector<512x128xf32> to vector<512x128xbf16>
      %c0_17 = arith.constant 0 : index
      %c0_18 = arith.constant 0 : index
      %22 = vector.load %arg6[%c0_17, %c0_18] : memref<512x128xbf16, #tpu.memory_space<vmem>>, vector<512x128xbf16>
      tpu.vector_store %arg6[%c0_17, %c0_18], %21 {strides = array<i32>} : memref<512x128xbf16, #tpu.memory_space<vmem>>, vector<512x128xbf16>,
    } else {
    }
    return
  }
  func.func @transform_0(%arg0: i32, %arg1: i32) -> (i32, i32) {
    %c0_i32 = arith.constant 0 : i32
    return %arg0, %arg1 : i32, i32
  }
  func.func @transform_1(%arg0: i32, %arg1: i32) -> (i32, i32) {
    %c0_i32 = arith.constant 0 : i32
    %c0_i32_0 = arith.constant 0 : i32
    return %arg1, %c0_i32 : i32, i32
  }
  func.func @transform_2(%arg0: i32, %arg1: i32) -> (i32, i32) {
    %c0_i32 = arith.constant 0 : i32
    %c0_i32_0 = arith.constant 0 : i32
    %c0_i32_1 = arith.constant 0 : i32
    return %c0_i32, %c0_i32_0 : i32, i32
  }
  func.func @transform_3(%arg0: i32, %arg1: i32) -> (i32, i32) {
    %c0_i32 = arith.constant 0 : i32
    %c0_i32_0 = arith.constant 0 : i32
    %c0_i32_1 = arith.constant 0 : i32
    return %c0_i32, %c0_i32_0 : i32, i32
  }
  func.func @transform_4(%arg0: i32, %arg1: i32) -> (i32, i32) {
    %c0_i32 = arith.constant 0 : i32
    %c0_i32_0 = arith.constant 0 : i32
    return %arg0, %c0_i32 : i32, i32
  }
}

module attributes {stable_mosaic.version = 11 : i64} {
  func.func @_matmul_affine_kernel(%arg0: i32, %arg1: i32, %arg2: memref<128x1792xbf16, #tpu.memory_space<vmem>>, %arg3: memref<1792x128xbf16, #tpu.memory_space<vmem>>, %arg4: memref<1x128xf32, #tpu.memory_space<vmem>>, %arg5: memref<1x128xf32, #tpu.memory_space<vmem>>, %arg6: memref<128x128xbf16, #tpu.memory_space<vmem>>, %arg7: memref<128x128xf32, #tpu.memory_space<vmem>>) attributes {dimension_semantics = [#tpu.dimension_semantics<parallel>, #tpu.dimension_semantics<arbitrary>], iteration_bounds = array<i64: 2, 1>, scalar_prefetch = 0 : i64, scratch_operands = 1 : i64, tpu.core_type = #tpu.core_type<tc>, window_params = [{transform_indices = @transform_0, window_bounds = array<i64: 128, 1792>}, {transform_indices = @transform_1, window_bounds = array<i64: 1792, 128>}, {pipeline_mode = #tpu.pipeline_mode<synchronous>, transform_indices = @transform_2, window_bounds = array<i64: 1, 128>}, {pipeline_mode = #tpu.pipeline_mode<synchronous>, transform_indices = @transform_3, window_bounds = array<i64: 1, 128>}, {transform_indices = @transform_4, window_bounds = array<i64: 128, 128>}]} {
    %c0_i32 = arith.constant 0 : i32
    %0 = arith.cmpi eq, %arg1, %c0_i32 : i32
    %1 = arith.extui %0 : i1 to i32
    %c0_i32_0 = arith.constant 0 : i32
    %2 = arith.cmpi ne, %1, %c0_i32_0 : i32
    scf.if %2 {
      %cst_10 = arith.constant 0.000000e+00 : f32
      %12 = vector.broadcast %cst_10 : f32 to vector<128x128xf32>
      %c0_11 = arith.constant 0 : index
      %c0_12 = arith.constant 0 : index
      %13 = vector.load %arg7[%c0_11, %c0_12] : memref<128x128xf32, #tpu.memory_space<vmem>>, vector<128x128xf32>
      tpu.vector_store %arg7[%c0_11, %c0_12], %12 {strides = array<i32>} : memref<128x128xf32, #tpu.memory_space<vmem>>, vector<128x128xf32>,
    } else {
    }
    %c0 = arith.constant 0 : index
    %c0_1 = arith.constant 0 : index
    %3 = vector.load %arg7[%c0, %c0_1] : memref<128x128xf32, #tpu.memory_space<vmem>>, vector<128x128xf32>
    %c0_2 = arith.constant 0 : index
    %c0_3 = arith.constant 0 : index
    %4 = vector.load %arg2[%c0_2, %c0_3] : memref<128x1792xbf16, #tpu.memory_space<vmem>>, vector<128x1792xbf16>
    %c0_4 = arith.constant 0 : index
    %c0_5 = arith.constant 0 : index
    %5 = vector.load %arg3[%c0_4, %c0_5] : memref<1792x128xbf16, #tpu.memory_space<vmem>>, vector<1792x128xbf16>
    %cst = arith.constant dense<0.000000e+00> : vector<128x128xf32>
    %6 = tpu.matmul %4, %5, %cst {dimension_numbers = #tpu.dot_dimension_numbers<[1], [0], [0], [1], [0, 0, 1, 1], [], []>} : vector<128x1792xbf16>, vector<1792x128xbf16>, vector<128x128xf32> -> vector<128x128xf32>
    %7 = arith.addf %3, %6 : vector<128x128xf32>
    %c0_6 = arith.constant 0 : index
    %c0_7 = arith.constant 0 : index
    %8 = vector.load %arg7[%c0_6, %c0_7] : memref<128x128xf32, #tpu.memory_space<vmem>>, vector<128x128xf32>
    tpu.vector_store %arg7[%c0_6, %c0_7], %7 {strides = array<i32>} : memref<128x128xf32, #tpu.memory_space<vmem>>, vector<128x128xf32>,
    %c0_i32_8 = arith.constant 0 : i32
    %9 = arith.cmpi eq, %arg1, %c0_i32_8 : i32
    %10 = arith.extui %9 : i1 to i32
    %c0_i32_9 = arith.constant 0 : i32
    %11 = arith.cmpi ne, %10, %c0_i32_9 : i32
    scf.if %11 {
      %c0_10 = arith.constant 0 : index
      %c0_11 = arith.constant 0 : index
      %12 = vector.load %arg7[%c0_10, %c0_11] : memref<128x128xf32, #tpu.memory_space<vmem>>, vector<128x128xf32>
      %c0_12 = arith.constant 0 : index
      %c0_13 = arith.constant 0 : index
      %13 = vector.load %arg4[%c0_12, %c0_13] : memref<1x128xf32, #tpu.memory_space<vmem>>, vector<1x128xf32>
      %14 = vector.broadcast %13 : vector<1x128xf32> to vector<128x128xf32>
      %15 = arith.mulf %12, %14 : vector<128x128xf32>
      %c0_14 = arith.constant 0 : index
      %c0_15 = arith.constant 0 : index
      %16 = vector.load %arg5[%c0_14, %c0_15] : memref<1x128xf32, #tpu.memory_space<vmem>>, vector<1x128xf32>
      %17 = vector.broadcast %16 : vector<1x128xf32> to vector<128x128xf32>
      %18 = arith.addf %15, %17 : vector<128x128xf32>
      %cst_16 = arith.constant 0.000000e+00 : f32
      %19 = vector.broadcast %cst_16 : f32 to vector<128x128xf32>
      %20 = arith.maximumf %18, %19 : vector<128x128xf32>
      %21 = arith.truncf %20 : vector<128x128xf32> to vector<128x128xbf16>
      %c0_17 = arith.constant 0 : index
      %c0_18 = arith.constant 0 : index
      %22 = vector.load %arg6[%c0_17, %c0_18] : memref<128x128xbf16, #tpu.memory_space<vmem>>, vector<128x128xbf16>
      tpu.vector_store %arg6[%c0_17, %c0_18], %21 {strides = array<i32>} : memref<128x128xbf16, #tpu.memory_space<vmem>>, vector<128x128xbf16>,
    } else {
    }
    return
  }
  func.func @transform_0(%arg0: i32, %arg1: i32) -> (i32, i32) {
    %c0_i32 = arith.constant 0 : i32
    return %arg0, %arg1 : i32, i32
  }
  func.func @transform_1(%arg0: i32, %arg1: i32) -> (i32, i32) {
    %c0_i32 = arith.constant 0 : i32
    %c0_i32_0 = arith.constant 0 : i32
    return %arg1, %c0_i32 : i32, i32
  }
  func.func @transform_2(%arg0: i32, %arg1: i32) -> (i32, i32) {
    %c0_i32 = arith.constant 0 : i32
    %c0_i32_0 = arith.constant 0 : i32
    %c0_i32_1 = arith.constant 0 : i32
    return %c0_i32, %c0_i32_0 : i32, i32
  }
  func.func @transform_3(%arg0: i32, %arg1: i32) -> (i32, i32) {
    %c0_i32 = arith.constant 0 : i32
    %c0_i32_0 = arith.constant 0 : i32
    %c0_i32_1 = arith.constant 0 : i32
    return %c0_i32, %c0_i32_0 : i32, i32
  }
  func.func @transform_4(%arg0: i32, %arg1: i32) -> (i32, i32) {
    %c0_i32 = arith.constant 0 : i32
    %c0_i32_0 = arith.constant 0 : i32
    return %arg0, %c0_i32 : i32, i32
  }
}

module attributes {stable_mosaic.version = 11 : i64} {
  func.func @_matmul_affine_kernel(%arg0: i32, %arg1: i32, %arg2: memref<8x2048xbf16, #tpu.memory_space<vmem>>, %arg3: memref<2048x512xbf16, #tpu.memory_space<vmem>>, %arg4: memref<1x512xf32, #tpu.memory_space<vmem>>, %arg5: memref<1x512xf32, #tpu.memory_space<vmem>>, %arg6: memref<8x512xbf16, #tpu.memory_space<vmem>>, %arg7: memref<8x512xf32, #tpu.memory_space<vmem>>) attributes {dimension_semantics = [#tpu.dimension_semantics<parallel>, #tpu.dimension_semantics<arbitrary>], iteration_bounds = array<i64: 1, 1>, scalar_prefetch = 0 : i64, scratch_operands = 1 : i64, tpu.core_type = #tpu.core_type<tc>, window_params = [{transform_indices = @transform_0, window_bounds = array<i64: 8, 2048>}, {transform_indices = @transform_1, window_bounds = array<i64: 2048, 512>}, {pipeline_mode = #tpu.pipeline_mode<synchronous>, transform_indices = @transform_2, window_bounds = array<i64: 1, 512>}, {pipeline_mode = #tpu.pipeline_mode<synchronous>, transform_indices = @transform_3, window_bounds = array<i64: 1, 512>}, {transform_indices = @transform_4, window_bounds = array<i64: 8, 512>}]} {
    %c0_i32 = arith.constant 0 : i32
    %0 = arith.cmpi eq, %arg1, %c0_i32 : i32
    %1 = arith.extui %0 : i1 to i32
    %c0_i32_0 = arith.constant 0 : i32
    %2 = arith.cmpi ne, %1, %c0_i32_0 : i32
    scf.if %2 {
      %cst_10 = arith.constant 0.000000e+00 : f32
      %12 = vector.broadcast %cst_10 : f32 to vector<8x512xf32>
      %c0_11 = arith.constant 0 : index
      %c0_12 = arith.constant 0 : index
      %13 = vector.load %arg7[%c0_11, %c0_12] : memref<8x512xf32, #tpu.memory_space<vmem>>, vector<8x512xf32>
      tpu.vector_store %arg7[%c0_11, %c0_12], %12 {strides = array<i32>} : memref<8x512xf32, #tpu.memory_space<vmem>>, vector<8x512xf32>,
    } else {
    }
    %c0 = arith.constant 0 : index
    %c0_1 = arith.constant 0 : index
    %3 = vector.load %arg7[%c0, %c0_1] : memref<8x512xf32, #tpu.memory_space<vmem>>, vector<8x512xf32>
    %c0_2 = arith.constant 0 : index
    %c0_3 = arith.constant 0 : index
    %4 = vector.load %arg2[%c0_2, %c0_3] : memref<8x2048xbf16, #tpu.memory_space<vmem>>, vector<8x2048xbf16>
    %c0_4 = arith.constant 0 : index
    %c0_5 = arith.constant 0 : index
    %5 = vector.load %arg3[%c0_4, %c0_5] : memref<2048x512xbf16, #tpu.memory_space<vmem>>, vector<2048x512xbf16>
    %cst = arith.constant dense<0.000000e+00> : vector<8x512xf32>
    %6 = tpu.matmul %4, %5, %cst {dimension_numbers = #tpu.dot_dimension_numbers<[1], [0], [0], [1], [0, 0, 1, 1], [], []>} : vector<8x2048xbf16>, vector<2048x512xbf16>, vector<8x512xf32> -> vector<8x512xf32>
    %7 = arith.addf %3, %6 : vector<8x512xf32>
    %c0_6 = arith.constant 0 : index
    %c0_7 = arith.constant 0 : index
    %8 = vector.load %arg7[%c0_6, %c0_7] : memref<8x512xf32, #tpu.memory_space<vmem>>, vector<8x512xf32>
    tpu.vector_store %arg7[%c0_6, %c0_7], %7 {strides = array<i32>} : memref<8x512xf32, #tpu.memory_space<vmem>>, vector<8x512xf32>,
    %c0_i32_8 = arith.constant 0 : i32
    %9 = arith.cmpi eq, %arg1, %c0_i32_8 : i32
    %10 = arith.extui %9 : i1 to i32
    %c0_i32_9 = arith.constant 0 : i32
    %11 = arith.cmpi ne, %10, %c0_i32_9 : i32
    scf.if %11 {
      %c0_10 = arith.constant 0 : index
      %c0_11 = arith.constant 0 : index
      %12 = vector.load %arg7[%c0_10, %c0_11] : memref<8x512xf32, #tpu.memory_space<vmem>>, vector<8x512xf32>
      %c0_12 = arith.constant 0 : index
      %c0_13 = arith.constant 0 : index
      %13 = vector.load %arg4[%c0_12, %c0_13] : memref<1x512xf32, #tpu.memory_space<vmem>>, vector<1x512xf32>
      %14 = vector.broadcast %13 : vector<1x512xf32> to vector<8x512xf32>
      %15 = arith.mulf %12, %14 : vector<8x512xf32>
      %c0_14 = arith.constant 0 : index
      %c0_15 = arith.constant 0 : index
      %16 = vector.load %arg5[%c0_14, %c0_15] : memref<1x512xf32, #tpu.memory_space<vmem>>, vector<1x512xf32>
      %17 = vector.broadcast %16 : vector<1x512xf32> to vector<8x512xf32>
      %18 = arith.addf %15, %17 : vector<8x512xf32>
      %cst_16 = arith.constant 0.000000e+00 : f32
      %19 = vector.broadcast %cst_16 : f32 to vector<8x512xf32>
      %20 = arith.maximumf %18, %19 : vector<8x512xf32>
      %21 = arith.truncf %20 : vector<8x512xf32> to vector<8x512xbf16>
      %c0_17 = arith.constant 0 : index
      %c0_18 = arith.constant 0 : index
      %22 = vector.load %arg6[%c0_17, %c0_18] : memref<8x512xbf16, #tpu.memory_space<vmem>>, vector<8x512xbf16>
      tpu.vector_store %arg6[%c0_17, %c0_18], %21 {strides = array<i32>} : memref<8x512xbf16, #tpu.memory_space<vmem>>, vector<8x512xbf16>,
    } else {
    }
    return
  }
  func.func @transform_0(%arg0: i32, %arg1: i32) -> (i32, i32) {
    %c0_i32 = arith.constant 0 : i32
    return %arg0, %arg1 : i32, i32
  }
  func.func @transform_1(%arg0: i32, %arg1: i32) -> (i32, i32) {
    %c0_i32 = arith.constant 0 : i32
    %c0_i32_0 = arith.constant 0 : i32
    return %arg1, %c0_i32 : i32, i32
  }
  func.func @transform_2(%arg0: i32, %arg1: i32) -> (i32, i32) {
    %c0_i32 = arith.constant 0 : i32
    %c0_i32_0 = arith.constant 0 : i32
    %c0_i32_1 = arith.constant 0 : i32
    return %c0_i32, %c0_i32_0 : i32, i32
  }
  func.func @transform_3(%arg0: i32, %arg1: i32) -> (i32, i32) {
    %c0_i32 = arith.constant 0 : i32
    %c0_i32_0 = arith.constant 0 : i32
    %c0_i32_1 = arith.constant 0 : i32
    return %c0_i32, %c0_i32_0 : i32, i32
  }
  func.func @transform_4(%arg0: i32, %arg1: i32) -> (i32, i32) {
    %c0_i32 = arith.constant 0 : i32
    %c0_i32_0 = arith.constant 0 : i32
    return %arg0, %c0_i32 : i32, i32
  }
}

module attributes {stable_mosaic.version = 11 : i64} {
  func.func @_matmul_affine_kernel(%arg0: i32, %arg1: i32, %arg2: memref<8x512xbf16, #tpu.memory_space<vmem>>, %arg3: memref<512x128xbf16, #tpu.memory_space<vmem>>, %arg4: memref<1x128xf32, #tpu.memory_space<vmem>>, %arg5: memref<1x128xf32, #tpu.memory_space<vmem>>, %arg6: memref<8x128xf32, #tpu.memory_space<vmem>>, %arg7: memref<8x128xf32, #tpu.memory_space<vmem>>) attributes {dimension_semantics = [#tpu.dimension_semantics<parallel>, #tpu.dimension_semantics<arbitrary>], iteration_bounds = array<i64: 1, 1>, scalar_prefetch = 0 : i64, scratch_operands = 1 : i64, tpu.core_type = #tpu.core_type<tc>, window_params = [{transform_indices = @transform_0, window_bounds = array<i64: 8, 512>}, {transform_indices = @transform_1, window_bounds = array<i64: 512, 128>}, {pipeline_mode = #tpu.pipeline_mode<synchronous>, transform_indices = @transform_2, window_bounds = array<i64: 1, 128>}, {pipeline_mode = #tpu.pipeline_mode<synchronous>, transform_indices = @transform_3, window_bounds = array<i64: 1, 128>}, {transform_indices = @transform_4, window_bounds = array<i64: 8, 128>}]} {
    %c0_i32 = arith.constant 0 : i32
    %0 = arith.cmpi eq, %arg1, %c0_i32 : i32
    %1 = arith.extui %0 : i1 to i32
    %c0_i32_0 = arith.constant 0 : i32
    %2 = arith.cmpi ne, %1, %c0_i32_0 : i32
    scf.if %2 {
      %cst_10 = arith.constant 0.000000e+00 : f32
      %12 = vector.broadcast %cst_10 : f32 to vector<8x128xf32>
      %c0_11 = arith.constant 0 : index
      %c0_12 = arith.constant 0 : index
      %13 = vector.load %arg7[%c0_11, %c0_12] : memref<8x128xf32, #tpu.memory_space<vmem>>, vector<8x128xf32>
      tpu.vector_store %arg7[%c0_11, %c0_12], %12 {strides = array<i32>} : memref<8x128xf32, #tpu.memory_space<vmem>>, vector<8x128xf32>,
    } else {
    }
    %c0 = arith.constant 0 : index
    %c0_1 = arith.constant 0 : index
    %3 = vector.load %arg7[%c0, %c0_1] : memref<8x128xf32, #tpu.memory_space<vmem>>, vector<8x128xf32>
    %c0_2 = arith.constant 0 : index
    %c0_3 = arith.constant 0 : index
    %4 = vector.load %arg2[%c0_2, %c0_3] : memref<8x512xbf16, #tpu.memory_space<vmem>>, vector<8x512xbf16>
    %c0_4 = arith.constant 0 : index
    %c0_5 = arith.constant 0 : index
    %5 = vector.load %arg3[%c0_4, %c0_5] : memref<512x128xbf16, #tpu.memory_space<vmem>>, vector<512x128xbf16>
    %cst = arith.constant dense<0.000000e+00> : vector<8x128xf32>
    %6 = tpu.matmul %4, %5, %cst {dimension_numbers = #tpu.dot_dimension_numbers<[1], [0], [0], [1], [0, 0, 1, 1], [], []>} : vector<8x512xbf16>, vector<512x128xbf16>, vector<8x128xf32> -> vector<8x128xf32>
    %7 = arith.addf %3, %6 : vector<8x128xf32>
    %c0_6 = arith.constant 0 : index
    %c0_7 = arith.constant 0 : index
    %8 = vector.load %arg7[%c0_6, %c0_7] : memref<8x128xf32, #tpu.memory_space<vmem>>, vector<8x128xf32>
    tpu.vector_store %arg7[%c0_6, %c0_7], %7 {strides = array<i32>} : memref<8x128xf32, #tpu.memory_space<vmem>>, vector<8x128xf32>,
    %c0_i32_8 = arith.constant 0 : i32
    %9 = arith.cmpi eq, %arg1, %c0_i32_8 : i32
    %10 = arith.extui %9 : i1 to i32
    %c0_i32_9 = arith.constant 0 : i32
    %11 = arith.cmpi ne, %10, %c0_i32_9 : i32
    scf.if %11 {
      %c0_10 = arith.constant 0 : index
      %c0_11 = arith.constant 0 : index
      %12 = vector.load %arg7[%c0_10, %c0_11] : memref<8x128xf32, #tpu.memory_space<vmem>>, vector<8x128xf32>
      %c0_12 = arith.constant 0 : index
      %c0_13 = arith.constant 0 : index
      %13 = vector.load %arg4[%c0_12, %c0_13] : memref<1x128xf32, #tpu.memory_space<vmem>>, vector<1x128xf32>
      %14 = vector.broadcast %13 : vector<1x128xf32> to vector<8x128xf32>
      %15 = arith.mulf %12, %14 : vector<8x128xf32>
      %c0_14 = arith.constant 0 : index
      %c0_15 = arith.constant 0 : index
      %16 = vector.load %arg5[%c0_14, %c0_15] : memref<1x128xf32, #tpu.memory_space<vmem>>, vector<1x128xf32>
      %17 = vector.broadcast %16 : vector<1x128xf32> to vector<8x128xf32>
      %18 = arith.addf %15, %17 : vector<8x128xf32>
      %c0_16 = arith.constant 0 : index
      %c0_17 = arith.constant 0 : index
      %19 = vector.load %arg6[%c0_16, %c0_17] : memref<8x128xf32, #tpu.memory_space<vmem>>, vector<8x128xf32>
      tpu.vector_store %arg6[%c0_16, %c0_17], %18 {strides = array<i32>} : memref<8x128xf32, #tpu.memory_space<vmem>>, vector<8x128xf32>,
    } else {
    }
    return
  }
  func.func @transform_0(%arg0: i32, %arg1: i32) -> (i32, i32) {
    %c0_i32 = arith.constant 0 : i32
    return %arg0, %arg1 : i32, i32
  }
  func.func @transform_1(%arg0: i32, %arg1: i32) -> (i32, i32) {
    %c0_i32 = arith.constant 0 : i32
    %c0_i32_0 = arith.constant 0 : i32
    return %arg1, %c0_i32 : i32, i32
  }
  func.func @transform_2(%arg0: i32, %arg1: i32) -> (i32, i32) {
    %c0_i32 = arith.constant 0 : i32
    %c0_i32_0 = arith.constant 0 : i32
    %c0_i32_1 = arith.constant 0 : i32
    return %c0_i32, %c0_i32_0 : i32, i32
  }
  func.func @transform_3(%arg0: i32, %arg1: i32) -> (i32, i32) {
    %c0_i32 = arith.constant 0 : i32
    %c0_i32_0 = arith.constant 0 : i32
    %c0_i32_1 = arith.constant 0 : i32
    return %c0_i32, %c0_i32_0 : i32, i32
  }
  func.func @transform_4(%arg0: i32, %arg1: i32) -> (i32, i32) {
    %c0_i32 = arith.constant 0 : i32
    %c0_i32_0 = arith.constant 0 : i32
    return %arg0, %c0_i32 : i32, i32
  }
}

</mosaic_0001>

<bundles_post_ra>
// kernel: model_forward.4
= control target key start
LH: loop header
LB: loop body
LE: loop exit
PB: predicated region body
PF: predicated region fallthrough
CT: control target
= control target key end

     0   :  { %s3778_s15 = smov 0   ;;  %s3780_s16 = smov 0   ;;  %s4353_s0 = inlined_call_operand.vmem [shape: bf16[1024,512], index: 0, kind: input, shape index: {}]   ;;  %s4354_s1 = inlined_call_operand.vmem [shape: bf16[512,128], index: 1, kind: input, shape index: {}]   ;;  %s4355_s2 = inlined_call_operand.vmem [shape: f32[1,128], index: 2, kind: input, shape index: {}]   ;;  %s4356_s3 = inlined_call_operand.vmem [shape: f32[1,128], index: 3, kind: input, shape index: {}]   ;;  %s4357_s4 = inlined_call_operand.vmem [shape: bf16[1024,128], index: 4, kind: output, shape index: {}]  }
   0x1   :  { %s3782_s17 = smov 0  }
   0x2 LB: > { %s26_s18 = sadd.s32 1, %s3747_s16  ;;  %p2700_p0 = scmp.ge.s32.totalorder %s3751_s17, 1  ;;  %s3751_s17 = sphi %s3782_s17, %s14_s17   ;;  %s3747_s16 = sphi %s3780_s16, %s4359_s16   ;;  %s3743_s15 = sphi %s3778_s15, %s4358_s15  }
   0x3   : > { %p28_p1 = scmp.ge.s32.totalorder %s26_s18, 2  ;;  %p194_p2 = scmp.lt.s32.totalorder %s3751_s17, 3 }
   0x5   : > { %s4361_s18 = smov (%p28_p1, %s26_s18), 0  ;;  %p195_p3 = pnand %p2700_p0, %p194_p2 }
   0x6   : > { %s2701_s21 = sshll.u32 (!%p195_p3), %s3743_s15, 6 }
   0x7   : > { %198 = sbr.rel (%p195_p3) target bundleno = 695 (0x2b7), region = 36  ;;  %p232_p4 = scmp.lt.s32.totalorder (!%p195_p3), %s2701_s21, 127 }
   0xc   : > { %v3484_v0 = vld [vmem:[%s4354_s1 + $0x38] sm:$0xff]  ;;  %v3483_v4 = vld [vmem:[%s4354_s1 + $0x30] sm:$0xff]  ;;  %v3482_v8 = vld [vmem:[%s4354_s1 + $0x28] sm:$0xff]  ;;  %s4363_s21 = smov (!%p232_p4, %s2701_s21), 127 }
   0xd   : > { %v3492_v1 = vld [vmem:[%s4354_s1 + $0x78] sm:$0xff]  ;;  %1410 = vmatpush.bf16.msra.mxu0 %v3484_v0  ;;  %v3491_v5 = vld [vmem:[%s4354_s1 + $0x70] sm:$0xff]  ;;  %v3490_v9 = vld [vmem:[%s4354_s1 + $0x68] sm:$0xff]  ;;  %s3348_s24 = sshll.u32 %s4363_s21, 4  ;;  %s2705_s26 = sshll.u32 %s4363_s21, 2 }
   0xe   : > { %v3500_v2 = vld [vmem:[%s4354_s1 + $0xb8] sm:$0xff]  ;;  %1579 = vmatpush.bf16.msra.mxu1 %v3492_v1  ;;  %v3499_v6 = vld [vmem:[%s4354_s1 + $0xb0] sm:$0xff]  ;;  %v3498_v10 = vld [vmem:[%s4354_s1 + $0xa8] sm:$0xff]  ;;  %s3883_s30 = scalar_lea.vmem %s4353_s0, %s3348_s24  ;;  %s4001_s29 = scalar_lea.vmem %s4357_s4, %s2705_s26 }
   0xf   : > { %v3508_v3 = vld [vmem:[%s4354_s1 + $0xf8] sm:$0xff]  ;;  %1748 = vmatpush.bf16.msra.mxu2 %v3500_v2  ;;  %v3507_v7 = vld [vmem:[%s4354_s1 + $0xf0] sm:$0xff]  ;;  %v3506_v11 = vld [vmem:[%s4354_s1 + $0xe8] sm:$0xff] }
  0x10   : > { %1917 = vmatpush.bf16.msra.mxu3 %v3508_v3  ;;  %v3481_v12 = vld [vmem:[%s4354_s1 + $0x20] sm:$0xff]  ;;  %v3480_v16 = vld [vmem:[%s4354_s1 + $0x18] sm:$0xff]  ;;  %v3479_v20 = vld [vmem:[%s4354_s1 + $0x10] sm:$0xff] }
  0x11   : > { %1411 = vmatpush.bf16.msra.mxu0 %v3483_v4  ;;  %v3489_v13 = vld [vmem:[%s4354_s1 + $0x60] sm:$0xff]  ;;  %v3488_v17 = vld [vmem:[%s4354_s1 + $0x58] sm:$0xff]  ;;  %v3487_v21 = vld [vmem:[%s4354_s1 + $0x50] sm:$0xff] }
  0x12   : > { %1580 = vmatpush.bf16.msra.mxu1 %v3491_v5  ;;  %v3497_v14 = vld [vmem:[%s4354_s1 + $0xa0] sm:$0xff]  ;;  %v3496_v18 = vld [vmem:[%s4354_s1 + $0x98] sm:$0xff]  ;;  %v3495_v22 = vld [vmem:[%s4354_s1 + $0x90] sm:$0xff] }
  0x13   : > { %1749 = vmatpush.bf16.msra.mxu2 %v3499_v6  ;;  %v3505_v15 = vld [vmem:[%s4354_s1 + $0xe0] sm:$0xff]  ;;  %v3504_v19 = vld [vmem:[%s4354_s1 + $0xd8] sm:$0xff]  ;;  %v3503_v23 = vld [vmem:[%s4354_s1 + $0xd0] sm:$0xff] }
  0x14   : > { %1918 = vmatpush.bf16.msra.mxu3 %v3507_v7  ;;  %v3478_v24 = vld [vmem:[%s4354_s1 + $0x8] sm:$0xff]  ;;  %v3477_v28 = vld [vmem:[%s4354_s1] sm:$0xff]  ;;  %v3351_v33 = vld [vmem:[%s3883_s30 + $0xc] sm:$0xf0] }
  0x15   : > { %1412 = vmatpush.bf16.msra.mxu0 %v3482_v8  ;;  %v3486_v25 = vld [vmem:[%s4354_s1 + $0x48] sm:$0xff]  ;;  %v3485_v29 = vld [vmem:[%s4354_s1 + $0x40] sm:$0xff]  ;;  %v2710_v35 = vld [vmem:[%s3883_s30 + $0x10] sm:$0xf0] }
  0x16   : > { %1581 = vmatpush.bf16.msra.mxu1 %v3490_v9  ;;  %v3494_v26 = vld [vmem:[%s4354_s1 + $0x88] sm:$0xff]  ;;  %v3493_v30 = vld [vmem:[%s4354_s1 + $0x80] sm:$0xff]  ;;  %v3352_v37 = vld [vmem:[%s3883_s30 + $0x14] sm:$0xf0] }
  0x17   : > { %1750 = vmatpush.bf16.msra.mxu2 %v3498_v10  ;;  %v3502_v27 = vld [vmem:[%s4354_s1 + $0xc8] sm:$0xff]  ;;  %v3501_v31 = vld [vmem:[%s4354_s1 + $0xc0] sm:$0xff]  ;;  %v2718_v39 = vld [vmem:[%s3883_s30 + $0x18] sm:$0xf0] }
  0x18   : > { %1919 = vmatpush.bf16.msra.mxu3 %v3506_v11  ;;  %v2708_v32 = vld [vmem:[%s3883_s30] sm:$0xf]  ;;  %v3349_v34 = vld [vmem:[%s3883_s30 + $0x4] sm:$0xf]  ;;  %v2716_v36 = vld [vmem:[%s3883_s30 + $0x8] sm:$0xf] }
  0x19   : > { %1413 = vmatpush.bf16.msra.mxu0 %v3481_v12  ;;  %v3350_v38 = vld [vmem:[%s3883_s30 + $0xc] sm:$0xf]  ;;  %v2709_v40 = vor.u32 %v3351_v33, %v2708_v32  ;;  %v2713_v41 = vor.u32 %v3349_v34, %v2710_v35  ;;  %v2717_v42 = vor.u32 %v3352_v37, %v2716_v36  ;;  %v2724_v44 = vld [vmem:[%s3883_s30 + $0x20] sm:$0xf]  ;;  %v3355_v45 = vld [vmem:[%s3883_s30 + $0x2c] sm:$0xf0] }
  0x1a   : > { %1582 = vmatpush.bf16.msra.mxu1 %v3489_v13  ;;  %v2721_v43 = vor.u32 %v3350_v38, %v2718_v39  ;;  %v3353_v46 = vld [vmem:[%s3883_s30 + $0x24] sm:$0xf]  ;;  %v2726_v47 = vld [vmem:[%s3883_s30 + $0x30] sm:$0xf0]  ;;  %v2732_v48 = vld [vmem:[%s3883_s30 + $0x28] sm:$0xf]  ;;  %v2725_v52 = vor.u32 %v3355_v45, %v2724_v44 }
  0x1b   : > { %1751 = vmatpush.bf16.msra.mxu2 %v3497_v14  ;;  %v3356_v49 = vld [vmem:[%s3883_s30 + $0x34] sm:$0xf0]  ;;  %v3354_v50 = vld [vmem:[%s3883_s30 + $0x2c] sm:$0xf]  ;;  %v2734_v51 = vld [vmem:[%s3883_s30 + $0x38] sm:$0xf0]  ;;  %v2729_v53 = vor.u32 %v3353_v46, %v2726_v47 }
  0x1c   : > { %1920 = vmatpush.bf16.msra.mxu3 %v3505_v15  ;;  %v2733_v54 = vor.u32 %v3356_v49, %v2732_v48  ;;  %v2737_v55 = vor.u32 %v3354_v50, %v2734_v51  ;;  %v2740_v56 = vld [vmem:[%s3883_s30 + $0x40] sm:$0xf]  ;;  %v3359_v57 = vld [vmem:[%s3883_s30 + $0x4c] sm:$0xf0]  ;;  %v3357_v58 = vld [vmem:[%s3883_s30 + $0x44] sm:$0xf] }
  0x1d   : > { %1414 = vmatpush.bf16.msra.mxu0 %v3480_v16  ;;  %v2742_v59 = vld [vmem:[%s3883_s30 + $0x50] sm:$0xf0]  ;;  %v2748_v60 = vld [vmem:[%s3883_s30 + $0x48] sm:$0xf]  ;;  %v3360_v61 = vld [vmem:[%s3883_s30 + $0x54] sm:$0xf0]  ;;  %v2741_v0 = vor.u32 %v3359_v57, %v2740_v56 }
  0x1e   : > { %1583 = vmatpush.bf16.msra.mxu1 %v3488_v17  ;;  %v3358_v62 = vld [vmem:[%s3883_s30 + $0x4c] sm:$0xf]  ;;  %v2750_v63 = vld [vmem:[%s3883_s30 + $0x58] sm:$0xf0]  ;;  %v2745_v1 = vor.u32 %v3357_v58, %v2742_v59  ;;  %v2749_v2 = vor.u32 %v3360_v61, %v2748_v60  ;;  %v2756_v4 = vld [vmem:[%s3883_s30 + $0x60] sm:$0xf] }
  0x1f   : > { %1752 = vmatpush.bf16.msra.mxu2 %v3496_v18  ;;  %v2753_v3 = vor.u32 %v3358_v62, %v2750_v63  ;;  %v3363_v5 = vld [vmem:[%s3883_s30 + $0x6c] sm:$0xf0]  ;;  %v3361_v6 = vld [vmem:[%s3883_s30 + $0x64] sm:$0xf]  ;;  %v2758_v7 = vld [vmem:[%s3883_s30 + $0x70] sm:$0xf0] }
  0x20   : > { %1921 = vmatpush.bf16.msra.mxu3 %v3504_v19  ;;  %v2764_v8 = vld [vmem:[%s3883_s30 + $0x68] sm:$0xf]  ;;  %v3364_v9 = vld [vmem:[%s3883_s30 + $0x74] sm:$0xf0]  ;;  %v3362_v10 = vld [vmem:[%s3883_s30 + $0x6c] sm:$0xf]  ;;  %v2757_v12 = vor.u32 %v3363_v5, %v2756_v4  ;;  %v2761_v13 = vor.u32 %v3361_v6, %v2758_v7 }
  0x21   : > { %1415 = vmatpush.bf16.msra.mxu0 %v3479_v20  ;;  %v2766_v11 = vld [vmem:[%s3883_s30 + $0x78] sm:$0xf0]  ;;  %v2765_v14 = vor.u32 %v3364_v9, %v2764_v8  ;;  %v2772_v16 = vld [vmem:[%s3883_s30 + $0x80] sm:$0xf]  ;;  %v3367_v17 = vld [vmem:[%s3883_s30 + $0x8c] sm:$0xf0] }
  0x22   : > { %1584 = vmatpush.bf16.msra.mxu1 %v3487_v21  ;;  %v2769_v15 = vor.u32 %v3362_v10, %v2766_v11  ;;  %v3365_v18 = vld [vmem:[%s3883_s30 + $0x84] sm:$0xf]  ;;  %v2774_v19 = vld [vmem:[%s3883_s30 + $0x90] sm:$0xf0]  ;;  %v2780_v20 = vld [vmem:[%s3883_s30 + $0x88] sm:$0xf] }
  0x23   : > { %1753 = vmatpush.bf16.msra.mxu2 %v3495_v22  ;;  %v3368_v21 = vld [vmem:[%s3883_s30 + $0x94] sm:$0xf0]  ;;  %v3366_v22 = vld [vmem:[%s3883_s30 + $0x8c] sm:$0xf]  ;;  %v2796_v32 = vld [vmem:[%s3883_s30 + $0xa8] sm:$0xf] }
  0x24   : > { %1922 = vmatpush.bf16.msra.mxu3 %v3503_v23  ;;  %v2782_v23 = vld [vmem:[%s3883_s30 + $0x98] sm:$0xf0]  ;;  %v3372_v33 = vld [vmem:[%s3883_s30 + $0xb4] sm:$0xf0]  ;;  %v3370_v34 = vld [vmem:[%s3883_s30 + $0xac] sm:$0xf] }
  0x25   : > { %1416 = vmatpush.bf16.msra.mxu0 %v3478_v24  ;;  %v2773_v24 = vor.u32 %v3367_v17, %v2772_v16  ;;  %v2798_v35 = vld [vmem:[%s3883_s30 + $0xb8] sm:$0xf0]  ;;  %v2797_v38 = vor.u32 %v3372_v33, %v2796_v32  ;;  %v2812_v44 = vld [vmem:[%s3883_s30 + $0xc8] sm:$0xf]  ;;  %v3376_v45 = vld [vmem:[%s3883_s30 + $0xd4] sm:$0xf0] }
  0x26   : > { %1585 = vmatpush.bf16.msra.mxu1 %v3486_v25  ;;  %v2777_v25 = vor.u32 %v3365_v18, %v2774_v19  ;;  %v2801_v39 = vor.u32 %v3370_v34, %v2798_v35  ;;  %v3374_v46 = vld [vmem:[%s3883_s30 + $0xcc] sm:$0xf]  ;;  %v2814_v47 = vld [vmem:[%s3883_s30 + $0xd8] sm:$0xf0]  ;;  %v2813_v50 = vor.u32 %v3376_v45, %v2812_v44  ;;  %v2828_v56 = vld [vmem:[%s3883_s30 + $0xe8] sm:$0xf] }
  0x27   : > { %1754 = vmatpush.bf16.msra.mxu2 %v3494_v26  ;;  %v2781_v26 = vor.u32 %v3368_v21, %v2780_v20  ;;  %v2817_v51 = vor.u32 %v3374_v46, %v2814_v47  ;;  %v3380_v57 = vld [vmem:[%s3883_s30 + $0xf4] sm:$0xf0]  ;;  %v3378_v58 = vld [vmem:[%s3883_s30 + $0xec] sm:$0xf]  ;;  %v2830_v59 = vld [vmem:[%s3883_s30 + $0xf8] sm:$0xf0] }
  0x28   : > { %1923 = vmatpush.bf16.msra.mxu3 %v3502_v27  ;;  %v2785_v27 = vor.u32 %v3366_v22, %v2782_v23  ;;  %v2829_v62 = vor.u32 %v3380_v57, %v2828_v56  ;;  %v2833_v63 = vor.u32 %v3378_v58, %v2830_v59  ;;  %v2844_v4 = vld [vmem:[%s3883_s30 + $0x108] sm:$0xf]  ;;  %v3384_v5 = vld [vmem:[%s3883_s30 + $0x114] sm:$0xf0]  ;;  %v3382_v6 = vld [vmem:[%s3883_s30 + $0x10c] sm:$0xf] }
  0x29   : > { %1417 = vmatpush.bf16.msra.mxu0 %v3477_v28  ;;  %v2788_v28 = vld [vmem:[%s3883_s30 + $0xa0] sm:$0xf]  ;;  %v2846_v7 = vld [vmem:[%s3883_s30 + $0x118] sm:$0xf0]  ;;  %v3387_v22 = vld [vmem:[%s3883_s30 + $0x12c] sm:$0xf0] }
  0x2a   : > { %1586 = vmatpush.bf16.msra.mxu1 %v3485_v29  ;;  %v3371_v29 = vld [vmem:[%s3883_s30 + $0xac] sm:$0xf0]  ;;  %v3978_v20 = vld [vmem:[%s4355_s2] ss:$0 sm:$0xff]  ;;  %v3389_v58 = vld [vmem:[%s3883_s30 + $0x144] sm:$0xf] }
  0x2b   : > { %1755 = vmatpush.bf16.msra.mxu2 %v3493_v30  ;;  %v3369_v30 = vld [vmem:[%s3883_s30 + $0xa4] sm:$0xf]  ;;  %v2789_v36 = vor.u32 %v3371_v29, %v2788_v28  ;;  %v2852_v21 = vld [vmem:[%s3883_s30 + $0x120] sm:$0xf]  ;;  %v3386_v28 = vld [vmem:[%s3883_s30 + $0x12c] sm:$0xf] }
  0x2c   : > { %1924 = vmatpush.bf16.msra.mxu3 %v3501_v31  ;;  %1418 = vmatmul.bf16.vlgmr.msra.gmra.mxu0 %v2709_v40  ;;  %v2790_v31 = vld [vmem:[%s3883_s30 + $0xb0] sm:$0xf0]  ;;  %v2804_v40 = vld [vmem:[%s3883_s30 + $0xc0] sm:$0xf]  ;;  %v2862_v29 = vld [vmem:[%s3883_s30 + $0x138] sm:$0xf0]  ;;  %v2853_v33 = vor.u32 %v3387_v22, %v2852_v21 }
  0x2d   : > { %1587 = vmatmul.bf16.vlgmr.msra.gmra.mxu1 %v2713_v41  ;;  %v2793_v37 = vor.u32 %v3369_v30, %v2790_v31  ;;  %v3375_v41 = vld [vmem:[%s3883_s30 + $0xcc] sm:$0xf0]  ;;  %v2870_v59 = vld [vmem:[%s3883_s30 + $0x150] sm:$0xf0] }
  0x2e   : > { %1756 = vmatmul.bf16.vlgmr.msra.gmra.mxu2 %v2717_v42  ;;  %v3373_v42 = vld [vmem:[%s3883_s30 + $0xc4] sm:$0xf]  ;;  %v2805_v48 = vor.u32 %v3375_v41, %v2804_v40  ;;  %v2865_v41 = vor.u32 %v3386_v28, %v2862_v29  ;;  %v3391_v56 = vld [vmem:[%s3883_s30 + $0x14c] sm:$0xf0]  ;;  %v2886_v29 = vld [vmem:[%s3883_s30 + $0x170] sm:$0xf0] }
  0x2f   : > { %1925 = vmatmul.bf16.vlgmr.msra.gmra.mxu3 %v2721_v43  ;;  %v2806_v43 = vld [vmem:[%s3883_s30 + $0xd0] sm:$0xf0] }
  0x30   : > { %v2809_v49 = vor.u32 %v3373_v42, %v2806_v43 }
  0x3c   : > { %1423 = vmatmul.bf16.gmra.mxu0 %v2725_v52  ;;  %v2820_v52 = vld [vmem:[%s3883_s30 + $0xe0] sm:$0xf] }
  0x3d   : > { %1592 = vmatmul.bf16.gmra.mxu1 %v2729_v53  ;;  %v3379_v53 = vld [vmem:[%s3883_s30 + $0xec] sm:$0xf0] }
  0x3e   : > { %1761 = vmatmul.bf16.gmra.mxu2 %v2733_v54  ;;  %v3377_v54 = vld [vmem:[%s3883_s30 + $0xe4] sm:$0xf]  ;;  %v2821_v60 = vor.u32 %v3379_v53, %v2820_v52 }
  0x3f   : > { %1930 = vmatmul.bf16.gmra.mxu3 %v2737_v55  ;;  %v2822_v55 = vld [vmem:[%s3883_s30 + $0xf0] sm:$0xf0] }
  0x40   : > { %v2825_v61 = vor.u32 %v3377_v54, %v2822_v55  ;;  %v2868_v55 = vld [vmem:[%s3883_s30 + $0x140] sm:$0xf] }
  0x4c   : > { %1428 = vmatmul.bf16.gmra.mxu0 %v2741_v0  ;;  %v2836_v0 = vld [vmem:[%s3883_s30 + $0x100] sm:$0xf] }
  0x4d   : > { %1597 = vmatmul.bf16.gmra.mxu1 %v2745_v1  ;;  %v3383_v1 = vld [vmem:[%s3883_s30 + $0x10c] sm:$0xf0] }
  0x4e   : > { %1766 = vmatmul.bf16.gmra.mxu2 %v2749_v2  ;;  %v3381_v2 = vld [vmem:[%s3883_s30 + $0x104] sm:$0xf]  ;;  %v2837_v8 = vor.u32 %v3383_v1, %v2836_v0 }
  0x4f   : > { %1935 = vmatmul.bf16.gmra.mxu3 %v2753_v3  ;;  %v2838_v3 = vld [vmem:[%s3883_s30 + $0x110] sm:$0xf0] }
  0x50   : > { %v2841_v9 = vor.u32 %v3381_v2, %v2838_v3  ;;  %v2869_v3 = vor.u32 %v3391_v56, %v2868_v55 }
  0x5c   : > { %1433 = vmatmul.bf16.gmra.mxu0 %v2757_v12  ;;  %v2845_v12 = vor.u32 %v3384_v5, %v2844_v4  ;;  %v2873_v4 = vor.u32 %v3389_v58, %v2870_v59  ;;  %v2900_v59 = vld [vmem:[%s3883_s30 + $0x180] sm:$0xf] }
  0x5d   : > { %1602 = vmatmul.bf16.gmra.mxu1 %v2761_v13  ;;  %v2849_v13 = vor.u32 %v3382_v6, %v2846_v7 }
  0x5e   : > { %1771 = vmatmul.bf16.gmra.mxu2 %v2765_v14 }
  0x5f   : > { %1940 = vmatmul.bf16.gmra.mxu3 %v2769_v15 }
  0x6c   : > { %1438 = vmatmul.bf16.gmra.mxu0 %v2773_v24  ;;  %v3385_v24 = vld [vmem:[%s3883_s30 + $0x124] sm:$0xf] }
  0x6d   : > { %1607 = vmatmul.bf16.gmra.mxu1 %v2777_v25  ;;  %v2854_v25 = vld [vmem:[%s3883_s30 + $0x130] sm:$0xf0] }
  0x6e   : > { %1776 = vmatmul.bf16.gmra.mxu2 %v2781_v26  ;;  %v2860_v26 = vld [vmem:[%s3883_s30 + $0x128] sm:$0xf]  ;;  %v2857_v34 = vor.u32 %v3385_v24, %v2854_v25  ;;  %v2884_v25 = vld [vmem:[%s3883_s30 + $0x160] sm:$0xf] }
  0x6f   : > { %1945 = vmatmul.bf16.gmra.mxu3 %v2785_v27  ;;  %v3388_v27 = vld [vmem:[%s3883_s30 + $0x134] sm:$0xf0] }
  0x70   : > { %v2861_v40 = vor.u32 %v3388_v27, %v2860_v26  ;;  %v3395_v26 = vld [vmem:[%s3883_s30 + $0x16c] sm:$0xf0]  ;;  %v3393_v27 = vld [vmem:[%s3883_s30 + $0x164] sm:$0xf] }
  0x7c   : > { %1443 = vmatmul.bf16.gmra.mxu0 %v2789_v36  ;;  %v3992_v36 = vld [vmem:[%s4356_s3] ss:$0 sm:$0xff] }
  0x7d   : > { %1612 = vmatmul.bf16.gmra.mxu1 %v2793_v37 }
  0x7e   : > { %1781 = vmatmul.bf16.gmra.mxu2 %v2797_v38 }
  0x7f   : > { %1950 = vmatmul.bf16.gmra.mxu3 %v2801_v39 }
  0x8c   : > { %1448 = vmatmul.bf16.gmra.mxu0 %v2805_v48 }
  0x8d   : > { %1617 = vmatmul.bf16.gmra.mxu1 %v2809_v49 }
  0x8e   : > { %1786 = vmatmul.bf16.gmra.mxu2 %v2813_v50 }
  0x8f   : > { %1955 = vmatmul.bf16.gmra.mxu3 %v2817_v51 }
  0x9c   : > { %1453 = vmatmul.bf16.gmra.mxu0 %v2821_v60  ;;  %v2876_v60 = vld [vmem:[%s3883_s30 + $0x148] sm:$0xf] }
  0x9d   : > { %1622 = vmatmul.bf16.gmra.mxu1 %v2825_v61  ;;  %v3392_v61 = vld [vmem:[%s3883_s30 + $0x154] sm:$0xf0] }
  0x9e   : > { %1791 = vmatmul.bf16.gmra.mxu2 %v2829_v62  ;;  %v3390_v62 = vld [vmem:[%s3883_s30 + $0x14c] sm:$0xf] }
  0x9f   : > { %1960 = vmatmul.bf16.gmra.mxu3 %v2833_v63  ;;  %v2878_v63 = vld [vmem:[%s3883_s30 + $0x158] sm:$0xf0] }
  0xa9   : > { %v1419_v10 = vpop.f32.mrf.mxu0 }
  0xaa   : > { %v1588_v11 = vpop.f32.mrf.mxu1 }
  0xab   : > { %v1589_v14 = vadd.f32 %v1588_v11, %v1419_v10  ;;  %v2881_v10 = vor.u32 %v3390_v62, %v2878_v63  ;;  %v2902_v63 = vld [vmem:[%s3883_s30 + $0x190] sm:$0xf0] }
  0xac   : > { %1458 = vmatmul.bf16.gmra.mxu0 %v2837_v8 }
  0xad   : > { %1627 = vmatmul.bf16.gmra.mxu1 %v2841_v9  ;;  %v2877_v9 = vor.u32 %v3392_v61, %v2876_v60  ;;  %v3399_v60 = vld [vmem:[%s3883_s30 + $0x18c] sm:$0xf0]  ;;  %v3397_v61 = vld [vmem:[%s3883_s30 + $0x184] sm:$0xf] }
  0xae   : > { %1796 = vmatmul.bf16.gmra.mxu2 %v2845_v12 }
  0xaf   : > { %1965 = vmatmul.bf16.gmra.mxu3 %v2849_v13 }
  0xb1   : > { %v1757_v15 = vpop.f32.mrf.mxu2  ;;  %v1421_v18 = vpop.f32.mrf.mxu0 }
  0xb2   : > { %v1926_v16 = vpop.f32.mrf.mxu3  ;;  %v1758_v17 = vadd.f32 %v1757_v15, %v1589_v14  ;;  %v1590_v19 = vpop.f32.mrf.mxu1 }
  0xb3   : > { %v1591_v30 = vadd.f32 %v1590_v19, %v1421_v18 }
  0xb4   : > { %v1927_v23 = vadd.f32 %v1926_v16, %v1758_v17 }
  0xb6   : > { %v2285_v35 = vmul.f32 %v3978_v20, %v1927_v23 }
  0xb8   : > { %v2353_v43 = vadd.f32 %v3992_v36, %v2285_v35 }
  0xb9   : > { %v1759_v31 = vpop.f32.mrf.mxu2  ;;  %v1424_v38 = vpop.f32.mrf.mxu0 }
  0xba   : > { %v1928_v32 = vpop.f32.mrf.mxu3  ;;  %v1760_v37 = vadd.f32 %v1759_v31, %v1591_v30  ;;  %v1593_v39 = vpop.f32.mrf.mxu1  ;;  %v2417_v49 = vmax.f32 %v2353_v43, 0.0  ;;  %v2892_v30 = vld [vmem:[%s3883_s30 + $0x168] sm:$0xf]  ;;  %v3396_v31 = vld [vmem:[%s3883_s30 + $0x174] sm:$0xf0] }
  0xbb   : > { %v1594_v45 = vadd.f32 %v1593_v39, %v1424_v38  ;;  %v2885_v38 = vor.u32 %v3395_v26, %v2884_v25  ;;  %v2889_v39 = vor.u32 %v3393_v27, %v2886_v29  ;;  %v2916_v29 = vld [vmem:[%s3883_s30 + $0x1a0] sm:$0xf] }
  0xbc   : > { %v1929_v42 = vadd.f32 %v1928_v32, %v1760_v37  ;;  %1463 = vmatmul.bf16.gmra.mxu0 %v2853_v33  ;;  %v3394_v32 = vld [vmem:[%s3883_s30 + $0x16c] sm:$0xf]  ;;  %v2894_v33 = vld [vmem:[%s3883_s30 + $0x178] sm:$0xf0] }
  0xbd   : > { %1632 = vmatmul.bf16.gmra.mxu1 %v2857_v34 }
  0xbe   : > { %v2286_v44 = vmul.f32 %v3978_v20, %v1929_v42  ;;  %1801 = vmatmul.bf16.gmra.mxu2 %v2861_v40 }
  0xbf   : > { %1970 = vmatmul.bf16.gmra.mxu3 %v2865_v41 }
  0xc0   : > { %v2354_v46 = vadd.f32 %v3992_v36, %v2286_v44  ;;  %v2893_v44 = vor.u32 %v3396_v31, %v2892_v30  ;;  %v3403_v30 = vld [vmem:[%s3883_s30 + $0x1ac] sm:$0xf0]  ;;  %v3401_v31 = vld [vmem:[%s3883_s30 + $0x1a4] sm:$0xf] }
  0xc1   : > { %v1762_v47 = vpop.f32.mrf.mxu2  ;;  %v1426_v52 = vpop.f32.mrf.mxu0 }
  0xc2   : > { %v1931_v48 = vpop.f32.mrf.mxu3  ;;  %v2418_v50 = vmax.f32 %v2354_v46, 0.0  ;;  %v1763_v51 = vadd.f32 %v1762_v47, %v1594_v45  ;;  %v1595_v53 = vpop.f32.mrf.mxu1  ;;  %v2897_v45 = vor.u32 %v3394_v32, %v2894_v33  ;;  %v2918_v33 = vld [vmem:[%s3883_s30 + $0x1b0] sm:$0xf0] }
  0xc3   : > { %v1596_v0 = vadd.f32 %v1595_v53, %v1426_v52 }
  0xc4   : > { %v3512_v54 = vpack.c.bf16 %v2418_v50, %v2417_v49  ;;  %v1932_v57 = vadd.f32 %v1931_v48, %v1763_v51 }
  0xc6   : > { %3513 = vst [vmem:[%s4001_s29] sm:$0xff] %v3512_v54   ;;  %v2287_v5 = vmul.f32 %v3978_v20, %v1932_v57 }
  0xc8   : > { %v2355_v12 = vadd.f32 %v3992_v36, %v2287_v5 }
  0xc9   : > { %v1764_v1 = vpop.f32.mrf.mxu2  ;;  %v1429_v7 = vpop.f32.mrf.mxu0 }
  0xca   : > { %v1933_v2 = vpop.f32.mrf.mxu3  ;;  %v1765_v6 = vadd.f32 %v1764_v1, %v1596_v0  ;;  %v1598_v8 = vpop.f32.mrf.mxu1  ;;  %v2419_v18 = vmax.f32 %v2355_v12, 0.0  ;;  %v2908_v0 = vld [vmem:[%s3883_s30 + $0x188] sm:$0xf]  ;;  %v3400_v1 = vld [vmem:[%s3883_s30 + $0x194] sm:$0xf0] }
  0xcb   : > { %v1599_v14 = vadd.f32 %v1598_v8, %v1429_v7  ;;  %v2901_v7 = vor.u32 %v3399_v60, %v2900_v59  ;;  %v2905_v8 = vor.u32 %v3397_v61, %v2902_v63  ;;  %v2932_v63 = vld [vmem:[%s3883_s30 + $0x1c0] sm:$0xf] }
  0xcc   : > { %v1934_v11 = vadd.f32 %v1933_v2, %v1765_v6  ;;  %1468 = vmatmul.bf16.gmra.mxu0 %v2869_v3  ;;  %v3398_v2 = vld [vmem:[%s3883_s30 + $0x18c] sm:$0xf]  ;;  %v2910_v3 = vld [vmem:[%s3883_s30 + $0x198] sm:$0xf0] }
  0xcd   : > { %1637 = vmatmul.bf16.gmra.mxu1 %v2873_v4 }
  0xce   : > { %v2288_v13 = vmul.f32 %v3978_v20, %v1934_v11  ;;  %1806 = vmatmul.bf16.gmra.mxu2 %v2877_v9 }
  0xcf   : > { %1975 = vmatmul.bf16.gmra.mxu3 %v2881_v10 }
  0xd0   : > { %v2356_v15 = vadd.f32 %v3992_v36, %v2288_v13  ;;  %v2909_v13 = vor.u32 %v3400_v1, %v2908_v0  ;;  %v3407_v0 = vld [vmem:[%s3883_s30 + $0x1cc] sm:$0xf0]  ;;  %v3405_v1 = vld [vmem:[%s3883_s30 + $0x1c4] sm:$0xf] }
  0xd1   : > { %v1767_v16 = vpop.f32.mrf.mxu2  ;;  %v1431_v22 = vpop.f32.mrf.mxu0 }
  0xd2   : > { %v1936_v17 = vpop.f32.mrf.mxu3  ;;  %v2420_v19 = vmax.f32 %v2356_v15, 0.0  ;;  %v1768_v21 = vadd.f32 %v1767_v16, %v1599_v14  ;;  %v1600_v23 = vpop.f32.mrf.mxu1  ;;  %v2913_v14 = vor.u32 %v3398_v2, %v2910_v3  ;;  %v2934_v3 = vld [vmem:[%s3883_s30 + $0x1d0] sm:$0xf0] }
  0xd3   : > { %v1601_v34 = vadd.f32 %v1600_v23, %v1431_v22 }
  0xd4   : > { %v3517_v24 = vpack.c.bf16 %v2420_v19, %v2419_v18  ;;  %v1937_v28 = vadd.f32 %v1936_v17, %v1768_v21 }
  0xd6   : > { %3669 = vst [vmem:[%s4001_s29 + $0x8] sm:$0xff] %v3517_v24   ;;  %v2289_v40 = vmul.f32 %v3978_v20, %v1937_v28 }
  0xd8   : > { %v2357_v47 = vadd.f32 %v3992_v36, %v2289_v40 }
  0xd9   : > { %v1769_v35 = vpop.f32.mrf.mxu2  ;;  %v1434_v42 = vpop.f32.mrf.mxu0 }
  0xda   : > { %v1938_v37 = vpop.f32.mrf.mxu3  ;;  %v1770_v41 = vadd.f32 %v1769_v35, %v1601_v34  ;;  %v1603_v43 = vpop.f32.mrf.mxu1  ;;  %v2421_v53 = vmax.f32 %v2357_v47, 0.0  ;;  %v2924_v34 = vld [vmem:[%s3883_s30 + $0x1a8] sm:$0xf]  ;;  %v3404_v35 = vld [vmem:[%s3883_s30 + $0x1b4] sm:$0xf0] }
  0xdb   : > { %v1604_v49 = vadd.f32 %v1603_v43, %v1434_v42  ;;  %v2917_v42 = vor.u32 %v3403_v30, %v2916_v29  ;;  %v2921_v43 = vor.u32 %v3401_v31, %v2918_v33  ;;  %v2948_v33 = vld [vmem:[%s3883_s30 + $0x1e0] sm:$0xf] }
  0xdc   : > { %v1939_v46 = vadd.f32 %v1938_v37, %v1770_v41  ;;  %1473 = vmatmul.bf16.gmra.mxu0 %v2885_v38  ;;  %v3402_v37 = vld [vmem:[%s3883_s30 + $0x1ac] sm:$0xf]  ;;  %v2926_v38 = vld [vmem:[%s3883_s30 + $0x1b8] sm:$0xf0] }
  0xdd   : > { %1642 = vmatmul.bf16.gmra.mxu1 %v2889_v39 }
  0xde   : > { %v2290_v48 = vmul.f32 %v3978_v20, %v1939_v46  ;;  %1811 = vmatmul.bf16.gmra.mxu2 %v2893_v44 }
  0xdf   : > { %1980 = vmatmul.bf16.gmra.mxu3 %v2897_v45 }
  0xe0   : > { %v2358_v50 = vadd.f32 %v3992_v36, %v2290_v48  ;;  %v2925_v48 = vor.u32 %v3404_v35, %v2924_v34  ;;  %v3411_v34 = vld [vmem:[%s3883_s30 + $0x1ec] sm:$0xf0]  ;;  %v3409_v35 = vld [vmem:[%s3883_s30 + $0x1e4] sm:$0xf] }
  0xe1   : > { %v1772_v51 = vpop.f32.mrf.mxu2  ;;  %v1436_v56 = vpop.f32.mrf.mxu0 }
  0xe2   : > { %v1941_v52 = vpop.f32.mrf.mxu3  ;;  %v2422_v54 = vmax.f32 %v2358_v50, 0.0  ;;  %v1773_v55 = vadd.f32 %v1772_v51, %v1604_v49  ;;  %v1605_v57 = vpop.f32.mrf.mxu1  ;;  %v2929_v49 = vor.u32 %v3402_v37, %v2926_v38  ;;  %v2950_v38 = vld [vmem:[%s3883_s30 + $0x1f0] sm:$0xf0] }
  0xe3   : > { %v1606_v4 = vadd.f32 %v1605_v57, %v1436_v56 }
  0xe4   : > { %v3522_v58 = vpack.c.bf16 %v2422_v54, %v2421_v53  ;;  %v1942_v62 = vadd.f32 %v1941_v52, %v1773_v55 }
  0xe6   : > { %3670 = vst [vmem:[%s4001_s29 + $0x10] sm:$0xff] %v3522_v58   ;;  %v2291_v9 = vmul.f32 %v3978_v20, %v1942_v62 }
  0xe8   : > { %v2359_v16 = vadd.f32 %v3992_v36, %v2291_v9 }
  0xe9   : > { %v1774_v5 = vpop.f32.mrf.mxu2  ;;  %v1439_v11 = vpop.f32.mrf.mxu0 }
  0xea   : > { %v1943_v6 = vpop.f32.mrf.mxu3  ;;  %v1775_v10 = vadd.f32 %v1774_v5, %v1606_v4  ;;  %v1608_v12 = vpop.f32.mrf.mxu1  ;;  %v2423_v23 = vmax.f32 %v2359_v16, 0.0  ;;  %v2940_v4 = vld [vmem:[%s3883_s30 + $0x1c8] sm:$0xf]  ;;  %v3408_v5 = vld [vmem:[%s3883_s30 + $0x1d4] sm:$0xf0] }
  0xeb   : > { %v1609_v18 = vadd.f32 %v1608_v12, %v1439_v11  ;;  %v2933_v11 = vor.u32 %v3407_v0, %v2932_v63  ;;  %v2937_v12 = vor.u32 %v3405_v1, %v2934_v3  ;;  %v2964_v3 = vld [vmem:[%s3883_s30 + $0x200] sm:$0xf] }
  0xec   : > { %v1944_v15 = vadd.f32 %v1943_v6, %v1775_v10  ;;  %1478 = vmatmul.bf16.gmra.mxu0 %v2901_v7  ;;  %v3406_v6 = vld [vmem:[%s3883_s30 + $0x1cc] sm:$0xf]  ;;  %v2942_v7 = vld [vmem:[%s3883_s30 + $0x1d8] sm:$0xf0] }
  0xed   : > { %1647 = vmatmul.bf16.gmra.mxu1 %v2905_v8 }
  0xee   : > { %v2292_v17 = vmul.f32 %v3978_v20, %v1944_v15  ;;  %1816 = vmatmul.bf16.gmra.mxu2 %v2909_v13 }
  0xef   : > { %1985 = vmatmul.bf16.gmra.mxu3 %v2913_v14 }
  0xf0   : > { %v2360_v19 = vadd.f32 %v3992_v36, %v2292_v17  ;;  %v2941_v17 = vor.u32 %v3408_v5, %v2940_v4  ;;  %v3415_v4 = vld [vmem:[%s3883_s30 + $0x20c] sm:$0xf0]  ;;  %v3413_v5 = vld [vmem:[%s3883_s30 + $0x204] sm:$0xf] }
  0xf1   : > { %v1777_v21 = vpop.f32.mrf.mxu2  ;;  %v1441_v26 = vpop.f32.mrf.mxu0 }
  0xf2   : > { %v1946_v22 = vpop.f32.mrf.mxu3  ;;  %v2424_v24 = vmax.f32 %v2360_v19, 0.0  ;;  %v1778_v25 = vadd.f32 %v1777_v21, %v1609_v18  ;;  %v1610_v27 = vpop.f32.mrf.mxu1  ;;  %v2945_v18 = vor.u32 %v3406_v6, %v2942_v7  ;;  %v2966_v7 = vld [vmem:[%s3883_s30 + $0x210] sm:$0xf0] }
  0xf3   : > { %v1611_v39 = vadd.f32 %v1610_v27, %v1441_v26 }
  0xf4   : > { %v3527_v28 = vpack.c.bf16 %v2424_v24, %v2423_v23  ;;  %v1947_v32 = vadd.f32 %v1946_v22, %v1778_v25 }
  0xf6   : > { %3671 = vst [vmem:[%s4001_s29 + $0x18] sm:$0xff] %v3527_v28   ;;  %v2293_v44 = vmul.f32 %v3978_v20, %v1947_v32 }
  0xf8   : > { %v2361_v51 = vadd.f32 %v3992_v36, %v2293_v44 }
  0xf9   : > { %v1779_v40 = vpop.f32.mrf.mxu2  ;;  %v1444_v46 = vpop.f32.mrf.mxu0 }
  0xfa   : > { %v1948_v41 = vpop.f32.mrf.mxu3  ;;  %v1780_v45 = vadd.f32 %v1779_v40, %v1611_v39  ;;  %v1613_v47 = vpop.f32.mrf.mxu1  ;;  %v2425_v57 = vmax.f32 %v2361_v51, 0.0  ;;  %v2956_v39 = vld [vmem:[%s3883_s30 + $0x1e8] sm:$0xf]  ;;  %v3412_v40 = vld [vmem:[%s3883_s30 + $0x1f4] sm:$0xf0] }
  0xfb   : > { %v1614_v53 = vadd.f32 %v1613_v47, %v1444_v46  ;;  %v2949_v46 = vor.u32 %v3411_v34, %v2948_v33  ;;  %v2953_v47 = vor.u32 %v3409_v35, %v2950_v38  ;;  %v2980_v38 = vld [vmem:[%s3883_s30 + $0x220] sm:$0xf] }
  0xfc   : > { %v1949_v50 = vadd.f32 %v1948_v41, %v1780_v45  ;;  %1483 = vmatmul.bf16.gmra.mxu0 %v2917_v42  ;;  %v3410_v41 = vld [vmem:[%s3883_s30 + $0x1ec] sm:$0xf]  ;;  %v2958_v42 = vld [vmem:[%s3883_s30 + $0x1f8] sm:$0xf0] }
  0xfd   : > { %1652 = vmatmul.bf16.gmra.mxu1 %v2921_v43 }
  0xfe   : > { %v2294_v52 = vmul.f32 %v3978_v20, %v1949_v50  ;;  %1821 = vmatmul.bf16.gmra.mxu2 %v2925_v48 }
  0xff   : > { %1990 = vmatmul.bf16.gmra.mxu3 %v2929_v49 }
 0x100   : > { %v2362_v54 = vadd.f32 %v3992_v36, %v2294_v52  ;;  %v2957_v52 = vor.u32 %v3412_v40, %v2956_v39  ;;  %v3419_v39 = vld [vmem:[%s3883_s30 + $0x22c] sm:$0xf0]  ;;  %v3417_v40 = vld [vmem:[%s3883_s30 + $0x224] sm:$0xf] }
 0x101   : > { %v1782_v55 = vpop.f32.mrf.mxu2  ;;  %v1446_v60 = vpop.f32.mrf.mxu0 }
 0x102   : > { %v1951_v56 = vpop.f32.mrf.mxu3  ;;  %v2426_v58 = vmax.f32 %v2362_v54, 0.0  ;;  %v1783_v59 = vadd.f32 %v1782_v55, %v1614_v53  ;;  %v1615_v61 = vpop.f32.mrf.mxu1  ;;  %v2961_v53 = vor.u32 %v3410_v41, %v2958_v42  ;;  %v2982_v42 = vld [vmem:[%s3883_s30 + $0x230] sm:$0xf0] }
 0x103   : > { %v1616_v8 = vadd.f32 %v1615_v61, %v1446_v60 }
 0x104   : > { %v3532_v62 = vpack.c.bf16 %v2426_v58, %v2425_v57  ;;  %v1952_v2 = vadd.f32 %v1951_v56, %v1783_v59 }
 0x106   : > { %3672 = vst [vmem:[%s4001_s29 + $0x20] sm:$0xff] %v3532_v62   ;;  %v2295_v13 = vmul.f32 %v3978_v20, %v1952_v2 }
 0x108   : > { %v2363_v21 = vadd.f32 %v3992_v36, %v2295_v13 }
 0x109   : > { %v1784_v9 = vpop.f32.mrf.mxu2  ;;  %v1449_v15 = vpop.f32.mrf.mxu0 }
 0x10a   : > { %v1953_v10 = vpop.f32.mrf.mxu3  ;;  %v1785_v14 = vadd.f32 %v1784_v9, %v1616_v8  ;;  %v1618_v16 = vpop.f32.mrf.mxu1  ;;  %v2427_v27 = vmax.f32 %v2363_v21, 0.0  ;;  %v2972_v8 = vld [vmem:[%s3883_s30 + $0x208] sm:$0xf]  ;;  %v3416_v9 = vld [vmem:[%s3883_s30 + $0x214] sm:$0xf0] }
 0x10b   : > { %v1619_v23 = vadd.f32 %v1618_v16, %v1449_v15  ;;  %v2965_v15 = vor.u32 %v3415_v4, %v2964_v3  ;;  %v2969_v16 = vor.u32 %v3413_v5, %v2966_v7  ;;  %v2996_v7 = vld [vmem:[%s3883_s30 + $0x240] sm:$0xf] }
 0x10c   : > { %v1954_v19 = vadd.f32 %v1953_v10, %v1785_v14  ;;  %1488 = vmatmul.bf16.gmra.mxu0 %v2933_v11  ;;  %v3414_v10 = vld [vmem:[%s3883_s30 + $0x20c] sm:$0xf]  ;;  %v2974_v11 = vld [vmem:[%s3883_s30 + $0x218] sm:$0xf0] }
 0x10d   : > { %1657 = vmatmul.bf16.gmra.mxu1 %v2937_v12 }
 0x10e   : > { %v2296_v22 = vmul.f32 %v3978_v20, %v1954_v19  ;;  %1826 = vmatmul.bf16.gmra.mxu2 %v2941_v17 }
 0x10f   : > { %1995 = vmatmul.bf16.gmra.mxu3 %v2945_v18 }
 0x110   : > { %v2364_v24 = vadd.f32 %v3992_v36, %v2296_v22  ;;  %v2973_v22 = vor.u32 %v3416_v9, %v2972_v8  ;;  %v3423_v8 = vld [vmem:[%s3883_s30 + $0x24c] sm:$0xf0]  ;;  %v3421_v9 = vld [vmem:[%s3883_s30 + $0x244] sm:$0xf] }
 0x111   : > { %v1787_v25 = vpop.f32.mrf.mxu2  ;;  %v1451_v30 = vpop.f32.mrf.mxu0 }
 0x112   : > { %v1956_v26 = vpop.f32.mrf.mxu3  ;;  %v2428_v28 = vmax.f32 %v2364_v24, 0.0  ;;  %v1788_v29 = vadd.f32 %v1787_v25, %v1619_v23  ;;  %v1620_v31 = vpop.f32.mrf.mxu1  ;;  %v2977_v23 = vor.u32 %v3414_v10, %v2974_v11  ;;  %v2998_v11 = vld [vmem:[%s3883_s30 + $0x250] sm:$0xf0] }
 0x113   : > { %v1621_v43 = vadd.f32 %v1620_v31, %v1451_v30 }
 0x114   : > { %v3537_v32 = vpack.c.bf16 %v2428_v28, %v2427_v27  ;;  %v1957_v37 = vadd.f32 %v1956_v26, %v1788_v29 }
 0x116   : > { %3673 = vst [vmem:[%s4001_s29 + $0x28] sm:$0xff] %v3537_v32   ;;  %v2297_v48 = vmul.f32 %v3978_v20, %v1957_v37 }
 0x118   : > { %v2365_v55 = vadd.f32 %v3992_v36, %v2297_v48 }
 0x119   : > { %v1789_v44 = vpop.f32.mrf.mxu2  ;;  %v1454_v50 = vpop.f32.mrf.mxu0 }
 0x11a   : > { %v1958_v45 = vpop.f32.mrf.mxu3  ;;  %v1790_v49 = vadd.f32 %v1789_v44, %v1621_v43  ;;  %v1623_v51 = vpop.f32.mrf.mxu1  ;;  %v2429_v61 = vmax.f32 %v2365_v55, 0.0  ;;  %v2988_v43 = vld [vmem:[%s3883_s30 + $0x228] sm:$0xf]  ;;  %v3420_v44 = vld [vmem:[%s3883_s30 + $0x234] sm:$0xf0] }
 0x11b   : > { %v1624_v57 = vadd.f32 %v1623_v51, %v1454_v50  ;;  %v2981_v50 = vor.u32 %v3419_v39, %v2980_v38  ;;  %v2985_v51 = vor.u32 %v3417_v40, %v2982_v42  ;;  %v3012_v42 = vld [vmem:[%s3883_s30 + $0x260] sm:$0xf] }
 0x11c   : > { %v1959_v54 = vadd.f32 %v1958_v45, %v1790_v49  ;;  %1493 = vmatmul.bf16.gmra.mxu0 %v2949_v46  ;;  %v3418_v45 = vld [vmem:[%s3883_s30 + $0x22c] sm:$0xf]  ;;  %v2990_v46 = vld [vmem:[%s3883_s30 + $0x238] sm:$0xf0] }
 0x11d   : > { %1662 = vmatmul.bf16.gmra.mxu1 %v2953_v47 }
 0x11e   : > { %v2298_v56 = vmul.f32 %v3978_v20, %v1959_v54  ;;  %1831 = vmatmul.bf16.gmra.mxu2 %v2957_v52 }
 0x11f   : > { %2000 = vmatmul.bf16.gmra.mxu3 %v2961_v53 }
 0x120   : > { %v2366_v58 = vadd.f32 %v3992_v36, %v2298_v56  ;;  %v2989_v56 = vor.u32 %v3420_v44, %v2988_v43  ;;  %v3427_v43 = vld [vmem:[%s3883_s30 + $0x26c] sm:$0xf0]  ;;  %v3425_v44 = vld [vmem:[%s3883_s30 + $0x264] sm:$0xf] }
 0x121   : > { %v1792_v59 = vpop.f32.mrf.mxu2  ;;  %v1456_v0 = vpop.f32.mrf.mxu0 }
 0x122   : > { %v1961_v60 = vpop.f32.mrf.mxu3  ;;  %v2430_v62 = vmax.f32 %v2366_v58, 0.0  ;;  %v1793_v63 = vadd.f32 %v1792_v59, %v1624_v57  ;;  %v1625_v1 = vpop.f32.mrf.mxu1  ;;  %v2993_v57 = vor.u32 %v3418_v45, %v2990_v46  ;;  %v3014_v46 = vld [vmem:[%s3883_s30 + $0x270] sm:$0xf0] }
 0x123   : > { %v1626_v12 = vadd.f32 %v1625_v1, %v1456_v0 }
 0x124   : > { %v3542_v2 = vpack.c.bf16 %v2430_v62, %v2429_v61  ;;  %v1962_v6 = vadd.f32 %v1961_v60, %v1793_v63 }
 0x126   : > { %3674 = vst [vmem:[%s4001_s29 + $0x30] sm:$0xff] %v3542_v2   ;;  %v2299_v17 = vmul.f32 %v3978_v20, %v1962_v6 }
 0x128   : > { %v2367_v25 = vadd.f32 %v3992_v36, %v2299_v17 }
 0x129   : > { %v1794_v13 = vpop.f32.mrf.mxu2  ;;  %v1459_v19 = vpop.f32.mrf.mxu0 }
 0x12a   : > { %v1963_v14 = vpop.f32.mrf.mxu3  ;;  %v1795_v18 = vadd.f32 %v1794_v13, %v1626_v12  ;;  %v1628_v21 = vpop.f32.mrf.mxu1  ;;  %v2431_v31 = vmax.f32 %v2367_v25, 0.0  ;;  %v3004_v12 = vld [vmem:[%s3883_s30 + $0x248] sm:$0xf]  ;;  %v3424_v13 = vld [vmem:[%s3883_s30 + $0x254] sm:$0xf0] }
 0x12b   : > { %v1629_v27 = vadd.f32 %v1628_v21, %v1459_v19  ;;  %v2997_v19 = vor.u32 %v3423_v8, %v2996_v7  ;;  %v3001_v21 = vor.u32 %v3421_v9, %v2998_v11  ;;  %v3028_v11 = vld [vmem:[%s3883_s30 + $0x280] sm:$0xf] }
 0x12c   : > { %v1964_v24 = vadd.f32 %v1963_v14, %v1795_v18  ;;  %1498 = vmatmul.bf16.gmra.mxu0 %v2965_v15  ;;  %v3422_v14 = vld [vmem:[%s3883_s30 + $0x24c] sm:$0xf]  ;;  %v3006_v15 = vld [vmem:[%s3883_s30 + $0x258] sm:$0xf0] }
 0x12d   : > { %1667 = vmatmul.bf16.gmra.mxu1 %v2969_v16 }
 0x12e   : > { %v2300_v26 = vmul.f32 %v3978_v20, %v1964_v24  ;;  %1836 = vmatmul.bf16.gmra.mxu2 %v2973_v22 }
 0x12f   : > { %2005 = vmatmul.bf16.gmra.mxu3 %v2977_v23 }
 0x130   : > { %v2368_v28 = vadd.f32 %v3992_v36, %v2300_v26  ;;  %v3005_v26 = vor.u32 %v3424_v13, %v3004_v12  ;;  %v3431_v12 = vld [vmem:[%s3883_s30 + $0x28c] sm:$0xf0]  ;;  %v3429_v13 = vld [vmem:[%s3883_s30 + $0x284] sm:$0xf] }
 0x131   : > { %v1797_v29 = vpop.f32.mrf.mxu2  ;;  %v1461_v34 = vpop.f32.mrf.mxu0 }
 0x132   : > { %v1966_v30 = vpop.f32.mrf.mxu3  ;;  %v2432_v32 = vmax.f32 %v2368_v28, 0.0  ;;  %v1798_v33 = vadd.f32 %v1797_v29, %v1629_v27  ;;  %v1630_v35 = vpop.f32.mrf.mxu1  ;;  %v3009_v27 = vor.u32 %v3422_v14, %v3006_v15  ;;  %v3030_v15 = vld [vmem:[%s3883_s30 + $0x290] sm:$0xf0] }
 0x133   : > { %v1631_v47 = vadd.f32 %v1630_v35, %v1461_v34 }
 0x134   : > { %v3547_v37 = vpack.c.bf16 %v2432_v32, %v2431_v31  ;;  %v1967_v41 = vadd.f32 %v1966_v30, %v1798_v33 }
 0x136   : > { %3675 = vst [vmem:[%s4001_s29 + $0x38] sm:$0xff] %v3547_v37   ;;  %v2301_v52 = vmul.f32 %v3978_v20, %v1967_v41 }
 0x138   : > { %v2369_v59 = vadd.f32 %v3992_v36, %v2301_v52 }
 0x139   : > { %v1799_v48 = vpop.f32.mrf.mxu2  ;;  %v1464_v54 = vpop.f32.mrf.mxu0 }
 0x13a   : > { %v1968_v49 = vpop.f32.mrf.mxu3  ;;  %v1800_v53 = vadd.f32 %v1799_v48, %v1631_v47  ;;  %v1633_v55 = vpop.f32.mrf.mxu1  ;;  %v2433_v1 = vmax.f32 %v2369_v59, 0.0  ;;  %v3020_v47 = vld [vmem:[%s3883_s30 + $0x268] sm:$0xf]  ;;  %v3428_v48 = vld [vmem:[%s3883_s30 + $0x274] sm:$0xf0] }
 0x13b   : > { %v1634_v61 = vadd.f32 %v1633_v55, %v1464_v54  ;;  %v3013_v54 = vor.u32 %v3427_v43, %v3012_v42  ;;  %v3017_v55 = vor.u32 %v3425_v44, %v3014_v46  ;;  %v3044_v46 = vld [vmem:[%s3883_s30 + $0x2a0] sm:$0xf] }
 0x13c   : > { %v1969_v58 = vadd.f32 %v1968_v49, %v1800_v53  ;;  %1503 = vmatmul.bf16.gmra.mxu0 %v2981_v50  ;;  %v3426_v49 = vld [vmem:[%s3883_s30 + $0x26c] sm:$0xf]  ;;  %v3022_v50 = vld [vmem:[%s3883_s30 + $0x278] sm:$0xf0] }
 0x13d   : > { %1672 = vmatmul.bf16.gmra.mxu1 %v2985_v51 }
 0x13e   : > { %v2302_v60 = vmul.f32 %v3978_v20, %v1969_v58  ;;  %1841 = vmatmul.bf16.gmra.mxu2 %v2989_v56 }
 0x13f   : > { %2010 = vmatmul.bf16.gmra.mxu3 %v2993_v57 }
 0x140   : > { %v2370_v62 = vadd.f32 %v3992_v36, %v2302_v60  ;;  %v3021_v60 = vor.u32 %v3428_v48, %v3020_v47  ;;  %v3435_v47 = vld [vmem:[%s3883_s30 + $0x2ac] sm:$0xf0]  ;;  %v3433_v48 = vld [vmem:[%s3883_s30 + $0x2a4] sm:$0xf] }
 0x141   : > { %v1802_v63 = vpop.f32.mrf.mxu2  ;;  %v1466_v4 = vpop.f32.mrf.mxu0 }
 0x142   : > { %v1971_v0 = vpop.f32.mrf.mxu3  ;;  %v2434_v2 = vmax.f32 %v2370_v62, 0.0  ;;  %v1803_v3 = vadd.f32 %v1802_v63, %v1634_v61  ;;  %v1635_v5 = vpop.f32.mrf.mxu1  ;;  %v3025_v61 = vor.u32 %v3426_v49, %v3022_v50  ;;  %v3046_v50 = vld [vmem:[%s3883_s30 + $0x2b0] sm:$0xf0] }
 0x143   : > { %v1636_v16 = vadd.f32 %v1635_v5, %v1466_v4 }
 0x144   : > { %v3552_v6 = vpack.c.bf16 %v2434_v2, %v2433_v1  ;;  %v1972_v10 = vadd.f32 %v1971_v0, %v1803_v3 }
 0x146   : > { %3676 = vst [vmem:[%s4001_s29 + $0x40] sm:$0xff] %v3552_v6   ;;  %v2303_v22 = vmul.f32 %v3978_v20, %v1972_v10 }
 0x148   : > { %v2371_v29 = vadd.f32 %v3992_v36, %v2303_v22 }
 0x149   : > { %v1804_v17 = vpop.f32.mrf.mxu2  ;;  %v1469_v24 = vpop.f32.mrf.mxu0 }
 0x14a   : > { %v1973_v18 = vpop.f32.mrf.mxu3  ;;  %v1805_v23 = vadd.f32 %v1804_v17, %v1636_v16  ;;  %v1638_v25 = vpop.f32.mrf.mxu1  ;;  %v2435_v35 = vmax.f32 %v2371_v29, 0.0  ;;  %v3036_v16 = vld [vmem:[%s3883_s30 + $0x288] sm:$0xf]  ;;  %v3432_v17 = vld [vmem:[%s3883_s30 + $0x294] sm:$0xf0] }
 0x14b   : > { %v1639_v31 = vadd.f32 %v1638_v25, %v1469_v24  ;;  %v3029_v24 = vor.u32 %v3431_v12, %v3028_v11  ;;  %v3033_v25 = vor.u32 %v3429_v13, %v3030_v15  ;;  %v3439_v15 = vld [vmem:[%s3883_s30 + $0x2cc] sm:$0xf0] }
 0x14c   : > { %v1974_v28 = vadd.f32 %v1973_v18, %v1805_v23  ;;  %1508 = vmatmul.bf16.gmra.mxu0 %v2997_v19  ;;  %v3430_v18 = vld [vmem:[%s3883_s30 + $0x28c] sm:$0xf]  ;;  %v3038_v19 = vld [vmem:[%s3883_s30 + $0x298] sm:$0xf0] }
 0x14d   : > { %1677 = vmatmul.bf16.gmra.mxu1 %v3001_v21 }
 0x14e   : > { %v2304_v30 = vmul.f32 %v3978_v20, %v1974_v28  ;;  %1846 = vmatmul.bf16.gmra.mxu2 %v3005_v26 }
 0x14f   : > { %2015 = vmatmul.bf16.gmra.mxu3 %v3009_v27 }
 0x150   : > { %v2372_v32 = vadd.f32 %v3992_v36, %v2304_v30  ;;  %v3037_v30 = vor.u32 %v3432_v17, %v3036_v16  ;;  %v3437_v16 = vld [vmem:[%s3883_s30 + $0x2c4] sm:$0xf] }
 0x151   : > { %v1807_v33 = vpop.f32.mrf.mxu2  ;;  %v1471_v39 = vpop.f32.mrf.mxu0 }
 0x152   : > { %v1976_v34 = vpop.f32.mrf.mxu3  ;;  %v2436_v37 = vmax.f32 %v2372_v32, 0.0  ;;  %v1808_v38 = vadd.f32 %v1807_v33, %v1639_v31  ;;  %v1640_v40 = vpop.f32.mrf.mxu1  ;;  %v3041_v31 = vor.u32 %v3430_v18, %v3038_v19  ;;  %v3062_v18 = vld [vmem:[%s3883_s30 + $0x2d0] sm:$0xf0]  ;;  %v3068_v19 = vld [vmem:[%s3883_s30 + $0x2c8] sm:$0xf] }
 0x153   : > { %v1641_v51 = vadd.f32 %v1640_v40, %v1471_v39 }
 0x154   : > { %v3557_v41 = vpack.c.bf16 %v2436_v37, %v2435_v35  ;;  %v1977_v45 = vadd.f32 %v1976_v34, %v1808_v38 }
 0x156   : > { %3677 = vst [vmem:[%s4001_s29 + $0x48] sm:$0xff] %v3557_v41   ;;  %v2305_v56 = vmul.f32 %v3978_v20, %v1977_v45 }
 0x158   : > { %v2373_v63 = vadd.f32 %v3992_v36, %v2305_v56 }
 0x159   : > { %v1809_v52 = vpop.f32.mrf.mxu2  ;;  %v1474_v58 = vpop.f32.mrf.mxu0 }
 0x15a   : > { %v1978_v53 = vpop.f32.mrf.mxu3  ;;  %v1810_v57 = vadd.f32 %v1809_v52, %v1641_v51  ;;  %v1643_v59 = vpop.f32.mrf.mxu1  ;;  %v2437_v5 = vmax.f32 %v2373_v63, 0.0  ;;  %v3052_v51 = vld [vmem:[%s3883_s30 + $0x2a8] sm:$0xf]  ;;  %v3436_v52 = vld [vmem:[%s3883_s30 + $0x2b4] sm:$0xf0] }
 0x15b   : > { %v1644_v1 = vadd.f32 %v1643_v59, %v1474_v58  ;;  %v3045_v58 = vor.u32 %v3435_v47, %v3044_v46  ;;  %v3049_v59 = vor.u32 %v3433_v48, %v3046_v50  ;;  %v3076_v50 = vld [vmem:[%s3883_s30 + $0x2e0] sm:$0xf] }
 0x15c   : > { %v1979_v62 = vadd.f32 %v1978_v53, %v1810_v57  ;;  %1513 = vmatmul.bf16.gmra.mxu0 %v3013_v54  ;;  %v3434_v53 = vld [vmem:[%s3883_s30 + $0x2ac] sm:$0xf]  ;;  %v3054_v54 = vld [vmem:[%s3883_s30 + $0x2b8] sm:$0xf0] }
 0x15d   : > { %1682 = vmatmul.bf16.gmra.mxu1 %v3017_v55 }
 0x15e   : > { %v2306_v0 = vmul.f32 %v3978_v20, %v1979_v62  ;;  %1851 = vmatmul.bf16.gmra.mxu2 %v3021_v60 }
 0x15f   : > { %2020 = vmatmul.bf16.gmra.mxu3 %v3025_v61 }
 0x160   : > { %v2374_v2 = vadd.f32 %v3992_v36, %v2306_v0  ;;  %v3053_v0 = vor.u32 %v3436_v52, %v3052_v51  ;;  %v3443_v51 = vld [vmem:[%s3883_s30 + $0x2ec] sm:$0xf0]  ;;  %v3441_v52 = vld [vmem:[%s3883_s30 + $0x2e4] sm:$0xf] }
 0x161   : > { %v1812_v3 = vpop.f32.mrf.mxu2  ;;  %v1476_v8 = vpop.f32.mrf.mxu0 }
 0x162   : > { %v1981_v4 = vpop.f32.mrf.mxu3  ;;  %v2438_v6 = vmax.f32 %v2374_v2, 0.0  ;;  %v1813_v7 = vadd.f32 %v1812_v3, %v1644_v1  ;;  %v1645_v9 = vpop.f32.mrf.mxu1  ;;  %v3057_v1 = vor.u32 %v3434_v53, %v3054_v54  ;;  %v3078_v54 = vld [vmem:[%s3883_s30 + $0x2f0] sm:$0xf0] }
 0x163   : > { %v1646_v21 = vadd.f32 %v1645_v9, %v1476_v8 }
 0x164   : > { %v3562_v10 = vpack.c.bf16 %v2438_v6, %v2437_v5  ;;  %v1982_v14 = vadd.f32 %v1981_v4, %v1813_v7 }
 0x166   : > { %3678 = vst [vmem:[%s4001_s29 + $0x50] sm:$0xff] %v3562_v10   ;;  %v2307_v26 = vmul.f32 %v3978_v20, %v1982_v14 }
 0x168   : > { %v2375_v33 = vadd.f32 %v3992_v36, %v2307_v26 }
 0x169   : > { %v1814_v22 = vpop.f32.mrf.mxu2  ;;  %v1479_v28 = vpop.f32.mrf.mxu0 }
 0x16a   : > { %v1983_v23 = vpop.f32.mrf.mxu3  ;;  %v1815_v27 = vadd.f32 %v1814_v22, %v1646_v21  ;;  %v1648_v29 = vpop.f32.mrf.mxu1  ;;  %v2439_v40 = vmax.f32 %v2375_v33, 0.0  ;;  %v3440_v21 = vld [vmem:[%s3883_s30 + $0x2d4] sm:$0xf0]  ;;  %v3438_v22 = vld [vmem:[%s3883_s30 + $0x2cc] sm:$0xf] }
 0x16b   : > { %v1649_v35 = vadd.f32 %v1648_v29, %v1479_v28  ;;  %v3065_v28 = vor.u32 %v3437_v16, %v3062_v18  ;;  %v4171_v29 = vld [vmem:[%s4355_s2] ss:$0 sm:$0xff] }
 0x16c   : > { %v1984_v32 = vadd.f32 %v1983_v23, %v1815_v27  ;;  %1518 = vmatmul.bf16.gmra.mxu0 %v3029_v24  ;;  %v3070_v23 = vld [vmem:[%s3883_s30 + $0x2d8] sm:$0xf0]  ;;  %v3092_v18 = vld [vmem:[%s3883_s30 + $0x300] sm:$0xf] }
 0x16d   : > { %1687 = vmatmul.bf16.gmra.mxu1 %v3033_v25 }
 0x16e   : > { %v2308_v34 = vmul.f32 %v3978_v20, %v1984_v32  ;;  %1856 = vmatmul.bf16.gmra.mxu2 %v3037_v30 }
 0x16f   : > { %2025 = vmatmul.bf16.gmra.mxu3 %v3041_v31 }
 0x170   : > { %v2376_v37 = vadd.f32 %v3992_v36, %v2308_v34  ;;  %v3069_v34 = vor.u32 %v3440_v21, %v3068_v19  ;;  %v3447_v19 = vld [vmem:[%s3883_s30 + $0x30c] sm:$0xf0]  ;;  %v3445_v21 = vld [vmem:[%s3883_s30 + $0x304] sm:$0xf] }
 0x171   : > { %v1817_v38 = vpop.f32.mrf.mxu2  ;;  %v1481_v43 = vpop.f32.mrf.mxu0 }
 0x172   : > { %v1986_v39 = vpop.f32.mrf.mxu3  ;;  %v2440_v41 = vmax.f32 %v2376_v37, 0.0  ;;  %v1818_v42 = vadd.f32 %v1817_v38, %v1649_v35  ;;  %v1650_v44 = vpop.f32.mrf.mxu1  ;;  %v3073_v35 = vor.u32 %v3438_v22, %v3070_v23  ;;  %v3094_v23 = vld [vmem:[%s3883_s30 + $0x310] sm:$0xf0] }
 0x173   : > { %v1651_v55 = vadd.f32 %v1650_v44, %v1481_v43 }
 0x174   : > { %v3567_v45 = vpack.c.bf16 %v2440_v41, %v2439_v40  ;;  %v1987_v49 = vadd.f32 %v1986_v39, %v1818_v42 }
 0x176   : > { %3679 = vst [vmem:[%s4001_s29 + $0x58] sm:$0xff] %v3567_v45   ;;  %v2309_v60 = vmul.f32 %v3978_v20, %v1987_v49 }
 0x178   : > { %v2377_v3 = vadd.f32 %v3992_v36, %v2309_v60 }
 0x179   : > { %v1819_v56 = vpop.f32.mrf.mxu2  ;;  %v1484_v62 = vpop.f32.mrf.mxu0 }
 0x17a   : > { %v1988_v57 = vpop.f32.mrf.mxu3  ;;  %v1820_v61 = vadd.f32 %v1819_v56, %v1651_v55  ;;  %v1653_v63 = vpop.f32.mrf.mxu1  ;;  %v2441_v9 = vmax.f32 %v2377_v3, 0.0  ;;  %v3084_v55 = vld [vmem:[%s3883_s30 + $0x2e8] sm:$0xf]  ;;  %v3444_v56 = vld [vmem:[%s3883_s30 + $0x2f4] sm:$0xf0] }
 0x17b   : > { %v1654_v5 = vadd.f32 %v1653_v63, %v1484_v62  ;;  %v3081_v62 = vor.u32 %v3441_v52, %v3078_v54  ;;  %v3085_v3 = vor.u32 %v3444_v56, %v3084_v55  ;;  %v3108_v54 = vld [vmem:[%s3883_s30 + $0x320] sm:$0xf]  ;;  %v3451_v55 = vld [vmem:[%s3883_s30 + $0x32c] sm:$0xf0]  ;;  %v3449_v56 = vld [vmem:[%s3883_s30 + $0x324] sm:$0xf] }
 0x17c   : > { %v1989_v2 = vadd.f32 %v1988_v57, %v1820_v61  ;;  %1523 = vmatmul.bf16.gmra.mxu0 %v3045_v58  ;;  %v3086_v57 = vld [vmem:[%s3883_s30 + $0x2f8] sm:$0xf0]  ;;  %v3077_v61 = vor.u32 %v3443_v51, %v3076_v50 }
 0x17d   : > { %1692 = vmatmul.bf16.gmra.mxu1 %v3049_v59 }
 0x17e   : > { %v2310_v4 = vmul.f32 %v3978_v20, %v1989_v2  ;;  %1861 = vmatmul.bf16.gmra.mxu2 %v3053_v0  ;;  %v3060_v20 = vld [vmem:[%s3883_s30 + $0x2c0] sm:$0xf] }
 0x17f   : > { %2030 = vmatmul.bf16.gmra.mxu3 %v3057_v1  ;;  %v3061_v27 = vor.u32 %v3439_v15, %v3060_v20 }
 0x180   : > { %v2378_v6 = vadd.f32 %v3992_v36, %v2310_v4 }
 0x181   : > { %v1822_v7 = vpop.f32.mrf.mxu2  ;;  %v1486_v12 = vpop.f32.mrf.mxu0 }
 0x182   : > { %v1991_v8 = vpop.f32.mrf.mxu3  ;;  %v2442_v10 = vmax.f32 %v2378_v6, 0.0  ;;  %v1823_v11 = vadd.f32 %v1822_v7, %v1654_v5  ;;  %v1655_v13 = vpop.f32.mrf.mxu1  ;;  %v4190_v6 = vld [vmem:[%s4356_s3] ss:$0 sm:$0xff] }
 0x183   : > { %v1656_v24 = vadd.f32 %v1655_v13, %v1486_v12 }
 0x184   : > { %v3572_v14 = vpack.c.bf16 %v2442_v10, %v2441_v9  ;;  %v1992_v17 = vadd.f32 %v1991_v8, %v1823_v11 }
 0x186   : > { %3680 = vst [vmem:[%s4001_s29 + $0x60] sm:$0xff] %v3572_v14   ;;  %v2311_v30 = vmul.f32 %v4171_v29, %v1992_v17 }
 0x188   : > { %v2379_v38 = vadd.f32 %v3992_v36, %v2311_v30 }
 0x189   : > { %v1824_v25 = vpop.f32.mrf.mxu2  ;;  %v1489_v32 = vpop.f32.mrf.mxu0 }
 0x18a   : > { %v1993_v26 = vpop.f32.mrf.mxu3  ;;  %v1825_v31 = vadd.f32 %v1824_v25, %v1656_v24  ;;  %v1658_v33 = vpop.f32.mrf.mxu1  ;;  %v2443_v44 = vmax.f32 %v2379_v38, 0.0  ;;  %v3100_v24 = vld [vmem:[%s3883_s30 + $0x308] sm:$0xf]  ;;  %v3448_v25 = vld [vmem:[%s3883_s30 + $0x314] sm:$0xf0] }
 0x18b   : > { %v1659_v40 = vadd.f32 %v1658_v33, %v1489_v32  ;;  %v3093_v32 = vor.u32 %v3447_v19, %v3092_v18  ;;  %v3097_v33 = vor.u32 %v3445_v21, %v3094_v23  ;;  %v3124_v23 = vld [vmem:[%s3883_s30 + $0x340] sm:$0xf] }
 0x18c   : > { %v1994_v37 = vadd.f32 %v1993_v26, %v1825_v31  ;;  %1528 = vmatmul.bf16.gmra.mxu0 %v3061_v27  ;;  %v3446_v26 = vld [vmem:[%s3883_s30 + $0x30c] sm:$0xf]  ;;  %v3102_v27 = vld [vmem:[%s3883_s30 + $0x318] sm:$0xf0] }
 0x18d   : > { %1697 = vmatmul.bf16.gmra.mxu1 %v3065_v28 }
 0x18e   : > { %v2312_v39 = vmul.f32 %v4171_v29, %v1994_v37  ;;  %1866 = vmatmul.bf16.gmra.mxu2 %v3069_v34 }
 0x18f   : > { %2035 = vmatmul.bf16.gmra.mxu3 %v3073_v35 }
 0x190   : > { %v2380_v41 = vadd.f32 %v3992_v36, %v2312_v39  ;;  %v3442_v36 = vld [vmem:[%s3883_s30 + $0x2ec] sm:$0xf]  ;;  %v3101_v39 = vor.u32 %v3448_v25, %v3100_v24  ;;  %v3455_v24 = vld [vmem:[%s3883_s30 + $0x34c] sm:$0xf0]  ;;  %v3453_v25 = vld [vmem:[%s3883_s30 + $0x344] sm:$0xf] }
 0x191   : > { %v1827_v42 = vpop.f32.mrf.mxu2  ;;  %v1491_v47 = vpop.f32.mrf.mxu0  ;;  %v3089_v4 = vor.u32 %v3442_v36, %v3086_v57  ;;  %v3110_v57 = vld [vmem:[%s3883_s30 + $0x330] sm:$0xf0] }
 0x192   : > { %v1996_v43 = vpop.f32.mrf.mxu3  ;;  %v2444_v45 = vmax.f32 %v2380_v41, 0.0  ;;  %v1828_v46 = vadd.f32 %v1827_v42, %v1659_v40  ;;  %v1660_v48 = vpop.f32.mrf.mxu1  ;;  %v3105_v40 = vor.u32 %v3446_v26, %v3102_v27  ;;  %v3126_v27 = vld [vmem:[%s3883_s30 + $0x350] sm:$0xf0] }
 0x193   : > { %v1661_v58 = vadd.f32 %v1660_v48, %v1491_v47 }
 0x194   : > { %v3577_v49 = vpack.c.bf16 %v2444_v45, %v2443_v44  ;;  %v1997_v53 = vadd.f32 %v1996_v43, %v1828_v46 }
 0x196   : > { %3681 = vst [vmem:[%s4001_s29 + $0x68] sm:$0xff] %v3577_v49   ;;  %v2313_v63 = vmul.f32 %v4171_v29, %v1997_v53 }
 0x198   : > { %v2381_v7 = vadd.f32 %v4190_v6, %v2313_v63 }
 0x199   : > { %v1829_v59 = vpop.f32.mrf.mxu2  ;;  %v1494_v1 = vpop.f32.mrf.mxu0 }
 0x19a   : > { %v1998_v60 = vpop.f32.mrf.mxu3  ;;  %v1830_v0 = vadd.f32 %v1829_v59, %v1661_v58  ;;  %v1663_v2 = vpop.f32.mrf.mxu1  ;;  %v2445_v13 = vmax.f32 %v2381_v7, 0.0  ;;  %v3116_v58 = vld [vmem:[%s3883_s30 + $0x328] sm:$0xf]  ;;  %v3452_v59 = vld [vmem:[%s3883_s30 + $0x334] sm:$0xf0] }
 0x19b   : > { %v1664_v9 = vadd.f32 %v1663_v2, %v1494_v1  ;;  %v3109_v1 = vor.u32 %v3451_v55, %v3108_v54  ;;  %v3113_v2 = vor.u32 %v3449_v56, %v3110_v57  ;;  %v3140_v57 = vld [vmem:[%s3883_s30 + $0x360] sm:$0xf] }
 0x19c   : > { %v1999_v5 = vadd.f32 %v1998_v60, %v1830_v0  ;;  %1533 = vmatmul.bf16.gmra.mxu0 %v3077_v61  ;;  %v3450_v60 = vld [vmem:[%s3883_s30 + $0x32c] sm:$0xf]  ;;  %v3118_v61 = vld [vmem:[%s3883_s30 + $0x338] sm:$0xf0] }
 0x19d   : > { %1702 = vmatmul.bf16.gmra.mxu1 %v3081_v62 }
 0x19e   : > { %v2314_v8 = vmul.f32 %v4171_v29, %v1999_v5  ;;  %1871 = vmatmul.bf16.gmra.mxu2 %v3085_v3 }
 0x19f   : > { %2040 = vmatmul.bf16.gmra.mxu3 %v3089_v4 }
 0x1a0   : > { %v2382_v10 = vadd.f32 %v4190_v6, %v2314_v8  ;;  %v3117_v8 = vor.u32 %v3452_v59, %v3116_v58  ;;  %v3459_v58 = vld [vmem:[%s3883_s30 + $0x36c] sm:$0xf0]  ;;  %v3457_v59 = vld [vmem:[%s3883_s30 + $0x364] sm:$0xf] }
 0x1a1   : > { %v1832_v11 = vpop.f32.mrf.mxu2  ;;  %v1496_v15 = vpop.f32.mrf.mxu0 }
 0x1a2   : > { %v2001_v12 = vpop.f32.mrf.mxu3  ;;  %v2446_v14 = vmax.f32 %v2382_v10, 0.0  ;;  %v1833_v20 = vadd.f32 %v1832_v11, %v1664_v9  ;;  %v1665_v16 = vpop.f32.mrf.mxu1  ;;  %v3121_v9 = vor.u32 %v3450_v60, %v3118_v61  ;;  %v3142_v61 = vld [vmem:[%s3883_s30 + $0x370] sm:$0xf0] }
 0x1a3   : > { %v1666_v28 = vadd.f32 %v1665_v16, %v1496_v15 }
 0x1a4   : > { %v3582_v17 = vpack.c.bf16 %v2446_v14, %v2445_v13  ;;  %v2002_v22 = vadd.f32 %v2001_v12, %v1833_v20 }
 0x1a6   : > { %3682 = vst [vmem:[%s4001_s29 + $0x70] sm:$0xff] %v3582_v17   ;;  %v2315_v34 = vmul.f32 %v4171_v29, %v2002_v22 }
 0x1a8   : > { %v2383_v42 = vadd.f32 %v4190_v6, %v2315_v34 }
 0x1a9   : > { %v1834_v30 = vpop.f32.mrf.mxu2  ;;  %v1499_v37 = vpop.f32.mrf.mxu0 }
 0x1aa   : > { %v2003_v31 = vpop.f32.mrf.mxu3  ;;  %v1835_v35 = vadd.f32 %v1834_v30, %v1666_v28  ;;  %v1668_v38 = vpop.f32.mrf.mxu1  ;;  %v2447_v48 = vmax.f32 %v2383_v42, 0.0  ;;  %v3132_v28 = vld [vmem:[%s3883_s30 + $0x348] sm:$0xf]  ;;  %v3456_v30 = vld [vmem:[%s3883_s30 + $0x354] sm:$0xf0] }
 0x1ab   : > { %v1669_v44 = vadd.f32 %v1668_v38, %v1499_v37  ;;  %v3125_v37 = vor.u32 %v3455_v24, %v3124_v23  ;;  %v3129_v38 = vor.u32 %v3453_v25, %v3126_v27  ;;  %v3156_v27 = vld [vmem:[%s3883_s30 + $0x380] sm:$0xf] }
 0x1ac   : > { %v2004_v41 = vadd.f32 %v2003_v31, %v1835_v35  ;;  %1538 = vmatmul.bf16.gmra.mxu0 %v3093_v32  ;;  %v3454_v31 = vld [vmem:[%s3883_s30 + $0x34c] sm:$0xf]  ;;  %v3134_v32 = vld [vmem:[%s3883_s30 + $0x358] sm:$0xf0] }
 0x1ad   : > { %1707 = vmatmul.bf16.gmra.mxu1 %v3097_v33 }
 0x1ae   : > { %v2316_v43 = vmul.f32 %v4171_v29, %v2004_v41  ;;  %1876 = vmatmul.bf16.gmra.mxu2 %v3101_v39 }
 0x1af   : > { %2045 = vmatmul.bf16.gmra.mxu3 %v3105_v40 }
 0x1b0   : > { %v2384_v45 = vadd.f32 %v4190_v6, %v2316_v43  ;;  %v3133_v43 = vor.u32 %v3456_v30, %v3132_v28  ;;  %v3463_v28 = vld [vmem:[%s3883_s30 + $0x38c] sm:$0xf0]  ;;  %v3461_v30 = vld [vmem:[%s3883_s30 + $0x384] sm:$0xf] }
 0x1b1   : > { %v1837_v46 = vpop.f32.mrf.mxu2  ;;  %v1501_v51 = vpop.f32.mrf.mxu0 }
 0x1b2   : > { %v2006_v47 = vpop.f32.mrf.mxu3  ;;  %v2448_v49 = vmax.f32 %v2384_v45, 0.0  ;;  %v1838_v50 = vadd.f32 %v1837_v46, %v1669_v44  ;;  %v1670_v52 = vpop.f32.mrf.mxu1  ;;  %v3137_v44 = vor.u32 %v3454_v31, %v3134_v32  ;;  %v3158_v32 = vld [vmem:[%s3883_s30 + $0x390] sm:$0xf0] }
 0x1b3   : > { %v1671_v62 = vadd.f32 %v1670_v52, %v1501_v51 }
 0x1b4   : > { %v3587_v53 = vpack.c.bf16 %v2448_v49, %v2447_v48  ;;  %v2007_v36 = vadd.f32 %v2006_v47, %v1838_v50 }
 0x1b6   : > { %3683 = vst [vmem:[%s4001_s29 + $0x78] sm:$0xff] %v3587_v53   ;;  %v2317_v3 = vmul.f32 %v4171_v29, %v2007_v36 }
 0x1b8   : > { %v2385_v11 = vadd.f32 %v4190_v6, %v2317_v3 }
 0x1b9   : > { %v1839_v63 = vpop.f32.mrf.mxu2  ;;  %v1504_v5 = vpop.f32.mrf.mxu0 }
 0x1ba   : > { %v2008_v0 = vpop.f32.mrf.mxu3  ;;  %v1840_v4 = vadd.f32 %v1839_v63, %v1671_v62  ;;  %v1673_v7 = vpop.f32.mrf.mxu1  ;;  %v2449_v16 = vmax.f32 %v2385_v11, 0.0  ;;  %v3148_v62 = vld [vmem:[%s3883_s30 + $0x368] sm:$0xf]  ;;  %v3460_v63 = vld [vmem:[%s3883_s30 + $0x374] sm:$0xf0] }
 0x1bb   : > { %v1674_v13 = vadd.f32 %v1673_v7, %v1504_v5  ;;  %v3141_v5 = vor.u32 %v3459_v58, %v3140_v57  ;;  %v3145_v7 = vor.u32 %v3457_v59, %v3142_v61  ;;  %v3172_v61 = vld [vmem:[%s3883_s30 + $0x3a0] sm:$0xf] }
 0x1bc   : > { %v2009_v10 = vadd.f32 %v2008_v0, %v1840_v4  ;;  %1543 = vmatmul.bf16.gmra.mxu0 %v3109_v1  ;;  %v3458_v0 = vld [vmem:[%s3883_s30 + $0x36c] sm:$0xf]  ;;  %v3150_v1 = vld [vmem:[%s3883_s30 + $0x378] sm:$0xf0] }
 0x1bd   : > { %1712 = vmatmul.bf16.gmra.mxu1 %v3113_v2 }
 0x1be   : > { %v2318_v12 = vmul.f32 %v4171_v29, %v2009_v10  ;;  %1881 = vmatmul.bf16.gmra.mxu2 %v3117_v8 }
 0x1bf   : > { %2050 = vmatmul.bf16.gmra.mxu3 %v3121_v9 }
 0x1c0   : > { %v2386_v14 = vadd.f32 %v4190_v6, %v2318_v12  ;;  %v3149_v12 = vor.u32 %v3460_v63, %v3148_v62  ;;  %v3467_v62 = vld [vmem:[%s3883_s30 + $0x3ac] sm:$0xf0]  ;;  %v3465_v63 = vld [vmem:[%s3883_s30 + $0x3a4] sm:$0xf] }
 0x1c1   : > { %v1842_v20 = vpop.f32.mrf.mxu2  ;;  %v1506_v19 = vpop.f32.mrf.mxu0 }
 0x1c2   : > { %v2011_v15 = vpop.f32.mrf.mxu3  ;;  %v2450_v17 = vmax.f32 %v2386_v14, 0.0  ;;  %v1843_v18 = vadd.f32 %v1842_v20, %v1674_v13  ;;  %v1675_v21 = vpop.f32.mrf.mxu1  ;;  %v3153_v13 = vor.u32 %v3458_v0, %v3150_v1  ;;  %v3174_v1 = vld [vmem:[%s3883_s30 + $0x3b0] sm:$0xf0] }
 0x1c3   : > { %v1676_v33 = vadd.f32 %v1675_v21, %v1506_v19 }
 0x1c4   : > { %v3592_v22 = vpack.c.bf16 %v2450_v17, %v2449_v16  ;;  %v2012_v26 = vadd.f32 %v2011_v15, %v1843_v18 }
 0x1c6   : > { %3684 = vst [vmem:[%s4001_s29 + $0x80] sm:$0xff] %v3592_v22   ;;  %v2319_v39 = vmul.f32 %v4171_v29, %v2012_v26 }
 0x1c8   : > { %v2387_v46 = vadd.f32 %v4190_v6, %v2319_v39 }
 0x1c9   : > { %v1844_v34 = vpop.f32.mrf.mxu2  ;;  %v1509_v41 = vpop.f32.mrf.mxu0 }
 0x1ca   : > { %v2013_v35 = vpop.f32.mrf.mxu3  ;;  %v1845_v40 = vadd.f32 %v1844_v34, %v1676_v33  ;;  %v1678_v42 = vpop.f32.mrf.mxu1  ;;  %v2451_v52 = vmax.f32 %v2387_v46, 0.0  ;;  %v3164_v33 = vld [vmem:[%s3883_s30 + $0x388] sm:$0xf]  ;;  %v3464_v34 = vld [vmem:[%s3883_s30 + $0x394] sm:$0xf0] }
 0x1cb   : > { %v1679_v48 = vadd.f32 %v1678_v42, %v1509_v41  ;;  %v3157_v41 = vor.u32 %v3463_v28, %v3156_v27  ;;  %v3161_v42 = vor.u32 %v3461_v30, %v3158_v32  ;;  %v3188_v32 = vld [vmem:[%s3883_s30 + $0x3c0] sm:$0xf] }
 0x1cc   : > { %v2014_v45 = vadd.f32 %v2013_v35, %v1845_v40  ;;  %1548 = vmatmul.bf16.gmra.mxu0 %v3125_v37  ;;  %v3462_v35 = vld [vmem:[%s3883_s30 + $0x38c] sm:$0xf]  ;;  %v3166_v37 = vld [vmem:[%s3883_s30 + $0x398] sm:$0xf0] }
 0x1cd   : > { %1717 = vmatmul.bf16.gmra.mxu1 %v3129_v38 }
 0x1ce   : > { %v2320_v47 = vmul.f32 %v4171_v29, %v2014_v45  ;;  %1886 = vmatmul.bf16.gmra.mxu2 %v3133_v43 }
 0x1cf   : > { %2055 = vmatmul.bf16.gmra.mxu3 %v3137_v44 }
 0x1d0   : > { %v2388_v49 = vadd.f32 %v4190_v6, %v2320_v47  ;;  %v3165_v47 = vor.u32 %v3464_v34, %v3164_v33  ;;  %v3471_v33 = vld [vmem:[%s3883_s30 + $0x3cc] sm:$0xf0]  ;;  %v3469_v34 = vld [vmem:[%s3883_s30 + $0x3c4] sm:$0xf] }
 0x1d1   : > { %v1847_v50 = vpop.f32.mrf.mxu2  ;;  %v1511_v55 = vpop.f32.mrf.mxu0 }
 0x1d2   : > { %v2016_v51 = vpop.f32.mrf.mxu3  ;;  %v2452_v53 = vmax.f32 %v2388_v49, 0.0  ;;  %v1848_v54 = vadd.f32 %v1847_v50, %v1679_v48  ;;  %v1680_v56 = vpop.f32.mrf.mxu1  ;;  %v3169_v48 = vor.u32 %v3462_v35, %v3166_v37  ;;  %v3190_v37 = vld [vmem:[%s3883_s30 + $0x3d0] sm:$0xf0] }
 0x1d3   : > { %v1681_v2 = vadd.f32 %v1680_v56, %v1511_v55 }
 0x1d4   : > { %v3597_v36 = vpack.c.bf16 %v2452_v53, %v2451_v52  ;;  %v2017_v60 = vadd.f32 %v2016_v51, %v1848_v54 }
 0x1d6   : > { %3685 = vst [vmem:[%s4001_s29 + $0x88] sm:$0xff] %v3597_v36   ;;  %v2321_v8 = vmul.f32 %v4171_v29, %v2017_v60 }
 0x1d8   : > { %v2389_v20 = vadd.f32 %v4190_v6, %v2321_v8 }
 0x1d9   : > { %v1849_v3 = vpop.f32.mrf.mxu2  ;;  %v1514_v10 = vpop.f32.mrf.mxu0 }
 0x1da   : > { %v2018_v4 = vpop.f32.mrf.mxu3  ;;  %v1850_v9 = vadd.f32 %v1849_v3, %v1681_v2  ;;  %v1683_v11 = vpop.f32.mrf.mxu1  ;;  %v2453_v21 = vmax.f32 %v2389_v20, 0.0  ;;  %v3180_v2 = vld [vmem:[%s3883_s30 + $0x3a8] sm:$0xf]  ;;  %v3468_v3 = vld [vmem:[%s3883_s30 + $0x3b4] sm:$0xf0] }
 0x1db   : > { %v1684_v16 = vadd.f32 %v1683_v11, %v1514_v10  ;;  %v3173_v10 = vor.u32 %v3467_v62, %v3172_v61  ;;  %v3177_v11 = vor.u32 %v3465_v63, %v3174_v1  ;;  %v3204_v1 = vld [vmem:[%s3883_s30 + $0x3e0] sm:$0xf] }
 0x1dc   : > { %v2019_v14 = vadd.f32 %v2018_v4, %v1850_v9  ;;  %1553 = vmatmul.bf16.gmra.mxu0 %v3141_v5  ;;  %v3466_v4 = vld [vmem:[%s3883_s30 + $0x3ac] sm:$0xf]  ;;  %v3182_v5 = vld [vmem:[%s3883_s30 + $0x3b8] sm:$0xf0] }
 0x1dd   : > { %1722 = vmatmul.bf16.gmra.mxu1 %v3145_v7 }
 0x1de   : > { %v2322_v15 = vmul.f32 %v4171_v29, %v2019_v14  ;;  %1891 = vmatmul.bf16.gmra.mxu2 %v3149_v12 }
 0x1df   : > { %2060 = vmatmul.bf16.gmra.mxu3 %v3153_v13 }
 0x1e0   : > { %v2390_v17 = vadd.f32 %v4190_v6, %v2322_v15  ;;  %v3181_v15 = vor.u32 %v3468_v3, %v3180_v2  ;;  %v3475_v2 = vld [vmem:[%s3883_s30 + $0x3ec] sm:$0xf0]  ;;  %v3473_v3 = vld [vmem:[%s3883_s30 + $0x3e4] sm:$0xf] }
 0x1e1   : > { %v1852_v18 = vpop.f32.mrf.mxu2  ;;  %v1516_v24 = vpop.f32.mrf.mxu0 }
 0x1e2   : > { %v2021_v19 = vpop.f32.mrf.mxu3  ;;  %v2454_v22 = vmax.f32 %v2390_v17, 0.0  ;;  %v1853_v23 = vadd.f32 %v1852_v18, %v1684_v16  ;;  %v1685_v25 = vpop.f32.mrf.mxu1  ;;  %v3185_v16 = vor.u32 %v3466_v4, %v3182_v5  ;;  %v3206_v5 = vld [vmem:[%s3883_s30 + $0x3f0] sm:$0xf0] }
 0x1e3   : > { %v1686_v38 = vadd.f32 %v1685_v25, %v1516_v24 }
 0x1e4   : > { %v3602_v26 = vpack.c.bf16 %v2454_v22, %v2453_v21  ;;  %v2022_v31 = vadd.f32 %v2021_v19, %v1853_v23 }
 0x1e6   : > { %3686 = vst [vmem:[%s4001_s29 + $0x90] sm:$0xff] %v3602_v26   ;;  %v2323_v43 = vmul.f32 %v4171_v29, %v2022_v31 }
 0x1e8   : > { %v2391_v50 = vadd.f32 %v4190_v6, %v2323_v43 }
 0x1e9   : > { %v1854_v39 = vpop.f32.mrf.mxu2  ;;  %v1519_v45 = vpop.f32.mrf.mxu0 }
 0x1ea   : > { %v2023_v40 = vpop.f32.mrf.mxu3  ;;  %v1855_v44 = vadd.f32 %v1854_v39, %v1686_v38  ;;  %v1688_v46 = vpop.f32.mrf.mxu1  ;;  %v2455_v56 = vmax.f32 %v2391_v50, 0.0  ;;  %v3196_v38 = vld [vmem:[%s3883_s30 + $0x3c8] sm:$0xf]  ;;  %v3472_v39 = vld [vmem:[%s3883_s30 + $0x3d4] sm:$0xf0] }
 0x1eb   : > { %v1689_v52 = vadd.f32 %v1688_v46, %v1519_v45  ;;  %v3189_v45 = vor.u32 %v3471_v33, %v3188_v32  ;;  %v3193_v46 = vor.u32 %v3469_v34, %v3190_v37 }
 0x1ec   : > { %v2024_v49 = vadd.f32 %v2023_v40, %v1855_v44  ;;  %1558 = vmatmul.bf16.gmra.mxu0 %v3157_v41  ;;  %v3470_v40 = vld [vmem:[%s3883_s30 + $0x3cc] sm:$0xf]  ;;  %v3198_v41 = vld [vmem:[%s3883_s30 + $0x3d8] sm:$0xf0] }
 0x1ed   : > { %1727 = vmatmul.bf16.gmra.mxu1 %v3161_v42 }
 0x1ee   : > { %v2324_v51 = vmul.f32 %v4171_v29, %v2024_v49  ;;  %1896 = vmatmul.bf16.gmra.mxu2 %v3165_v47 }
 0x1ef   : > { %2065 = vmatmul.bf16.gmra.mxu3 %v3169_v48 }
 0x1f0   : > { %v2392_v53 = vadd.f32 %v4190_v6, %v2324_v51  ;;  %v3197_v51 = vor.u32 %v3472_v39, %v3196_v38 }
 0x1f1   : > { %v1857_v54 = vpop.f32.mrf.mxu2  ;;  %v1521_v58 = vpop.f32.mrf.mxu0 }
 0x1f2   : > { %v2026_v55 = vpop.f32.mrf.mxu3  ;;  %v2456_v36 = vmax.f32 %v2392_v53, 0.0  ;;  %v1858_v57 = vadd.f32 %v1857_v54, %v1689_v52  ;;  %v1690_v59 = vpop.f32.mrf.mxu1  ;;  %v3201_v52 = vor.u32 %v3470_v40, %v3198_v41 }
 0x1f3   : > { %v1691_v7 = vadd.f32 %v1690_v59, %v1521_v58 }
 0x1f4   : > { %v3607_v60 = vpack.c.bf16 %v2456_v36, %v2455_v56  ;;  %v2027_v0 = vadd.f32 %v2026_v55, %v1858_v57 }
 0x1f6   : > { %3687 = vst [vmem:[%s4001_s29 + $0x98] sm:$0xff] %v3607_v60   ;;  %v2325_v12 = vmul.f32 %v4171_v29, %v2027_v0 }
 0x1f8   : > { %v2393_v18 = vadd.f32 %v4190_v6, %v2325_v12 }
 0x1f9   : > { %v1859_v8 = vpop.f32.mrf.mxu2  ;;  %v1524_v14 = vpop.f32.mrf.mxu0 }
 0x1fa   : > { %v2028_v9 = vpop.f32.mrf.mxu3  ;;  %v1860_v13 = vadd.f32 %v1859_v8, %v1691_v7  ;;  %v1693_v20 = vpop.f32.mrf.mxu1  ;;  %v2457_v25 = vmax.f32 %v2393_v18, 0.0  ;;  %v3212_v7 = vld [vmem:[%s3883_s30 + $0x3e8] sm:$0xf]  ;;  %v3476_v8 = vld [vmem:[%s3883_s30 + $0x3f4] sm:$0xf0] }
 0x1fb   : > { %v1694_v21 = vadd.f32 %v1693_v20, %v1524_v14  ;;  %v3205_v14 = vor.u32 %v3475_v2, %v3204_v1  ;;  %v3209_v20 = vor.u32 %v3473_v3, %v3206_v5 }
 0x1fc   : > { %v2029_v17 = vadd.f32 %v2028_v9, %v1860_v13  ;;  %1563 = vmatmul.bf16.gmra.mxu0 %v3173_v10  ;;  %v3474_v9 = vld [vmem:[%s3883_s30 + $0x3ec] sm:$0xf]  ;;  %v3214_v10 = vld [vmem:[%s3883_s30 + $0x3f8] sm:$0xf0] }
 0x1fd   : > { %1732 = vmatmul.bf16.gmra.mxu1 %v3177_v11 }
 0x1fe   : > { %v2326_v19 = vmul.f32 %v4171_v29, %v2029_v17  ;;  %1901 = vmatmul.bf16.gmra.mxu2 %v3181_v15 }
 0x1ff   : > { %2070 = vmatmul.bf16.gmra.mxu3 %v3185_v16 }
 0x200   : > { %v2394_v22 = vadd.f32 %v4190_v6, %v2326_v19  ;;  %v3213_v19 = vor.u32 %v3476_v8, %v3212_v7 }
 0x201   : > { %v1862_v23 = vpop.f32.mrf.mxu2  ;;  %v1526_v28 = vpop.f32.mrf.mxu0 }
 0x202   : > { %v2031_v24 = vpop.f32.mrf.mxu3  ;;  %v2458_v26 = vmax.f32 %v2394_v22, 0.0  ;;  %v1863_v27 = vadd.f32 %v1862_v23, %v1694_v21  ;;  %v1695_v30 = vpop.f32.mrf.mxu1  ;;  %v3217_v21 = vor.u32 %v3474_v9, %v3214_v10 }
 0x203   : > { %v1696_v42 = vadd.f32 %v1695_v30, %v1526_v28 }
 0x204   : > { %v3612_v31 = vpack.c.bf16 %v2458_v26, %v2457_v25  ;;  %v2032_v35 = vadd.f32 %v2031_v24, %v1863_v27 }
 0x206   : > { %3688 = vst [vmem:[%s4001_s29 + $0xa0] sm:$0xff] %v3612_v31   ;;  %v2327_v47 = vmul.f32 %v4171_v29, %v2032_v35 }
 0x208   : > { %v2395_v54 = vadd.f32 %v4190_v6, %v2327_v47 }
 0x209   : > { %v1864_v43 = vpop.f32.mrf.mxu2  ;;  %v1529_v49 = vpop.f32.mrf.mxu0 }
 0x20a   : > { %v2033_v44 = vpop.f32.mrf.mxu3  ;;  %v1865_v48 = vadd.f32 %v1864_v43, %v1696_v42  ;;  %v1698_v50 = vpop.f32.mrf.mxu1  ;;  %v2459_v59 = vmax.f32 %v2395_v54, 0.0 }
 0x20b   : > { %v1699_v56 = vadd.f32 %v1698_v50, %v1529_v49 }
 0x20c   : > { %v2034_v53 = vadd.f32 %v2033_v44, %v1865_v48  ;;  %1568 = vmatmul.bf16.gmra.mxu0 %v3189_v45 }
 0x20d   : > { %1737 = vmatmul.bf16.gmra.mxu1 %v3193_v46 }
 0x20e   : > { %v2328_v55 = vmul.f32 %v4171_v29, %v2034_v53  ;;  %1906 = vmatmul.bf16.gmra.mxu2 %v3197_v51 }
 0x20f   : > { %2075 = vmatmul.bf16.gmra.mxu3 %v3201_v52 }
 0x210   : > { %v2396_v36 = vadd.f32 %v4190_v6, %v2328_v55 }
 0x211   : > { %v1867_v57 = vpop.f32.mrf.mxu2  ;;  %v1531_v62 = vpop.f32.mrf.mxu0 }
 0x212   : > { %v2036_v58 = vpop.f32.mrf.mxu3  ;;  %v2460_v60 = vmax.f32 %v2396_v36, 0.0  ;;  %v1868_v61 = vadd.f32 %v1867_v57, %v1699_v56  ;;  %v1700_v63 = vpop.f32.mrf.mxu1 }
 0x213   : > { %v1701_v11 = vadd.f32 %v1700_v63, %v1531_v62 }
 0x214   : > { %v3617_v0 = vpack.c.bf16 %v2460_v60, %v2459_v59  ;;  %v2037_v4 = vadd.f32 %v2036_v58, %v1868_v61 }
 0x216   : > { %3689 = vst [vmem:[%s4001_s29 + $0xa8] sm:$0xff] %v3617_v0   ;;  %v2329_v15 = vmul.f32 %v4171_v29, %v2037_v4 }
 0x218   : > { %v2397_v23 = vadd.f32 %v4190_v6, %v2329_v15 }
 0x219   : > { %v1869_v12 = vpop.f32.mrf.mxu2  ;;  %v1534_v17 = vpop.f32.mrf.mxu0 }
 0x21a   : > { %v2038_v13 = vpop.f32.mrf.mxu3  ;;  %v1870_v16 = vadd.f32 %v1869_v12, %v1701_v11  ;;  %v1703_v18 = vpop.f32.mrf.mxu1  ;;  %v2461_v30 = vmax.f32 %v2397_v23, 0.0 }
 0x21b   : > { %v1704_v25 = vadd.f32 %v1703_v18, %v1534_v17 }
 0x21c   : > { %v2039_v22 = vadd.f32 %v2038_v13, %v1870_v16  ;;  %1573 = vmatmul.bf16.gmra.mxu0 %v3205_v14 }
 0x21d   : > { %1742 = vmatmul.bf16.gmra.mxu1 %v3209_v20 }
 0x21e   : > { %v2330_v24 = vmul.f32 %v4171_v29, %v2039_v22  ;;  %1911 = vmatmul.bf16.gmra.mxu2 %v3213_v19 }
 0x21f   : > { %2080 = vmatmul.bf16.gmra.mxu3 %v3217_v21 }
 0x220   : > { %v2398_v26 = vadd.f32 %v4190_v6, %v2330_v24 }
 0x221   : > { %v1872_v27 = vpop.f32.mrf.mxu2  ;;  %v1536_v33 = vpop.f32.mrf.mxu0 }
 0x222   : > { %v2041_v28 = vpop.f32.mrf.mxu3  ;;  %v2462_v31 = vmax.f32 %v2398_v26, 0.0  ;;  %v1873_v32 = vadd.f32 %v1872_v27, %v1704_v25  ;;  %v1705_v34 = vpop.f32.mrf.mxu1 }
 0x223   : > { %v1706_v38 = vadd.f32 %v1705_v34, %v1536_v33 }
 0x224   : > { %v3622_v35 = vpack.c.bf16 %v2462_v31, %v2461_v30  ;;  %v2042_v37 = vadd.f32 %v2041_v28, %v1873_v32 }
 0x226   : > { %3690 = vst [vmem:[%s4001_s29 + $0xb0] sm:$0xff] %v3622_v35   ;;  %v2331_v41 = vmul.f32 %v4171_v29, %v2042_v37 }
 0x228   : > { %v2399_v46 = vadd.f32 %v4190_v6, %v2331_v41 }
 0x229   : > { %v1874_v39 = vpop.f32.mrf.mxu2  ;;  %v1539_v43 = vpop.f32.mrf.mxu0 }
 0x22a   : > { %v2043_v40 = vpop.f32.mrf.mxu3  ;;  %v1875_v42 = vadd.f32 %v1874_v39, %v1706_v38  ;;  %v1708_v44 = vpop.f32.mrf.mxu1  ;;  %v2463_v52 = vmax.f32 %v2399_v46, 0.0 }
 0x22b   : > { %v1709_v48 = vadd.f32 %v1708_v44, %v1539_v43 }
 0x22c   : > { %v2044_v45 = vadd.f32 %v2043_v40, %v1875_v42 }
 0x22e   : > { %v2332_v47 = vmul.f32 %v4171_v29, %v2044_v45 }
 0x230   : > { %v2400_v49 = vadd.f32 %v4190_v6, %v2332_v47 }
 0x231   : > { %v1877_v50 = vpop.f32.mrf.mxu2  ;;  %v1541_v55 = vpop.f32.mrf.mxu0 }
 0x232   : > { %v2046_v51 = vpop.f32.mrf.mxu3  ;;  %v2464_v53 = vmax.f32 %v2400_v49, 0.0  ;;  %v1878_v54 = vadd.f32 %v1877_v50, %v1709_v48  ;;  %v1710_v56 = vpop.f32.mrf.mxu1 }
 0x233   : > { %v1711_v58 = vadd.f32 %v1710_v56, %v1541_v55 }
 0x234   : > { %v3627_v36 = vpack.c.bf16 %v2464_v53, %v2463_v52  ;;  %v2047_v57 = vadd.f32 %v2046_v51, %v1878_v54 }
 0x236   : > { %3691 = vst [vmem:[%s4001_s29 + $0xb8] sm:$0xff] %v3627_v36   ;;  %v2333_v61 = vmul.f32 %v4171_v29, %v2047_v57 }
 0x238   : > { %v2401_v2 = vadd.f32 %v4190_v6, %v2333_v61 }
 0x239   : > { %v1879_v59 = vpop.f32.mrf.mxu2  ;;  %v1544_v63 = vpop.f32.mrf.mxu0 }
 0x23a   : > { %v2048_v60 = vpop.f32.mrf.mxu3  ;;  %v1880_v62 = vadd.f32 %v1879_v59, %v1711_v58  ;;  %v1713_v0 = vpop.f32.mrf.mxu1  ;;  %v2465_v9 = vmax.f32 %v2401_v2, 0.0 }
 0x23b   : > { %v1714_v4 = vadd.f32 %v1713_v0, %v1544_v63 }
 0x23c   : > { %v2049_v1 = vadd.f32 %v2048_v60, %v1880_v62 }
 0x23e   : > { %v2334_v3 = vmul.f32 %v4171_v29, %v2049_v1 }
 0x240   : > { %v2402_v5 = vadd.f32 %v4190_v6, %v2334_v3 }
 0x241   : > { %v1882_v7 = vpop.f32.mrf.mxu2  ;;  %v1546_v12 = vpop.f32.mrf.mxu0 }
 0x242   : > { %v2051_v8 = vpop.f32.mrf.mxu3  ;;  %v2466_v10 = vmax.f32 %v2402_v5, 0.0  ;;  %v1883_v11 = vadd.f32 %v1882_v7, %v1714_v4  ;;  %v1715_v13 = vpop.f32.mrf.mxu1 }
 0x243   : > { %v1716_v15 = vadd.f32 %v1715_v13, %v1546_v12 }
 0x244   : > { %v3632_v14 = vpack.c.bf16 %v2466_v10, %v2465_v9  ;;  %v2052_v20 = vadd.f32 %v2051_v8, %v1883_v11 }
 0x246   : > { %3692 = vst [vmem:[%s4001_s29 + $0xc0] sm:$0xff] %v3632_v14   ;;  %v2335_v18 = vmul.f32 %v4171_v29, %v2052_v20 }
 0x248   : > { %v2403_v24 = vadd.f32 %v4190_v6, %v2335_v18 }
 0x249   : > { %v1884_v16 = vpop.f32.mrf.mxu2  ;;  %v1549_v21 = vpop.f32.mrf.mxu0 }
 0x24a   : > { %v2053_v17 = vpop.f32.mrf.mxu3  ;;  %v1885_v19 = vadd.f32 %v1884_v16, %v1716_v15  ;;  %v1718_v22 = vpop.f32.mrf.mxu1  ;;  %v2467_v31 = vmax.f32 %v2403_v24, 0.0 }
 0x24b   : > { %v1719_v26 = vadd.f32 %v1718_v22, %v1549_v21 }
 0x24c   : > { %v2054_v23 = vadd.f32 %v2053_v17, %v1885_v19 }
 0x24e   : > { %v2336_v25 = vmul.f32 %v4171_v29, %v2054_v23 }
 0x250   : > { %v2404_v27 = vadd.f32 %v4190_v6, %v2336_v25 }
 0x251   : > { %v1887_v28 = vpop.f32.mrf.mxu2  ;;  %v1551_v34 = vpop.f32.mrf.mxu0 }
 0x252   : > { %v2056_v30 = vpop.f32.mrf.mxu3  ;;  %v2468_v32 = vmax.f32 %v2404_v27, 0.0  ;;  %v1888_v33 = vadd.f32 %v1887_v28, %v1719_v26  ;;  %v1720_v35 = vpop.f32.mrf.mxu1 }
 0x253   : > { %v1721_v39 = vadd.f32 %v1720_v35, %v1551_v34 }
 0x254   : > { %v3637_v37 = vpack.c.bf16 %v2468_v32, %v2467_v31  ;;  %v2057_v38 = vadd.f32 %v2056_v30, %v1888_v33 }
 0x256   : > { %3693 = vst [vmem:[%s4001_s29 + $0xc8] sm:$0xff] %v3637_v37   ;;  %v2337_v42 = vmul.f32 %v4171_v29, %v2057_v38 }
 0x258   : > { %v2405_v47 = vadd.f32 %v4190_v6, %v2337_v42 }
 0x259   : > { %v1889_v40 = vpop.f32.mrf.mxu2  ;;  %v1554_v44 = vpop.f32.mrf.mxu0 }
 0x25a   : > { %v2058_v41 = vpop.f32.mrf.mxu3  ;;  %v1890_v43 = vadd.f32 %v1889_v40, %v1721_v39  ;;  %v1723_v45 = vpop.f32.mrf.mxu1  ;;  %v2469_v53 = vmax.f32 %v2405_v47, 0.0 }
 0x25b   : > { %v1724_v49 = vadd.f32 %v1723_v45, %v1554_v44 }
 0x25c   : > { %v2059_v46 = vadd.f32 %v2058_v41, %v1890_v43 }
 0x25e   : > { %v2338_v48 = vmul.f32 %v4171_v29, %v2059_v46 }
 0x260   : > { %v2406_v50 = vadd.f32 %v4190_v6, %v2338_v48 }
 0x261   : > { %v1892_v51 = vpop.f32.mrf.mxu2  ;;  %v1556_v56 = vpop.f32.mrf.mxu0 }
 0x262   : > { %v2061_v52 = vpop.f32.mrf.mxu3  ;;  %v2470_v54 = vmax.f32 %v2406_v50, 0.0  ;;  %v1893_v55 = vadd.f32 %v1892_v51, %v1724_v49  ;;  %v1725_v36 = vpop.f32.mrf.mxu1 }
 0x263   : > { %v1726_v59 = vadd.f32 %v1725_v36, %v1556_v56 }
 0x264   : > { %v3642_v57 = vpack.c.bf16 %v2470_v54, %v2469_v53  ;;  %v2062_v58 = vadd.f32 %v2061_v52, %v1893_v55 }
 0x266   : > { %3694 = vst [vmem:[%s4001_s29 + $0xd0] sm:$0xff] %v3642_v57   ;;  %v2339_v62 = vmul.f32 %v4171_v29, %v2062_v58 }
 0x268   : > { %v2407_v3 = vadd.f32 %v4190_v6, %v2339_v62 }
 0x269   : > { %v1894_v60 = vpop.f32.mrf.mxu2  ;;  %v1559_v0 = vpop.f32.mrf.mxu0 }
 0x26a   : > { %v2063_v61 = vpop.f32.mrf.mxu3  ;;  %v1895_v63 = vadd.f32 %v1894_v60, %v1726_v59  ;;  %v1728_v1 = vpop.f32.mrf.mxu1  ;;  %v2471_v10 = vmax.f32 %v2407_v3, 0.0 }
 0x26b   : > { %v1729_v5 = vadd.f32 %v1728_v1, %v1559_v0 }
 0x26c   : > { %v2064_v2 = vadd.f32 %v2063_v61, %v1895_v63 }
 0x26e   : > { %v2340_v4 = vmul.f32 %v4171_v29, %v2064_v2 }
 0x270   : > { %v2408_v7 = vadd.f32 %v4190_v6, %v2340_v4 }
 0x271   : > { %v1897_v8 = vpop.f32.mrf.mxu2  ;;  %v1561_v13 = vpop.f32.mrf.mxu0 }
 0x272   : > { %v2066_v9 = vpop.f32.mrf.mxu3  ;;  %v2472_v11 = vmax.f32 %v2408_v7, 0.0  ;;  %v1898_v12 = vadd.f32 %v1897_v8, %v1729_v5  ;;  %v1730_v14 = vpop.f32.mrf.mxu1 }
 0x273   : > { %v1731_v16 = vadd.f32 %v1730_v14, %v1561_v13 }
 0x274   : > { %v3647_v20 = vpack.c.bf16 %v2472_v11, %v2471_v10  ;;  %v2067_v15 = vadd.f32 %v2066_v9, %v1898_v12 }
 0x276   : > { %3695 = vst [vmem:[%s4001_s29 + $0xd8] sm:$0xff] %v3647_v20   ;;  %v2341_v19 = vmul.f32 %v4171_v29, %v2067_v15 }
 0x278   : > { %v2409_v25 = vadd.f32 %v4190_v6, %v2341_v19 }
 0x279   : > { %v1899_v17 = vpop.f32.mrf.mxu2  ;;  %v1564_v22 = vpop.f32.mrf.mxu0 }
 0x27a   : > { %v2068_v18 = vpop.f32.mrf.mxu3  ;;  %v1900_v21 = vadd.f32 %v1899_v17, %v1731_v16  ;;  %v1733_v23 = vpop.f32.mrf.mxu1  ;;  %v2473_v32 = vmax.f32 %v2409_v25, 0.0 }
 0x27b   : > { %v1734_v27 = vadd.f32 %v1733_v23, %v1564_v22 }
 0x27c   : > { %v2069_v24 = vadd.f32 %v2068_v18, %v1900_v21 }
 0x27e   : > { %v2342_v26 = vmul.f32 %v4171_v29, %v2069_v24 }
 0x280   : > { %v2410_v28 = vadd.f32 %v4190_v6, %v2342_v26 }
 0x281   : > { %v1902_v30 = vpop.f32.mrf.mxu2  ;;  %v1566_v35 = vpop.f32.mrf.mxu0 }
 0x282   : > { %v2071_v31 = vpop.f32.mrf.mxu3  ;;  %v2474_v33 = vmax.f32 %v2410_v28, 0.0  ;;  %v1903_v34 = vadd.f32 %v1902_v30, %v1734_v27  ;;  %v1735_v37 = vpop.f32.mrf.mxu1 }
 0x283   : > { %v1736_v40 = vadd.f32 %v1735_v37, %v1566_v35 }
 0x284   : > { %v3652_v38 = vpack.c.bf16 %v2474_v33, %v2473_v32  ;;  %v2072_v39 = vadd.f32 %v2071_v31, %v1903_v34 }
 0x286   : > { %3696 = vst [vmem:[%s4001_s29 + $0xe0] sm:$0xff] %v3652_v38   ;;  %v2343_v43 = vmul.f32 %v4171_v29, %v2072_v39 }
 0x288   : > { %v2411_v48 = vadd.f32 %v4190_v6, %v2343_v43 }
 0x289   : > { %v1904_v41 = vpop.f32.mrf.mxu2  ;;  %v1569_v45 = vpop.f32.mrf.mxu0 }
 0x28a   : > { %v2073_v42 = vpop.f32.mrf.mxu3  ;;  %v1905_v44 = vadd.f32 %v1904_v41, %v1736_v40  ;;  %v1738_v46 = vpop.f32.mrf.mxu1  ;;  %v2475_v54 = vmax.f32 %v2411_v48, 0.0 }
 0x28b   : > { %v1739_v50 = vadd.f32 %v1738_v46, %v1569_v45 }
 0x28c   : > { %v2074_v47 = vadd.f32 %v2073_v42, %v1905_v44 }
 0x28e   : > { %v2344_v49 = vmul.f32 %v4171_v29, %v2074_v47  ;;  %v3728_v29 = vld [vmem:[%s4355_s2] ss:$0 sm:$0xff] }
 0x290   : > { %v2412_v51 = vadd.f32 %v4190_v6, %v2344_v49 }
 0x291   : > { %v1907_v52 = vpop.f32.mrf.mxu2  ;;  %v1571_v36 = vpop.f32.mrf.mxu0 }
 0x292   : > { %v2076_v53 = vpop.f32.mrf.mxu3  ;;  %v2476_v55 = vmax.f32 %v2412_v51, 0.0  ;;  %v1908_v56 = vadd.f32 %v1907_v52, %v1739_v50  ;;  %v1740_v57 = vpop.f32.mrf.mxu1 }
 0x293   : > { %v1741_v60 = vadd.f32 %v1740_v57, %v1571_v36 }
 0x294   : > { %v3657_v58 = vpack.c.bf16 %v2476_v55, %v2475_v54  ;;  %v2077_v59 = vadd.f32 %v2076_v53, %v1908_v56 }
 0x296   : > { %3697 = vst [vmem:[%s4001_s29 + $0xe8] sm:$0xff] %v3657_v58   ;;  %v2345_v63 = vmul.f32 %v3728_v29, %v2077_v59 }
 0x298   : > { %v2413_v4 = vadd.f32 %v4190_v6, %v2345_v63 }
 0x299   : > { %v1909_v61 = vpop.f32.mrf.mxu2  ;;  %v1574_v1 = vpop.f32.mrf.mxu0 }
 0x29a   : > { %v2078_v62 = vpop.f32.mrf.mxu3  ;;  %v1910_v0 = vadd.f32 %v1909_v61, %v1741_v60  ;;  %v1743_v2 = vpop.f32.mrf.mxu1  ;;  %v2477_v11 = vmax.f32 %v2413_v4, 0.0 }
 0x29b   : > { %v1744_v7 = vadd.f32 %v1743_v2, %v1574_v1 }
 0x29c   : > { %v2079_v3 = vadd.f32 %v2078_v62, %v1910_v0 }
 0x29e   : > { %v2346_v5 = vmul.f32 %v3728_v29, %v2079_v3 }
 0x2a0   : > { %v2414_v8 = vadd.f32 %v4190_v6, %v2346_v5 }
 0x2a1   : > { %v1912_v9 = vpop.f32.mrf.mxu2  ;;  %v1576_v20 = vpop.f32.mrf.mxu0 }
 0x2a2   : > { %v2081_v10 = vpop.f32.mrf.mxu3  ;;  %v2478_v12 = vmax.f32 %v2414_v8, 0.0  ;;  %v1913_v13 = vadd.f32 %v1912_v9, %v1744_v7  ;;  %v1745_v15 = vpop.f32.mrf.mxu1 }
 0x2a3   : > { %v1746_v17 = vadd.f32 %v1745_v15, %v1576_v20 }
 0x2a4   : > { %v3662_v14 = vpack.c.bf16 %v2478_v12, %v2477_v11  ;;  %v2082_v16 = vadd.f32 %v2081_v10, %v1913_v13 }
 0x2a6   : > { %3698 = vst [vmem:[%s4001_s29 + $0xf0] sm:$0xff] %v3662_v14   ;;  %v2347_v19 = vmul.f32 %v3728_v29, %v2082_v16 }
 0x2a8   : > { %v2415_v24 = vadd.f32 %v4190_v6, %v2347_v19 }
 0x2a9   : > { %v1914_v18 = vpop.f32.mrf.mxu2 }
 0x2aa   : > { %v1915_v21 = vadd.f32 %v1914_v18, %v1746_v17  ;;  %v2083_v22 = vpop.f32.mrf.mxu3  ;;  %v2479_v27 = vmax.f32 %v2415_v24, 0.0 }
 0x2ac   : > { %v2084_v23 = vadd.f32 %v2083_v22, %v1915_v21 }
 0x2ae   : > { %v2348_v25 = vmul.f32 %v3728_v29, %v2084_v23 }
 0x2b0   : > { %v2416_v26 = vadd.f32 %v4190_v6, %v2348_v25 }
 0x2b2   : > { %v2480_v28 = vmax.f32 %v2416_v26, 0.0 }
 0x2b4   : > { %v3667_v30 = vpack.c.bf16 %v2480_v28, %v2479_v27 }
 0x2b6   : > { %3699 = vst [vmem:[%s4001_s29 + $0xf8] sm:$0xff] %v3667_v30  }
 0x2b7 PF: > { %s14_s17 = sadd.s32 1, %s3751_s17   ;;  %s4358_s15 = smov %s3747_s16 }
 0x2b8   : > { %p11_p5 = scmp.ge.s32.totalorder %s14_s17, 4   ;;  %s4359_s16 = smov %s4361_s18 }
 0x2ba   :  { %13 = sbr.rel (!%p11_p5) target bundleno = 2 (0x2), region = 77 }

// kernel: model_forward.5
= control target key start
LH: loop header
LB: loop body
LE: loop exit
PB: predicated region body
PF: predicated region fallthrough
CT: control target
= control target key end

     0   :  { %s4040_s15 = smov 0   ;;  %s4042_s16 = smov 0   ;;  %s4838_s0 = inlined_call_operand.vmem [shape: bf16[256,1792], index: 0, kind: input, shape index: {}]   ;;  %s4839_s1 = inlined_call_operand.vmem [shape: bf16[1792,128], index: 1, kind: input, shape index: {}]   ;;  %s4840_s2 = inlined_call_operand.vmem [shape: f32[1,128], index: 2, kind: input, shape index: {}]   ;;  %s4841_s3 = inlined_call_operand.vmem [shape: f32[1,128], index: 3, kind: input, shape index: {}]   ;;  %s4842_s4 = inlined_call_operand.vmem [shape: bf16[256,128], index: 4, kind: output, shape index: {}]  }
   0x1   :  { %s4044_s17 = smov 0  }
   0x2 LB: > { %s26_s18 = sadd.s32 1, %s4009_s16  ;;  %p2774_p0 = scmp.ge.s32.totalorder %s4013_s17, 1  ;;  %s4013_s17 = sphi %s4044_s17, %s14_s17   ;;  %s4009_s16 = sphi %s4042_s16, %s4844_s16   ;;  %s4005_s15 = sphi %s4040_s15, %s4843_s15  }
   0x3   : > { %p28_p1 = scmp.ge.s32.totalorder %s26_s18, 2  ;;  %p194_p2 = scmp.lt.s32.totalorder %s4013_s17, 3 }
   0x5   : > { %s4846_s18 = smov (%p28_p1, %s26_s18), 0  ;;  %p195_p3 = pnand %p2774_p0, %p194_p2 }
   0x6   : > { %s2775_s5 = sshll.u32 (!%p195_p3), %s4005_s15, 4 }
   0x7   : > { %198 = sbr.rel (%p195_p3) target bundleno = 633 (0x279), region = 36  ;;  %p232_p4 = scmp.lt.s32.totalorder (!%p195_p3), %s2775_s5, 31 }
   0xc   : > { %v3796_v0 = vld [vmem:[%s4839_s1 + $0x38] sm:$0xff]  ;;  %v3795_v2 = vld [vmem:[%s4839_s1 + $0x30] sm:$0xff]  ;;  %v3794_v4 = vld [vmem:[%s4839_s1 + $0x28] sm:$0xff]  ;;  %s4848_s5 = smov (!%p232_p4, %s2775_s5), 31 }
   0xd   : > { %v3804_v1 = vld [vmem:[%s4839_s1 + $0x78] sm:$0xff]  ;;  %3948 = vmatpush.bf16.msra.mxu2 %v3796_v0  ;;  %v3803_v3 = vld [vmem:[%s4839_s1 + $0x70] sm:$0xff]  ;;  %1858 = vmatpush.bf16.msra.mxu0 %v3796_v0  ;;  %v3802_v5 = vld [vmem:[%s4839_s1 + $0x68] sm:$0xff]  ;;  %s3964_s21 = smul.u32 56, %s4848_s5  ;;  %s2778_s14 = sshll.u32 %s4848_s5, 2 }
   0xe   : > { %3956 = vmatpush.bf16.msra.mxu3 %v3804_v1  ;;  %1907 = vmatpush.bf16.msra.mxu1 %v3804_v1  ;;  %v3793_v6 = vld [vmem:[%s4839_s1 + $0x20] sm:$0xff]  ;;  %v3792_v8 = vld [vmem:[%s4839_s1 + $0x18] sm:$0xff]  ;;  %v3791_v10 = vld [vmem:[%s4839_s1 + $0x10] sm:$0xff]  ;;  %s4778_s20 = scalar_lea.vmem %s4842_s4, %s2778_s14 }
   0xf   : > { %v3801_v7 = vld [vmem:[%s4839_s1 + $0x60] sm:$0xff]  ;;  %v3800_v9 = vld [vmem:[%s4839_s1 + $0x58] sm:$0xff]  ;;  %v3799_v11 = vld [vmem:[%s4839_s1 + $0x50] sm:$0xff]  ;;  %s4109_s28 = scalar_lea.vmem %s4838_s0, %s3964_s21 }
  0x10   : > { %v3790_v12 = vld [vmem:[%s4839_s1 + $0x8] sm:$0xff]  ;;  %v3789_v14 = vld [vmem:[%s4839_s1] sm:$0xff]  ;;  %v3740_v17 = vld [vmem:[%s4109_s28 + $0x1f4] sm:$0xf0] }
  0x11   : > { %3949 = vmatpush.bf16.msra.mxu2 %v3795_v2  ;;  %1859 = vmatpush.bf16.msra.mxu0 %v3795_v2  ;;  %v3798_v13 = vld [vmem:[%s4839_s1 + $0x48] sm:$0xff]  ;;  %v3797_v15 = vld [vmem:[%s4839_s1 + $0x40] sm:$0xff]  ;;  %v3007_v19 = vld [vmem:[%s4109_s28 + $0x1f8] sm:$0xf0] }
  0x12   : > { %3957 = vmatpush.bf16.msra.mxu3 %v3803_v3  ;;  %1908 = vmatpush.bf16.msra.mxu1 %v3803_v3  ;;  %v3005_v16 = vld [vmem:[%s4109_s28 + $0x1c0] sm:$0xf]  ;;  %v3733_v18 = vld [vmem:[%s4109_s28 + $0x1c4] sm:$0xf]  ;;  %v3684_v21 = vld [vmem:[%s4109_s28 + $0x34] sm:$0xf0] }
  0x13   : > { %v2781_v20 = vld [vmem:[%s4109_s28] sm:$0xf]  ;;  %v3677_v22 = vld [vmem:[%s4109_s28 + $0x4] sm:$0xf]  ;;  %v2783_v23 = vld [vmem:[%s4109_s28 + $0x38] sm:$0xf0]  ;;  %v3006_v26 = vor.u32 %v3740_v17, %v3005_v16  ;;  %v3010_v27 = vor.u32 %v3733_v18, %v3007_v19 }
  0x14   : > { %v3812_v24 = vld [vmem:[%s4839_s1 + $0xb8] sm:$0xff]  ;;  %v2782_v28 = vor.u32 %v3684_v21, %v2781_v20  ;;  %v2786_v29 = vor.u32 %v3677_v22, %v2783_v23  ;;  %v3811_v32 = vld [vmem:[%s4839_s1 + $0xb0] sm:$0xff]  ;;  %v3810_v36 = vld [vmem:[%s4839_s1 + $0xa8] sm:$0xff] }
  0x15   : > { %3950 = vmatpush.bf16.msra.mxu2 %v3794_v4  ;;  %1860 = vmatpush.bf16.msra.mxu0 %v3794_v4  ;;  %v3820_v25 = vld [vmem:[%s4839_s1 + $0xf8] sm:$0xff]  ;;  %v3819_v33 = vld [vmem:[%s4839_s1 + $0xf0] sm:$0xff]  ;;  %v3818_v37 = vld [vmem:[%s4839_s1 + $0xe8] sm:$0xff] }
  0x16   : > { %3958 = vmatpush.bf16.msra.mxu3 %v3802_v5  ;;  %1909 = vmatpush.bf16.msra.mxu1 %v3802_v5  ;;  %v3828_v30 = vld [vmem:[%s4839_s1 + $0x138] sm:$0xff]  ;;  %v3827_v34 = vld [vmem:[%s4839_s1 + $0x130] sm:$0xff]  ;;  %v3826_v38 = vld [vmem:[%s4839_s1 + $0x128] sm:$0xff] }
  0x17   : > { %v3836_v31 = vld [vmem:[%s4839_s1 + $0x178] sm:$0xff]  ;;  %v3835_v35 = vld [vmem:[%s4839_s1 + $0x170] sm:$0xff]  ;;  %v3834_v39 = vld [vmem:[%s4839_s1 + $0x168] sm:$0xff] }
  0x18   : > { %v3061_v40 = vld [vmem:[%s4109_s28 + $0x230] sm:$0xf]  ;;  %v3809_v41 = vld [vmem:[%s4839_s1 + $0xa0] sm:$0xff]  ;;  %v3754_v43 = vld [vmem:[%s4109_s28 + $0x264] sm:$0xf0] }
  0x19   : > { %3951 = vmatpush.bf16.msra.mxu2 %v3793_v6  ;;  %1861 = vmatpush.bf16.msra.mxu0 %v3793_v6  ;;  %v3817_v42 = vld [vmem:[%s4839_s1 + $0xe0] sm:$0xff]  ;;  %v3747_v44 = vld [vmem:[%s4109_s28 + $0x234] sm:$0xf]  ;;  %v3063_v45 = vld [vmem:[%s4109_s28 + $0x268] sm:$0xf0]  ;;  %v3062_v54 = vor.u32 %v3754_v43, %v3061_v40 }
  0x1a   : > { %3959 = vmatpush.bf16.msra.mxu3 %v3801_v7  ;;  %1910 = vmatpush.bf16.msra.mxu1 %v3801_v7  ;;  %v2837_v46 = vld [vmem:[%s4109_s28 + $0x70] sm:$0xf]  ;;  %v3698_v47 = vld [vmem:[%s4109_s28 + $0xa4] sm:$0xf0]  ;;  %v3691_v48 = vld [vmem:[%s4109_s28 + $0x74] sm:$0xf]  ;;  %v3066_v55 = vor.u32 %v3747_v44, %v3063_v45 }
  0x1b   : > { %v2839_v49 = vld [vmem:[%s4109_s28 + $0xa8] sm:$0xf0]  ;;  %v3825_v50 = vld [vmem:[%s4839_s1 + $0x120] sm:$0xff]  ;;  %v3808_v52 = vld [vmem:[%s4839_s1 + $0x98] sm:$0xff]  ;;  %v2838_v56 = vor.u32 %v3698_v47, %v2837_v46 }
  0x1c   : > { %v3833_v51 = vld [vmem:[%s4839_s1 + $0x160] sm:$0xff]  ;;  %v3816_v53 = vld [vmem:[%s4839_s1 + $0xd8] sm:$0xff]  ;;  %v2842_v57 = vor.u32 %v3691_v48, %v2839_v49  ;;  %v3807_v60 = vld [vmem:[%s4839_s1 + $0x90] sm:$0xff] }
  0x1d   : > { %3952 = vmatpush.bf16.msra.mxu2 %v3792_v8  ;;  %1862 = vmatpush.bf16.msra.mxu0 %v3792_v8  ;;  %v3824_v58 = vld [vmem:[%s4839_s1 + $0x118] sm:$0xff]  ;;  %v3815_v61 = vld [vmem:[%s4839_s1 + $0xd0] sm:$0xff]  ;;  %v3806_v0 = vld [vmem:[%s4839_s1 + $0x88] sm:$0xff] }
  0x1e   : > { %3960 = vmatpush.bf16.msra.mxu3 %v3800_v9  ;;  %1911 = vmatpush.bf16.msra.mxu1 %v3800_v9  ;;  %v3832_v59 = vld [vmem:[%s4839_s1 + $0x158] sm:$0xff]  ;;  %v3823_v62 = vld [vmem:[%s4839_s1 + $0x110] sm:$0xff]  ;;  %v3814_v1 = vld [vmem:[%s4839_s1 + $0xc8] sm:$0xff] }
  0x1f   : > { %v3831_v63 = vld [vmem:[%s4839_s1 + $0x150] sm:$0xff]  ;;  %v3822_v2 = vld [vmem:[%s4839_s1 + $0x108] sm:$0xff]  ;;  %v3805_v4 = vld [vmem:[%s4839_s1 + $0x80] sm:$0xff] }
  0x20   : > { %v3830_v3 = vld [vmem:[%s4839_s1 + $0x148] sm:$0xff]  ;;  %v3813_v5 = vld [vmem:[%s4839_s1 + $0xc0] sm:$0xff]  ;;  %v3768_v7 = vld [vmem:[%s4109_s28 + $0x2d4] sm:$0xf0] }
  0x21   : > { %3953 = vmatpush.bf16.msra.mxu2 %v3791_v10  ;;  %1863 = vmatpush.bf16.msra.mxu0 %v3791_v10  ;;  %v3117_v6 = vld [vmem:[%s4109_s28 + $0x2a0] sm:$0xf]  ;;  %v3761_v8 = vld [vmem:[%s4109_s28 + $0x2a4] sm:$0xf]  ;;  %v3119_v9 = vld [vmem:[%s4109_s28 + $0x2d8] sm:$0xf0] }
  0x22   : > { %3961 = vmatpush.bf16.msra.mxu3 %v3799_v11  ;;  %1912 = vmatpush.bf16.msra.mxu1 %v3799_v11  ;;  %v2893_v10 = vld [vmem:[%s4109_s28 + $0xe0] sm:$0xf]  ;;  %v3712_v11 = vld [vmem:[%s4109_s28 + $0x114] sm:$0xf0]  ;;  %v3122_v16 = vor.u32 %v3761_v8, %v3119_v9  ;;  %v2789_v40 = vld [vmem:[%s4109_s28 + $0x8] sm:$0xf] }
  0x23   : > { %v2894_v17 = vor.u32 %v3712_v11, %v2893_v10  ;;  %v3829_v19 = vld [vmem:[%s4839_s1 + $0x140] sm:$0xff]  ;;  %v3844_v20 = vld [vmem:[%s4839_s1 + $0x1b8] sm:$0xff]  ;;  %v2797_v44 = vld [vmem:[%s4109_s28 + $0x10] sm:$0xf] }
  0x24   : > { %v3852_v21 = vld [vmem:[%s4839_s1 + $0x1f8] sm:$0xff]  ;;  %v2791_v43 = vld [vmem:[%s4109_s28 + $0x40] sm:$0xf0]  ;;  %v3686_v45 = vld [vmem:[%s4109_s28 + $0x44] sm:$0xf0] }
  0x25   : > { %3954 = vmatpush.bf16.msra.mxu2 %v3790_v12  ;;  %1864 = vmatpush.bf16.msra.mxu0 %v3790_v12  ;;  %v3705_v12 = vld [vmem:[%s4109_s28 + $0xe4] sm:$0xf]  ;;  %v3860_v22 = vld [vmem:[%s4839_s1 + $0x238] sm:$0xff]  ;;  %v3679_v46 = vld [vmem:[%s4109_s28 + $0x14] sm:$0xf] }
  0x26   : > { %3962 = vmatpush.bf16.msra.mxu3 %v3798_v13  ;;  %1913 = vmatpush.bf16.msra.mxu1 %v3798_v13  ;;  %v2895_v13 = vld [vmem:[%s4109_s28 + $0x118] sm:$0xf0]  ;;  %v2799_v47 = vld [vmem:[%s4109_s28 + $0x48] sm:$0xf0]  ;;  %v2901_v8 = vld [vmem:[%s4109_s28 + $0xe8] sm:$0xf] }
  0x27   : > { %v2898_v18 = vor.u32 %v3705_v12, %v2895_v13  ;;  %v3868_v23 = vld [vmem:[%s4839_s1 + $0x278] sm:$0xff]  ;;  %v3713_v9 = vld [vmem:[%s4109_s28 + $0x11c] sm:$0xf0]  ;;  %v3706_v10 = vld [vmem:[%s4109_s28 + $0xec] sm:$0xf] }
  0x28   : > { %v2903_v11 = vld [vmem:[%s4109_s28 + $0x120] sm:$0xf0]  ;;  %v2909_v12 = vld [vmem:[%s4109_s28 + $0xf0] sm:$0xf]  ;;  %v3714_v13 = vld [vmem:[%s4109_s28 + $0x124] sm:$0xf0] }
  0x29   : > { %3955 = vmatpush.bf16.msra.mxu2 %v3789_v14  ;;  %1865 = vmatpush.bf16.msra.mxu0 %v3789_v14  ;;  %v3821_v14 = vld [vmem:[%s4839_s1 + $0x100] sm:$0xff] }
  0x2a   : > { %3963 = vmatpush.bf16.msra.mxu3 %v3797_v15  ;;  %1914 = vmatpush.bf16.msra.mxu1 %v3797_v15  ;;  %v3118_v15 = vor.u32 %v3768_v7, %v3117_v6  ;;  %v3857_v6 = vld [vmem:[%s4839_s1 + $0x220] sm:$0xff] }
  0x2b   : > { %v3865_v7 = vld [vmem:[%s4839_s1 + $0x260] sm:$0xff] }
  0x2c   : > { %1886 = vmatmul.bf16.vlgmr.msra.gmra.mxu2 %v3006_v26  ;;  %1866 = vmatmul.bf16.vlgmr.msra.gmra.mxu0 %v2782_v28  ;;  %v3775_v26 = vld [vmem:[%s4109_s28 + $0x314] sm:$0xf]  ;;  %v2949_v28 = vld [vmem:[%s4109_s28 + $0x150] sm:$0xf] }
  0x2d   : > { %1956 = vmatpush.bf16.msrb.mxu2 %v3812_v24  ;;  %1935 = vmatmul.bf16.vlgmr.msra.gmra.mxu3 %v3010_v27  ;;  %v3173_v24 = vld [vmem:[%s4109_s28 + $0x310] sm:$0xf]  ;;  %v3175_v27 = vld [vmem:[%s4109_s28 + $0x348] sm:$0xf0] }
  0x2e   : > { %2005 = vmatpush.bf16.msrb.mxu3 %v3820_v25  ;;  %1915 = vmatmul.bf16.vlgmr.msra.gmra.mxu1 %v2786_v29  ;;  %v3782_v25 = vld [vmem:[%s4109_s28 + $0x344] sm:$0xf0] }
  0x2f   : > { %2054 = vmatpush.bf16.msrb.mxu0 %v3828_v30  ;;  %2103 = vmatpush.bf16.msrb.mxu1 %v3836_v31  ;;  %v3726_v29 = vld [vmem:[%s4109_s28 + $0x184] sm:$0xf0]  ;;  %v3719_v30 = vld [vmem:[%s4109_s28 + $0x154] sm:$0xf]  ;;  %v2951_v31 = vld [vmem:[%s4109_s28 + $0x188] sm:$0xf0] }
  0x31   : > { %1957 = vmatpush.bf16.msrb.mxu2 %v3811_v32  ;;  %v3174_v32 = vor.u32 %v3782_v25, %v3173_v24  ;;  %v3727_v24 = vld [vmem:[%s4109_s28 + $0x18c] sm:$0xf0]  ;;  %v3720_v25 = vld [vmem:[%s4109_s28 + $0x15c] sm:$0xf] }
  0x32   : > { %2006 = vmatpush.bf16.msrb.mxu3 %v3819_v33  ;;  %v3178_v33 = vor.u32 %v3775_v26, %v3175_v27  ;;  %v2959_v26 = vld [vmem:[%s4109_s28 + $0x190] sm:$0xf0]  ;;  %v2965_v27 = vld [vmem:[%s4109_s28 + $0x160] sm:$0xf] }
  0x33   : > { %2055 = vmatpush.bf16.msrb.mxu0 %v3827_v34  ;;  %2104 = vmatpush.bf16.msrb.mxu1 %v3835_v35  ;;  %v2950_v34 = vor.u32 %v3726_v29, %v2949_v28  ;;  %v2954_v35 = vor.u32 %v3719_v30, %v2951_v31  ;;  %v3728_v28 = vld [vmem:[%s4109_s28 + $0x194] sm:$0xf0]  ;;  %v3721_v29 = vld [vmem:[%s4109_s28 + $0x164] sm:$0xf]  ;;  %v2967_v30 = vld [vmem:[%s4109_s28 + $0x198] sm:$0xf0] }
  0x35   : > { %1958 = vmatpush.bf16.msrb.mxu2 %v3810_v36  ;;  %v3843_v36 = vld [vmem:[%s4839_s1 + $0x1b0] sm:$0xff] }
  0x36   : > { %2007 = vmatpush.bf16.msrb.mxu3 %v3818_v37  ;;  %v3851_v37 = vld [vmem:[%s4839_s1 + $0x1f0] sm:$0xff] }
  0x37   : > { %2056 = vmatpush.bf16.msrb.mxu0 %v3826_v38  ;;  %2105 = vmatpush.bf16.msrb.mxu1 %v3834_v39  ;;  %v3859_v38 = vld [vmem:[%s4839_s1 + $0x230] sm:$0xff] }
  0x38   : > { %v3867_v39 = vld [vmem:[%s4839_s1 + $0x270] sm:$0xff] }
  0x39   : > { %1959 = vmatpush.bf16.msrb.mxu2 %v3809_v41  ;;  %v3685_v41 = vld [vmem:[%s4109_s28 + $0x3c] sm:$0xf0] }
  0x3a   : > { %2008 = vmatpush.bf16.msrb.mxu3 %v3817_v42  ;;  %v3678_v42 = vld [vmem:[%s4109_s28 + $0xc] sm:$0xf]  ;;  %v2790_v48 = vor.u32 %v3685_v41, %v2789_v40  ;;  %v3741_v40 = vld [vmem:[%s4109_s28 + $0x1fc] sm:$0xf0] }
  0x3b   : > { %2057 = vmatpush.bf16.msrb.mxu0 %v3825_v50  ;;  %2106 = vmatpush.bf16.msrb.mxu1 %v3833_v51  ;;  %v2794_v49 = vor.u32 %v3678_v42, %v2791_v43  ;;  %v2798_v50 = vor.u32 %v3686_v45, %v2797_v44  ;;  %v2802_v51 = vor.u32 %v3679_v46, %v2799_v47  ;;  %v3734_v41 = vld [vmem:[%s4109_s28 + $0x1cc] sm:$0xf]  ;;  %v3015_v42 = vld [vmem:[%s4109_s28 + $0x200] sm:$0xf0]  ;;  %v3021_v43 = vld [vmem:[%s4109_s28 + $0x1d0] sm:$0xf] }
  0x3c   : > { %1891 = vmatmul.bf16.gmra.mxu2 %v3062_v54  ;;  %1871 = vmatmul.bf16.gmra.mxu0 %v2838_v56  ;;  %v3858_v54 = vld [vmem:[%s4839_s1 + $0x228] sm:$0xff]  ;;  %v2845_v56 = vld [vmem:[%s4109_s28 + $0x78] sm:$0xf]  ;;  %v3735_v45 = vld [vmem:[%s4109_s28 + $0x1d4] sm:$0xf] }
  0x3d   : > { %1960 = vmatpush.bf16.msrb.mxu2 %v3808_v52  ;;  %1940 = vmatmul.bf16.gmra.mxu3 %v3066_v55  ;;  %v3842_v52 = vld [vmem:[%s4839_s1 + $0x1a8] sm:$0xff] }
  0x3e   : > { %2009 = vmatpush.bf16.msrb.mxu3 %v3816_v53  ;;  %1920 = vmatmul.bf16.gmra.mxu1 %v2842_v57  ;;  %v3850_v53 = vld [vmem:[%s4839_s1 + $0x1e8] sm:$0xff]  ;;  %v3699_v57 = vld [vmem:[%s4109_s28 + $0xac] sm:$0xf0] }
  0x3f   : > { %2058 = vmatpush.bf16.msrb.mxu0 %v3824_v58  ;;  %2107 = vmatpush.bf16.msrb.mxu1 %v3832_v59  ;;  %v3866_v55 = vld [vmem:[%s4839_s1 + $0x268] sm:$0xff]  ;;  %v3692_v58 = vld [vmem:[%s4109_s28 + $0x7c] sm:$0xf]  ;;  %v2847_v59 = vld [vmem:[%s4109_s28 + $0xb0] sm:$0xf0] }
  0x40   : > { %v3742_v44 = vld [vmem:[%s4109_s28 + $0x204] sm:$0xf0]  ;;  %v3023_v46 = vld [vmem:[%s4109_s28 + $0x208] sm:$0xf0] }
  0x41   : > { %1961 = vmatpush.bf16.msrb.mxu2 %v3807_v60  ;;  %v2853_v60 = vld [vmem:[%s4109_s28 + $0x80] sm:$0xf] }
  0x42   : > { %2010 = vmatpush.bf16.msrb.mxu3 %v3815_v61  ;;  %v3700_v61 = vld [vmem:[%s4109_s28 + $0xb4] sm:$0xf0] }
  0x43   : > { %2059 = vmatpush.bf16.msrb.mxu0 %v3823_v62  ;;  %2108 = vmatpush.bf16.msrb.mxu1 %v3831_v63  ;;  %v3693_v62 = vld [vmem:[%s4109_s28 + $0x84] sm:$0xf]  ;;  %v2855_v63 = vld [vmem:[%s4109_s28 + $0xb8] sm:$0xf0] }
  0x45   : > { %1962 = vmatpush.bf16.msrb.mxu2 %v3806_v0  ;;  %v2846_v0 = vor.u32 %v3699_v57, %v2845_v56  ;;  %v3846_v56 = vld [vmem:[%s4839_s1 + $0x1c8] sm:$0xff] }
  0x46   : > { %2011 = vmatpush.bf16.msrb.mxu3 %v3814_v1  ;;  %v2850_v1 = vor.u32 %v3692_v58, %v2847_v59 }
  0x47   : > { %2060 = vmatpush.bf16.msrb.mxu0 %v3822_v2  ;;  %2109 = vmatpush.bf16.msrb.mxu1 %v3830_v3  ;;  %v2854_v2 = vor.u32 %v3700_v61, %v2853_v60  ;;  %v2858_v3 = vor.u32 %v3693_v62, %v2855_v63  ;;  %v3854_v63 = vld [vmem:[%s4839_s1 + $0x208] sm:$0xff] }
  0x49   : > { %1963 = vmatpush.bf16.msrb.mxu2 %v3805_v4  ;;  %v3841_v4 = vld [vmem:[%s4839_s1 + $0x1a0] sm:$0xff] }
  0x4a   : > { %2012 = vmatpush.bf16.msrb.mxu3 %v3813_v5  ;;  %v3849_v5 = vld [vmem:[%s4839_s1 + $0x1e0] sm:$0xff] }
  0x4b   : > { %2061 = vmatpush.bf16.msrb.mxu0 %v3821_v14  ;;  %2110 = vmatpush.bf16.msrb.mxu1 %v3829_v19  ;;  %v3707_v14 = vld [vmem:[%s4109_s28 + $0xf4] sm:$0xf] }
  0x4c   : > { %1896 = vmatmul.bf16.gmra.mxu2 %v3118_v15  ;;  %1876 = vmatmul.bf16.gmra.mxu0 %v2894_v17  ;;  %v2911_v15 = vld [vmem:[%s4109_s28 + $0x128] sm:$0xf0]  ;;  %v2906_v17 = vor.u32 %v3706_v10, %v2903_v11 }
  0x4d   : > { %1945 = vmatmul.bf16.gmra.mxu3 %v3122_v16  ;;  %2152 = vmatpush.bf16.msra.mxu2 %v3844_v20  ;;  %v2902_v16 = vor.u32 %v3713_v9, %v2901_v8  ;;  %v2914_v19 = vor.u32 %v3707_v14, %v2911_v15  ;;  %v3840_v20 = vld [vmem:[%s4839_s1 + $0x198] sm:$0xff] }
  0x4e   : > { %1925 = vmatmul.bf16.gmra.mxu1 %v2898_v18  ;;  %2201 = vmatpush.bf16.msra.mxu3 %v3852_v21  ;;  %v2910_v18 = vor.u32 %v3714_v13, %v2909_v12  ;;  %v3848_v21 = vld [vmem:[%s4839_s1 + $0x1d8] sm:$0xff]  ;;  %v3862_v13 = vld [vmem:[%s4839_s1 + $0x248] sm:$0xff] }
  0x4f   : > { %2250 = vmatpush.bf16.msra.mxu0 %v3860_v22  ;;  %2299 = vmatpush.bf16.msra.mxu1 %v3868_v23  ;;  %v3856_v22 = vld [vmem:[%s4839_s1 + $0x218] sm:$0xff] }
  0x50   : > { %v2957_v23 = vld [vmem:[%s4109_s28 + $0x158] sm:$0xf] }
  0x51   : > { %2153 = vmatpush.bf16.msra.mxu2 %v3843_v36  ;;  %v2958_v31 = vor.u32 %v3727_v24, %v2957_v23  ;;  %v3839_v36 = vld [vmem:[%s4839_s1 + $0x190] sm:$0xff] }
  0x52   : > { %2202 = vmatpush.bf16.msra.mxu3 %v3851_v37  ;;  %v3847_v37 = vld [vmem:[%s4839_s1 + $0x1d0] sm:$0xff] }
  0x53   : > { %2251 = vmatpush.bf16.msra.mxu0 %v3859_v38  ;;  %2300 = vmatpush.bf16.msra.mxu1 %v3867_v39  ;;  %v3855_v38 = vld [vmem:[%s4839_s1 + $0x210] sm:$0xff]  ;;  %v3013_v39 = vld [vmem:[%s4109_s28 + $0x1c8] sm:$0xf] }
  0x54   : > { %v3014_v47 = vor.u32 %v3741_v40, %v3013_v39 }
  0x55   : > { %2154 = vmatpush.bf16.msra.mxu2 %v3842_v52 }
  0x56   : > { %2203 = vmatpush.bf16.msra.mxu3 %v3850_v53 }
  0x57   : > { %2252 = vmatpush.bf16.msra.mxu0 %v3858_v54  ;;  %2301 = vmatpush.bf16.msra.mxu1 %v3866_v55  ;;  %v3838_v55 = vld [vmem:[%s4839_s1 + $0x188] sm:$0xff] }
  0x59   : > { %2155 = vmatpush.bf16.msra.mxu2 %v3841_v4  ;;  %v3077_v4 = vld [vmem:[%s4109_s28 + $0x240] sm:$0xf] }
  0x5a   : > { %2204 = vmatpush.bf16.msra.mxu3 %v3849_v5  ;;  %v3756_v5 = vld [vmem:[%s4109_s28 + $0x274] sm:$0xf0] }
  0x5b   : > { %2253 = vmatpush.bf16.msra.mxu0 %v3857_v6  ;;  %2302 = vmatpush.bf16.msra.mxu1 %v3865_v7  ;;  %v3749_v6 = vld [vmem:[%s4109_s28 + $0x244] sm:$0xf]  ;;  %v3079_v7 = vld [vmem:[%s4109_s28 + $0x278] sm:$0xf0]  ;;  %v3078_v14 = vor.u32 %v3756_v5, %v3077_v4 }
  0x5c   : > { %1901 = vmatmul.bf16.gmra.mxu2 %v3174_v32  ;;  %1881 = vmatmul.bf16.gmra.mxu0 %v2950_v34  ;;  %v2962_v32 = vor.u32 %v3720_v25, %v2959_v26  ;;  %v2966_v34 = vor.u32 %v3728_v28, %v2965_v27  ;;  %v3082_v15 = vor.u32 %v3749_v6, %v3079_v7  ;;  %v3853_v27 = vld [vmem:[%s4839_s1 + $0x200] sm:$0xff]  ;;  %v3125_v28 = vld [vmem:[%s4109_s28 + $0x2a8] sm:$0xf] }
  0x5d   : > { %1950 = vmatmul.bf16.gmra.mxu3 %v3178_v33  ;;  %2156 = vmatpush.bf16.msra.mxu2 %v3840_v20  ;;  %v3864_v33 = vld [vmem:[%s4839_s1 + $0x258] sm:$0xff]  ;;  %v3845_v20 = vld [vmem:[%s4839_s1 + $0x1c0] sm:$0xff] }
  0x5e   : > { %1930 = vmatmul.bf16.gmra.mxu1 %v2954_v35  ;;  %2205 = vmatpush.bf16.msra.mxu3 %v3848_v21  ;;  %v2970_v35 = vor.u32 %v3721_v29, %v2967_v30  ;;  %v3769_v29 = vld [vmem:[%s4109_s28 + $0x2dc] sm:$0xf0]  ;;  %v3762_v30 = vld [vmem:[%s4109_s28 + $0x2ac] sm:$0xf] }
  0x5f   : > { %2254 = vmatpush.bf16.msra.mxu0 %v3856_v22  ;;  %2303 = vmatpush.bf16.msra.mxu1 %v3864_v33  ;;  %v3770_v33 = vld [vmem:[%s4109_s28 + $0x2e4] sm:$0xf0]  ;;  %v3126_v39 = vor.u32 %v3769_v29, %v3125_v28  ;;  %v3891_v28 = vld [vmem:[%s4839_s1 + $0x330] sm:$0xff]  ;;  %v3680_v29 = vld [vmem:[%s4109_s28 + $0x1c] sm:$0xf] }
  0x61   : > { %2157 = vmatpush.bf16.msra.mxu2 %v3839_v36 }
  0x62   : > { %2206 = vmatpush.bf16.msra.mxu3 %v3847_v37 }
  0x63   : > { %2255 = vmatpush.bf16.msra.mxu0 %v3855_v38 }
  0x65   : > { %2158 = vmatpush.bf16.msra.mxu2 %v3838_v55 }
  0x66   : > { %2207 = vmatpush.bf16.msra.mxu3 %v3846_v56  ;;  %v3181_v56 = vld [vmem:[%s4109_s28 + $0x318] sm:$0xf] }
  0x67   : > { %2256 = vmatpush.bf16.msra.mxu0 %v3854_v63  ;;  %v3189_v63 = vld [vmem:[%s4109_s28 + $0x320] sm:$0xf] }
  0x6a   : > { %2208 = vmatpush.bf16.msra.mxu3 %v3845_v20 }
  0x6b   : > { %2257 = vmatpush.bf16.msra.mxu0 %v3853_v27  ;;  %v3687_v27 = vld [vmem:[%s4109_s28 + $0x4c] sm:$0xf0] }
  0x6c   : > { %1964 = vmatmul.bf16.vlgmr.msrb.gmra.mxu2 %v2790_v48  ;;  %2062 = vmatmul.bf16.vlgmr.msrb.gmra.mxu0 %v2798_v50  ;;  %v3018_v48 = vor.u32 %v3734_v41, %v3015_v42  ;;  %v3022_v50 = vor.u32 %v3742_v44, %v3021_v43  ;;  %v3861_v41 = vld [vmem:[%s4839_s1 + $0x240] sm:$0xff] }
  0x6d   : > { %2013 = vmatmul.bf16.vlgmr.msrb.gmra.mxu3 %v2794_v49  ;;  %v3863_v49 = vld [vmem:[%s4839_s1 + $0x250] sm:$0xff] }
  0x6e   : > { %2111 = vmatmul.bf16.vlgmr.msrb.gmra.mxu1 %v2802_v51  ;;  %v3026_v51 = vor.u32 %v3735_v45, %v3023_v46 }
  0x6f   : > { %2304 = vmatpush.bf16.msra.mxu1 %v3863_v49 }
  0x73   : > { %2305 = vmatpush.bf16.msra.mxu1 %v3862_v13 }
  0x77   : > { %2306 = vmatpush.bf16.msra.mxu1 %v3861_v41 }
  0x7c   : > { %1969 = vmatmul.bf16.gmra.mxu2 %v2846_v0  ;;  %2067 = vmatmul.bf16.gmra.mxu0 %v2854_v2  ;;  %v3069_v0 = vld [vmem:[%s4109_s28 + $0x238] sm:$0xf]  ;;  %v3748_v2 = vld [vmem:[%s4109_s28 + $0x23c] sm:$0xf] }
  0x7d   : > { %2018 = vmatmul.bf16.gmra.mxu3 %v2850_v1  ;;  %v3755_v1 = vld [vmem:[%s4109_s28 + $0x26c] sm:$0xf0] }
  0x7e   : > { %2116 = vmatmul.bf16.gmra.mxu1 %v2858_v3  ;;  %v3071_v3 = vld [vmem:[%s4109_s28 + $0x270] sm:$0xf0]  ;;  %v3070_v11 = vor.u32 %v3755_v1, %v3069_v0  ;;  %v3784_v0 = vld [vmem:[%s4109_s28 + $0x354] sm:$0xf0]  ;;  %v3777_v1 = vld [vmem:[%s4109_s28 + $0x324] sm:$0xf] }
  0x7f   : > { %v3074_v12 = vor.u32 %v3748_v2, %v3071_v3  ;;  %v3191_v2 = vld [vmem:[%s4109_s28 + $0x358] sm:$0xf0] }
  0x8c   : > { %1974 = vmatmul.bf16.gmra.mxu2 %v2902_v16  ;;  %2072 = vmatmul.bf16.gmra.mxu0 %v2910_v18 }
  0x8d   : > { %2023 = vmatmul.bf16.gmra.mxu3 %v2906_v17 }
  0x8e   : > { %2121 = vmatmul.bf16.gmra.mxu1 %v2914_v19  ;;  %v3837_v19 = vld [vmem:[%s4839_s1 + $0x180] sm:$0xff] }
  0x8f   : > { %2159 = vmatpush.bf16.msra.mxu2 %v3837_v19 }
  0x9c   : > { %1979 = vmatmul.bf16.gmra.mxu2 %v2958_v31  ;;  %2077 = vmatmul.bf16.gmra.mxu0 %v2966_v34  ;;  %v3127_v31 = vld [vmem:[%s4109_s28 + $0x2e0] sm:$0xf0]  ;;  %v3763_v34 = vld [vmem:[%s4109_s28 + $0x2b4] sm:$0xf] }
  0x9d   : > { %2028 = vmatmul.bf16.gmra.mxu3 %v2962_v32  ;;  %v3133_v32 = vld [vmem:[%s4109_s28 + $0x2b0] sm:$0xf]  ;;  %v3130_v40 = vor.u32 %v3762_v30, %v3127_v31  ;;  %v2807_v30 = vld [vmem:[%s4109_s28 + $0x50] sm:$0xf0]  ;;  %v2813_v31 = vld [vmem:[%s4109_s28 + $0x20] sm:$0xf] }
  0x9e   : > { %2126 = vmatmul.bf16.gmra.mxu1 %v2970_v35  ;;  %v3135_v35 = vld [vmem:[%s4109_s28 + $0x2e8] sm:$0xf0]  ;;  %v3134_v42 = vor.u32 %v3770_v33, %v3133_v32  ;;  %v3688_v32 = vld [vmem:[%s4109_s28 + $0x54] sm:$0xf0]  ;;  %v3681_v33 = vld [vmem:[%s4109_s28 + $0x24] sm:$0xf] }
  0x9f   : > { %v3138_v43 = vor.u32 %v3763_v34, %v3135_v35  ;;  %v2815_v34 = vld [vmem:[%s4109_s28 + $0x58] sm:$0xf0]  ;;  %v2814_v41 = vor.u32 %v3688_v32, %v2813_v31 }
  0xa9   : > { %v1867_v52 = vpop.f32.mrf.mxu0 }
  0xab   : > { %v1916_v53 = vpop.f32.mrf.mxu1 }
  0xac   : > { %v4357_v54 = vadd.f32 %v1916_v53, %v1867_v52  ;;  %1984 = vmatmul.bf16.gmra.mxu2 %v3014_v47  ;;  %2082 = vmatmul.bf16.gmra.mxu0 %v3022_v50  ;;  %v3876_v47 = vld [vmem:[%s4839_s1 + $0x2b8] sm:$0xff] }
  0xad   : > { %2033 = vmatmul.bf16.gmra.mxu3 %v3018_v48  ;;  %v3884_v48 = vld [vmem:[%s4839_s1 + $0x2f8] sm:$0xff]  ;;  %2348 = vmatpush.bf16.msrb.mxu2 %v3876_v47  ;;  %v3874_v47 = vld [vmem:[%s4839_s1 + $0x2a8] sm:$0xff] }
  0xae   : > { %2131 = vmatmul.bf16.gmra.mxu1 %v3026_v51  ;;  %2397 = vmatpush.bf16.msrb.mxu3 %v3884_v48  ;;  %v3882_v48 = vld [vmem:[%s4839_s1 + $0x2e8] sm:$0xff] }
  0xaf   : > { %v1887_v57 = vpop.f32.mrf.mxu2 }
  0xb0   : > { %v1936_v58 = vpop.f32.mrf.mxu3 }
  0xb1   : > { %v4365_v59 = vadd.f32 %v1936_v58, %v1887_v57  ;;  %v1869_v60 = vpop.f32.mrf.mxu0  ;;  %v3783_v57 = vld [vmem:[%s4109_s28 + $0x34c] sm:$0xf0]  ;;  %v3892_v58 = vld [vmem:[%s4839_s1 + $0x338] sm:$0xff] }
  0xb2   : > { %2446 = vmatpush.bf16.msrb.mxu0 %v3892_v58  ;;  %v3182_v6 = vor.u32 %v3783_v57, %v3181_v56 }
  0xb3   : > { %v1918_v61 = vpop.f32.mrf.mxu1 }
  0xb4   : > { %v4367_v62 = vadd.f32 %v1918_v61, %v1869_v60  ;;  %v3776_v60 = vld [vmem:[%s4109_s28 + $0x31c] sm:$0xf]  ;;  %v3183_v61 = vld [vmem:[%s4109_s28 + $0x350] sm:$0xf0] }
  0xb5   : > { %v3186_v7 = vor.u32 %v3776_v60, %v3183_v61  ;;  %v2861_v60 = vld [vmem:[%s4109_s28 + $0x88] sm:$0xf]  ;;  %v3701_v61 = vld [vmem:[%s4109_s28 + $0xbc] sm:$0xf0] }
  0xb6   : > { %2447 = vmatpush.bf16.msrb.mxu0 %v3891_v28 }
  0xb7   : > { %v1889_v8 = vpop.f32.mrf.mxu2 }
  0xb8   : > { %v1938_v9 = vpop.f32.mrf.mxu3 }
  0xb9   : > { %v4380_v10 = vadd.f32 %v1938_v9, %v1889_v8  ;;  %v1872_v16 = vpop.f32.mrf.mxu0  ;;  %v3190_v8 = vor.u32 %v3784_v0, %v3189_v63  ;;  %v3194_v9 = vor.u32 %v3777_v1, %v3191_v2  ;;  %v3890_v63 = vld [vmem:[%s4839_s1 + $0x328] sm:$0xff]  ;;  %v2863_v1 = vld [vmem:[%s4109_s28 + $0xc0] sm:$0xf0]  ;;  %v2869_v2 = vld [vmem:[%s4109_s28 + $0x90] sm:$0xf] }
  0xba   : > { %v3694_v0 = vld [vmem:[%s4109_s28 + $0x8c] sm:$0xf]  ;;  %2448 = vmatpush.bf16.msrb.mxu0 %v3890_v63  ;;  %v3897_v63 = vld [vmem:[%s4839_s1 + $0x360] sm:$0xff] }
  0xbb   : > { %v1921_v17 = vpop.f32.mrf.mxu1 }
  0xbc   : > { %v4385_v18 = vadd.f32 %v1921_v17, %v1872_v16  ;;  %1989 = vmatmul.bf16.gmra.mxu2 %v3070_v11  ;;  %2087 = vmatmul.bf16.gmra.mxu0 %v3078_v14  ;;  %v3900_v14 = vld [vmem:[%s4839_s1 + $0x378] sm:$0xff]  ;;  %v3883_v16 = vld [vmem:[%s4839_s1 + $0x2f0] sm:$0xff] }
  0xbd   : > { %2038 = vmatmul.bf16.gmra.mxu3 %v3074_v12  ;;  %2495 = vmatpush.bf16.msrb.mxu1 %v3900_v14 }
  0xbe   : > { %2136 = vmatmul.bf16.gmra.mxu1 %v3082_v15  ;;  %v3875_v15 = vld [vmem:[%s4839_s1 + $0x2b0] sm:$0xff]  ;;  %2398 = vmatpush.bf16.msrb.mxu3 %v3883_v16 }
  0xbf   : > { %v1892_v21 = vpop.f32.mrf.mxu2  ;;  %2349 = vmatpush.bf16.msrb.mxu2 %v3875_v15 }
  0xc0   : > { %v1941_v22 = vpop.f32.mrf.mxu3 }
  0xc1   : > { %v4393_v23 = vadd.f32 %v1941_v22, %v1892_v21  ;;  %v1874_v24 = vpop.f32.mrf.mxu0 }
  0xc2   : > { %2399 = vmatpush.bf16.msrb.mxu3 %v3882_v48 }
  0xc3   : > { %v1923_v25 = vpop.f32.mrf.mxu1  ;;  %2350 = vmatpush.bf16.msrb.mxu2 %v3874_v47 }
  0xc4   : > { %v4395_v26 = vadd.f32 %v1923_v25, %v1874_v24  ;;  %v2805_v25 = vld [vmem:[%s4109_s28 + $0x18] sm:$0xf] }
  0xc7   : > { %v1894_v36 = vpop.f32.mrf.mxu2 }
  0xc8   : > { %v1943_v37 = vpop.f32.mrf.mxu3 }
  0xc9   : > { %v4408_v38 = vadd.f32 %v1943_v37, %v1894_v36  ;;  %v1877_v44 = vpop.f32.mrf.mxu0 }
  0xcb   : > { %v1926_v45 = vpop.f32.mrf.mxu1 }
  0xcc   : > { %v4413_v46 = vadd.f32 %v1926_v45, %v1877_v44  ;;  %1994 = vmatmul.bf16.gmra.mxu2 %v3126_v39  ;;  %2092 = vmatmul.bf16.gmra.mxu0 %v3134_v42  ;;  %v2806_v39 = vor.u32 %v3687_v27, %v2805_v25  ;;  %v2818_v42 = vor.u32 %v3681_v33, %v2815_v34  ;;  %v3899_v45 = vld [vmem:[%s4839_s1 + $0x370] sm:$0xff]  ;;  %v3873_v25 = vld [vmem:[%s4839_s1 + $0x2a0] sm:$0xff] }
  0xcd   : > { %2043 = vmatmul.bf16.gmra.mxu3 %v3130_v40  ;;  %v2810_v40 = vor.u32 %v3680_v29, %v2807_v30  ;;  %2496 = vmatpush.bf16.msrb.mxu1 %v3899_v45  ;;  %v2927_v45 = vld [vmem:[%s4109_s28 + $0x138] sm:$0xf0] }
  0xce   : > { %2141 = vmatmul.bf16.gmra.mxu1 %v3138_v43  ;;  %2351 = vmatpush.bf16.msrb.mxu2 %v3873_v25 }
  0xcf   : > { %v1897_v49 = vpop.f32.mrf.mxu2 }
  0xd0   : > { %v1946_v50 = vpop.f32.mrf.mxu3 }
  0xd1   : > { %v4421_v51 = vadd.f32 %v1946_v50, %v1897_v49  ;;  %v1879_v52 = vpop.f32.mrf.mxu0 }
  0xd3   : > { %v1928_v53 = vpop.f32.mrf.mxu1 }
  0xd4   : > { %v4423_v55 = vadd.f32 %v1928_v53, %v1879_v52 }
  0xd7   : > { %v1899_v3 = vpop.f32.mrf.mxu2 }
  0xd8   : > { %v1948_v4 = vpop.f32.mrf.mxu3 }
  0xd9   : > { %v4436_v5 = vadd.f32 %v1948_v4, %v1899_v3  ;;  %v1882_v11 = vpop.f32.mrf.mxu0  ;;  %v3702_v3 = vld [vmem:[%s4109_s28 + $0xc4] sm:$0xf0]  ;;  %v3695_v4 = vld [vmem:[%s4109_s28 + $0x94] sm:$0xf] }
  0xda   : > { %v2870_v14 = vor.u32 %v3702_v3, %v2869_v2 }
  0xdb   : > { %v1931_v12 = vpop.f32.mrf.mxu1 }
  0xdc   : > { %v4438_v13 = vadd.f32 %v1931_v12, %v1882_v11  ;;  %1999 = vmatmul.bf16.gmra.mxu2 %v3182_v6  ;;  %2097 = vmatmul.bf16.gmra.mxu0 %v3190_v8  ;;  %v2871_v6 = vld [vmem:[%s4109_s28 + $0xc8] sm:$0xf0]  ;;  %v2862_v11 = vor.u32 %v3701_v61, %v2861_v60  ;;  %v2866_v12 = vor.u32 %v3694_v0, %v2863_v1  ;;  %v3872_v0 = vld [vmem:[%s4839_s1 + $0x298] sm:$0xff] }
  0xdd   : > { %2048 = vmatmul.bf16.gmra.mxu3 %v3186_v7  ;;  %v2874_v15 = vor.u32 %v3695_v4, %v2871_v6  ;;  %2352 = vmatpush.bf16.msrb.mxu2 %v3872_v0 }
  0xde   : > { %2146 = vmatmul.bf16.gmra.mxu1 %v3194_v9 }
  0xdf   : > { %v1902_v17 = vpop.f32.mrf.mxu2 }
  0xe0   : > { %v1951_v19 = vpop.f32.mrf.mxu3 }
  0xe1   : > { %v4449_v20 = vadd.f32 %v1951_v19, %v1902_v17  ;;  %v1884_v21 = vpop.f32.mrf.mxu0 }
  0xe3   : > { %v1933_v22 = vpop.f32.mrf.mxu1 }
  0xe4   : > { %v4451_v24 = vadd.f32 %v1933_v22, %v1884_v21  ;;  %v3898_v22 = vld [vmem:[%s4839_s1 + $0x368] sm:$0xff] }
  0xe5   : > { %2497 = vmatpush.bf16.msrb.mxu1 %v3898_v22  ;;  %v2983_v22 = vld [vmem:[%s4109_s28 + $0x1a8] sm:$0xf0] }
  0xe7   : > { %v1904_v35 = vpop.f32.mrf.mxu2 }
  0xe8   : > { %v1953_v36 = vpop.f32.mrf.mxu3 }
  0xe9   : > { %v4464_v37 = vadd.f32 %v1953_v36, %v1904_v35  ;;  %v2063_v43 = vpop.f32.mrf.mxu0  ;;  %v2917_v35 = vld [vmem:[%s4109_s28 + $0xf8] sm:$0xf]  ;;  %v3715_v36 = vld [vmem:[%s4109_s28 + $0x12c] sm:$0xf0]  ;;  %2498 = vmatpush.bf16.msrb.mxu1 %v3897_v63  ;;  %v3039_v63 = vld [vmem:[%s4109_s28 + $0x218] sm:$0xf0] }
  0xeb   : > { %v2112_v44 = vpop.f32.mrf.mxu1 }
  0xec   : > { %2160 = vmatmul.bf16.vlgmr.msra.gmra.mxu2 %v2806_v39  ;;  %2258 = vmatmul.bf16.vlgmr.msra.gmra.mxu0 %v2814_v41  ;;  %v3889_v39 = vld [vmem:[%s4839_s1 + $0x320] sm:$0xff]  ;;  %v2919_v41 = vld [vmem:[%s4109_s28 + $0x130] sm:$0xf0] }
  0xed   : > { %2209 = vmatmul.bf16.vlgmr.msra.gmra.mxu3 %v2810_v40  ;;  %v3708_v40 = vld [vmem:[%s4109_s28 + $0xfc] sm:$0xf]  ;;  %2449 = vmatpush.bf16.msrb.mxu0 %v3889_v39 }
  0xee   : > { %2307 = vmatmul.bf16.vlgmr.msra.gmra.mxu1 %v2818_v42  ;;  %v2925_v42 = vld [vmem:[%s4109_s28 + $0x100] sm:$0xf]  ;;  %v3896_v39 = vld [vmem:[%s4839_s1 + $0x358] sm:$0xff] }
  0xef   : > { %v1965_v49 = vpop.f32.mrf.mxu2  ;;  %2499 = vmatpush.bf16.msrb.mxu1 %v3896_v39  ;;  %v3095_v39 = vld [vmem:[%s4109_s28 + $0x288] sm:$0xf0] }
  0xf0   : > { %v2014_v50 = vpop.f32.mrf.mxu3  ;;  %v1966_v52 = vadd.f32 %v1965_v49, %v4357_v54 }
  0xf1   : > { %v2065_v56 = vpop.f32.mrf.mxu0 }
  0xf2   : > { %v2015_v53 = vadd.f32 %v2014_v50, %v1966_v52  ;;  %v2918_v50 = vor.u32 %v3715_v36, %v2917_v35  ;;  %v2922_v52 = vor.u32 %v3708_v40, %v2919_v41  ;;  %v3871_v40 = vld [vmem:[%s4839_s1 + $0x290] sm:$0xff] }
  0xf3   : > { %v2114_v57 = vpop.f32.mrf.mxu1  ;;  %2353 = vmatpush.bf16.msrb.mxu2 %v3871_v40 }
  0xf4   : > { %v2064_v58 = vadd.f32 %v2063_v43, %v2015_v53  ;;  %v3716_v43 = vld [vmem:[%s4109_s28 + $0x134] sm:$0xf0] }
  0xf5   : > { %v2926_v53 = vor.u32 %v3716_v43, %v2925_v42 }
  0xf6   : > { %v4487_v7 = vadd.f32 %v2112_v44, %v2064_v58  ;;  %v3709_v44 = vld [vmem:[%s4109_s28 + $0x104] sm:$0xf] }
  0xf7   : > { %v1967_v54 = vpop.f32.mrf.mxu2 }
  0xf8   : > { %v2016_v8 = vpop.f32.mrf.mxu3  ;;  %v1968_v9 = vadd.f32 %v1967_v54, %v4367_v62  ;;  %v3881_v62 = vld [vmem:[%s4839_s1 + $0x2e0] sm:$0xff] }
  0xf9   : > { %v2068_v17 = vpop.f32.mrf.mxu0  ;;  %2400 = vmatpush.bf16.msrb.mxu3 %v3881_v62 }
  0xfa   : > { %v2017_v16 = vadd.f32 %v2016_v8, %v1968_v9 }
  0xfb   : > { %v2117_v19 = vpop.f32.mrf.mxu1 }
  0xfc   : > { %v2066_v21 = vadd.f32 %v2065_v56, %v2017_v16  ;;  %2165 = vmatmul.bf16.gmra.mxu2 %v2862_v11  ;;  %2263 = vmatmul.bf16.gmra.mxu0 %v2870_v14  ;;  %v2930_v56 = vor.u32 %v3709_v44, %v2927_v45  ;;  %v2973_v11 = vld [vmem:[%s4109_s28 + $0x168] sm:$0xf]  ;;  %v3888_v14 = vld [vmem:[%s4839_s1 + $0x318] sm:$0xff]  ;;  %v2975_v16 = vld [vmem:[%s4109_s28 + $0x1a0] sm:$0xf0] }
  0xfd   : > { %2214 = vmatmul.bf16.gmra.mxu3 %v2866_v12  ;;  %v3729_v12 = vld [vmem:[%s4109_s28 + $0x19c] sm:$0xf0]  ;;  %2450 = vmatpush.bf16.msrb.mxu0 %v3888_v14  ;;  %v3895_v14 = vld [vmem:[%s4839_s1 + $0x350] sm:$0xff] }
  0xfe   : > { %2312 = vmatmul.bf16.gmra.mxu1 %v2874_v15  ;;  %v4499_v27 = vadd.f32 %v2114_v57, %v2066_v21  ;;  %v3722_v15 = vld [vmem:[%s4109_s28 + $0x16c] sm:$0xf]  ;;  %v3723_v21 = vld [vmem:[%s4109_s28 + $0x174] sm:$0xf] }
  0xff   : > { %v1970_v28 = vpop.f32.mrf.mxu2  ;;  %2500 = vmatpush.bf16.msrb.mxu1 %v3895_v14  ;;  %v3151_v14 = vld [vmem:[%s4109_s28 + $0x2f8] sm:$0xf0] }
 0x100   : > { %v2019_v29 = vpop.f32.mrf.mxu3  ;;  %v1971_v30 = vadd.f32 %v1970_v28, %v4385_v18 }
 0x101   : > { %v2070_v32 = vpop.f32.mrf.mxu0 }
 0x102   : > { %v2020_v31 = vadd.f32 %v2019_v29, %v1971_v30  ;;  %v2974_v29 = vor.u32 %v3729_v12, %v2973_v11  ;;  %v2978_v30 = vor.u32 %v3722_v15, %v2975_v16  ;;  %v3870_v15 = vld [vmem:[%s4839_s1 + $0x288] sm:$0xff] }
 0x103   : > { %v2119_v33 = vpop.f32.mrf.mxu1  ;;  %2354 = vmatpush.bf16.msrb.mxu2 %v3870_v15 }
 0x104   : > { %v2069_v34 = vadd.f32 %v2068_v17, %v2020_v31  ;;  %v2981_v17 = vld [vmem:[%s4109_s28 + $0x170] sm:$0xf] }
 0x106   : > { %v4513_v47 = vadd.f32 %v2117_v19, %v2069_v34  ;;  %v3730_v19 = vld [vmem:[%s4109_s28 + $0x1a4] sm:$0xf0] }
 0x107   : > { %v1972_v18 = vpop.f32.mrf.mxu2  ;;  %v2982_v31 = vor.u32 %v3730_v19, %v2981_v17 }
 0x108   : > { %v2021_v48 = vpop.f32.mrf.mxu3  ;;  %v1973_v49 = vadd.f32 %v1972_v18, %v4395_v26  ;;  %v3880_v26 = vld [vmem:[%s4839_s1 + $0x2d8] sm:$0xff] }
 0x109   : > { %v2073_v58 = vpop.f32.mrf.mxu0  ;;  %2401 = vmatpush.bf16.msrb.mxu3 %v3880_v26 }
 0x10a   : > { %v2022_v57 = vadd.f32 %v2021_v48, %v1973_v49 }
 0x10b   : > { %v2122_v60 = vpop.f32.mrf.mxu1 }
 0x10c   : > { %v2071_v61 = vadd.f32 %v2070_v32, %v2022_v57  ;;  %2170 = vmatmul.bf16.gmra.mxu2 %v2918_v50  ;;  %2268 = vmatmul.bf16.gmra.mxu0 %v2926_v53  ;;  %v2986_v32 = vor.u32 %v3723_v21, %v2983_v22  ;;  %v3029_v50 = vld [vmem:[%s4109_s28 + $0x1d8] sm:$0xf]  ;;  %v3887_v53 = vld [vmem:[%s4839_s1 + $0x310] sm:$0xff] }
 0x10d   : > { %2219 = vmatmul.bf16.gmra.mxu3 %v2922_v52  ;;  %v3743_v52 = vld [vmem:[%s4109_s28 + $0x20c] sm:$0xf0]  ;;  %v3031_v57 = vld [vmem:[%s4109_s28 + $0x210] sm:$0xf0]  ;;  %2451 = vmatpush.bf16.msrb.mxu0 %v3887_v53  ;;  %v3894_v53 = vld [vmem:[%s4839_s1 + $0x348] sm:$0xff] }
 0x10e   : > { %2317 = vmatmul.bf16.gmra.mxu1 %v2930_v56  ;;  %v4525_v1 = vadd.f32 %v2119_v33, %v2071_v61  ;;  %v3736_v56 = vld [vmem:[%s4109_s28 + $0x1dc] sm:$0xf]  ;;  %v3737_v61 = vld [vmem:[%s4109_s28 + $0x1e4] sm:$0xf] }
 0x10f   : > { %v1975_v2 = vpop.f32.mrf.mxu2  ;;  %2501 = vmatpush.bf16.msrb.mxu1 %v3894_v53 }
 0x110   : > { %v2024_v3 = vpop.f32.mrf.mxu3  ;;  %v1976_v4 = vadd.f32 %v1975_v2, %v4413_v46 }
 0x111   : > { %v2075_v54 = vpop.f32.mrf.mxu0 }
 0x112   : > { %v2025_v6 = vadd.f32 %v2024_v3, %v1976_v4  ;;  %v3030_v3 = vor.u32 %v3743_v52, %v3029_v50  ;;  %v3034_v4 = vor.u32 %v3736_v56, %v3031_v57  ;;  %v3869_v56 = vld [vmem:[%s4839_s1 + $0x280] sm:$0xff] }
 0x113   : > { %v2124_v8 = vpop.f32.mrf.mxu1  ;;  %2355 = vmatpush.bf16.msrb.mxu2 %v3869_v56 }
 0x114   : > { %v2074_v9 = vadd.f32 %v2073_v58, %v2025_v6  ;;  %v3037_v58 = vld [vmem:[%s4109_s28 + $0x1e0] sm:$0xf] }
 0x116   : > { %v4539_v25 = vadd.f32 %v2122_v60, %v2074_v9  ;;  %v3744_v60 = vld [vmem:[%s4109_s28 + $0x214] sm:$0xf0] }
 0x117   : > { %v1977_v46 = vpop.f32.mrf.mxu2  ;;  %v3038_v6 = vor.u32 %v3744_v60, %v3037_v58 }
 0x118   : > { %v2026_v62 = vpop.f32.mrf.mxu3  ;;  %v1978_v28 = vadd.f32 %v1977_v46, %v4423_v55  ;;  %v3879_v55 = vld [vmem:[%s4839_s1 + $0x2d0] sm:$0xff] }
 0x119   : > { %v2078_v34 = vpop.f32.mrf.mxu0  ;;  %2402 = vmatpush.bf16.msrb.mxu3 %v3879_v55 }
 0x11a   : > { %v2027_v33 = vadd.f32 %v2026_v62, %v1978_v28 }
 0x11b   : > { %v2127_v35 = vpop.f32.mrf.mxu1 }
 0x11c   : > { %v2076_v36 = vadd.f32 %v2075_v54, %v2027_v33  ;;  %2175 = vmatmul.bf16.gmra.mxu2 %v2974_v29  ;;  %2273 = vmatmul.bf16.gmra.mxu0 %v2982_v31  ;;  %v3042_v54 = vor.u32 %v3737_v61, %v3039_v63  ;;  %v3085_v29 = vld [vmem:[%s4109_s28 + $0x248] sm:$0xf]  ;;  %v3087_v33 = vld [vmem:[%s4109_s28 + $0x280] sm:$0xf0] }
 0x11d   : > { %2224 = vmatmul.bf16.gmra.mxu3 %v2978_v30  ;;  %v3757_v30 = vld [vmem:[%s4109_s28 + $0x27c] sm:$0xf0]  ;;  %v3886_v31 = vld [vmem:[%s4839_s1 + $0x308] sm:$0xff] }
 0x11e   : > { %2322 = vmatmul.bf16.gmra.mxu1 %v2986_v32  ;;  %v4551_v41 = vadd.f32 %v2124_v8, %v2076_v36  ;;  %v3750_v32 = vld [vmem:[%s4109_s28 + $0x24c] sm:$0xf]  ;;  %v3751_v36 = vld [vmem:[%s4109_s28 + $0x254] sm:$0xf]  ;;  %2452 = vmatpush.bf16.msrb.mxu0 %v3886_v31 }
 0x11f   : > { %v1980_v42 = vpop.f32.mrf.mxu2 }
 0x120   : > { %v2029_v43 = vpop.f32.mrf.mxu3  ;;  %v1981_v44 = vadd.f32 %v1980_v42, %v4438_v13 }
 0x121   : > { %v2080_v18 = vpop.f32.mrf.mxu0 }
 0x122   : > { %v2030_v45 = vadd.f32 %v2029_v43, %v1981_v44  ;;  %v3086_v43 = vor.u32 %v3757_v30, %v3085_v29  ;;  %v3090_v44 = vor.u32 %v3750_v32, %v3087_v33  ;;  %v3893_v30 = vld [vmem:[%s4839_s1 + $0x340] sm:$0xff] }
 0x123   : > { %v2129_v48 = vpop.f32.mrf.mxu1  ;;  %2502 = vmatpush.bf16.msrb.mxu1 %v3893_v30 }
 0x124   : > { %v2079_v49 = vadd.f32 %v2078_v34, %v2030_v45  ;;  %v3093_v34 = vld [vmem:[%s4109_s28 + $0x250] sm:$0xf] }
 0x126   : > { %v4565_v0 = vadd.f32 %v2127_v35, %v2079_v49  ;;  %v3758_v35 = vld [vmem:[%s4109_s28 + $0x284] sm:$0xf0] }
 0x127   : > { %v1982_v13 = vpop.f32.mrf.mxu2  ;;  %v3094_v45 = vor.u32 %v3758_v35, %v3093_v34 }
 0x128   : > { %v2031_v26 = vpop.f32.mrf.mxu3  ;;  %v1983_v2 = vadd.f32 %v1982_v13, %v4451_v24  ;;  %v3878_v24 = vld [vmem:[%s4839_s1 + $0x2c8] sm:$0xff] }
 0x129   : > { %v2083_v9 = vpop.f32.mrf.mxu0  ;;  %2403 = vmatpush.bf16.msrb.mxu3 %v3878_v24 }
 0x12a   : > { %v2032_v8 = vadd.f32 %v2031_v26, %v1983_v2 }
 0x12b   : > { %v2132_v11 = vpop.f32.mrf.mxu1 }
 0x12c   : > { %v2081_v12 = vadd.f32 %v2080_v18, %v2032_v8  ;;  %2180 = vmatmul.bf16.gmra.mxu2 %v3030_v3  ;;  %2278 = vmatmul.bf16.gmra.mxu0 %v3038_v6  ;;  %v3098_v18 = vor.u32 %v3751_v36, %v3095_v39  ;;  %v3141_v3 = vld [vmem:[%s4109_s28 + $0x2b8] sm:$0xf]  ;;  %v3885_v6 = vld [vmem:[%s4839_s1 + $0x300] sm:$0xff]  ;;  %v3143_v8 = vld [vmem:[%s4109_s28 + $0x2f0] sm:$0xf0] }
 0x12d   : > { %2229 = vmatmul.bf16.gmra.mxu3 %v3034_v4  ;;  %v3771_v4 = vld [vmem:[%s4109_s28 + $0x2ec] sm:$0xf0]  ;;  %2453 = vmatpush.bf16.msrb.mxu0 %v3885_v6 }
 0x12e   : > { %2327 = vmatmul.bf16.gmra.mxu1 %v3042_v54  ;;  %v4577_v16 = vadd.f32 %v2129_v48, %v2081_v12  ;;  %v3764_v54 = vld [vmem:[%s4109_s28 + $0x2bc] sm:$0xf]  ;;  %v3765_v12 = vld [vmem:[%s4109_s28 + $0x2c4] sm:$0xf] }
 0x12f   : > { %v1985_v17 = vpop.f32.mrf.mxu2 }
 0x130   : > { %v2034_v19 = vpop.f32.mrf.mxu3  ;;  %v1986_v21 = vadd.f32 %v1985_v17, %v4365_v59 }
 0x131   : > { %v2085_v46 = vpop.f32.mrf.mxu0 }
 0x132   : > { %v2035_v22 = vadd.f32 %v2034_v19, %v1986_v21  ;;  %v3142_v19 = vor.u32 %v3771_v4, %v3141_v3  ;;  %v3146_v21 = vor.u32 %v3764_v54, %v3143_v8 }
 0x133   : > { %v2134_v62 = vpop.f32.mrf.mxu1 }
 0x134   : > { %v2084_v28 = vadd.f32 %v2083_v9, %v2035_v22  ;;  %v3149_v9 = vld [vmem:[%s4109_s28 + $0x2c0] sm:$0xf] }
 0x136   : > { %v4591_v40 = vadd.f32 %v2132_v11, %v2084_v28  ;;  %v3772_v11 = vld [vmem:[%s4109_s28 + $0x2f4] sm:$0xf0] }
 0x137   : > { %v1987_v59 = vpop.f32.mrf.mxu2  ;;  %v3150_v22 = vor.u32 %v3772_v11, %v3149_v9  ;;  %v2821_v11 = vld [vmem:[%s4109_s28 + $0x28] sm:$0xf] }
 0x138   : > { %v2036_v55 = vpop.f32.mrf.mxu3  ;;  %v1988_v42 = vadd.f32 %v1987_v59, %v4380_v10  ;;  %v3877_v10 = vld [vmem:[%s4839_s1 + $0x2c0] sm:$0xff] }
 0x139   : > { %v2088_v49 = vpop.f32.mrf.mxu0  ;;  %2404 = vmatpush.bf16.msrb.mxu3 %v3877_v10 }
 0x13a   : > { %v2037_v48 = vadd.f32 %v2036_v55, %v1988_v42  ;;  %v3197_v55 = vld [vmem:[%s4109_s28 + $0x328] sm:$0xf]  ;;  %v3785_v42 = vld [vmem:[%s4109_s28 + $0x35c] sm:$0xf0] }
 0x13b   : > { %v2137_v50 = vpop.f32.mrf.mxu1  ;;  %v3198_v10 = vor.u32 %v3785_v42, %v3197_v55 }
 0x13c   : > { %v2086_v52 = vadd.f32 %v2085_v46, %v2037_v48  ;;  %2185 = vmatmul.bf16.gmra.mxu2 %v3086_v43  ;;  %2283 = vmatmul.bf16.gmra.mxu0 %v3094_v45  ;;  %v3154_v46 = vor.u32 %v3765_v12, %v3151_v14  ;;  %v3778_v43 = vld [vmem:[%s4109_s28 + $0x32c] sm:$0xf]  ;;  %v3205_v45 = vld [vmem:[%s4109_s28 + $0x330] sm:$0xf]  ;;  %v3779_v48 = vld [vmem:[%s4109_s28 + $0x334] sm:$0xf] }
 0x13d   : > { %2234 = vmatmul.bf16.gmra.mxu3 %v3090_v44  ;;  %v3199_v44 = vld [vmem:[%s4109_s28 + $0x360] sm:$0xf0]  ;;  %v3689_v12 = vld [vmem:[%s4109_s28 + $0x5c] sm:$0xf0]  ;;  %v3682_v14 = vld [vmem:[%s4109_s28 + $0x2c] sm:$0xf] }
 0x13e   : > { %2332 = vmatmul.bf16.gmra.mxu1 %v3098_v18  ;;  %v4603_v57 = vadd.f32 %v2134_v62, %v2086_v52  ;;  %v3786_v18 = vld [vmem:[%s4109_s28 + $0x364] sm:$0xf0] }
 0x13f   : > { %v1990_v58 = vpop.f32.mrf.mxu2 }
 0x140   : > { %v2039_v60 = vpop.f32.mrf.mxu3  ;;  %v1991_v61 = vadd.f32 %v1990_v58, %v4393_v23  ;;  %v3206_v58 = vor.u32 %v3786_v18, %v3205_v45  ;;  %v2877_v45 = vld [vmem:[%s4109_s28 + $0x98] sm:$0xf]  ;;  %v3703_v18 = vld [vmem:[%s4109_s28 + $0xcc] sm:$0xf0] }
 0x141   : > { %v2090_v13 = vpop.f32.mrf.mxu0 }
 0x142   : > { %v2040_v63 = vadd.f32 %v2039_v60, %v1991_v61 }
 0x143   : > { %v2139_v26 = vpop.f32.mrf.mxu1 }
 0x144   : > { %v2089_v2 = vadd.f32 %v2088_v49, %v2040_v63  ;;  %v3207_v49 = vld [vmem:[%s4109_s28 + $0x368] sm:$0xf0] }
 0x145   : > { %v3210_v60 = vor.u32 %v3779_v48, %v3207_v49  ;;  %v3696_v48 = vld [vmem:[%s4109_s28 + $0x9c] sm:$0xf]  ;;  %v2879_v49 = vld [vmem:[%s4109_s28 + $0xd0] sm:$0xf0] }
 0x146   : > { %v4617_v15 = vadd.f32 %v2137_v50, %v2089_v2 }
 0x147   : > { %v1992_v23 = vpop.f32.mrf.mxu2 }
 0x148   : > { %v2041_v24 = vpop.f32.mrf.mxu3  ;;  %v1993_v17 = vadd.f32 %v1992_v23, %v4408_v38  ;;  %v2823_v23 = vld [vmem:[%s4109_s28 + $0x60] sm:$0xf0] }
 0x149   : > { %v2093_v28 = vpop.f32.mrf.mxu0 }
 0x14a   : > { %v2042_v62 = vadd.f32 %v2041_v24, %v1993_v17  ;;  %v2829_v24 = vld [vmem:[%s4109_s28 + $0x30] sm:$0xf]  ;;  %v3690_v17 = vld [vmem:[%s4109_s28 + $0x64] sm:$0xf0] }
 0x14b   : > { %v2142_v29 = vpop.f32.mrf.mxu1  ;;  %v2830_v30 = vor.u32 %v3690_v17, %v2829_v24  ;;  %v2933_v24 = vld [vmem:[%s4109_s28 + $0x108] sm:$0xf]  ;;  %v3717_v17 = vld [vmem:[%s4109_s28 + $0x13c] sm:$0xf0] }
 0x14c   : > { %v2091_v31 = vadd.f32 %v2090_v13, %v2042_v62  ;;  %2190 = vmatmul.bf16.gmra.mxu2 %v3142_v19  ;;  %2288 = vmatmul.bf16.gmra.mxu0 %v3150_v22  ;;  %v3683_v19 = vld [vmem:[%s4109_s28 + $0x34] sm:$0xf] }
 0x14d   : > { %2239 = vmatmul.bf16.gmra.mxu3 %v3146_v21  ;;  %v2831_v21 = vld [vmem:[%s4109_s28 + $0x68] sm:$0xf0] }
 0x14e   : > { %2337 = vmatmul.bf16.gmra.mxu1 %v3154_v46  ;;  %v4623_v38 = vadd.f32 %v2139_v26, %v2091_v31  ;;  %v2834_v31 = vor.u32 %v3683_v19, %v2831_v21  ;;  %v3710_v19 = vld [vmem:[%s4109_s28 + $0x10c] sm:$0xf]  ;;  %v2935_v21 = vld [vmem:[%s4109_s28 + $0x140] sm:$0xf0] }
 0x14f   : > { %v1995_v32 = vpop.f32.mrf.mxu2 }
 0x150   : > { %v2044_v33 = vpop.f32.mrf.mxu3  ;;  %v1996_v34 = vadd.f32 %v1995_v32, %v4421_v51  ;;  %v3202_v51 = vor.u32 %v3778_v43, %v3199_v44 }
 0x151   : > { %v2095_v36 = vpop.f32.mrf.mxu0 }
 0x152   : > { %v2045_v35 = vadd.f32 %v2044_v33, %v1996_v34 }
 0x153   : > { %v2144_v39 = vpop.f32.mrf.mxu1 }
 0x154   : > { %v2094_v59 = vadd.f32 %v2093_v28, %v2045_v35 }
 0x156   : > { %v4634_v50 = vadd.f32 %v2142_v29, %v2094_v59  ;;  %v2822_v29 = vor.u32 %v3689_v12, %v2821_v11 }
 0x157   : > { %v1997_v52 = vpop.f32.mrf.mxu2 }
 0x158   : > { %v2046_v53 = vpop.f32.mrf.mxu3  ;;  %v1998_v56 = vadd.f32 %v1997_v52, %v4436_v5  ;;  %v2885_v52 = vld [vmem:[%s4109_s28 + $0xa0] sm:$0xf] }
 0x159   : > { %v2098_v63 = vpop.f32.mrf.mxu0 }
 0x15a   : > { %v2047_v61 = vadd.f32 %v2046_v53, %v1998_v56  ;;  %v3704_v53 = vld [vmem:[%s4109_s28 + $0xd4] sm:$0xf0]  ;;  %v3697_v56 = vld [vmem:[%s4109_s28 + $0xa4] sm:$0xf] }
 0x15b   : > { %v2147_v13 = vpop.f32.mrf.mxu1 }
 0x15c   : > { %v2096_v26 = vadd.f32 %v2095_v36, %v2047_v61  ;;  %2195 = vmatmul.bf16.gmra.mxu2 %v3198_v10  ;;  %2293 = vmatmul.bf16.gmra.mxu0 %v3206_v58  ;;  %v2887_v10 = vld [vmem:[%s4109_s28 + $0xd8] sm:$0xf0] }
 0x15d   : > { %2244 = vmatmul.bf16.gmra.mxu3 %v3202_v51 }
 0x15e   : > { %2342 = vmatmul.bf16.gmra.mxu1 %v3210_v60  ;;  %v4637_v5 = vadd.f32 %v2144_v39, %v2096_v26  ;;  %v2890_v26 = vor.u32 %v3697_v56, %v2887_v10  ;;  %v3724_v56 = vld [vmem:[%s4109_s28 + $0x17c] sm:$0xf]  ;;  %v2991_v10 = vld [vmem:[%s4109_s28 + $0x1b0] sm:$0xf0] }
 0x15f   : > { %v2000_v2 = vpop.f32.mrf.mxu2 }
 0x160   : > { %v2049_v3 = vpop.f32.mrf.mxu3  ;;  %v2001_v4 = vadd.f32 %v2000_v2, %v4449_v20  ;;  %v2826_v20 = vor.u32 %v3682_v14, %v2823_v23 }
 0x161   : > { %v2100_v54 = vpop.f32.mrf.mxu0 }
 0x162   : > { %v2050_v6 = vadd.f32 %v2049_v3, %v2001_v4 }
 0x163   : > { %v2149_v8 = vpop.f32.mrf.mxu1 }
 0x164   : > { %v2099_v9 = vadd.f32 %v2098_v63, %v2050_v6  ;;  %v2878_v63 = vor.u32 %v3703_v18, %v2877_v45 }
 0x166   : > { %v4648_v22 = vadd.f32 %v2147_v13, %v2099_v9  ;;  %v2886_v13 = vor.u32 %v3704_v53, %v2885_v52  ;;  %v2989_v52 = vld [vmem:[%s4109_s28 + $0x178] sm:$0xf]  ;;  %v3731_v53 = vld [vmem:[%s4109_s28 + $0x1ac] sm:$0xf0] }
 0x167   : > { %v2002_v46 = vpop.f32.mrf.mxu2 }
 0x168   : > { %v2051_v62 = vpop.f32.mrf.mxu3  ;;  %v2003_v28 = vadd.f32 %v2002_v46, %v4464_v37  ;;  %v2941_v46 = vld [vmem:[%s4109_s28 + $0x110] sm:$0xf] }
 0x169   : > { %v2259_v33 = vpop.f32.mrf.mxu0 }
 0x16a   : > { %v2052_v32 = vadd.f32 %v2051_v62, %v2003_v28  ;;  %v3718_v62 = vld [vmem:[%s4109_s28 + $0x144] sm:$0xf0]  ;;  %v3711_v28 = vld [vmem:[%s4109_s28 + $0x114] sm:$0xf] }
 0x16b   : > { %v2308_v34 = vpop.f32.mrf.mxu1 }
 0x16c   : > { %v2101_v35 = vadd.f32 %v2100_v54, %v2052_v32  ;;  %2356 = vmatmul.bf16.vlgmr.msrb.gmra.mxu2 %v2822_v29  ;;  %2454 = vmatmul.bf16.vlgmr.msrb.gmra.mxu0 %v2830_v30  ;;  %v2943_v29 = vld [vmem:[%s4109_s28 + $0x148] sm:$0xf0] }
 0x16d   : > { %2405 = vmatmul.bf16.vlgmr.msrb.gmra.mxu3 %v2826_v20 }
 0x16e   : > { %2503 = vmatmul.bf16.vlgmr.msrb.gmra.mxu1 %v2834_v31  ;;  %v4651_v37 = vadd.f32 %v2149_v8, %v2101_v35  ;;  %v2946_v35 = vor.u32 %v3711_v28, %v2943_v29  ;;  %v3738_v28 = vld [vmem:[%s4109_s28 + $0x1ec] sm:$0xf]  ;;  %v3047_v29 = vld [vmem:[%s4109_s28 + $0x220] sm:$0xf0] }
 0x16f   : > { %v2161_v36 = vpop.f32.mrf.mxu2 }
 0x170   : > { %v2210_v39 = vpop.f32.mrf.mxu3  ;;  %v2162_v59 = vadd.f32 %v2161_v36, %v4487_v7  ;;  %v2882_v7 = vor.u32 %v3696_v48, %v2879_v49 }
 0x171   : > { %v2261_v42 = vpop.f32.mrf.mxu0 }
 0x172   : > { %v2211_v55 = vadd.f32 %v2210_v39, %v2162_v59 }
 0x173   : > { %v2310_v43 = vpop.f32.mrf.mxu1 }
 0x174   : > { %v2260_v44 = vadd.f32 %v2259_v33, %v2211_v55  ;;  %v2934_v33 = vor.u32 %v3717_v17, %v2933_v24 }
 0x176   : > { %v4662_v51 = vadd.f32 %v2308_v34, %v2260_v44  ;;  %v2942_v34 = vor.u32 %v3718_v62, %v2941_v46  ;;  %v3045_v46 = vld [vmem:[%s4109_s28 + $0x1e8] sm:$0xf]  ;;  %v3745_v62 = vld [vmem:[%s4109_s28 + $0x21c] sm:$0xf0] }
 0x177   : > { %v2163_v58 = vpop.f32.mrf.mxu2 }
 0x178   : > { %v2212_v60 = vpop.f32.mrf.mxu3  ;;  %v2164_v61 = vadd.f32 %v2163_v58, %v4499_v27  ;;  %v2997_v58 = vld [vmem:[%s4109_s28 + $0x180] sm:$0xf] }
 0x179   : > { %v2264_v3 = vpop.f32.mrf.mxu0 }
 0x17a   : > { %v2213_v2 = vadd.f32 %v2212_v60, %v2164_v61  ;;  %v3732_v60 = vld [vmem:[%s4109_s28 + $0x1b4] sm:$0xf0]  ;;  %v3725_v61 = vld [vmem:[%s4109_s28 + $0x184] sm:$0xf] }
 0x17b   : > { %v2313_v4 = vpop.f32.mrf.mxu1 }
 0x17c   : > { %v2262_v6 = vadd.f32 %v2261_v42, %v2213_v2  ;;  %2361 = vmatmul.bf16.gmra.mxu2 %v2878_v63  ;;  %2459 = vmatmul.bf16.gmra.mxu0 %v2886_v13  ;;  %v2999_v63 = vld [vmem:[%s4109_s28 + $0x1b8] sm:$0xf0] }
 0x17d   : > { %2410 = vmatmul.bf16.gmra.mxu3 %v2882_v7 }
 0x17e   : > { %2508 = vmatmul.bf16.gmra.mxu1 %v2890_v26  ;;  %v4665_v27 = vadd.f32 %v2310_v43, %v2262_v6  ;;  %v3002_v6 = vor.u32 %v3725_v61, %v2999_v63  ;;  %v3752_v61 = vld [vmem:[%s4109_s28 + $0x25c] sm:$0xf]  ;;  %v3103_v63 = vld [vmem:[%s4109_s28 + $0x290] sm:$0xf0] }
 0x17f   : > { %v2166_v54 = vpop.f32.mrf.mxu2 }
 0x180   : > { %v2215_v8 = vpop.f32.mrf.mxu3  ;;  %v2167_v9 = vadd.f32 %v2166_v54, %v4513_v47  ;;  %v2938_v47 = vor.u32 %v3710_v19, %v2935_v21 }
 0x181   : > { %v2266_v12 = vpop.f32.mrf.mxu0 }
 0x182   : > { %v2216_v11 = vadd.f32 %v2215_v8, %v2167_v9 }
 0x183   : > { %v2315_v14 = vpop.f32.mrf.mxu1 }
 0x184   : > { %v2265_v23 = vadd.f32 %v2264_v3, %v2216_v11  ;;  %v2990_v3 = vor.u32 %v3731_v53, %v2989_v52 }
 0x186   : > { %v4676_v20 = vadd.f32 %v2313_v4, %v2265_v23  ;;  %v2998_v4 = vor.u32 %v3732_v60, %v2997_v58  ;;  %v3101_v58 = vld [vmem:[%s4109_s28 + $0x258] sm:$0xf]  ;;  %v3759_v60 = vld [vmem:[%s4109_s28 + $0x28c] sm:$0xf0] }
 0x187   : > { %v2168_v30 = vpop.f32.mrf.mxu2 }
 0x188   : > { %v2217_v31 = vpop.f32.mrf.mxu3  ;;  %v2169_v32 = vadd.f32 %v2168_v30, %v4525_v1  ;;  %v3053_v30 = vld [vmem:[%s4109_s28 + $0x1f0] sm:$0xf] }
 0x189   : > { %v2269_v39 = vpop.f32.mrf.mxu0 }
 0x18a   : > { %v2218_v36 = vadd.f32 %v2217_v31, %v2169_v32  ;;  %v3746_v31 = vld [vmem:[%s4109_s28 + $0x224] sm:$0xf0]  ;;  %v3739_v32 = vld [vmem:[%s4109_s28 + $0x1f4] sm:$0xf] }
 0x18b   : > { %v2318_v59 = vpop.f32.mrf.mxu1 }
 0x18c   : > { %v2267_v55 = vadd.f32 %v2266_v12, %v2218_v36  ;;  %2366 = vmatmul.bf16.gmra.mxu2 %v2934_v33  ;;  %2464 = vmatmul.bf16.gmra.mxu0 %v2942_v34  ;;  %v3055_v33 = vld [vmem:[%s4109_s28 + $0x228] sm:$0xf0] }
 0x18d   : > { %2415 = vmatmul.bf16.gmra.mxu3 %v2938_v47 }
 0x18e   : > { %2513 = vmatmul.bf16.gmra.mxu1 %v2946_v35  ;;  %v4679_v1 = vadd.f32 %v2315_v14, %v2267_v55  ;;  %v3058_v55 = vor.u32 %v3739_v32, %v3055_v33  ;;  %v3766_v32 = vld [vmem:[%s4109_s28 + $0x2cc] sm:$0xf]  ;;  %v3159_v33 = vld [vmem:[%s4109_s28 + $0x300] sm:$0xf0] }
 0x18f   : > { %v2171_v42 = vpop.f32.mrf.mxu2 }
 0x190   : > { %v2220_v43 = vpop.f32.mrf.mxu3  ;;  %v2172_v44 = vadd.f32 %v2171_v42, %v4539_v25  ;;  %v2994_v25 = vor.u32 %v3724_v56, %v2991_v10 }
 0x191   : > { %v2271_v18 = vpop.f32.mrf.mxu0 }
 0x192   : > { %v2221_v45 = vadd.f32 %v2220_v43, %v2172_v44 }
 0x193   : > { %v2320_v48 = vpop.f32.mrf.mxu1 }
 0x194   : > { %v2270_v49 = vadd.f32 %v2269_v39, %v2221_v45  ;;  %v3046_v39 = vor.u32 %v3745_v62, %v3045_v46 }
 0x196   : > { %v4690_v7 = vadd.f32 %v2318_v59, %v2270_v49  ;;  %v3054_v59 = vor.u32 %v3746_v31, %v3053_v30  ;;  %v3157_v30 = vld [vmem:[%s4109_s28 + $0x2c8] sm:$0xf]  ;;  %v3773_v31 = vld [vmem:[%s4109_s28 + $0x2fc] sm:$0xf0] }
 0x197   : > { %v2173_v13 = vpop.f32.mrf.mxu2 }
 0x198   : > { %v2222_v26 = vpop.f32.mrf.mxu3  ;;  %v2174_v2 = vadd.f32 %v2173_v13, %v4551_v41  ;;  %v3109_v13 = vld [vmem:[%s4109_s28 + $0x260] sm:$0xf] }
 0x199   : > { %v2274_v8 = vpop.f32.mrf.mxu0 }
 0x19a   : > { %v2223_v54 = vadd.f32 %v2222_v26, %v2174_v2  ;;  %v3760_v26 = vld [vmem:[%s4109_s28 + $0x294] sm:$0xf0]  ;;  %v3753_v2 = vld [vmem:[%s4109_s28 + $0x264] sm:$0xf] }
 0x19b   : > { %v2323_v9 = vpop.f32.mrf.mxu1 }
 0x19c   : > { %v2272_v11 = vadd.f32 %v2271_v18, %v2223_v54  ;;  %2371 = vmatmul.bf16.gmra.mxu2 %v2990_v3  ;;  %2469 = vmatmul.bf16.gmra.mxu0 %v2998_v4  ;;  %v3111_v3 = vld [vmem:[%s4109_s28 + $0x298] sm:$0xf0] }
 0x19d   : > { %2420 = vmatmul.bf16.gmra.mxu3 %v2994_v25 }
 0x19e   : > { %2518 = vmatmul.bf16.gmra.mxu1 %v3002_v6  ;;  %v4693_v41 = vadd.f32 %v2320_v48, %v2272_v11  ;;  %v3114_v11 = vor.u32 %v3753_v2, %v3111_v3  ;;  %v3780_v2 = vld [vmem:[%s4109_s28 + $0x33c] sm:$0xf]  ;;  %v3215_v3 = vld [vmem:[%s4109_s28 + $0x370] sm:$0xf0] }
 0x19f   : > { %v2176_v12 = vpop.f32.mrf.mxu2 }
 0x1a0   : > { %v2225_v14 = vpop.f32.mrf.mxu3  ;;  %v2177_v23 = vadd.f32 %v2176_v12, %v4565_v0  ;;  %v3050_v0 = vor.u32 %v3738_v28, %v3047_v29 }
 0x1a1   : > { %v2276_v17 = vpop.f32.mrf.mxu0 }
 0x1a2   : > { %v2226_v24 = vadd.f32 %v2225_v14, %v2177_v23 }
 0x1a3   : > { %v2325_v19 = vpop.f32.mrf.mxu1 }
 0x1a4   : > { %v2275_v21 = vadd.f32 %v2274_v8, %v2226_v24  ;;  %v3102_v8 = vor.u32 %v3759_v60, %v3101_v58 }
 0x1a6   : > { %v4704_v47 = vadd.f32 %v2323_v9, %v2275_v21  ;;  %v3110_v9 = vor.u32 %v3760_v26, %v3109_v13  ;;  %v3213_v13 = vld [vmem:[%s4109_s28 + $0x338] sm:$0xf]  ;;  %v3787_v26 = vld [vmem:[%s4109_s28 + $0x36c] sm:$0xf0] }
 0x1a7   : > { %v2178_v34 = vpop.f32.mrf.mxu2 }
 0x1a8   : > { %v2227_v35 = vpop.f32.mrf.mxu3  ;;  %v2179_v36 = vadd.f32 %v2178_v34, %v4577_v16  ;;  %v3165_v34 = vld [vmem:[%s4109_s28 + $0x2d0] sm:$0xf] }
 0x1a9   : > { %v2279_v43 = vpop.f32.mrf.mxu0 }
 0x1aa   : > { %v2228_v42 = vadd.f32 %v2227_v35, %v2179_v36  ;;  %v3774_v35 = vld [vmem:[%s4109_s28 + $0x304] sm:$0xf0]  ;;  %v3767_v36 = vld [vmem:[%s4109_s28 + $0x2d4] sm:$0xf] }
 0x1ab   : > { %v2328_v44 = vpop.f32.mrf.mxu1 }
 0x1ac   : > { %v2277_v45 = vadd.f32 %v2276_v17, %v2228_v42  ;;  %2376 = vmatmul.bf16.gmra.mxu2 %v3046_v39  ;;  %2474 = vmatmul.bf16.gmra.mxu0 %v3054_v59  ;;  %v3167_v39 = vld [vmem:[%s4109_s28 + $0x308] sm:$0xf0] }
 0x1ad   : > { %2425 = vmatmul.bf16.gmra.mxu3 %v3050_v0 }
 0x1ae   : > { %2523 = vmatmul.bf16.gmra.mxu1 %v3058_v55  ;;  %v4707_v16 = vadd.f32 %v2325_v19, %v2277_v45  ;;  %v3170_v45 = vor.u32 %v3767_v36, %v3167_v39 }
 0x1af   : > { %v2181_v18 = vpop.f32.mrf.mxu2 }
 0x1b0   : > { %v2230_v48 = vpop.f32.mrf.mxu3  ;;  %v2182_v49 = vadd.f32 %v2181_v18, %v4591_v40  ;;  %v3106_v40 = vor.u32 %v3752_v61, %v3103_v63 }
 0x1b1   : > { %v2281_v53 = vpop.f32.mrf.mxu0 }
 0x1b2   : > { %v2231_v52 = vadd.f32 %v2230_v48, %v2182_v49 }
 0x1b3   : > { %v2330_v56 = vpop.f32.mrf.mxu1 }
 0x1b4   : > { %v2280_v10 = vadd.f32 %v2279_v43, %v2231_v52  ;;  %v3158_v43 = vor.u32 %v3773_v31, %v3157_v30 }
 0x1b6   : > { %v4718_v25 = vadd.f32 %v2328_v44, %v2280_v10  ;;  %v3166_v44 = vor.u32 %v3774_v35, %v3165_v34 }
 0x1b7   : > { %v2183_v4 = vpop.f32.mrf.mxu2 }
 0x1b8   : > { %v2232_v6 = vpop.f32.mrf.mxu3  ;;  %v2184_v54 = vadd.f32 %v2183_v4, %v4603_v57  ;;  %v3221_v4 = vld [vmem:[%s4109_s28 + $0x340] sm:$0xf] }
 0x1b9   : > { %v2284_v14 = vpop.f32.mrf.mxu0 }
 0x1ba   : > { %v2233_v12 = vadd.f32 %v2232_v6, %v2184_v54  ;;  %v3788_v6 = vld [vmem:[%s4109_s28 + $0x374] sm:$0xf0]  ;;  %v3781_v54 = vld [vmem:[%s4109_s28 + $0x344] sm:$0xf] }
 0x1bb   : > { %v2333_v23 = vpop.f32.mrf.mxu1 }
 0x1bc   : > { %v2282_v24 = vadd.f32 %v2281_v53, %v2233_v12  ;;  %2381 = vmatmul.bf16.gmra.mxu2 %v3102_v8  ;;  %2479 = vmatmul.bf16.gmra.mxu0 %v3110_v9  ;;  %v3223_v8 = vld [vmem:[%s4109_s28 + $0x378] sm:$0xf0] }
 0x1bd   : > { %2430 = vmatmul.bf16.gmra.mxu3 %v3106_v40 }
 0x1be   : > { %2528 = vmatmul.bf16.gmra.mxu1 %v3114_v11  ;;  %v4721_v57 = vadd.f32 %v2330_v56, %v2282_v24  ;;  %v3226_v24 = vor.u32 %v3781_v54, %v3223_v8 }
 0x1bf   : > { %v2186_v17 = vpop.f32.mrf.mxu2 }
 0x1c0   : > { %v2235_v19 = vpop.f32.mrf.mxu3  ;;  %v2187_v21 = vadd.f32 %v2186_v17, %v4617_v15  ;;  %v3162_v15 = vor.u32 %v3766_v32, %v3159_v33 }
 0x1c1   : > { %v2286_v62 = vpop.f32.mrf.mxu0 }
 0x1c2   : > { %v2236_v46 = vadd.f32 %v2235_v19, %v2187_v21 }
 0x1c3   : > { %v2335_v28 = vpop.f32.mrf.mxu1 }
 0x1c4   : > { %v2285_v29 = vadd.f32 %v2284_v14, %v2236_v46  ;;  %v3214_v14 = vor.u32 %v3787_v26, %v3213_v13  ;;  %v4768_v13 = vld [vmem:[%s4841_s3] ss:$0 sm:$0xff] }
 0x1c6   : > { %v4732_v0 = vadd.f32 %v2333_v23, %v2285_v29  ;;  %v3222_v23 = vor.u32 %v3788_v6, %v3221_v4 }
 0x1c7   : > { %v2188_v59 = vpop.f32.mrf.mxu2 }
 0x1c8   : > { %v2237_v55 = vpop.f32.mrf.mxu3  ;;  %v2189_v42 = vadd.f32 %v2188_v59, %v4623_v38 }
 0x1c9   : > { %v2289_v48 = vpop.f32.mrf.mxu0 }
 0x1ca   : > { %v2238_v18 = vadd.f32 %v2237_v55, %v2189_v42 }
 0x1cb   : > { %v2338_v49 = vpop.f32.mrf.mxu1 }
 0x1cc   : > { %v2287_v52 = vadd.f32 %v2286_v62, %v2238_v18  ;;  %2386 = vmatmul.bf16.gmra.mxu2 %v3158_v43  ;;  %2484 = vmatmul.bf16.gmra.mxu0 %v3166_v44 }
 0x1cd   : > { %2435 = vmatmul.bf16.gmra.mxu3 %v3162_v15 }
 0x1ce   : > { %2533 = vmatmul.bf16.gmra.mxu1 %v3170_v45  ;;  %v4735_v38 = vadd.f32 %v2335_v28, %v2287_v52 }
 0x1cf   : > { %v2191_v53 = vpop.f32.mrf.mxu2 }
 0x1d0   : > { %v2240_v56 = vpop.f32.mrf.mxu3  ;;  %v2192_v10 = vadd.f32 %v2191_v53, %v4634_v50  ;;  %v3218_v50 = vor.u32 %v3780_v2, %v3215_v3 }
 0x1d1   : > { %v2291_v60 = vpop.f32.mrf.mxu0 }
 0x1d2   : > { %v2241_v58 = vadd.f32 %v2240_v56, %v2192_v10 }
 0x1d3   : > { %v2340_v61 = vpop.f32.mrf.mxu1 }
 0x1d4   : > { %v2290_v63 = vadd.f32 %v2289_v48, %v2241_v58 }
 0x1d6   : > { %v4746_v40 = vadd.f32 %v2338_v49, %v2290_v63 }
 0x1d7   : > { %v2193_v9 = vpop.f32.mrf.mxu2 }
 0x1d8   : > { %v2242_v11 = vpop.f32.mrf.mxu3  ;;  %v2194_v12 = vadd.f32 %v2193_v9, %v4637_v5 }
 0x1d9   : > { %v2294_v19 = vpop.f32.mrf.mxu0 }
 0x1da   : > { %v2243_v17 = vadd.f32 %v2242_v11, %v2194_v12 }
 0x1db   : > { %v2343_v21 = vpop.f32.mrf.mxu1 }
 0x1dc   : > { %v2292_v46 = vadd.f32 %v2291_v60, %v2243_v17  ;;  %2391 = vmatmul.bf16.gmra.mxu2 %v3214_v14  ;;  %2489 = vmatmul.bf16.gmra.mxu0 %v3222_v23 }
 0x1dd   : > { %2440 = vmatmul.bf16.gmra.mxu3 %v3218_v50 }
 0x1de   : > { %2538 = vmatmul.bf16.gmra.mxu1 %v3226_v24  ;;  %v4749_v62 = vadd.f32 %v2340_v61, %v2292_v46 }
 0x1df   : > { %v2196_v28 = vpop.f32.mrf.mxu2 }
 0x1e0   : > { %v2245_v29 = vpop.f32.mrf.mxu3  ;;  %v2197_v30 = vadd.f32 %v2196_v28, %v4648_v22 }
 0x1e1   : > { %v2296_v5 = vpop.f32.mrf.mxu0 }
 0x1e2   : > { %v2246_v31 = vadd.f32 %v2245_v29, %v2197_v30 }
 0x1e3   : > { %v2345_v32 = vpop.f32.mrf.mxu1 }
 0x1e4   : > { %v2295_v33 = vadd.f32 %v2294_v19, %v2246_v31 }
 0x1e6   : > { %v4752_v34 = vadd.f32 %v2343_v21, %v2295_v33 }
 0x1e7   : > { %v2198_v35 = vpop.f32.mrf.mxu2 }
 0x1e8   : > { %v2247_v36 = vpop.f32.mrf.mxu3  ;;  %v2199_v39 = vadd.f32 %v2198_v35, %v4651_v37  ;;  %v4761_v37 = vld [vmem:[%s4840_s2] ss:$0 sm:$0xff] }
 0x1e9   : > { %v2455_v55 = vpop.f32.mrf.mxu0 }
 0x1ea   : > { %v2248_v59 = vadd.f32 %v2247_v36, %v2199_v39 }
 0x1eb   : > { %v2504_v42 = vpop.f32.mrf.mxu1 }
 0x1ec   : > { %v2297_v43 = vadd.f32 %v2296_v5, %v2248_v59 }
 0x1ee   : > { %v4755_v15 = vadd.f32 %v2345_v32, %v2297_v43 }
 0x1ef   : > { %v2357_v44 = vpop.f32.mrf.mxu2 }
 0x1f0   : > { %v2406_v45 = vpop.f32.mrf.mxu3  ;;  %v2358_v22 = vadd.f32 %v2357_v44, %v4662_v51 }
 0x1f1   : > { %v2457_v48 = vpop.f32.mrf.mxu0 }
 0x1f2   : > { %v2407_v18 = vadd.f32 %v2406_v45, %v2358_v22 }
 0x1f3   : > { %v2506_v49 = vpop.f32.mrf.mxu1 }
 0x1f4   : > { %v2456_v52 = vadd.f32 %v2455_v55, %v2407_v18 }
 0x1f6   : > { %v2505_v10 = vadd.f32 %v2504_v42, %v2456_v52 }
 0x1f7   : > { %v2359_v53 = vpop.f32.mrf.mxu2 }
 0x1f8   : > { %v2408_v56 = vpop.f32.mrf.mxu3  ;;  %v2360_v58 = vadd.f32 %v2359_v53, %v4665_v27  ;;  %v2599_v51 = vmul.f32 %v4761_v37, %v2505_v10 }
 0x1f9   : > { %v2460_v61 = vpop.f32.mrf.mxu0 }
 0x1fa   : > { %v2409_v60 = vadd.f32 %v2408_v56, %v2360_v58  ;;  %v2619_v6 = vadd.f32 %v4768_v13, %v2599_v51 }
 0x1fb   : > { %v2509_v63 = vpop.f32.mrf.mxu1 }
 0x1fc   : > { %v2458_v26 = vadd.f32 %v2457_v48, %v2409_v60  ;;  %v2635_v14 = vmax.f32 %v2619_v6, 0.0 }
 0x1fe   : > { %v2507_v2 = vadd.f32 %v2506_v49, %v2458_v26 }
 0x1ff   : > { %v2362_v3 = vpop.f32.mrf.mxu2 }
 0x200   : > { %v2411_v4 = vpop.f32.mrf.mxu3  ;;  %v2600_v54 = vmul.f32 %v4761_v37, %v2507_v2  ;;  %v2363_v27 = vadd.f32 %v2362_v3, %v4676_v20 }
 0x201   : > { %v2462_v11 = vpop.f32.mrf.mxu0 }
 0x202   : > { %v2620_v8 = vadd.f32 %v4768_v13, %v2600_v54  ;;  %v2412_v9 = vadd.f32 %v2411_v4, %v2363_v27 }
 0x203   : > { %v2511_v12 = vpop.f32.mrf.mxu1 }
 0x204   : > { %v2636_v50 = vmax.f32 %v2620_v8, 0.0  ;;  %v2461_v23 = vadd.f32 %v2460_v61, %v2412_v9 }
 0x206   : > { %v3904_v24 = vpack.c.bf16 %v2636_v50, %v2635_v14  ;;  %v2510_v20 = vadd.f32 %v2509_v63, %v2461_v23 }
 0x207   : > { %v2364_v17 = vpop.f32.mrf.mxu2 }
 0x208   : > { %v2413_v19 = vpop.f32.mrf.mxu3  ;;  %3905 = vst [vmem:[%s4778_s20] sm:$0xff] %v3904_v24   ;;  %v2365_v21 = vadd.f32 %v2364_v17, %v4679_v1  ;;  %v2601_v30 = vmul.f32 %v4761_v37, %v2510_v20 }
 0x209   : > { %v2465_v28 = vpop.f32.mrf.mxu0 }
 0x20a   : > { %v2414_v46 = vadd.f32 %v2413_v19, %v2365_v21  ;;  %v2621_v35 = vadd.f32 %v4768_v13, %v2601_v30 }
 0x20b   : > { %v2514_v29 = vpop.f32.mrf.mxu1 }
 0x20c   : > { %v2463_v31 = vadd.f32 %v2462_v11, %v2414_v46  ;;  %v2637_v43 = vmax.f32 %v2621_v35, 0.0 }
 0x20e   : > { %v2512_v5 = vadd.f32 %v2511_v12, %v2463_v31 }
 0x20f   : > { %v2367_v32 = vpop.f32.mrf.mxu2 }
 0x210   : > { %v2416_v33 = vpop.f32.mrf.mxu3  ;;  %v2602_v36 = vmul.f32 %v4761_v37, %v2512_v5  ;;  %v2368_v39 = vadd.f32 %v2367_v32, %v4690_v7 }
 0x211   : > { %v2467_v1 = vpop.f32.mrf.mxu0 }
 0x212   : > { %v2622_v59 = vadd.f32 %v4768_v13, %v2602_v36  ;;  %v2417_v55 = vadd.f32 %v2416_v33, %v2368_v39 }
 0x213   : > { %v2516_v42 = vpop.f32.mrf.mxu1 }
 0x214   : > { %v2638_v44 = vmax.f32 %v2622_v59, 0.0  ;;  %v2466_v45 = vadd.f32 %v2465_v28, %v2417_v55 }
 0x216   : > { %v3909_v22 = vpack.c.bf16 %v2638_v44, %v2637_v43  ;;  %v2515_v49 = vadd.f32 %v2514_v29, %v2466_v45 }
 0x217   : > { %v2369_v18 = vpop.f32.mrf.mxu2 }
 0x218   : > { %v2418_v48 = vpop.f32.mrf.mxu3  ;;  %3941 = vst [vmem:[%s4778_s20 + $0x8] sm:$0xff] %v3909_v22   ;;  %v2370_v52 = vadd.f32 %v2369_v18, %v4693_v41  ;;  %v2603_v7 = vmul.f32 %v4761_v37, %v2515_v49 }
 0x219   : > { %v2470_v56 = vpop.f32.mrf.mxu0 }
 0x21a   : > { %v2419_v53 = vadd.f32 %v2418_v48, %v2370_v52  ;;  %v2623_v51 = vadd.f32 %v4768_v13, %v2603_v7 }
 0x21b   : > { %v2519_v10 = vpop.f32.mrf.mxu1 }
 0x21c   : > { %v2468_v58 = vadd.f32 %v2467_v1, %v2419_v53  ;;  %v2639_v54 = vmax.f32 %v2623_v51, 0.0 }
 0x21e   : > { %v2517_v60 = vadd.f32 %v2516_v42, %v2468_v58 }
 0x21f   : > { %v2372_v61 = vpop.f32.mrf.mxu2 }
 0x220   : > { %v2421_v63 = vpop.f32.mrf.mxu3  ;;  %v2604_v26 = vmul.f32 %v4761_v37, %v2517_v60  ;;  %v2373_v2 = vadd.f32 %v2372_v61, %v4704_v47 }
 0x221   : > { %v2472_v41 = vpop.f32.mrf.mxu0 }
 0x222   : > { %v2624_v3 = vadd.f32 %v4768_v13, %v2604_v26  ;;  %v2422_v4 = vadd.f32 %v2421_v63, %v2373_v2 }
 0x223   : > { %v2521_v6 = vpop.f32.mrf.mxu1 }
 0x224   : > { %v2640_v27 = vmax.f32 %v2624_v3, 0.0  ;;  %v2471_v8 = vadd.f32 %v2470_v56, %v2422_v4 }
 0x226   : > { %v3914_v9 = vpack.c.bf16 %v2640_v27, %v2639_v54  ;;  %v2520_v14 = vadd.f32 %v2519_v10, %v2471_v8 }
 0x227   : > { %v2374_v11 = vpop.f32.mrf.mxu2 }
 0x228   : > { %v2423_v12 = vpop.f32.mrf.mxu3  ;;  %3942 = vst [vmem:[%s4778_s20 + $0x10] sm:$0xff] %v3914_v9   ;;  %v2375_v50 = vadd.f32 %v2374_v11, %v4707_v16  ;;  %v2605_v47 = vmul.f32 %v4761_v37, %v2520_v14 }
 0x229   : > { %v2475_v24 = vpop.f32.mrf.mxu0 }
 0x22a   : > { %v2424_v23 = vadd.f32 %v2423_v12, %v2375_v50  ;;  %v2625_v28 = vadd.f32 %v4768_v13, %v2605_v47 }
 0x22b   : > { %v2524_v17 = vpop.f32.mrf.mxu1 }
 0x22c   : > { %v2473_v19 = vadd.f32 %v2472_v41, %v2424_v23  ;;  %v2641_v33 = vmax.f32 %v2625_v28, 0.0 }
 0x22e   : > { %v2522_v20 = vadd.f32 %v2521_v6, %v2473_v19 }
 0x22f   : > { %v2377_v21 = vpop.f32.mrf.mxu2 }
 0x230   : > { %v2426_v46 = vpop.f32.mrf.mxu3  ;;  %v2606_v29 = vmul.f32 %v4761_v37, %v2522_v20  ;;  %v2378_v30 = vadd.f32 %v2377_v21, %v4718_v25 }
 0x231   : > { %v2477_v16 = vpop.f32.mrf.mxu0 }
 0x232   : > { %v2626_v31 = vadd.f32 %v4768_v13, %v2606_v29  ;;  %v2427_v5 = vadd.f32 %v2426_v46, %v2378_v30 }
 0x233   : > { %v2526_v32 = vpop.f32.mrf.mxu1 }
 0x234   : > { %v2642_v35 = vmax.f32 %v2626_v31, 0.0  ;;  %v2476_v36 = vadd.f32 %v2475_v24, %v2427_v5 }
 0x236   : > { %v3919_v39 = vpack.c.bf16 %v2642_v35, %v2641_v33  ;;  %v2525_v1 = vadd.f32 %v2524_v17, %v2476_v36 }
 0x237   : > { %v2379_v59 = vpop.f32.mrf.mxu2 }
 0x238   : > { %v2428_v55 = vpop.f32.mrf.mxu3  ;;  %3943 = vst [vmem:[%s4778_s20 + $0x18] sm:$0xff] %v3919_v39   ;;  %v2380_v42 = vadd.f32 %v2379_v59, %v4721_v57  ;;  %v2607_v25 = vmul.f32 %v4761_v37, %v2525_v1 }
 0x239   : > { %v2480_v44 = vpop.f32.mrf.mxu0 }
 0x23a   : > { %v2429_v43 = vadd.f32 %v2428_v55, %v2380_v42  ;;  %v2627_v52 = vadd.f32 %v4768_v13, %v2607_v25 }
 0x23b   : > { %v2529_v45 = vpop.f32.mrf.mxu1 }
 0x23c   : > { %v2478_v22 = vadd.f32 %v2477_v16, %v2429_v43  ;;  %v2643_v58 = vmax.f32 %v2627_v52, 0.0 }
 0x23e   : > { %v2527_v18 = vadd.f32 %v2526_v32, %v2478_v22 }
 0x23f   : > { %v2382_v48 = vpop.f32.mrf.mxu2 }
 0x240   : > { %v2431_v49 = vpop.f32.mrf.mxu3  ;;  %v2608_v53 = vmul.f32 %v4761_v37, %v2527_v18  ;;  %v2383_v56 = vadd.f32 %v2382_v48, %v4732_v0 }
 0x241   : > { %v2482_v57 = vpop.f32.mrf.mxu0 }
 0x242   : > { %v2628_v10 = vadd.f32 %v4768_v13, %v2608_v53  ;;  %v2432_v7 = vadd.f32 %v2431_v49, %v2383_v56 }
 0x243   : > { %v2531_v63 = vpop.f32.mrf.mxu1 }
 0x244   : > { %v2644_v60 = vmax.f32 %v2628_v10, 0.0  ;;  %v2481_v61 = vadd.f32 %v2480_v44, %v2432_v7 }
 0x246   : > { %v3924_v51 = vpack.c.bf16 %v2644_v60, %v2643_v58  ;;  %v2530_v3 = vadd.f32 %v2529_v45, %v2481_v61 }
 0x247   : > { %v2384_v26 = vpop.f32.mrf.mxu2 }
 0x248   : > { %v2433_v2 = vpop.f32.mrf.mxu3  ;;  %3944 = vst [vmem:[%s4778_s20 + $0x20] sm:$0xff] %v3924_v51   ;;  %v2385_v4 = vadd.f32 %v2384_v26, %v4735_v38  ;;  %v2609_v6 = vmul.f32 %v4761_v37, %v2530_v3 }
 0x249   : > { %v2485_v0 = vpop.f32.mrf.mxu0 }
 0x24a   : > { %v2434_v41 = vadd.f32 %v2433_v2, %v2385_v4  ;;  %v2629_v12 = vadd.f32 %v4768_v13, %v2609_v6 }
 0x24b   : > { %v2534_v8 = vpop.f32.mrf.mxu1 }
 0x24c   : > { %v2483_v54 = vadd.f32 %v2482_v57, %v2434_v41  ;;  %v2645_v38 = vmax.f32 %v2629_v12, 0.0 }
 0x24e   : > { %v2532_v27 = vadd.f32 %v2531_v63, %v2483_v54 }
 0x24f   : > { %v2387_v9 = vpop.f32.mrf.mxu2 }
 0x250   : > { %v2436_v11 = vpop.f32.mrf.mxu3  ;;  %v2610_v14 = vmul.f32 %v4761_v37, %v2532_v27  ;;  %v2388_v50 = vadd.f32 %v2387_v9, %v4746_v40 }
 0x251   : > { %v2487_v20 = vpop.f32.mrf.mxu0 }
 0x252   : > { %v2630_v23 = vadd.f32 %v4768_v13, %v2610_v14  ;;  %v2437_v24 = vadd.f32 %v2436_v11, %v2388_v50 }
 0x253   : > { %v2536_v30 = vpop.f32.mrf.mxu1 }
 0x254   : > { %v2646_v17 = vmax.f32 %v2630_v23, 0.0  ;;  %v2486_v47 = vadd.f32 %v2485_v0, %v2437_v24 }
 0x256   : > { %v3929_v19 = vpack.c.bf16 %v2646_v17, %v2645_v38  ;;  %v2535_v28 = vadd.f32 %v2534_v8, %v2486_v47 }
 0x257   : > { %v2389_v21 = vpop.f32.mrf.mxu2 }
 0x258   : > { %v2438_v46 = vpop.f32.mrf.mxu3  ;;  %3945 = vst [vmem:[%s4778_s20 + $0x28] sm:$0xff] %v3929_v19   ;;  %v2390_v29 = vadd.f32 %v2389_v21, %v4749_v62  ;;  %v2611_v5 = vmul.f32 %v4761_v37, %v2535_v28 }
 0x259   : > { %v2490_v59 = vpop.f32.mrf.mxu0 }
 0x25a   : > { %v2439_v31 = vadd.f32 %v2438_v46, %v2390_v29  ;;  %v2631_v35 = vadd.f32 %v4768_v13, %v2611_v5 }
 0x25b   : > { %v2539_v62 = vpop.f32.mrf.mxu1 }
 0x25c   : > { %v2488_v16 = vadd.f32 %v2487_v20, %v2439_v31  ;;  %v2647_v42 = vmax.f32 %v2631_v35, 0.0 }
 0x25e   : > { %v2537_v40 = vadd.f32 %v2536_v30, %v2488_v16 }
 0x25f   : > { %v2392_v32 = vpop.f32.mrf.mxu2 }
 0x260   : > { %v2441_v33 = vpop.f32.mrf.mxu3  ;;  %v2612_v36 = vmul.f32 %v4761_v37, %v2537_v40  ;;  %v2393_v39 = vadd.f32 %v2392_v32, %v4752_v34 }
 0x261   : > { %v2492_v52 = vpop.f32.mrf.mxu0 }
 0x262   : > { %v2632_v55 = vadd.f32 %v4768_v13, %v2612_v36  ;;  %v2442_v1 = vadd.f32 %v2441_v33, %v2393_v39 }
 0x263   : > { %v2541_v56 = vpop.f32.mrf.mxu1 }
 0x264   : > { %v2648_v43 = vmax.f32 %v2632_v55, 0.0  ;;  %v2491_v44 = vadd.f32 %v2490_v59, %v2442_v1 }
 0x266   : > { %v3934_v45 = vpack.c.bf16 %v2648_v43, %v2647_v42  ;;  %v2540_v22 = vadd.f32 %v2539_v62, %v2491_v44 }
 0x267   : > { %v2394_v25 = vpop.f32.mrf.mxu2 }
 0x268   : > { %3946 = vst [vmem:[%s4778_s20 + $0x30] sm:$0xff] %v3934_v45   ;;  %v2395_v18 = vadd.f32 %v2394_v25, %v4755_v15  ;;  %v2443_v48 = vpop.f32.mrf.mxu3  ;;  %v2613_v34 = vmul.f32 %v4761_v37, %v2540_v22 }
 0x26a   : > { %v2444_v49 = vadd.f32 %v2443_v48, %v2395_v18  ;;  %v2633_v7 = vadd.f32 %v4768_v13, %v2613_v34 }
 0x26c   : > { %v2493_v53 = vadd.f32 %v2492_v52, %v2444_v49  ;;  %v2649_v60 = vmax.f32 %v2633_v7, 0.0 }
 0x26e   : > { %v2542_v10 = vadd.f32 %v2541_v56, %v2493_v53 }
 0x270   : > { %v2614_v57 = vmul.f32 %v4761_v37, %v2542_v10 }
 0x272   : > { %v2634_v58 = vadd.f32 %v4768_v13, %v2614_v57 }
 0x274   : > { %v2650_v61 = vmax.f32 %v2634_v58, 0.0 }
 0x276   : > { %v3939_v63 = vpack.c.bf16 %v2650_v61, %v2649_v60 }
 0x278   : > { %3947 = vst [vmem:[%s4778_s20 + $0x38] sm:$0xff] %v3939_v63  }
 0x279 PF: > { %s14_s17 = sadd.s32 1, %s4013_s17   ;;  %s4843_s15 = smov %s4009_s16 }
 0x27a   : > { %p11_p5 = scmp.ge.s32.totalorder %s14_s17, 4   ;;  %s4844_s16 = smov %s4846_s18 }
 0x27c   :  { %13 = sbr.rel (!%p11_p5) target bundleno = 2 (0x2), region = 77 }

// kernel: model_forward.7
= control target key start
LH: loop header
LB: loop body
LE: loop exit
PB: predicated region body
PF: predicated region fallthrough
CT: control target
= control target key end

     0   :  { %s666_s1 = inlined_call_operand.vmem [shape: bf16[512,128], index: 1, kind: input, shape index: {}]   ;;  %s667_s0 = inlined_call_operand.vmem [shape: bf16[8,512], index: 0, kind: input, shape index: {}]   ;;  %s668_s2 = inlined_call_operand.vmem [shape: f32[1,128], index: 2, kind: input, shape index: {}]   ;;  %s669_s3 = inlined_call_operand.vmem [shape: f32[1,128], index: 3, kind: input, shape index: {}]   ;;  %s670_s4 = inlined_call_operand.vmem [shape: f32[8,128], index: 4, kind: output, shape index: {}]  }
   0x1   :  { %v503_v0 = vld [vmem:[%s666_s1 + $0x38] sm:$0xff]  ;;  %v502_v4 = vld [vmem:[%s666_s1 + $0x30] sm:$0xff]  ;;  %v501_v8 = vld [vmem:[%s666_s1 + $0x28] sm:$0xff] }
   0x2   :  { %v511_v1 = vld [vmem:[%s666_s1 + $0x78] sm:$0xff]  ;;  %295 = vmatpush.bf16.msra.mxu0 %v503_v0  ;;  %v510_v5 = vld [vmem:[%s666_s1 + $0x70] sm:$0xff]  ;;  %v509_v9 = vld [vmem:[%s666_s1 + $0x68] sm:$0xff] }
   0x3   :  { %v519_v2 = vld [vmem:[%s666_s1 + $0xb8] sm:$0xff]  ;;  %308 = vmatpush.bf16.msra.mxu1 %v511_v1  ;;  %v518_v6 = vld [vmem:[%s666_s1 + $0xb0] sm:$0xff]  ;;  %v517_v10 = vld [vmem:[%s666_s1 + $0xa8] sm:$0xff] }
   0x4   :  { %v527_v3 = vld [vmem:[%s666_s1 + $0xf8] sm:$0xff]  ;;  %321 = vmatpush.bf16.msra.mxu2 %v519_v2  ;;  %v526_v7 = vld [vmem:[%s666_s1 + $0xf0] sm:$0xff]  ;;  %v525_v11 = vld [vmem:[%s666_s1 + $0xe8] sm:$0xff] }
   0x5   :  { %334 = vmatpush.bf16.msra.mxu3 %v527_v3  ;;  %v500_v12 = vld [vmem:[%s666_s1 + $0x20] sm:$0xff]  ;;  %v499_v16 = vld [vmem:[%s666_s1 + $0x18] sm:$0xff]  ;;  %v498_v20 = vld [vmem:[%s666_s1 + $0x10] sm:$0xff] }
   0x6   :  { %296 = vmatpush.bf16.msra.mxu0 %v502_v4  ;;  %v508_v13 = vld [vmem:[%s666_s1 + $0x60] sm:$0xff]  ;;  %v507_v17 = vld [vmem:[%s666_s1 + $0x58] sm:$0xff]  ;;  %v506_v21 = vld [vmem:[%s666_s1 + $0x50] sm:$0xff] }
   0x7   :  { %309 = vmatpush.bf16.msra.mxu1 %v510_v5  ;;  %v516_v14 = vld [vmem:[%s666_s1 + $0xa0] sm:$0xff]  ;;  %v515_v18 = vld [vmem:[%s666_s1 + $0x98] sm:$0xff]  ;;  %v514_v22 = vld [vmem:[%s666_s1 + $0x90] sm:$0xff] }
   0x8   :  { %322 = vmatpush.bf16.msra.mxu2 %v518_v6  ;;  %v524_v15 = vld [vmem:[%s666_s1 + $0xe0] sm:$0xff]  ;;  %v523_v19 = vld [vmem:[%s666_s1 + $0xd8] sm:$0xff]  ;;  %v522_v23 = vld [vmem:[%s666_s1 + $0xd0] sm:$0xff] }
   0x9   :  { %335 = vmatpush.bf16.msra.mxu3 %v526_v7  ;;  %v497_v24 = vld [vmem:[%s666_s1 + $0x8] sm:$0xff]  ;;  %v23_v26 = vld [vmem:[%s667_s0] sm:$0xff] }
   0xa   :  { %297 = vmatpush.bf16.msra.mxu0 %v501_v8  ;;  %v505_v25 = vld [vmem:[%s666_s1 + $0x48] sm:$0xff]  ;;  %v91_v30 = vunpack.c.l.b16 %v23_v26  ;;  %v92_v31 = vunpack.c.h.b16 %v23_v26  ;;  %v496_v32 = vld [vmem:[%s666_s1] sm:$0xff] }
   0xb   :  { %310 = vmatpush.bf16.msra.mxu1 %v509_v9  ;;  %v513_v27 = vld [vmem:[%s666_s1 + $0x88] sm:$0xff]  ;;  %v504_v33 = vld [vmem:[%s666_s1 + $0x40] sm:$0xff] }
   0xc   :  { %323 = vmatpush.bf16.msra.mxu2 %v517_v10  ;;  %v521_v28 = vld [vmem:[%s666_s1 + $0xc8] sm:$0xff]  ;;  %v512_v36 = vld [vmem:[%s666_s1 + $0x80] sm:$0xff]  ;;  %v95_v38 = vpack.c.b16 %v91_v30, %v91_v30  ;;  %v96_v39 = vpack.c.b16 %v92_v31, %v92_v31 }
   0xd   :  { %336 = vmatpush.bf16.msra.mxu3 %v525_v11  ;;  %v24_v29 = vld [vmem:[%s667_s0 + $0x8] sm:$0xff]  ;;  %v520_v37 = vld [vmem:[%s666_s1 + $0xc0] sm:$0xff] }
   0xe   :  { %298 = vmatpush.bf16.msra.mxu0 %v500_v12  ;;  %v93_v34 = vunpack.c.l.b16 %v24_v29  ;;  %v94_v35 = vunpack.c.h.b16 %v24_v29  ;;  %v528_v48 = vld [vmem:[%s668_s2] ss:$0 sm:$0xff] }
   0xf   :  { %311 = vmatpush.bf16.msra.mxu1 %v508_v13  ;;  %v529_v52 = vld [vmem:[%s669_s3] ss:$0 sm:$0xff] }
  0x10   :  { %324 = vmatpush.bf16.msra.mxu2 %v516_v14  ;;  %v97_v40 = vpack.c.b16 %v93_v34, %v93_v34  ;;  %v98_v41 = vpack.c.b16 %v94_v35, %v94_v35 }
  0x11   :  { %337 = vmatpush.bf16.msra.mxu3 %v524_v15 }
  0x12   :  { %299 = vmatpush.bf16.msra.mxu0 %v499_v16 }
  0x13   :  { %312 = vmatpush.bf16.msra.mxu1 %v507_v17 }
  0x14   :  { %325 = vmatpush.bf16.msra.mxu2 %v515_v18 }
  0x15   :  { %338 = vmatpush.bf16.msra.mxu3 %v523_v19 }
  0x16   :  { %300 = vmatpush.bf16.msra.mxu0 %v498_v20 }
  0x17   :  { %313 = vmatpush.bf16.msra.mxu1 %v506_v21 }
  0x18   :  { %326 = vmatpush.bf16.msra.mxu2 %v514_v22 }
  0x19   :  { %339 = vmatpush.bf16.msra.mxu3 %v522_v23 }
  0x1a   :  { %301 = vmatpush.bf16.msra.mxu0 %v497_v24 }
  0x1b   :  { %314 = vmatpush.bf16.msra.mxu1 %v505_v25 }
  0x1c   :  { %327 = vmatpush.bf16.msra.mxu2 %v513_v27 }
  0x1d   :  { %340 = vmatpush.bf16.msra.mxu3 %v521_v28 }
  0x1e   :  { %302 = vmatpush.bf16.msra.mxu0 %v496_v32 }
  0x1f   :  { %315 = vmatpush.bf16.msra.mxu1 %v504_v33 }
  0x20   :  { %328 = vmatpush.bf16.msra.mxu2 %v512_v36 }
  0x21   :  { %341 = vmatpush.bf16.msra.mxu3 %v520_v37  ;;  %303 = vmatmul.bf16.vlgmr.msra.gmra.mxu0 %v95_v38 }
  0x22   :  { %316 = vmatmul.bf16.vlgmr.msra.gmra.mxu1 %v96_v39 }
  0x23   :  { %329 = vmatmul.bf16.vlgmr.msra.gmra.mxu2 %v97_v40 }
  0x24   :  { %342 = vmatmul.bf16.vlgmr.msra.gmra.mxu3 %v98_v41 }
  0x9e   :  { %v304_v42 = vpop.f32.mrf.mxu0 }
  0x9f   :  { %v317_v43 = vpop.f32.mrf.mxu1 }
  0xa0   :  { %v318_v44 = vadd.f32 %v317_v43, %v304_v42 }
  0xa6   :  { %v330_v45 = vpop.f32.mrf.mxu2  ;;  %v306_v49 = vpop.f32.mrf.mxu0 }
  0xa7   :  { %v343_v46 = vpop.f32.mrf.mxu3  ;;  %v331_v47 = vadd.f32 %v330_v45, %v318_v44  ;;  %v319_v50 = vpop.f32.mrf.mxu1 }
  0xa9   :  { %v344_v51 = vadd.f32 %v343_v46, %v331_v47 }
  0xab   :  { %v357_v53 = vmul.f32 %v528_v48, %v344_v51 }
  0xad   :  { %v362_v54 = vadd.f32 %v529_v52, %v357_v53 }
  0xae   :  { %v332_v55 = vpop.f32.mrf.mxu2 }
  0xaf   :  { %v345_v56 = vpop.f32.mrf.mxu3  ;;  %363 = vst [vmem:[%s670_s4] sm:$0xff] %v362_v54 }

// kernel: model_forward.6
= control target key start
LH: loop header
LB: loop body
LE: loop exit
PB: predicated region body
PF: predicated region fallthrough
CT: control target
= control target key end

     0   :  { %s9898_s1 = inlined_call_operand.vmem [shape: bf16[2048,512], index: 1, kind: input, shape index: {}]   ;;  %s9899_s0 = inlined_call_operand.vmem [shape: bf16[8,2048], index: 0, kind: input, shape index: {}]   ;;  %s9900_s2 = inlined_call_operand.vmem [shape: f32[1,512], index: 2, kind: input, shape index: {}]   ;;  %s9901_s3 = inlined_call_operand.vmem [shape: f32[1,512], index: 3, kind: input, shape index: {}]   ;;  %s9902_s4 = inlined_call_operand.vmem [shape: bf16[8,512], index: 4, kind: output, shape index: {}]  }
   0x1   :  { %v4166_v0 = vld [vmem:[%s9898_s1 + $0xe0] sm:$0xf]  ;;  %v6130_v1 = vld [vmem:[%s9898_s1 + $0xec] sm:$0xf0] }
   0x2   :  { %v4294_v2 = vld [vmem:[%s9898_s1 + $0x1e0] sm:$0xf]  ;;  %v4167_v3 = vor.u32 %v6130_v1, %v4166_v0  ;;  %v6162_v4 = vld [vmem:[%s9898_s1 + $0x1ec] sm:$0xf0] }
   0x3   :  { %v4422_v5 = vld [vmem:[%s9898_s1 + $0x2e0] sm:$0xf]  ;;  %v6194_v6 = vld [vmem:[%s9898_s1 + $0x2ec] sm:$0xf0]  ;;  %v4295_v7 = vor.u32 %v6162_v4, %v4294_v2 }
   0x4   :  { %v4423_v8 = vor.u32 %v6194_v6, %v4422_v5  ;;  %v4550_v9 = vld [vmem:[%s9898_s1 + $0x3e0] sm:$0xf]  ;;  %v6226_v10 = vld [vmem:[%s9898_s1 + $0x3ec] sm:$0xf0]  ;;  %3165 = vmatpush.bf16.msra.mxu0 %v4167_v3 }
   0x5   :  { %v4150_v11 = vld [vmem:[%s9898_s1 + $0xc0] sm:$0xf]  ;;  %v4551_v12 = vor.u32 %v6226_v10, %v4550_v9  ;;  %v6126_v13 = vld [vmem:[%s9898_s1 + $0xcc] sm:$0xf0]  ;;  %3178 = vmatpush.bf16.msra.mxu1 %v4295_v7 }
   0x6   :  { %v4278_v14 = vld [vmem:[%s9898_s1 + $0x1c0] sm:$0xf]  ;;  %v6158_v15 = vld [vmem:[%s9898_s1 + $0x1cc] sm:$0xf0]  ;;  %3191 = vmatpush.bf16.msra.mxu2 %v4423_v8  ;;  %v4151_v16 = vor.u32 %v6126_v13, %v4150_v11 }
   0x7   :  { %v4279_v17 = vor.u32 %v6158_v15, %v4278_v14  ;;  %v4406_v18 = vld [vmem:[%s9898_s1 + $0x2c0] sm:$0xf]  ;;  %v6190_v19 = vld [vmem:[%s9898_s1 + $0x2cc] sm:$0xf0]  ;;  %3204 = vmatpush.bf16.msra.mxu3 %v4551_v12 }
   0x8   :  { %v4534_v20 = vld [vmem:[%s9898_s1 + $0x3c0] sm:$0xf]  ;;  %v4407_v21 = vor.u32 %v6190_v19, %v4406_v18  ;;  %v6222_v22 = vld [vmem:[%s9898_s1 + $0x3cc] sm:$0xf0]  ;;  %3166 = vmatpush.bf16.msra.mxu0 %v4151_v16 }
   0x9   :  { %v4134_v23 = vld [vmem:[%s9898_s1 + $0xa0] sm:$0xf]  ;;  %v6122_v24 = vld [vmem:[%s9898_s1 + $0xac] sm:$0xf0]  ;;  %v4535_v25 = vor.u32 %v6222_v22, %v4534_v20  ;;  %3179 = vmatpush.bf16.msra.mxu1 %v4279_v17 }
   0xa   :  { %v4262_v26 = vld [vmem:[%s9898_s1 + $0x1a0] sm:$0xf]  ;;  %v6154_v27 = vld [vmem:[%s9898_s1 + $0x1ac] sm:$0xf0]  ;;  %v4135_v29 = vor.u32 %v6122_v24, %v4134_v23  ;;  %3192 = vmatpush.bf16.msra.mxu2 %v4407_v21 }
   0xb   :  { %v4390_v28 = vld [vmem:[%s9898_s1 + $0x2a0] sm:$0xf]  ;;  %v6186_v30 = vld [vmem:[%s9898_s1 + $0x2ac] sm:$0xf0]  ;;  %v4263_v33 = vor.u32 %v6154_v27, %v4262_v26  ;;  %3205 = vmatpush.bf16.msra.mxu3 %v4535_v25 }
   0xc   :  { %v4518_v31 = vld [vmem:[%s9898_s1 + $0x3a0] sm:$0xf]  ;;  %v6218_v32 = vld [vmem:[%s9898_s1 + $0x3ac] sm:$0xf0]  ;;  %v4391_v34 = vor.u32 %v6186_v30, %v4390_v28  ;;  %3167 = vmatpush.bf16.msra.mxu0 %v4135_v29 }
   0xd   :  { %v4118_v35 = vld [vmem:[%s9898_s1 + $0x80] sm:$0xf]  ;;  %v6118_v36 = vld [vmem:[%s9898_s1 + $0x8c] sm:$0xf0]  ;;  %v4519_v38 = vor.u32 %v6218_v32, %v4518_v31  ;;  %3180 = vmatpush.bf16.msra.mxu1 %v4263_v33 }
   0xe   :  { %v4246_v37 = vld [vmem:[%s9898_s1 + $0x180] sm:$0xf]  ;;  %v6150_v39 = vld [vmem:[%s9898_s1 + $0x18c] sm:$0xf0]  ;;  %v4119_v44 = vor.u32 %v6118_v36, %v4118_v35  ;;  %3193 = vmatpush.bf16.msra.mxu2 %v4391_v34 }
   0xf   :  { %v4374_v40 = vld [vmem:[%s9898_s1 + $0x280] sm:$0xf]  ;;  %v6182_v41 = vld [vmem:[%s9898_s1 + $0x28c] sm:$0xf0]  ;;  %v4247_v45 = vor.u32 %v6150_v39, %v4246_v37  ;;  %3206 = vmatpush.bf16.msra.mxu3 %v4519_v38 }
  0x10   :  { %v4502_v42 = vld [vmem:[%s9898_s1 + $0x380] sm:$0xf]  ;;  %v6214_v43 = vld [vmem:[%s9898_s1 + $0x38c] sm:$0xf0]  ;;  %v4375_v46 = vor.u32 %v6182_v41, %v4374_v40  ;;  %3168 = vmatpush.bf16.msra.mxu0 %v4119_v44 }
  0x11   :  { %v4102_v47 = vld [vmem:[%s9898_s1 + $0x60] sm:$0xf]  ;;  %v6114_v48 = vld [vmem:[%s9898_s1 + $0x6c] sm:$0xf0]  ;;  %v4503_v50 = vor.u32 %v6214_v43, %v4502_v42  ;;  %3181 = vmatpush.bf16.msra.mxu1 %v4247_v45 }
  0x12   :  { %v4230_v49 = vld [vmem:[%s9898_s1 + $0x160] sm:$0xf]  ;;  %v6146_v51 = vld [vmem:[%s9898_s1 + $0x16c] sm:$0xf0]  ;;  %v4103_v56 = vor.u32 %v6114_v48, %v4102_v47  ;;  %3194 = vmatpush.bf16.msra.mxu2 %v4375_v46 }
  0x13   :  { %v4358_v52 = vld [vmem:[%s9898_s1 + $0x260] sm:$0xf]  ;;  %v6178_v53 = vld [vmem:[%s9898_s1 + $0x26c] sm:$0xf0]  ;;  %v4231_v57 = vor.u32 %v6146_v51, %v4230_v49  ;;  %3207 = vmatpush.bf16.msra.mxu3 %v4503_v50 }
  0x14   :  { %v4486_v54 = vld [vmem:[%s9898_s1 + $0x360] sm:$0xf]  ;;  %v6210_v55 = vld [vmem:[%s9898_s1 + $0x36c] sm:$0xf0]  ;;  %v4359_v58 = vor.u32 %v6178_v53, %v4358_v52  ;;  %3169 = vmatpush.bf16.msra.mxu0 %v4103_v56 }
  0x15   :  { %v4086_v59 = vld [vmem:[%s9898_s1 + $0x40] sm:$0xf]  ;;  %v6110_v60 = vld [vmem:[%s9898_s1 + $0x4c] sm:$0xf0]  ;;  %v4487_v62 = vor.u32 %v6210_v55, %v4486_v54  ;;  %3182 = vmatpush.bf16.msra.mxu1 %v4231_v57 }
  0x16   :  { %v4214_v61 = vld [vmem:[%s9898_s1 + $0x140] sm:$0xf]  ;;  %v6142_v63 = vld [vmem:[%s9898_s1 + $0x14c] sm:$0xf0]  ;;  %v4087_v4 = vor.u32 %v6110_v60, %v4086_v59  ;;  %3195 = vmatpush.bf16.msra.mxu2 %v4359_v58  ;;  %v30_v58 = vld [vmem:[%s9899_s0 + $0x8] sm:$0xff] }
  0x17   :  { %v4342_v0 = vld [vmem:[%s9898_s1 + $0x240] sm:$0xf]  ;;  %v6174_v1 = vld [vmem:[%s9898_s1 + $0x24c] sm:$0xf0]  ;;  %v4215_v5 = vor.u32 %v6142_v63, %v4214_v61  ;;  %3208 = vmatpush.bf16.msra.mxu3 %v4487_v62  ;;  %v559_v63 = vunpack.c.l.b16 %v30_v58 }
  0x18   :  { %v4470_v2 = vld [vmem:[%s9898_s1 + $0x340] sm:$0xf]  ;;  %v6206_v3 = vld [vmem:[%s9898_s1 + $0x34c] sm:$0xf0]  ;;  %v4343_v6 = vor.u32 %v6174_v1, %v4342_v0  ;;  %3170 = vmatpush.bf16.msra.mxu0 %v4087_v4  ;;  %v560_v0 = vunpack.c.h.b16 %v30_v58 }
  0x19   :  { %v4070_v7 = vld [vmem:[%s9898_s1 + $0x20] sm:$0xf]  ;;  %v6106_v8 = vld [vmem:[%s9898_s1 + $0x2c] sm:$0xf0]  ;;  %v4471_v10 = vor.u32 %v6206_v3, %v4470_v2  ;;  %3183 = vmatpush.bf16.msra.mxu1 %v4215_v5  ;;  %v6906_v4 = vpack.c.b16 %v559_v63, %v559_v63 }
  0x1a   :  { %v4198_v9 = vld [vmem:[%s9898_s1 + $0x120] sm:$0xf]  ;;  %v6138_v11 = vld [vmem:[%s9898_s1 + $0x12c] sm:$0xf0]  ;;  %v4071_v16 = vor.u32 %v6106_v8, %v4070_v7  ;;  %3196 = vmatpush.bf16.msra.mxu2 %v4343_v6  ;;  %v6911_v6 = vpack.c.b16 %v560_v0, %v560_v0 }
  0x1b   :  { %v4326_v12 = vld [vmem:[%s9898_s1 + $0x220] sm:$0xf]  ;;  %v6170_v13 = vld [vmem:[%s9898_s1 + $0x22c] sm:$0xf0]  ;;  %v4199_v19 = vor.u32 %v6138_v11, %v4198_v9  ;;  %3209 = vmatpush.bf16.msra.mxu3 %v4471_v10 }
  0x1c   :  { %v4454_v14 = vld [vmem:[%s9898_s1 + $0x320] sm:$0xf]  ;;  %v6202_v15 = vld [vmem:[%s9898_s1 + $0x32c] sm:$0xf0]  ;;  %v4327_v20 = vor.u32 %v6170_v13, %v4326_v12  ;;  %3171 = vmatpush.bf16.msra.mxu0 %v4071_v16 }
  0x1d   :  { %v4054_v17 = vld [vmem:[%s9898_s1] sm:$0xf]  ;;  %v6102_v18 = vld [vmem:[%s9898_s1 + $0xc] sm:$0xf0]  ;;  %v4455_v24 = vor.u32 %v6202_v15, %v4454_v14  ;;  %3184 = vmatpush.bf16.msra.mxu1 %v4199_v19 }
  0x1e   :  { %v4182_v21 = vld [vmem:[%s9898_s1 + $0x100] sm:$0xf]  ;;  %v6134_v22 = vld [vmem:[%s9898_s1 + $0x10c] sm:$0xf0]  ;;  %v4055_v31 = vor.u32 %v6102_v18, %v4054_v17  ;;  %3197 = vmatpush.bf16.msra.mxu2 %v4327_v20 }
  0x1f   :  { %v4310_v23 = vld [vmem:[%s9898_s1 + $0x200] sm:$0xf]  ;;  %v6166_v25 = vld [vmem:[%s9898_s1 + $0x20c] sm:$0xf0]  ;;  %v4183_v35 = vor.u32 %v6134_v22, %v4182_v21  ;;  %3210 = vmatpush.bf16.msra.mxu3 %v4455_v24 }
  0x20   :  { %v4438_v26 = vld [vmem:[%s9898_s1 + $0x300] sm:$0xf]  ;;  %v6198_v27 = vld [vmem:[%s9898_s1 + $0x30c] sm:$0xf0]  ;;  %v4311_v36 = vor.u32 %v6166_v25, %v4310_v23  ;;  %3172 = vmatpush.bf16.msra.mxu0 %v4055_v31 }
  0x21   :  { %v4678_v28 = vld [vmem:[%s9898_s1 + $0x4e0] sm:$0xf]  ;;  %v6258_v29 = vld [vmem:[%s9898_s1 + $0x4ec] sm:$0xf0]  ;;  %v4439_v39 = vor.u32 %v6198_v27, %v4438_v26  ;;  %3185 = vmatpush.bf16.msra.mxu1 %v4183_v35 }
  0x22   :  { %v4806_v30 = vld [vmem:[%s9898_s1 + $0x5e0] sm:$0xf]  ;;  %v6290_v32 = vld [vmem:[%s9898_s1 + $0x5ec] sm:$0xf0]  ;;  %v4679_v40 = vor.u32 %v6258_v29, %v4678_v28  ;;  %3198 = vmatpush.bf16.msra.mxu2 %v4311_v36 }
  0x23   :  { %v4934_v33 = vld [vmem:[%s9898_s1 + $0x6e0] sm:$0xf]  ;;  %v6322_v34 = vld [vmem:[%s9898_s1 + $0x6ec] sm:$0xf0]  ;;  %v4807_v41 = vor.u32 %v6290_v32, %v4806_v30  ;;  %3211 = vmatpush.bf16.msra.mxu3 %v4439_v39 }
  0x24   :  { %v5062_v37 = vld [vmem:[%s9898_s1 + $0x7e0] sm:$0xf]  ;;  %v6354_v38 = vld [vmem:[%s9898_s1 + $0x7ec] sm:$0xf0]  ;;  %v4935_v42 = vor.u32 %v6322_v34, %v4934_v33  ;;  %3217 = vmatpush.bf16.msrb.mxu0 %v4679_v40 }
  0x25   :  { %v4662_v43 = vld [vmem:[%s9898_s1 + $0x4c0] sm:$0xf]  ;;  %v6254_v44 = vld [vmem:[%s9898_s1 + $0x4cc] sm:$0xf0]  ;;  %v5063_v46 = vor.u32 %v6354_v38, %v5062_v37  ;;  %3230 = vmatpush.bf16.msrb.mxu1 %v4807_v41  ;;  %3199 = vmatmul.bf16.vlgmr.msra.gmra.mxu2 %v6906_v4 }
  0x26   :  { %v4790_v45 = vld [vmem:[%s9898_s1 + $0x5c0] sm:$0xf]  ;;  %v6286_v47 = vld [vmem:[%s9898_s1 + $0x5cc] sm:$0xf0]  ;;  %v4663_v52 = vor.u32 %v6254_v44, %v4662_v43  ;;  %3243 = vmatpush.bf16.msrb.mxu2 %v4935_v42  ;;  %3212 = vmatmul.bf16.vlgmr.msra.gmra.mxu3 %v6911_v6 }
  0x27   :  { %v4918_v48 = vld [vmem:[%s9898_s1 + $0x6c0] sm:$0xf]  ;;  %v6318_v49 = vld [vmem:[%s9898_s1 + $0x6cc] sm:$0xf0]  ;;  %v4791_v54 = vor.u32 %v6286_v47, %v4790_v45  ;;  %3256 = vmatpush.bf16.msrb.mxu3 %v5063_v46 }
  0x28   :  { %v5046_v50 = vld [vmem:[%s9898_s1 + $0x7c0] sm:$0xf]  ;;  %v6350_v51 = vld [vmem:[%s9898_s1 + $0x7cc] sm:$0xf0]  ;;  %v4919_v55 = vor.u32 %v6318_v49, %v4918_v48  ;;  %3218 = vmatpush.bf16.msrb.mxu0 %v4663_v52 }
  0x29   :  { %v4646_v53 = vld [vmem:[%s9898_s1 + $0x4a0] sm:$0xf]  ;;  %v6250_v56 = vld [vmem:[%s9898_s1 + $0x4ac] sm:$0xf0]  ;;  %v5047_v59 = vor.u32 %v6350_v51, %v5046_v50  ;;  %3231 = vmatpush.bf16.msrb.mxu1 %v4791_v54 }
  0x2a   :  { %v4774_v57 = vld [vmem:[%s9898_s1 + $0x5a0] sm:$0xf]  ;;  %v6282_v60 = vld [vmem:[%s9898_s1 + $0x5ac] sm:$0xf0]  ;;  %v4647_v3 = vor.u32 %v6250_v56, %v4646_v53  ;;  %3244 = vmatpush.bf16.msrb.mxu2 %v4919_v55 }
  0x2b   :  { %v4902_v61 = vld [vmem:[%s9898_s1 + $0x6a0] sm:$0xf]  ;;  %v6314_v62 = vld [vmem:[%s9898_s1 + $0x6ac] sm:$0xf0]  ;;  %v4775_v7 = vor.u32 %v6282_v60, %v4774_v57  ;;  %3257 = vmatpush.bf16.msrb.mxu3 %v5047_v59 }
  0x2c   :  { %v5030_v1 = vld [vmem:[%s9898_s1 + $0x7a0] sm:$0xf]  ;;  %v6346_v2 = vld [vmem:[%s9898_s1 + $0x7ac] sm:$0xf0]  ;;  %v4903_v8 = vor.u32 %v6314_v62, %v4902_v61  ;;  %3219 = vmatpush.bf16.msrb.mxu0 %v4647_v3  ;;  %v32_v3 = vld [vmem:[%s9899_s0 + $0x18] sm:$0xff] }
  0x2d   :  { %v29_v5 = vld [vmem:[%s9899_s0] sm:$0xff]  ;;  %v6246_v10 = vld [vmem:[%s9898_s1 + $0x48c] sm:$0xf0]  ;;  %v5031_v14 = vor.u32 %v6346_v2, %v5030_v1  ;;  %3232 = vmatpush.bf16.msrb.mxu1 %v4775_v7 }
  0x2e   :  { %v4630_v9 = vld [vmem:[%s9898_s1 + $0x480] sm:$0xf]  ;;  %v557_v12 = vunpack.c.l.b16 %v29_v5  ;;  %v558_v13 = vunpack.c.h.b16 %v29_v5  ;;  %v6278_v15 = vld [vmem:[%s9898_s1 + $0x58c] sm:$0xf0]  ;;  %3245 = vmatpush.bf16.msrb.mxu2 %v4903_v8 }
  0x2f   :  { %v4758_v11 = vld [vmem:[%s9898_s1 + $0x580] sm:$0xf]  ;;  %v6310_v17 = vld [vmem:[%s9898_s1 + $0x68c] sm:$0xf0]  ;;  %v4631_v22 = vor.u32 %v6246_v10, %v4630_v9  ;;  %3258 = vmatpush.bf16.msrb.mxu3 %v5031_v14 }
  0x30   :  { %v4886_v16 = vld [vmem:[%s9898_s1 + $0x680] sm:$0xf]  ;;  %v6342_v19 = vld [vmem:[%s9898_s1 + $0x78c] sm:$0xf0]  ;;  %v6938_v20 = vpack.c.b16 %v557_v12, %v557_v12  ;;  %v6941_v21 = vpack.c.b16 %v558_v13, %v558_v13  ;;  %v4759_v23 = vor.u32 %v6278_v15, %v4758_v11 }
  0x31   :  { %v5014_v18 = vld [vmem:[%s9898_s1 + $0x780] sm:$0xf]  ;;  %v4887_v24 = vor.u32 %v6310_v17, %v4886_v16  ;;  %v6242_v26 = vld [vmem:[%s9898_s1 + $0x46c] sm:$0xf0]  ;;  %3220 = vmatpush.bf16.msrb.mxu0 %v4631_v22  ;;  %v563_v17 = vunpack.c.l.b16 %v32_v3 }
  0x32   :  { %v4614_v25 = vld [vmem:[%s9898_s1 + $0x460] sm:$0xf]  ;;  %v5015_v28 = vor.u32 %v6342_v19, %v5014_v18  ;;  %v6274_v29 = vld [vmem:[%s9898_s1 + $0x56c] sm:$0xf0]  ;;  %3173 = vmatmul.bf16.vlgmr.msra.gmra.mxu0 %v6938_v20  ;;  %3186 = vmatmul.bf16.vlgmr.msra.gmra.mxu1 %v6941_v21 }
  0x33   :  { %v4742_v27 = vld [vmem:[%s9898_s1 + $0x560] sm:$0xf]  ;;  %v6306_v31 = vld [vmem:[%s9898_s1 + $0x66c] sm:$0xf0]  ;;  %v4615_v34 = vor.u32 %v6242_v26, %v4614_v25  ;;  %3233 = vmatpush.bf16.msrb.mxu1 %v4759_v23  ;;  %3246 = vmatpush.bf16.msrb.mxu2 %v4887_v24  ;;  %v564_v25 = vunpack.c.h.b16 %v32_v3 }
  0x34   :  { %v4870_v30 = vld [vmem:[%s9898_s1 + $0x660] sm:$0xf]  ;;  %v6338_v33 = vld [vmem:[%s9898_s1 + $0x76c] sm:$0xf0]  ;;  %v4743_v35 = vor.u32 %v6274_v29, %v4742_v27  ;;  %3259 = vmatpush.bf16.msrb.mxu3 %v5015_v28 }
  0x35   :  { %v4998_v32 = vld [vmem:[%s9898_s1 + $0x760] sm:$0xf]  ;;  %v4871_v36 = vor.u32 %v6306_v31, %v4870_v30  ;;  %v6238_v38 = vld [vmem:[%s9898_s1 + $0x44c] sm:$0xf0]  ;;  %3221 = vmatpush.bf16.msrb.mxu0 %v4615_v34 }
  0x36   :  { %v4598_v37 = vld [vmem:[%s9898_s1 + $0x440] sm:$0xf]  ;;  %v4999_v40 = vor.u32 %v6338_v33, %v4998_v32  ;;  %v6270_v41 = vld [vmem:[%s9898_s1 + $0x54c] sm:$0xf0] }
  0x37   :  { %v4726_v39 = vld [vmem:[%s9898_s1 + $0x540] sm:$0xf]  ;;  %v6302_v43 = vld [vmem:[%s9898_s1 + $0x64c] sm:$0xf0]  ;;  %v4599_v46 = vor.u32 %v6238_v38, %v4598_v37  ;;  %3234 = vmatpush.bf16.msrb.mxu1 %v4743_v35  ;;  %3247 = vmatpush.bf16.msrb.mxu2 %v4871_v36  ;;  %v7089_v38 = vpack.c.b16 %v563_v17, %v563_v17 }
  0x38   :  { %v4854_v42 = vld [vmem:[%s9898_s1 + $0x640] sm:$0xf]  ;;  %v6334_v45 = vld [vmem:[%s9898_s1 + $0x74c] sm:$0xf0]  ;;  %v4727_v47 = vor.u32 %v6270_v41, %v4726_v39  ;;  %3260 = vmatpush.bf16.msrb.mxu3 %v4999_v40 }
  0x39   :  { %v4982_v44 = vld [vmem:[%s9898_s1 + $0x740] sm:$0xf]  ;;  %v4855_v48 = vor.u32 %v6302_v43, %v4854_v42  ;;  %v6234_v50 = vld [vmem:[%s9898_s1 + $0x42c] sm:$0xf0]  ;;  %3222 = vmatpush.bf16.msrb.mxu0 %v4599_v46  ;;  %v7099_v42 = vpack.c.b16 %v564_v25, %v564_v25 }
  0x3a   :  { %v4582_v49 = vld [vmem:[%s9898_s1 + $0x420] sm:$0xf]  ;;  %v4983_v52 = vor.u32 %v6334_v45, %v4982_v44  ;;  %v6266_v53 = vld [vmem:[%s9898_s1 + $0x52c] sm:$0xf0] }
  0x3b   :  { %v4710_v51 = vld [vmem:[%s9898_s1 + $0x520] sm:$0xf]  ;;  %v6298_v55 = vld [vmem:[%s9898_s1 + $0x62c] sm:$0xf0]  ;;  %v4583_v59 = vor.u32 %v6234_v50, %v4582_v49  ;;  %3235 = vmatpush.bf16.msrb.mxu1 %v4727_v47  ;;  %3248 = vmatpush.bf16.msrb.mxu2 %v4855_v48 }
  0x3c   :  { %v4838_v54 = vld [vmem:[%s9898_s1 + $0x620] sm:$0xf]  ;;  %v6330_v57 = vld [vmem:[%s9898_s1 + $0x72c] sm:$0xf0]  ;;  %v4711_v63 = vor.u32 %v6266_v53, %v4710_v51  ;;  %3261 = vmatpush.bf16.msrb.mxu3 %v4983_v52 }
  0x3d   :  { %v4966_v56 = vld [vmem:[%s9898_s1 + $0x720] sm:$0xf]  ;;  %v6230_v60 = vld [vmem:[%s9898_s1 + $0x40c] sm:$0xf0]  ;;  %v4839_v0 = vor.u32 %v6298_v55, %v4838_v54  ;;  %3223 = vmatpush.bf16.msrb.mxu0 %v4583_v59 }
  0x3e   :  { %v4566_v58 = vld [vmem:[%s9898_s1 + $0x400] sm:$0xf]  ;;  %v6262_v62 = vld [vmem:[%s9898_s1 + $0x50c] sm:$0xf0]  ;;  %v4967_v5 = vor.u32 %v6330_v57, %v4966_v56 }
  0x3f   :  { %v4694_v61 = vld [vmem:[%s9898_s1 + $0x500] sm:$0xf]  ;;  %v6294_v2 = vld [vmem:[%s9898_s1 + $0x60c] sm:$0xf0]  ;;  %v4567_v13 = vor.u32 %v6230_v60, %v4566_v58  ;;  %3236 = vmatpush.bf16.msrb.mxu1 %v4711_v63  ;;  %3249 = vmatpush.bf16.msrb.mxu2 %v4839_v0 }
  0x40   :  { %v4822_v1 = vld [vmem:[%s9898_s1 + $0x600] sm:$0xf]  ;;  %v6326_v8 = vld [vmem:[%s9898_s1 + $0x70c] sm:$0xf0]  ;;  %v4695_v18 = vor.u32 %v6262_v62, %v4694_v61  ;;  %3262 = vmatpush.bf16.msrb.mxu3 %v4967_v5 }
  0x41   :  { %v4950_v7 = vld [vmem:[%s9898_s1 + $0x700] sm:$0xf]  ;;  %v31_v9 = vld [vmem:[%s9899_s0 + $0x10] sm:$0xff]  ;;  %v4823_v19 = vor.u32 %v6294_v2, %v4822_v1  ;;  %3224 = vmatpush.bf16.msrb.mxu0 %v4567_v13 }
  0x42   :  { %v5190_v10 = vld [vmem:[%s9898_s1 + $0x8e0] sm:$0xf]  ;;  %v6386_v11 = vld [vmem:[%s9898_s1 + $0x8ec] sm:$0xf0]  ;;  %v561_v24 = vunpack.c.l.b16 %v31_v9  ;;  %v4951_v26 = vor.u32 %v6326_v8, %v4950_v7  ;;  %v562_v28 = vunpack.c.h.b16 %v31_v9 }
  0x43   :  { %v5318_v12 = vld [vmem:[%s9898_s1 + $0x9e0] sm:$0xf]  ;;  %v6418_v14 = vld [vmem:[%s9898_s1 + $0x9ec] sm:$0xf0]  ;;  %v5191_v27 = vor.u32 %v6386_v11, %v5190_v10  ;;  %3237 = vmatpush.bf16.msrb.mxu1 %v4695_v18  ;;  %3250 = vmatpush.bf16.msrb.mxu2 %v4823_v19 }
  0x44   :  { %v5446_v15 = vld [vmem:[%s9898_s1 + $0xae0] sm:$0xf]  ;;  %v6450_v16 = vld [vmem:[%s9898_s1 + $0xaec] sm:$0xf0]  ;;  %v5319_v29 = vor.u32 %v6418_v14, %v5318_v12  ;;  %v7097_v41 = vpack.c.b16 %v561_v24, %v561_v24  ;;  %3263 = vmatpush.bf16.msrb.mxu3 %v4951_v26  ;;  %v7101_v44 = vpack.c.b16 %v562_v28, %v562_v28 }
  0x45   :  { %v5574_v22 = vld [vmem:[%s9898_s1 + $0xbe0] sm:$0xf]  ;;  %v6482_v23 = vld [vmem:[%s9898_s1 + $0xbec] sm:$0xf0]  ;;  %v5447_v30 = vor.u32 %v6450_v16, %v5446_v15  ;;  %3269 = vmatpush.bf16.msra.mxu0 %v5191_v27 }
  0x46   :  { %v5174_v31 = vld [vmem:[%s9898_s1 + $0x8c0] sm:$0xf]  ;;  %v6382_v32 = vld [vmem:[%s9898_s1 + $0x8cc] sm:$0xf0]  ;;  %v5575_v34 = vor.u32 %v6482_v23, %v5574_v22  ;;  %3251 = vmatmul.bf16.vlgmr.msrb.gmra.mxu2 %v7089_v38  ;;  %3225 = vmatmul.bf16.vlgmr.msrb.gmra.mxu0 %v7097_v41 }
  0x47   :  { %v5302_v33 = vld [vmem:[%s9898_s1 + $0x9c0] sm:$0xf]  ;;  %v6414_v35 = vld [vmem:[%s9898_s1 + $0x9cc] sm:$0xf0]  ;;  %v5175_v43 = vor.u32 %v6382_v32, %v5174_v31  ;;  %3282 = vmatpush.bf16.msra.mxu1 %v5319_v29  ;;  %3295 = vmatpush.bf16.msra.mxu2 %v5447_v30 }
  0x48   :  { %v5430_v36 = vld [vmem:[%s9898_s1 + $0xac0] sm:$0xf]  ;;  %v6446_v37 = vld [vmem:[%s9898_s1 + $0xacc] sm:$0xf0]  ;;  %v5303_v45 = vor.u32 %v6414_v35, %v5302_v33  ;;  %3308 = vmatpush.bf16.msra.mxu3 %v5575_v34  ;;  %3238 = vmatmul.bf16.vlgmr.msrb.gmra.mxu1 %v7101_v44 }
  0x49   :  { %v5558_v39 = vld [vmem:[%s9898_s1 + $0xbc0] sm:$0xf]  ;;  %v6478_v40 = vld [vmem:[%s9898_s1 + $0xbcc] sm:$0xf0]  ;;  %v5431_v46 = vor.u32 %v6446_v37, %v5430_v36  ;;  %3264 = vmatmul.bf16.vlgmr.msrb.gmra.mxu3 %v7099_v42  ;;  %3270 = vmatpush.bf16.msra.mxu0 %v5175_v43 }
  0x4a   :  { %v5158_v47 = vld [vmem:[%s9898_s1 + $0x8a0] sm:$0xf]  ;;  %v6378_v48 = vld [vmem:[%s9898_s1 + $0x8ac] sm:$0xf0]  ;;  %v5559_v50 = vor.u32 %v6478_v40, %v5558_v39 }
  0x4b   :  { %v5286_v49 = vld [vmem:[%s9898_s1 + $0x9a0] sm:$0xf]  ;;  %v6410_v51 = vld [vmem:[%s9898_s1 + $0x9ac] sm:$0xf0]  ;;  %v5159_v56 = vor.u32 %v6378_v48, %v5158_v47  ;;  %3283 = vmatpush.bf16.msra.mxu1 %v5303_v45  ;;  %3296 = vmatpush.bf16.msra.mxu2 %v5431_v46 }
  0x4c   :  { %v5414_v52 = vld [vmem:[%s9898_s1 + $0xaa0] sm:$0xf]  ;;  %v6442_v53 = vld [vmem:[%s9898_s1 + $0xaac] sm:$0xf0]  ;;  %v5287_v57 = vor.u32 %v6410_v51, %v5286_v49  ;;  %3309 = vmatpush.bf16.msra.mxu3 %v5559_v50 }
  0x4d   :  { %v5542_v54 = vld [vmem:[%s9898_s1 + $0xba0] sm:$0xf]  ;;  %v6474_v55 = vld [vmem:[%s9898_s1 + $0xbac] sm:$0xf0]  ;;  %v5415_v58 = vor.u32 %v6442_v53, %v5414_v52  ;;  %3271 = vmatpush.bf16.msra.mxu0 %v5159_v56 }
  0x4e   :  { %v5142_v59 = vld [vmem:[%s9898_s1 + $0x880] sm:$0xf]  ;;  %v6374_v60 = vld [vmem:[%s9898_s1 + $0x88c] sm:$0xf0]  ;;  %v5543_v62 = vor.u32 %v6474_v55, %v5542_v54 }
  0x4f   :  { %v5270_v61 = vld [vmem:[%s9898_s1 + $0x980] sm:$0xf]  ;;  %v6406_v63 = vld [vmem:[%s9898_s1 + $0x98c] sm:$0xf0]  ;;  %v5143_v5 = vor.u32 %v6374_v60, %v5142_v59  ;;  %3284 = vmatpush.bf16.msra.mxu1 %v5287_v57  ;;  %3297 = vmatpush.bf16.msra.mxu2 %v5415_v58 }
  0x50   :  { %v5398_v0 = vld [vmem:[%s9898_s1 + $0xa80] sm:$0xf]  ;;  %v6438_v1 = vld [vmem:[%s9898_s1 + $0xa8c] sm:$0xf0]  ;;  %v5271_v7 = vor.u32 %v6406_v63, %v5270_v61  ;;  %3310 = vmatpush.bf16.msra.mxu3 %v5543_v62  ;;  %v34_v61 = vld [vmem:[%s9899_s0 + $0x28] sm:$0xff] }
  0x51   :  { %v5526_v2 = vld [vmem:[%s9898_s1 + $0xb80] sm:$0xf]  ;;  %v6470_v3 = vld [vmem:[%s9898_s1 + $0xb8c] sm:$0xf0]  ;;  %v5399_v8 = vor.u32 %v6438_v1, %v5398_v0  ;;  %3272 = vmatpush.bf16.msra.mxu0 %v5143_v5 }
  0x52   :  { %v5126_v9 = vld [vmem:[%s9898_s1 + $0x860] sm:$0xf]  ;;  %v6370_v10 = vld [vmem:[%s9898_s1 + $0x86c] sm:$0xf0]  ;;  %v5527_v12 = vor.u32 %v6470_v3, %v5526_v2 }
  0x53   :  { %v5254_v11 = vld [vmem:[%s9898_s1 + $0x960] sm:$0xf]  ;;  %v6402_v13 = vld [vmem:[%s9898_s1 + $0x96c] sm:$0xf0]  ;;  %v5127_v18 = vor.u32 %v6370_v10, %v5126_v9  ;;  %3285 = vmatpush.bf16.msra.mxu1 %v5271_v7  ;;  %3298 = vmatpush.bf16.msra.mxu2 %v5399_v8 }
  0x54   :  { %v5382_v14 = vld [vmem:[%s9898_s1 + $0xa60] sm:$0xf]  ;;  %v6434_v15 = vld [vmem:[%s9898_s1 + $0xa6c] sm:$0xf0]  ;;  %v5255_v19 = vor.u32 %v6402_v13, %v5254_v11  ;;  %3311 = vmatpush.bf16.msra.mxu3 %v5527_v12  ;;  %v567_v12 = vunpack.c.l.b16 %v34_v61 }
  0x55   :  { %v5510_v16 = vld [vmem:[%s9898_s1 + $0xb60] sm:$0xf]  ;;  %v6466_v17 = vld [vmem:[%s9898_s1 + $0xb6c] sm:$0xf0]  ;;  %v5383_v22 = vor.u32 %v6434_v15, %v5382_v14  ;;  %3273 = vmatpush.bf16.msra.mxu0 %v5127_v18 }
  0x56   :  { %v5110_v23 = vld [vmem:[%s9898_s1 + $0x840] sm:$0xf]  ;;  %v6366_v24 = vld [vmem:[%s9898_s1 + $0x84c] sm:$0xf0]  ;;  %v5511_v26 = vor.u32 %v6466_v17, %v5510_v16  ;;  %v568_v16 = vunpack.c.h.b16 %v34_v61 }
  0x57   :  { %v5238_v25 = vld [vmem:[%s9898_s1 + $0x940] sm:$0xf]  ;;  %v6398_v27 = vld [vmem:[%s9898_s1 + $0x94c] sm:$0xf0]  ;;  %v5111_v32 = vor.u32 %v6366_v24, %v5110_v23  ;;  %3286 = vmatpush.bf16.msra.mxu1 %v5255_v19  ;;  %3299 = vmatpush.bf16.msra.mxu2 %v5383_v22 }
  0x58   :  { %v5366_v28 = vld [vmem:[%s9898_s1 + $0xa40] sm:$0xf]  ;;  %v6430_v29 = vld [vmem:[%s9898_s1 + $0xa4c] sm:$0xf0]  ;;  %v5239_v33 = vor.u32 %v6398_v27, %v5238_v25  ;;  %3312 = vmatpush.bf16.msra.mxu3 %v5511_v26 }
  0x59   :  { %v5494_v30 = vld [vmem:[%s9898_s1 + $0xb40] sm:$0xf]  ;;  %v6462_v31 = vld [vmem:[%s9898_s1 + $0xb4c] sm:$0xf0]  ;;  %v5367_v34 = vor.u32 %v6430_v29, %v5366_v28  ;;  %3274 = vmatpush.bf16.msra.mxu0 %v5111_v32  ;;  %v7301_v29 = vpack.c.b16 %v567_v12, %v567_v12 }
  0x5a   :  { %v5094_v35 = vld [vmem:[%s9898_s1 + $0x820] sm:$0xf]  ;;  %v6362_v36 = vld [vmem:[%s9898_s1 + $0x82c] sm:$0xf0]  ;;  %v5495_v39 = vor.u32 %v6462_v31, %v5494_v30 }
  0x5b   :  { %v5222_v37 = vld [vmem:[%s9898_s1 + $0x920] sm:$0xf]  ;;  %v6394_v40 = vld [vmem:[%s9898_s1 + $0x92c] sm:$0xf0]  ;;  %v5095_v49 = vor.u32 %v6362_v36, %v5094_v35  ;;  %3287 = vmatpush.bf16.msra.mxu1 %v5239_v33  ;;  %3300 = vmatpush.bf16.msra.mxu2 %v5367_v34  ;;  %v7311_v33 = vpack.c.b16 %v568_v16, %v568_v16 }
  0x5c   :  { %v5350_v43 = vld [vmem:[%s9898_s1 + $0xa20] sm:$0xf]  ;;  %v6426_v45 = vld [vmem:[%s9898_s1 + $0xa2c] sm:$0xf0]  ;;  %v5223_v53 = vor.u32 %v6394_v40, %v5222_v37  ;;  %3313 = vmatpush.bf16.msra.mxu3 %v5495_v39 }
  0x5d   :  { %v5478_v46 = vld [vmem:[%s9898_s1 + $0xb20] sm:$0xf]  ;;  %v6458_v47 = vld [vmem:[%s9898_s1 + $0xb2c] sm:$0xf0]  ;;  %v5351_v54 = vor.u32 %v6426_v45, %v5350_v43  ;;  %3275 = vmatpush.bf16.msra.mxu0 %v5095_v49 }
  0x5e   :  { %v5078_v48 = vld [vmem:[%s9898_s1 + $0x800] sm:$0xf]  ;;  %v6358_v50 = vld [vmem:[%s9898_s1 + $0x80c] sm:$0xf0]  ;;  %v5479_v58 = vor.u32 %v6458_v47, %v5478_v46 }
  0x5f   :  { %v5206_v51 = vld [vmem:[%s9898_s1 + $0x900] sm:$0xf]  ;;  %v6390_v52 = vld [vmem:[%s9898_s1 + $0x90c] sm:$0xf0]  ;;  %v5079_v1 = vor.u32 %v6358_v50, %v5078_v48  ;;  %3288 = vmatpush.bf16.msra.mxu1 %v5223_v53  ;;  %3301 = vmatpush.bf16.msra.mxu2 %v5351_v54 }
  0x60   :  { %v5334_v55 = vld [vmem:[%s9898_s1 + $0xa00] sm:$0xf]  ;;  %v6422_v56 = vld [vmem:[%s9898_s1 + $0xa0c] sm:$0xf0]  ;;  %v5207_v8 = vor.u32 %v6390_v52, %v5206_v51  ;;  %3314 = vmatpush.bf16.msra.mxu3 %v5479_v58 }
  0x61   :  { %v33_v57 = vld [vmem:[%s9899_s0 + $0x20] sm:$0xff]  ;;  %v6454_v60 = vld [vmem:[%s9898_s1 + $0xb0c] sm:$0xf0]  ;;  %v5335_v9 = vor.u32 %v6422_v56, %v5334_v55  ;;  %3276 = vmatpush.bf16.msra.mxu0 %v5079_v1 }
  0x62   :  { %v5462_v59 = vld [vmem:[%s9898_s1 + $0xb00] sm:$0xf]  ;;  %v6514_v63 = vld [vmem:[%s9898_s1 + $0xcec] sm:$0xf0]  ;;  %v565_v7 = vunpack.c.l.b16 %v33_v57  ;;  %v566_v13 = vunpack.c.h.b16 %v33_v57 }
  0x63   :  { %v5702_v62 = vld [vmem:[%s9898_s1 + $0xce0] sm:$0xf]  ;;  %v6546_v2 = vld [vmem:[%s9898_s1 + $0xdec] sm:$0xf0]  ;;  %v5463_v14 = vor.u32 %v6454_v60, %v5462_v59  ;;  %3289 = vmatpush.bf16.msra.mxu1 %v5207_v8  ;;  %3302 = vmatpush.bf16.msra.mxu2 %v5335_v9 }
  0x64   :  { %v5830_v0 = vld [vmem:[%s9898_s1 + $0xde0] sm:$0xf]  ;;  %v6578_v5 = vld [vmem:[%s9898_s1 + $0xeec] sm:$0xf0]  ;;  %v5703_v15 = vor.u32 %v6514_v63, %v5702_v62  ;;  %v7290_v25 = vpack.c.b16 %v565_v7, %v565_v7  ;;  %v7303_v30 = vpack.c.b16 %v566_v13, %v566_v13 }
  0x65   :  { %v5958_v3 = vld [vmem:[%s9898_s1 + $0xee0] sm:$0xf]  ;;  %v6610_v11 = vld [vmem:[%s9898_s1 + $0xfec] sm:$0xf0]  ;;  %v5831_v17 = vor.u32 %v6546_v2, %v5830_v0  ;;  %3315 = vmatpush.bf16.msra.mxu3 %v5463_v14 }
  0x66   :  { %v6086_v10 = vld [vmem:[%s9898_s1 + $0xfe0] sm:$0xf]  ;;  %v5959_v18 = vor.u32 %v6578_v5, %v5958_v3  ;;  %v6510_v22 = vld [vmem:[%s9898_s1 + $0xccc] sm:$0xf0]  ;;  %3321 = vmatpush.bf16.msrb.mxu0 %v5703_v15  ;;  %3303 = vmatmul.bf16.vlgmr.msra.gmra.mxu2 %v7301_v29 }
  0x67   :  { %v5686_v19 = vld [vmem:[%s9898_s1 + $0xcc0] sm:$0xf]  ;;  %v6087_v24 = vor.u32 %v6610_v11, %v6086_v10  ;;  %v6542_v26 = vld [vmem:[%s9898_s1 + $0xdcc] sm:$0xf0]  ;;  %3334 = vmatpush.bf16.msrb.mxu1 %v5831_v17  ;;  %3277 = vmatmul.bf16.vlgmr.msra.gmra.mxu0 %v7290_v25 }
  0x68   :  { %v5814_v23 = vld [vmem:[%s9898_s1 + $0xdc0] sm:$0xf]  ;;  %v6574_v28 = vld [vmem:[%s9898_s1 + $0xecc] sm:$0xf0]  ;;  %v5687_v34 = vor.u32 %v6510_v22, %v5686_v19  ;;  %3347 = vmatpush.bf16.msrb.mxu2 %v5959_v18  ;;  %3290 = vmatmul.bf16.vlgmr.msra.gmra.mxu1 %v7303_v30 }
  0x69   :  { %v5942_v27 = vld [vmem:[%s9898_s1 + $0xec0] sm:$0xf]  ;;  %v6606_v32 = vld [vmem:[%s9898_s1 + $0xfcc] sm:$0xf0]  ;;  %v5815_v35 = vor.u32 %v6542_v26, %v5814_v23  ;;  %3360 = vmatpush.bf16.msrb.mxu3 %v6087_v24 }
  0x6a   :  { %v6070_v31 = vld [vmem:[%s9898_s1 + $0xfc0] sm:$0xf]  ;;  %v5943_v36 = vor.u32 %v6574_v28, %v5942_v27  ;;  %v6506_v39 = vld [vmem:[%s9898_s1 + $0xcac] sm:$0xf0]  ;;  %3316 = vmatmul.bf16.vlgmr.msra.gmra.mxu3 %v7311_v33  ;;  %3322 = vmatpush.bf16.msrb.mxu0 %v5687_v34 }
  0x6b   :  { %v5670_v37 = vld [vmem:[%s9898_s1 + $0xca0] sm:$0xf]  ;;  %v6071_v43 = vor.u32 %v6606_v32, %v6070_v31  ;;  %v6538_v45 = vld [vmem:[%s9898_s1 + $0xdac] sm:$0xf0]  ;;  %3335 = vmatpush.bf16.msrb.mxu1 %v5815_v35 }
  0x6c   :  { %v5798_v40 = vld [vmem:[%s9898_s1 + $0xda0] sm:$0xf]  ;;  %v6570_v47 = vld [vmem:[%s9898_s1 + $0xeac] sm:$0xf0]  ;;  %v5671_v50 = vor.u32 %v6506_v39, %v5670_v37  ;;  %3348 = vmatpush.bf16.msrb.mxu2 %v5943_v36 }
  0x6d   :  { %v5926_v46 = vld [vmem:[%s9898_s1 + $0xea0] sm:$0xf]  ;;  %v6602_v49 = vld [vmem:[%s9898_s1 + $0xfac] sm:$0xf0]  ;;  %v5799_v51 = vor.u32 %v6538_v45, %v5798_v40  ;;  %3361 = vmatpush.bf16.msrb.mxu3 %v6071_v43 }
  0x6e   :  { %v6054_v48 = vld [vmem:[%s9898_s1 + $0xfa0] sm:$0xf]  ;;  %v5927_v52 = vor.u32 %v6570_v47, %v5926_v46  ;;  %v6502_v54 = vld [vmem:[%s9898_s1 + $0xc8c] sm:$0xf0]  ;;  %3323 = vmatpush.bf16.msrb.mxu0 %v5671_v50 }
  0x6f   :  { %v5654_v53 = vld [vmem:[%s9898_s1 + $0xc80] sm:$0xf]  ;;  %v6055_v56 = vor.u32 %v6602_v49, %v6054_v48  ;;  %v6534_v57 = vld [vmem:[%s9898_s1 + $0xd8c] sm:$0xf0]  ;;  %3336 = vmatpush.bf16.msrb.mxu1 %v5799_v51 }
  0x70   :  { %v5782_v55 = vld [vmem:[%s9898_s1 + $0xd80] sm:$0xf]  ;;  %v6566_v59 = vld [vmem:[%s9898_s1 + $0xe8c] sm:$0xf0]  ;;  %v5655_v62 = vor.u32 %v6502_v54, %v5654_v53  ;;  %3349 = vmatpush.bf16.msrb.mxu2 %v5927_v52 }
  0x71   :  { %v5910_v58 = vld [vmem:[%s9898_s1 + $0xe80] sm:$0xf]  ;;  %v6598_v61 = vld [vmem:[%s9898_s1 + $0xf8c] sm:$0xf0]  ;;  %v5783_v63 = vor.u32 %v6534_v57, %v5782_v55  ;;  %3362 = vmatpush.bf16.msrb.mxu3 %v6055_v56 }
  0x72   :  { %v6038_v60 = vld [vmem:[%s9898_s1 + $0xf80] sm:$0xf]  ;;  %v5911_v0 = vor.u32 %v6566_v59, %v5910_v58  ;;  %v6498_v2 = vld [vmem:[%s9898_s1 + $0xc6c] sm:$0xf0]  ;;  %3324 = vmatpush.bf16.msrb.mxu0 %v5655_v62  ;;  %v36_v59 = vld [vmem:[%s9899_s0 + $0x38] sm:$0xff] }
  0x73   :  { %v5638_v1 = vld [vmem:[%s9898_s1 + $0xc60] sm:$0xf]  ;;  %v6039_v5 = vor.u32 %v6598_v61, %v6038_v60  ;;  %v6530_v7 = vld [vmem:[%s9898_s1 + $0xd6c] sm:$0xf0]  ;;  %3337 = vmatpush.bf16.msrb.mxu1 %v5783_v63  ;;  %v6128_v60 = vld [vmem:[%s9898_s1 + $0xe4] sm:$0xf] }
  0x74   :  { %v5766_v3 = vld [vmem:[%s9898_s1 + $0xd60] sm:$0xf]  ;;  %v6562_v9 = vld [vmem:[%s9898_s1 + $0xe6c] sm:$0xf0]  ;;  %v5639_v12 = vor.u32 %v6498_v2, %v5638_v1  ;;  %3350 = vmatpush.bf16.msrb.mxu2 %v5911_v0  ;;  %v4168_v61 = vld [vmem:[%s9898_s1 + $0xf0] sm:$0xf0] }
  0x75   :  { %v5894_v8 = vld [vmem:[%s9898_s1 + $0xe60] sm:$0xf]  ;;  %v6594_v11 = vld [vmem:[%s9898_s1 + $0xf6c] sm:$0xf0]  ;;  %v5767_v13 = vor.u32 %v6530_v7, %v5766_v3  ;;  %3363 = vmatpush.bf16.msrb.mxu3 %v6039_v5  ;;  %v6160_v62 = vld [vmem:[%s9898_s1 + $0x1e4] sm:$0xf] }
  0x76   :  { %v6022_v10 = vld [vmem:[%s9898_s1 + $0xf60] sm:$0xf]  ;;  %v5895_v14 = vor.u32 %v6562_v9, %v5894_v8  ;;  %v6494_v16 = vld [vmem:[%s9898_s1 + $0xc4c] sm:$0xf0]  ;;  %3325 = vmatpush.bf16.msrb.mxu0 %v5639_v12  ;;  %v4296_v0 = vld [vmem:[%s9898_s1 + $0x1f0] sm:$0xf0] }
  0x77   :  { %v5622_v15 = vld [vmem:[%s9898_s1 + $0xc40] sm:$0xf]  ;;  %v6023_v18 = vor.u32 %v6594_v11, %v6022_v10  ;;  %v6526_v19 = vld [vmem:[%s9898_s1 + $0xd4c] sm:$0xf0]  ;;  %3338 = vmatpush.bf16.msrb.mxu1 %v5767_v13  ;;  %v6192_v1 = vld [vmem:[%s9898_s1 + $0x2e4] sm:$0xf]  ;;  %v571_v10 = vunpack.c.l.b16 %v36_v59  ;;  %v4171_v13 = vor.u32 %v6128_v60, %v4168_v61 }
  0x78   :  { %v5750_v17 = vld [vmem:[%s9898_s1 + $0xd40] sm:$0xf]  ;;  %v6558_v23 = vld [vmem:[%s9898_s1 + $0xe4c] sm:$0xf0]  ;;  %v5623_v27 = vor.u32 %v6494_v16, %v5622_v15  ;;  %3351 = vmatpush.bf16.msrb.mxu2 %v5895_v14  ;;  %v4424_v2 = vld [vmem:[%s9898_s1 + $0x2f0] sm:$0xf0]  ;;  %v572_v14 = vunpack.c.h.b16 %v36_v59  ;;  %v4299_v15 = vor.u32 %v6160_v62, %v4296_v0 }
  0x79   :  { %v5878_v22 = vld [vmem:[%s9898_s1 + $0xe40] sm:$0xf]  ;;  %v6590_v26 = vld [vmem:[%s9898_s1 + $0xf4c] sm:$0xf0]  ;;  %v5751_v28 = vor.u32 %v6526_v19, %v5750_v17  ;;  %3364 = vmatpush.bf16.msrb.mxu3 %v6023_v18  ;;  %v6224_v8 = vld [vmem:[%s9898_s1 + $0x3e4] sm:$0xf]  ;;  %v4427_v16 = vor.u32 %v6192_v1, %v4424_v2 }
  0x7a   :  { %v6006_v24 = vld [vmem:[%s9898_s1 + $0xf40] sm:$0xf]  ;;  %v5879_v31 = vor.u32 %v6558_v23, %v5878_v22  ;;  %v6490_v34 = vld [vmem:[%s9898_s1 + $0xc2c] sm:$0xf0]  ;;  %3326 = vmatpush.bf16.msrb.mxu0 %v5623_v27  ;;  %v4552_v9 = vld [vmem:[%s9898_s1 + $0x3f0] sm:$0xf0] }
  0x7b   :  { %v5606_v32 = vld [vmem:[%s9898_s1 + $0xc20] sm:$0xf]  ;;  %v6007_v36 = vor.u32 %v6590_v26, %v6006_v24  ;;  %v6522_v37 = vld [vmem:[%s9898_s1 + $0xd2c] sm:$0xf0]  ;;  %3339 = vmatpush.bf16.msrb.mxu1 %v5751_v28  ;;  %v6124_v17 = vld [vmem:[%s9898_s1 + $0xc4] sm:$0xf]  ;;  %v4555_v22 = vor.u32 %v6224_v8, %v4552_v9  ;;  %v7511_v28 = vpack.c.b16 %v571_v10, %v571_v10 }
  0x7c   :  { %v5734_v35 = vld [vmem:[%s9898_s1 + $0xd20] sm:$0xf]  ;;  %v6554_v40 = vld [vmem:[%s9898_s1 + $0xe2c] sm:$0xf0]  ;;  %v5607_v47 = vor.u32 %v6490_v34, %v5606_v32  ;;  %3352 = vmatpush.bf16.msrb.mxu2 %v5879_v31  ;;  %v4152_v18 = vld [vmem:[%s9898_s1 + $0xd0] sm:$0xf0] }
  0x7d   :  { %v5862_v39 = vld [vmem:[%s9898_s1 + $0xe20] sm:$0xf]  ;;  %v6586_v45 = vld [vmem:[%s9898_s1 + $0xf2c] sm:$0xf0]  ;;  %v5735_v51 = vor.u32 %v6522_v37, %v5734_v35  ;;  %3365 = vmatpush.bf16.msrb.mxu3 %v6007_v36  ;;  %v6156_v19 = vld [vmem:[%s9898_s1 + $0x1c4] sm:$0xf]  ;;  %v7521_v35 = vpack.c.b16 %v572_v14, %v572_v14  ;;  %v4155_v36 = vor.u32 %v6124_v17, %v4152_v18 }
  0x7e   :  { %v5990_v43 = vld [vmem:[%s9898_s1 + $0xf20] sm:$0xf]  ;;  %v6486_v48 = vld [vmem:[%s9898_s1 + $0xc0c] sm:$0xf0]  ;;  %v5863_v52 = vor.u32 %v6554_v40, %v5862_v39  ;;  %3327 = vmatpush.bf16.msrb.mxu0 %v5607_v47  ;;  %v4280_v24 = vld [vmem:[%s9898_s1 + $0x1d0] sm:$0xf0] }
  0x7f   :  { %v5590_v46 = vld [vmem:[%s9898_s1 + $0xc00] sm:$0xf]  ;;  %v6518_v50 = vld [vmem:[%s9898_s1 + $0xd0c] sm:$0xf0]  ;;  %v5991_v56 = vor.u32 %v6586_v45, %v5990_v43  ;;  %3340 = vmatpush.bf16.msrb.mxu1 %v5735_v51  ;;  %v6188_v26 = vld [vmem:[%s9898_s1 + $0x2c4] sm:$0xf]  ;;  %v4283_v37 = vor.u32 %v6156_v19, %v4280_v24 }
  0x80   :  { %v5718_v49 = vld [vmem:[%s9898_s1 + $0xd00] sm:$0xf]  ;;  %v6550_v54 = vld [vmem:[%s9898_s1 + $0xe0c] sm:$0xf0]  ;;  %v5591_v63 = vor.u32 %v6486_v48, %v5590_v46  ;;  %3353 = vmatpush.bf16.msrb.mxu2 %v5863_v52  ;;  %v4408_v27 = vld [vmem:[%s9898_s1 + $0x2d0] sm:$0xf0] }
  0x81   :  { %v5846_v53 = vld [vmem:[%s9898_s1 + $0xe00] sm:$0xf]  ;;  %v35_v55 = vld [vmem:[%s9899_s0 + $0x30] sm:$0xff]  ;;  %v5719_v5 = vor.u32 %v6518_v50, %v5718_v49  ;;  %3366 = vmatpush.bf16.msrb.mxu3 %v5991_v56  ;;  %v6220_v32 = vld [vmem:[%s9898_s1 + $0x3c4] sm:$0xf]  ;;  %v4411_v39 = vor.u32 %v6188_v26, %v4408_v27 }
  0x82   :  { %v5974_v57 = vld [vmem:[%s9898_s1 + $0xf00] sm:$0xf]  ;;  %v6582_v58 = vld [vmem:[%s9898_s1 + $0xf0c] sm:$0xf0]  ;;  %v569_v3 = vunpack.c.l.b16 %v35_v55  ;;  %v5847_v7 = vor.u32 %v6550_v54, %v5846_v53  ;;  %v570_v11 = vunpack.c.h.b16 %v35_v55  ;;  %3328 = vmatpush.bf16.msrb.mxu0 %v5591_v63  ;;  %v4536_v34 = vld [vmem:[%s9898_s1 + $0x3d0] sm:$0xf0] }
  0x83   :  { %v5975_v12 = vor.u32 %v6582_v58, %v5974_v57  ;;  %3341 = vmatpush.bf16.msrb.mxu1 %v5719_v5  ;;  %v6120_v40 = vld [vmem:[%s9898_s1 + $0xa4] sm:$0xf]  ;;  %v4136_v43 = vld [vmem:[%s9898_s1 + $0xb0] sm:$0xf0]  ;;  %v4539_v46 = vor.u32 %v6220_v32, %v4536_v34 }
  0x84   :  { %v7500_v23 = vpack.c.b16 %v569_v3, %v569_v3  ;;  %3354 = vmatpush.bf16.msrb.mxu2 %v5847_v7  ;;  %v7513_v31 = vpack.c.b16 %v570_v11, %v570_v11  ;;  %v6152_v45 = vld [vmem:[%s9898_s1 + $0x1a4] sm:$0xf]  ;;  %v4264_v47 = vld [vmem:[%s9898_s1 + $0x1b0] sm:$0xf0]  ;;  %v4139_v52 = vor.u32 %v6120_v40, %v4136_v43 }
  0x85   :  { %3367 = vmatpush.bf16.msrb.mxu3 %v5975_v12  ;;  %v6184_v48 = vld [vmem:[%s9898_s1 + $0x2a4] sm:$0xf]  ;;  %v4392_v49 = vld [vmem:[%s9898_s1 + $0x2b0] sm:$0xf0]  ;;  %v4267_v53 = vor.u32 %v6152_v45, %v4264_v47 }
  0x86   :  { %3373 = vmatpush.bf16.msra.mxu0 %v4171_v13  ;;  %3342 = vmatmul.bf16.vlgmr.msrb.gmra.mxu1 %v7513_v31  ;;  %v6216_v50 = vld [vmem:[%s9898_s1 + $0x3a4] sm:$0xf]  ;;  %v4520_v51 = vld [vmem:[%s9898_s1 + $0x3b0] sm:$0xf0]  ;;  %v4395_v54 = vor.u32 %v6184_v48, %v4392_v49 }
  0x87   :  { %3386 = vmatpush.bf16.msra.mxu1 %v4299_v15  ;;  %3329 = vmatmul.bf16.vlgmr.msrb.gmra.mxu0 %v7500_v23  ;;  %v6116_v55 = vld [vmem:[%s9898_s1 + $0x84] sm:$0xf]  ;;  %v4120_v56 = vld [vmem:[%s9898_s1 + $0x90] sm:$0xf0]  ;;  %v4523_v58 = vor.u32 %v6216_v50, %v4520_v51 }
  0x88   :  { %3399 = vmatpush.bf16.msra.mxu2 %v4427_v16  ;;  %3368 = vmatmul.bf16.vlgmr.msrb.gmra.mxu3 %v7521_v35  ;;  %v6148_v57 = vld [vmem:[%s9898_s1 + $0x184] sm:$0xf]  ;;  %v4248_v59 = vld [vmem:[%s9898_s1 + $0x190] sm:$0xf0]  ;;  %v4123_v0 = vor.u32 %v6116_v55, %v4120_v56 }
  0x89   :  { %3412 = vmatpush.bf16.msra.mxu3 %v4555_v22  ;;  %3355 = vmatmul.bf16.vlgmr.msrb.gmra.mxu2 %v7511_v28  ;;  %v6180_v60 = vld [vmem:[%s9898_s1 + $0x284] sm:$0xf]  ;;  %v4376_v61 = vld [vmem:[%s9898_s1 + $0x290] sm:$0xf0]  ;;  %v4251_v1 = vor.u32 %v6148_v57, %v4248_v59 }
  0x8a   :  { %3374 = vmatpush.bf16.msra.mxu0 %v4155_v36  ;;  %v6212_v62 = vld [vmem:[%s9898_s1 + $0x384] sm:$0xf]  ;;  %v4504_v63 = vld [vmem:[%s9898_s1 + $0x390] sm:$0xf0]  ;;  %v4379_v2 = vor.u32 %v6180_v60, %v4376_v61 }
  0x8b   :  { %3387 = vmatpush.bf16.msra.mxu1 %v4283_v37  ;;  %v6112_v3 = vld [vmem:[%s9898_s1 + $0x64] sm:$0xf]  ;;  %v4104_v5 = vld [vmem:[%s9898_s1 + $0x70] sm:$0xf0]  ;;  %v4507_v8 = vor.u32 %v6212_v62, %v4504_v63 }
  0x8c   :  { %3400 = vmatpush.bf16.msra.mxu2 %v4411_v39  ;;  %v6144_v7 = vld [vmem:[%s9898_s1 + $0x164] sm:$0xf]  ;;  %v4232_v9 = vld [vmem:[%s9898_s1 + $0x170] sm:$0xf0]  ;;  %v4107_v14 = vor.u32 %v6112_v3, %v4104_v5 }
  0x8d   :  { %3413 = vmatpush.bf16.msra.mxu3 %v4539_v46  ;;  %v6176_v10 = vld [vmem:[%s9898_s1 + $0x264] sm:$0xf]  ;;  %v4360_v11 = vld [vmem:[%s9898_s1 + $0x270] sm:$0xf0]  ;;  %v4235_v15 = vor.u32 %v6144_v7, %v4232_v9 }
  0x8e   :  { %3375 = vmatpush.bf16.msra.mxu0 %v4139_v52  ;;  %v6208_v12 = vld [vmem:[%s9898_s1 + $0x364] sm:$0xf]  ;;  %v4488_v13 = vld [vmem:[%s9898_s1 + $0x370] sm:$0xf0]  ;;  %v4363_v16 = vor.u32 %v6176_v10, %v4360_v11 }
  0x8f   :  { %3388 = vmatpush.bf16.msra.mxu1 %v4267_v53  ;;  %v6108_v17 = vld [vmem:[%s9898_s1 + $0x44] sm:$0xf]  ;;  %v4088_v18 = vld [vmem:[%s9898_s1 + $0x50] sm:$0xf0]  ;;  %v4491_v22 = vor.u32 %v6208_v12, %v4488_v13 }
  0x90   :  { %3401 = vmatpush.bf16.msra.mxu2 %v4395_v54  ;;  %v6140_v19 = vld [vmem:[%s9898_s1 + $0x144] sm:$0xf]  ;;  %v4216_v24 = vld [vmem:[%s9898_s1 + $0x150] sm:$0xf0]  ;;  %v4091_v36 = vor.u32 %v6108_v17, %v4088_v18 }
  0x91   :  { %3414 = vmatpush.bf16.msra.mxu3 %v4523_v58  ;;  %v6172_v26 = vld [vmem:[%s9898_s1 + $0x244] sm:$0xf]  ;;  %v4344_v27 = vld [vmem:[%s9898_s1 + $0x250] sm:$0xf0]  ;;  %v4219_v37 = vor.u32 %v6140_v19, %v4216_v24 }
  0x92   :  { %3376 = vmatpush.bf16.msra.mxu0 %v4123_v0  ;;  %v6204_v32 = vld [vmem:[%s9898_s1 + $0x344] sm:$0xf]  ;;  %v4472_v34 = vld [vmem:[%s9898_s1 + $0x350] sm:$0xf0]  ;;  %v4347_v39 = vor.u32 %v6172_v26, %v4344_v27 }
  0x93   :  { %3389 = vmatpush.bf16.msra.mxu1 %v4251_v1  ;;  %v6104_v40 = vld [vmem:[%s9898_s1 + $0x24] sm:$0xf]  ;;  %v4072_v43 = vld [vmem:[%s9898_s1 + $0x30] sm:$0xf0]  ;;  %v4475_v46 = vor.u32 %v6204_v32, %v4472_v34 }
  0x94   :  { %3402 = vmatpush.bf16.msra.mxu2 %v4379_v2  ;;  %v6136_v45 = vld [vmem:[%s9898_s1 + $0x124] sm:$0xf]  ;;  %v4200_v47 = vld [vmem:[%s9898_s1 + $0x130] sm:$0xf0]  ;;  %v4075_v52 = vor.u32 %v6104_v40, %v4072_v43 }
  0x95   :  { %3415 = vmatpush.bf16.msra.mxu3 %v4507_v8  ;;  %v6168_v48 = vld [vmem:[%s9898_s1 + $0x224] sm:$0xf]  ;;  %v4328_v49 = vld [vmem:[%s9898_s1 + $0x230] sm:$0xf0]  ;;  %v4203_v55 = vor.u32 %v6136_v45, %v4200_v47 }
  0x96   :  { %3377 = vmatpush.bf16.msra.mxu0 %v4107_v14  ;;  %v6200_v50 = vld [vmem:[%s9898_s1 + $0x324] sm:$0xf]  ;;  %v4456_v51 = vld [vmem:[%s9898_s1 + $0x330] sm:$0xf0]  ;;  %v4331_v56 = vor.u32 %v6168_v48, %v4328_v49 }
  0x97   :  { %3390 = vmatpush.bf16.msra.mxu1 %v4235_v15  ;;  %v6100_v53 = vld [vmem:[%s9898_s1 + $0x4] sm:$0xf]  ;;  %v4056_v54 = vld [vmem:[%s9898_s1 + $0x10] sm:$0xf0]  ;;  %v4459_v60 = vor.u32 %v6200_v50, %v4456_v51 }
  0x98   :  { %3403 = vmatpush.bf16.msra.mxu2 %v4363_v16  ;;  %v6132_v57 = vld [vmem:[%s9898_s1 + $0x104] sm:$0xf]  ;;  %v4184_v58 = vld [vmem:[%s9898_s1 + $0x110] sm:$0xf0]  ;;  %v4059_v3 = vor.u32 %v6100_v53, %v4056_v54 }
  0x99   :  { %3416 = vmatpush.bf16.msra.mxu3 %v4491_v22  ;;  %v6164_v59 = vld [vmem:[%s9898_s1 + $0x204] sm:$0xf]  ;;  %v4312_v61 = vld [vmem:[%s9898_s1 + $0x210] sm:$0xf0]  ;;  %v4187_v9 = vor.u32 %v6132_v57, %v4184_v58 }
  0x9a   :  { %3378 = vmatpush.bf16.msra.mxu0 %v4091_v36  ;;  %v6196_v62 = vld [vmem:[%s9898_s1 + $0x304] sm:$0xf]  ;;  %v4440_v63 = vld [vmem:[%s9898_s1 + $0x310] sm:$0xf0]  ;;  %v4315_v10 = vor.u32 %v6164_v59, %v4312_v61 }
  0x9b   :  { %3391 = vmatpush.bf16.msra.mxu1 %v4219_v37  ;;  %v6256_v0 = vld [vmem:[%s9898_s1 + $0x4e4] sm:$0xf]  ;;  %v4680_v1 = vld [vmem:[%s9898_s1 + $0x4f0] sm:$0xf0]  ;;  %v4443_v13 = vor.u32 %v6196_v62, %v4440_v63 }
  0x9c   :  { %3404 = vmatpush.bf16.msra.mxu2 %v4347_v39  ;;  %v6288_v2 = vld [vmem:[%s9898_s1 + $0x5e4] sm:$0xf]  ;;  %v4808_v5 = vld [vmem:[%s9898_s1 + $0x5f0] sm:$0xf0]  ;;  %v4683_v14 = vor.u32 %v6256_v0, %v4680_v1 }
  0x9d   :  { %3417 = vmatpush.bf16.msra.mxu3 %v4475_v46  ;;  %v6320_v7 = vld [vmem:[%s9898_s1 + $0x6e4] sm:$0xf]  ;;  %v4936_v8 = vld [vmem:[%s9898_s1 + $0x6f0] sm:$0xf0]  ;;  %v4811_v15 = vor.u32 %v6288_v2, %v4808_v5 }
  0x9e   :  { %3379 = vmatpush.bf16.msra.mxu0 %v4075_v52  ;;  %v6352_v11 = vld [vmem:[%s9898_s1 + $0x7e4] sm:$0xf]  ;;  %v5064_v12 = vld [vmem:[%s9898_s1 + $0x7f0] sm:$0xf0]  ;;  %v4939_v16 = vor.u32 %v6320_v7, %v4936_v8 }
  0x9f   :  { %3392 = vmatpush.bf16.msra.mxu1 %v4203_v55  ;;  %v6252_v17 = vld [vmem:[%s9898_s1 + $0x4c4] sm:$0xf]  ;;  %v4664_v18 = vld [vmem:[%s9898_s1 + $0x4d0] sm:$0xf0]  ;;  %v5067_v22 = vor.u32 %v6352_v11, %v5064_v12 }
  0xa0   :  { %3405 = vmatpush.bf16.msra.mxu2 %v4331_v56  ;;  %v6284_v19 = vld [vmem:[%s9898_s1 + $0x5c4] sm:$0xf]  ;;  %v4792_v24 = vld [vmem:[%s9898_s1 + $0x5d0] sm:$0xf0]  ;;  %v4667_v36 = vor.u32 %v6252_v17, %v4664_v18 }
  0xa1   :  { %3418 = vmatpush.bf16.msra.mxu3 %v4459_v60  ;;  %v6316_v26 = vld [vmem:[%s9898_s1 + $0x6c4] sm:$0xf]  ;;  %v4920_v27 = vld [vmem:[%s9898_s1 + $0x6d0] sm:$0xf0]  ;;  %v4795_v37 = vor.u32 %v6284_v19, %v4792_v24 }
  0xa2   :  { %3380 = vmatpush.bf16.msra.mxu0 %v4059_v3  ;;  %v6348_v32 = vld [vmem:[%s9898_s1 + $0x7c4] sm:$0xf]  ;;  %v5048_v34 = vld [vmem:[%s9898_s1 + $0x7d0] sm:$0xf0]  ;;  %v4923_v39 = vor.u32 %v6316_v26, %v4920_v27 }
  0xa3   :  { %3393 = vmatpush.bf16.msra.mxu1 %v4187_v9  ;;  %v6248_v40 = vld [vmem:[%s9898_s1 + $0x4a4] sm:$0xf]  ;;  %v4648_v43 = vld [vmem:[%s9898_s1 + $0x4b0] sm:$0xf0]  ;;  %v5051_v46 = vor.u32 %v6348_v32, %v5048_v34 }
  0xa4   :  { %3406 = vmatpush.bf16.msra.mxu2 %v4315_v10  ;;  %v6280_v45 = vld [vmem:[%s9898_s1 + $0x5a4] sm:$0xf]  ;;  %v4776_v47 = vld [vmem:[%s9898_s1 + $0x5b0] sm:$0xf0]  ;;  %v4651_v52 = vor.u32 %v6248_v40, %v4648_v43 }
  0xa5   :  { %3419 = vmatpush.bf16.msra.mxu3 %v4443_v13  ;;  %v6312_v48 = vld [vmem:[%s9898_s1 + $0x6a4] sm:$0xf]  ;;  %v4904_v49 = vld [vmem:[%s9898_s1 + $0x6b0] sm:$0xf0]  ;;  %3381 = vmatmul.bf16.vlgmr.msra.gmra.mxu0 %v6938_v20  ;;  %v4779_v53 = vor.u32 %v6280_v45, %v4776_v47 }
  0xa6   :  { %3425 = vmatpush.bf16.msrb.mxu0 %v4683_v14  ;;  %v6344_v50 = vld [vmem:[%s9898_s1 + $0x7a4] sm:$0xf]  ;;  %v5032_v51 = vld [vmem:[%s9898_s1 + $0x7b0] sm:$0xf0]  ;;  %3394 = vmatmul.bf16.vlgmr.msra.gmra.mxu1 %v6941_v21  ;;  %v4907_v54 = vor.u32 %v6312_v48, %v4904_v49 }
  0xa7   :  { %3438 = vmatpush.bf16.msrb.mxu1 %v4811_v15  ;;  %3407 = vmatmul.bf16.vlgmr.msra.gmra.mxu2 %v6906_v4  ;;  %v6244_v55 = vld [vmem:[%s9898_s1 + $0x484] sm:$0xf]  ;;  %v4632_v56 = vld [vmem:[%s9898_s1 + $0x490] sm:$0xf0]  ;;  %v5035_v58 = vor.u32 %v6344_v50, %v5032_v51 }
  0xa8   :  { %3451 = vmatpush.bf16.msrb.mxu2 %v4939_v16  ;;  %3420 = vmatmul.bf16.vlgmr.msra.gmra.mxu3 %v6911_v6  ;;  %v6276_v57 = vld [vmem:[%s9898_s1 + $0x584] sm:$0xf]  ;;  %v4760_v59 = vld [vmem:[%s9898_s1 + $0x590] sm:$0xf0]  ;;  %v4635_v0 = vor.u32 %v6244_v55, %v4632_v56  ;;  %v3200_v49 = vpop.f32.mrf.mxu2 }
  0xa9   :  { %3464 = vmatpush.bf16.msrb.mxu3 %v5067_v22  ;;  %v6308_v60 = vld [vmem:[%s9898_s1 + $0x684] sm:$0xf]  ;;  %v4888_v61 = vld [vmem:[%s9898_s1 + $0x690] sm:$0xf0]  ;;  %v4763_v1 = vor.u32 %v6276_v57, %v4760_v59 }
  0xaa   :  { %3426 = vmatpush.bf16.msrb.mxu0 %v4667_v36  ;;  %v6340_v62 = vld [vmem:[%s9898_s1 + $0x784] sm:$0xf]  ;;  %v5016_v63 = vld [vmem:[%s9898_s1 + $0x790] sm:$0xf0]  ;;  %v4891_v2 = vor.u32 %v6308_v60, %v4888_v61 }
  0xab   :  { %3439 = vmatpush.bf16.msrb.mxu1 %v4795_v37  ;;  %v6240_v3 = vld [vmem:[%s9898_s1 + $0x464] sm:$0xf]  ;;  %v4616_v5 = vld [vmem:[%s9898_s1 + $0x470] sm:$0xf0]  ;;  %v5019_v8 = vor.u32 %v6340_v62, %v5016_v63 }
  0xac   :  { %3452 = vmatpush.bf16.msrb.mxu2 %v4923_v39  ;;  %v6272_v7 = vld [vmem:[%s9898_s1 + $0x564] sm:$0xf]  ;;  %v4744_v9 = vld [vmem:[%s9898_s1 + $0x570] sm:$0xf0]  ;;  %v4619_v14 = vor.u32 %v6240_v3, %v4616_v5 }
  0xad   :  { %3465 = vmatpush.bf16.msrb.mxu3 %v5051_v46  ;;  %v6304_v10 = vld [vmem:[%s9898_s1 + $0x664] sm:$0xf]  ;;  %v4872_v11 = vld [vmem:[%s9898_s1 + $0x670] sm:$0xf0]  ;;  %v4747_v15 = vor.u32 %v6272_v7, %v4744_v9 }
  0xae   :  { %3427 = vmatpush.bf16.msrb.mxu0 %v4651_v52  ;;  %v6336_v12 = vld [vmem:[%s9898_s1 + $0x764] sm:$0xf]  ;;  %v5000_v13 = vld [vmem:[%s9898_s1 + $0x770] sm:$0xf0]  ;;  %v4875_v16 = vor.u32 %v6304_v10, %v4872_v11 }
  0xaf   :  { %3440 = vmatpush.bf16.msrb.mxu1 %v4779_v53  ;;  %v6236_v17 = vld [vmem:[%s9898_s1 + $0x444] sm:$0xf]  ;;  %v4600_v18 = vld [vmem:[%s9898_s1 + $0x450] sm:$0xf0]  ;;  %v5003_v22 = vor.u32 %v6336_v12, %v5000_v13  ;;  %v3174_v36 = vpop.f32.mrf.mxu0  ;;  %v3187_v39 = vpop.f32.mrf.mxu1 }
  0xb0   :  { %3453 = vmatpush.bf16.msrb.mxu2 %v4907_v54  ;;  %v6268_v19 = vld [vmem:[%s9898_s1 + $0x544] sm:$0xf]  ;;  %v4728_v24 = vld [vmem:[%s9898_s1 + $0x550] sm:$0xf0]  ;;  %v4603_v37 = vor.u32 %v6236_v17, %v4600_v18  ;;  %v3188_v48 = vadd.f32 %v3187_v39, %v3174_v36  ;;  %v3213_v54 = vpop.f32.mrf.mxu3 }
  0xb1   :  { %3466 = vmatpush.bf16.msrb.mxu3 %v5035_v58  ;;  %v6300_v26 = vld [vmem:[%s9898_s1 + $0x644] sm:$0xf]  ;;  %v4856_v27 = vld [vmem:[%s9898_s1 + $0x650] sm:$0xf0]  ;;  %v4731_v40 = vor.u32 %v6268_v19, %v4728_v24 }
  0xb2   :  { %3428 = vmatpush.bf16.msrb.mxu0 %v4635_v0  ;;  %v6332_v32 = vld [vmem:[%s9898_s1 + $0x744] sm:$0xf]  ;;  %v4984_v34 = vld [vmem:[%s9898_s1 + $0x750] sm:$0xf0]  ;;  %v4859_v43 = vor.u32 %v6300_v26, %v4856_v27  ;;  %v3201_v57 = vadd.f32 %v3200_v49, %v3188_v48  ;;  %v3202_v26 = vpop.f32.mrf.mxu2 }
  0xb3   :  { %3441 = vmatpush.bf16.msrb.mxu1 %v4763_v1  ;;  %v6232_v45 = vld [vmem:[%s9898_s1 + $0x424] sm:$0xf]  ;;  %v4584_v46 = vld [vmem:[%s9898_s1 + $0x430] sm:$0xf0]  ;;  %v4987_v50 = vor.u32 %v6332_v32, %v4984_v34 }
  0xb4   :  { %3454 = vmatpush.bf16.msrb.mxu2 %v4891_v2  ;;  %v6264_v47 = vld [vmem:[%s9898_s1 + $0x524] sm:$0xf]  ;;  %v4712_v51 = vld [vmem:[%s9898_s1 + $0x530] sm:$0xf0]  ;;  %v4587_v58 = vor.u32 %v6232_v45, %v4584_v46  ;;  %v7858_v2 = vadd.f32 %v3213_v54, %v3201_v57 }
  0xb5   :  { %3467 = vmatpush.bf16.msrb.mxu3 %v5019_v8  ;;  %v6296_v52 = vld [vmem:[%s9898_s1 + $0x624] sm:$0xf]  ;;  %v4840_v53 = vld [vmem:[%s9898_s1 + $0x630] sm:$0xf0]  ;;  %v4715_v61 = vor.u32 %v6264_v47, %v4712_v51 }
  0xb6   :  { %3429 = vmatpush.bf16.msrb.mxu0 %v4619_v14  ;;  %v6328_v55 = vld [vmem:[%s9898_s1 + $0x724] sm:$0xf]  ;;  %v4968_v56 = vld [vmem:[%s9898_s1 + $0x730] sm:$0xf0]  ;;  %v4843_v62 = vor.u32 %v6296_v52, %v4840_v53 }
  0xb7   :  { %3442 = vmatpush.bf16.msrb.mxu1 %v4747_v15  ;;  %v6228_v59 = vld [vmem:[%s9898_s1 + $0x404] sm:$0xf]  ;;  %v4568_v60 = vld [vmem:[%s9898_s1 + $0x410] sm:$0xf0]  ;;  %v4971_v3 = vor.u32 %v6328_v55, %v4968_v56  ;;  %v3176_v12 = vpop.f32.mrf.mxu0  ;;  %v3189_v17 = vpop.f32.mrf.mxu1 }
  0xb8   :  { %3455 = vmatpush.bf16.msrb.mxu2 %v4875_v16  ;;  %v6260_v63 = vld [vmem:[%s9898_s1 + $0x504] sm:$0xf]  ;;  %v4696_v0 = vld [vmem:[%s9898_s1 + $0x510] sm:$0xf0]  ;;  %v4571_v13 = vor.u32 %v6228_v59, %v4568_v60  ;;  %v3215_v34 = vpop.f32.mrf.mxu3 }
  0xb9   :  { %3468 = vmatpush.bf16.msrb.mxu3 %v5003_v22  ;;  %v6292_v1 = vld [vmem:[%s9898_s1 + $0x604] sm:$0xf]  ;;  %v4824_v5 = vld [vmem:[%s9898_s1 + $0x610] sm:$0xf0]  ;;  %v4699_v18 = vor.u32 %v6260_v63, %v4696_v0 }
  0xba   :  { %3430 = vmatpush.bf16.msrb.mxu0 %v4603_v37  ;;  %v6324_v7 = vld [vmem:[%s9898_s1 + $0x704] sm:$0xf]  ;;  %v4952_v8 = vld [vmem:[%s9898_s1 + $0x710] sm:$0xf0]  ;;  %v4827_v19 = vor.u32 %v6292_v1, %v4824_v5 }
  0xbb   :  { %3443 = vmatpush.bf16.msrb.mxu1 %v4731_v40  ;;  %v6384_v9 = vld [vmem:[%s9898_s1 + $0x8e4] sm:$0xf]  ;;  %v5192_v10 = vld [vmem:[%s9898_s1 + $0x8f0] sm:$0xf0]  ;;  %v4955_v27 = vor.u32 %v6324_v7, %v4952_v8 }
  0xbc   :  { %3456 = vmatpush.bf16.msrb.mxu2 %v4859_v43  ;;  %v6416_v11 = vld [vmem:[%s9898_s1 + $0x9e4] sm:$0xf]  ;;  %v5320_v14 = vld [vmem:[%s9898_s1 + $0x9f0] sm:$0xf0]  ;;  %v5195_v32 = vor.u32 %v6384_v9, %v5192_v10 }
  0xbd   :  { %3469 = vmatpush.bf16.msrb.mxu3 %v4987_v50  ;;  %v6448_v15 = vld [vmem:[%s9898_s1 + $0xae4] sm:$0xf]  ;;  %v5448_v16 = vld [vmem:[%s9898_s1 + $0xaf0] sm:$0xf0]  ;;  %v5323_v36 = vor.u32 %v6416_v11, %v5320_v14 }
  0xbe   :  { %3431 = vmatpush.bf16.msrb.mxu0 %v4587_v58  ;;  %v6480_v22 = vld [vmem:[%s9898_s1 + $0xbe4] sm:$0xf]  ;;  %v5576_v24 = vld [vmem:[%s9898_s1 + $0xbf0] sm:$0xf0]  ;;  %v5451_v37 = vor.u32 %v6448_v15, %v5448_v16 }
  0xbf   :  { %3444 = vmatpush.bf16.msrb.mxu1 %v4715_v61  ;;  %v6380_v39 = vld [vmem:[%s9898_s1 + $0x8c4] sm:$0xf]  ;;  %v5176_v40 = vld [vmem:[%s9898_s1 + $0x8d0] sm:$0xf0]  ;;  %v5579_v45 = vor.u32 %v6480_v22, %v5576_v24 }
  0xc0   :  { %3457 = vmatpush.bf16.msrb.mxu2 %v4843_v62  ;;  %v6412_v43 = vld [vmem:[%s9898_s1 + $0x9c4] sm:$0xf]  ;;  %v5304_v46 = vld [vmem:[%s9898_s1 + $0x9d0] sm:$0xf0]  ;;  %v5179_v51 = vor.u32 %v6380_v39, %v5176_v40 }
  0xc1   :  { %3470 = vmatpush.bf16.msrb.mxu3 %v4971_v3  ;;  %v6444_v47 = vld [vmem:[%s9898_s1 + $0xac4] sm:$0xf]  ;;  %v5432_v48 = vld [vmem:[%s9898_s1 + $0xad0] sm:$0xf0]  ;;  %v5307_v52 = vor.u32 %v6412_v43, %v5304_v46 }
  0xc2   :  { %3432 = vmatpush.bf16.msrb.mxu0 %v4571_v13  ;;  %v6476_v49 = vld [vmem:[%s9898_s1 + $0xbc4] sm:$0xf]  ;;  %v5560_v50 = vld [vmem:[%s9898_s1 + $0xbd0] sm:$0xf0]  ;;  %v5435_v53 = vor.u32 %v6444_v47, %v5432_v48 }
  0xc3   :  { %3445 = vmatpush.bf16.msrb.mxu1 %v4699_v18  ;;  %v6376_v54 = vld [vmem:[%s9898_s1 + $0x8a4] sm:$0xf]  ;;  %v5160_v55 = vld [vmem:[%s9898_s1 + $0x8b0] sm:$0xf0]  ;;  %v5563_v57 = vor.u32 %v6476_v49, %v5560_v50  ;;  %v3226_v15 = vpop.f32.mrf.mxu0 }
  0xc4   :  { %3458 = vmatpush.bf16.msrb.mxu2 %v4827_v19  ;;  %v6408_v56 = vld [vmem:[%s9898_s1 + $0x9a4] sm:$0xf]  ;;  %v5288_v58 = vld [vmem:[%s9898_s1 + $0x9b0] sm:$0xf0]  ;;  %v5163_v63 = vor.u32 %v6376_v54, %v5160_v55  ;;  %v3227_v24 = vadd.f32 %v3226_v15, %v7858_v2 }
  0xc5   :  { %3471 = vmatpush.bf16.msrb.mxu3 %v4955_v27  ;;  %v6440_v59 = vld [vmem:[%s9898_s1 + $0xaa4] sm:$0xf]  ;;  %v5416_v60 = vld [vmem:[%s9898_s1 + $0xab0] sm:$0xf0]  ;;  %3433 = vmatmul.bf16.vlgmr.msrb.gmra.mxu0 %v7097_v41  ;;  %v5291_v0 = vor.u32 %v6408_v56, %v5288_v58  ;;  %v3239_v26 = vpop.f32.mrf.mxu1 }
  0xc6   :  { %3477 = vmatpush.bf16.msra.mxu0 %v5195_v32  ;;  %v6472_v61 = vld [vmem:[%s9898_s1 + $0xba4] sm:$0xf]  ;;  %v5544_v62 = vld [vmem:[%s9898_s1 + $0xbb0] sm:$0xf0]  ;;  %3446 = vmatmul.bf16.vlgmr.msrb.gmra.mxu1 %v7101_v44  ;;  %v5419_v1 = vor.u32 %v6440_v59, %v5416_v60  ;;  %v3240_v39 = vadd.f32 %v3239_v26, %v3227_v24 }
  0xc7   :  { %3490 = vmatpush.bf16.msra.mxu1 %v5323_v36  ;;  %3459 = vmatmul.bf16.vlgmr.msrb.gmra.mxu2 %v7089_v38  ;;  %v6372_v3 = vld [vmem:[%s9898_s1 + $0x884] sm:$0xf]  ;;  %v5144_v5 = vld [vmem:[%s9898_s1 + $0x890] sm:$0xf0]  ;;  %v5547_v8 = vor.u32 %v6472_v61, %v5544_v62 }
  0xc8   :  { %3503 = vmatpush.bf16.msra.mxu2 %v5451_v37  ;;  %3472 = vmatmul.bf16.vlgmr.msrb.gmra.mxu3 %v7099_v42  ;;  %v6404_v7 = vld [vmem:[%s9898_s1 + $0x984] sm:$0xf]  ;;  %v5272_v9 = vld [vmem:[%s9898_s1 + $0x990] sm:$0xf0]  ;;  %v5147_v14 = vor.u32 %v6372_v3, %v5144_v5 }
  0xc9   :  { %3516 = vmatpush.bf16.msra.mxu3 %v5579_v45  ;;  %v6436_v10 = vld [vmem:[%s9898_s1 + $0xa84] sm:$0xf]  ;;  %v5400_v11 = vld [vmem:[%s9898_s1 + $0xa90] sm:$0xf0]  ;;  %v5275_v16 = vor.u32 %v6404_v7, %v5272_v9  ;;  %v3252_v49 = vpop.f32.mrf.mxu2 }
  0xca   :  { %3478 = vmatpush.bf16.msra.mxu0 %v5179_v51  ;;  %v6468_v12 = vld [vmem:[%s9898_s1 + $0xb84] sm:$0xf]  ;;  %v5528_v13 = vld [vmem:[%s9898_s1 + $0xb90] sm:$0xf0]  ;;  %v5403_v17 = vor.u32 %v6436_v10, %v5400_v11  ;;  %v3253_v54 = vadd.f32 %v3252_v49, %v3240_v39 }
  0xcb   :  { %3491 = vmatpush.bf16.msra.mxu1 %v5307_v52  ;;  %v6368_v18 = vld [vmem:[%s9898_s1 + $0x864] sm:$0xf]  ;;  %v5128_v19 = vld [vmem:[%s9898_s1 + $0x870] sm:$0xf0]  ;;  %v5531_v27 = vor.u32 %v6468_v12, %v5528_v13  ;;  %v3228_v60 = vpop.f32.mrf.mxu0 }
  0xcc   :  { %3504 = vmatpush.bf16.msra.mxu2 %v5435_v53  ;;  %v6400_v22 = vld [vmem:[%s9898_s1 + $0x964] sm:$0xf]  ;;  %v5256_v32 = vld [vmem:[%s9898_s1 + $0x970] sm:$0xf0]  ;;  %v5131_v40 = vor.u32 %v6368_v18, %v5128_v19  ;;  %v3265_v55 = vpop.f32.mrf.mxu3 }
  0xcd   :  { %3517 = vmatpush.bf16.msra.mxu3 %v5563_v57  ;;  %v6432_v34 = vld [vmem:[%s9898_s1 + $0xa64] sm:$0xf]  ;;  %v5384_v36 = vld [vmem:[%s9898_s1 + $0xa70] sm:$0xf0]  ;;  %v5259_v43 = vor.u32 %v6400_v22, %v5256_v32  ;;  %v8018_v59 = vadd.f32 %v3265_v55, %v3253_v54  ;;  %v3241_v3 = vpop.f32.mrf.mxu1 }
  0xce   :  { %3479 = vmatpush.bf16.msra.mxu0 %v5163_v63  ;;  %v6464_v37 = vld [vmem:[%s9898_s1 + $0xb64] sm:$0xf]  ;;  %v5512_v2 = vld [vmem:[%s9898_s1 + $0xb70] sm:$0xf0]  ;;  %v5387_v45 = vor.u32 %v6432_v34, %v5384_v36 }
  0xcf   :  { %3492 = vmatpush.bf16.msra.mxu1 %v5291_v0  ;;  %v6364_v46 = vld [vmem:[%s9898_s1 + $0x844] sm:$0xf]  ;;  %v5112_v47 = vld [vmem:[%s9898_s1 + $0x850] sm:$0xf0]  ;;  %v5515_v50 = vor.u32 %v6464_v37, %v5512_v2 }
  0xd0   :  { %3505 = vmatpush.bf16.msra.mxu2 %v5419_v1  ;;  %v6396_v48 = vld [vmem:[%s9898_s1 + $0x944] sm:$0xf]  ;;  %v5240_v51 = vld [vmem:[%s9898_s1 + $0x950] sm:$0xf0]  ;;  %v5115_v58 = vor.u32 %v6364_v46, %v5112_v47 }
  0xd1   :  { %3518 = vmatpush.bf16.msra.mxu3 %v5547_v8  ;;  %v6428_v52 = vld [vmem:[%s9898_s1 + $0xa44] sm:$0xf]  ;;  %v5368_v53 = vld [vmem:[%s9898_s1 + $0xa50] sm:$0xf0]  ;;  %v5243_v61 = vor.u32 %v6396_v48, %v5240_v51  ;;  %v3254_v22 = vpop.f32.mrf.mxu2 }
  0xd2   :  { %3480 = vmatpush.bf16.msra.mxu0 %v5147_v14  ;;  %v6460_v56 = vld [vmem:[%s9898_s1 + $0xb44] sm:$0xf]  ;;  %v5496_v57 = vld [vmem:[%s9898_s1 + $0xb50] sm:$0xf0]  ;;  %v5371_v62 = vor.u32 %v6428_v52, %v5368_v53 }
  0xd3   :  { %3493 = vmatpush.bf16.msra.mxu1 %v5275_v16  ;;  %v6360_v63 = vld [vmem:[%s9898_s1 + $0x824] sm:$0xf]  ;;  %v5096_v0 = vld [vmem:[%s9898_s1 + $0x830] sm:$0xf0]  ;;  %v5499_v5 = vor.u32 %v6460_v56, %v5496_v57 }
  0xd4   :  { %3506 = vmatpush.bf16.msra.mxu2 %v5403_v17  ;;  %v6392_v1 = vld [vmem:[%s9898_s1 + $0x924] sm:$0xf]  ;;  %v5224_v7 = vld [vmem:[%s9898_s1 + $0x930] sm:$0xf0]  ;;  %v5099_v12 = vor.u32 %v6360_v63, %v5096_v0  ;;  %v3267_v34 = vpop.f32.mrf.mxu3 }
  0xd5   :  { %3519 = vmatpush.bf16.msra.mxu3 %v5531_v27  ;;  %v6424_v8 = vld [vmem:[%s9898_s1 + $0xa24] sm:$0xf]  ;;  %v5352_v9 = vld [vmem:[%s9898_s1 + $0xa30] sm:$0xf0]  ;;  %v5227_v15 = vor.u32 %v6392_v1, %v5224_v7 }
  0xd6   :  { %3481 = vmatpush.bf16.msra.mxu0 %v5131_v40  ;;  %v6456_v10 = vld [vmem:[%s9898_s1 + $0xb24] sm:$0xf]  ;;  %v5480_v11 = vld [vmem:[%s9898_s1 + $0xb30] sm:$0xf0]  ;;  %v5355_v16 = vor.u32 %v6424_v8, %v5352_v9 }
  0xd7   :  { %3494 = vmatpush.bf16.msra.mxu1 %v5259_v43  ;;  %v6356_v13 = vld [vmem:[%s9898_s1 + $0x804] sm:$0xf]  ;;  %v5080_v14 = vld [vmem:[%s9898_s1 + $0x810] sm:$0xf0]  ;;  %v5483_v24 = vor.u32 %v6456_v10, %v5480_v11 }
  0xd8   :  { %3507 = vmatpush.bf16.msra.mxu2 %v5387_v45  ;;  %v6388_v17 = vld [vmem:[%s9898_s1 + $0x904] sm:$0xf]  ;;  %v5208_v18 = vld [vmem:[%s9898_s1 + $0x910] sm:$0xf0]  ;;  %v5083_v39 = vor.u32 %v6356_v13, %v5080_v14 }
  0xd9   :  { %3520 = vmatpush.bf16.msra.mxu3 %v5515_v50  ;;  %v6420_v19 = vld [vmem:[%s9898_s1 + $0xa04] sm:$0xf]  ;;  %v5336_v26 = vld [vmem:[%s9898_s1 + $0xa10] sm:$0xf0]  ;;  %v5211_v46 = vor.u32 %v6388_v17, %v5208_v18 }
  0xda   :  { %3482 = vmatpush.bf16.msra.mxu0 %v5115_v58  ;;  %v6452_v27 = vld [vmem:[%s9898_s1 + $0xb04] sm:$0xf]  ;;  %v5464_v32 = vld [vmem:[%s9898_s1 + $0xb10] sm:$0xf0]  ;;  %v5339_v47 = vor.u32 %v6420_v19, %v5336_v26 }
  0xdb   :  { %3495 = vmatpush.bf16.msra.mxu1 %v5243_v61  ;;  %v6512_v36 = vld [vmem:[%s9898_s1 + $0xce4] sm:$0xf]  ;;  %v5704_v37 = vld [vmem:[%s9898_s1 + $0xcf0] sm:$0xf0]  ;;  %v5467_v50 = vor.u32 %v6452_v27, %v5464_v32 }
  0xdc   :  { %3508 = vmatpush.bf16.msra.mxu2 %v5371_v62  ;;  %v6544_v2 = vld [vmem:[%s9898_s1 + $0xde4] sm:$0xf]  ;;  %v5832_v40 = vld [vmem:[%s9898_s1 + $0xdf0] sm:$0xf0]  ;;  %v5707_v51 = vor.u32 %v6512_v36, %v5704_v37 }
  0xdd   :  { %3521 = vmatpush.bf16.msra.mxu3 %v5499_v5  ;;  %v6576_v43 = vld [vmem:[%s9898_s1 + $0xee4] sm:$0xf]  ;;  %v5960_v45 = vld [vmem:[%s9898_s1 + $0xef0] sm:$0xf0]  ;;  %v5835_v52 = vor.u32 %v6544_v2, %v5832_v40 }
  0xde   :  { %3483 = vmatpush.bf16.msra.mxu0 %v5099_v12  ;;  %v6608_v48 = vld [vmem:[%s9898_s1 + $0xfe4] sm:$0xf]  ;;  %v6088_v49 = vld [vmem:[%s9898_s1 + $0xff0] sm:$0xf0]  ;;  %v5963_v53 = vor.u32 %v6576_v43, %v5960_v45 }
  0xdf   :  { %3496 = vmatpush.bf16.msra.mxu1 %v5227_v15  ;;  %v6508_v54 = vld [vmem:[%s9898_s1 + $0xcc4] sm:$0xf]  ;;  %v5688_v55 = vld [vmem:[%s9898_s1 + $0xcd0] sm:$0xf0]  ;;  %v6091_v57 = vor.u32 %v6608_v48, %v6088_v49 }
  0xe0   :  { %3509 = vmatpush.bf16.msra.mxu2 %v5355_v16  ;;  %v6540_v56 = vld [vmem:[%s9898_s1 + $0xdc4] sm:$0xf]  ;;  %v5816_v58 = vld [vmem:[%s9898_s1 + $0xdd0] sm:$0xf0]  ;;  %v5691_v0 = vor.u32 %v6508_v54, %v5688_v55 }
  0xe1   :  { %3522 = vmatpush.bf16.msra.mxu3 %v5483_v24  ;;  %v6572_v60 = vld [vmem:[%s9898_s1 + $0xec4] sm:$0xf]  ;;  %v5944_v61 = vld [vmem:[%s9898_s1 + $0xed0] sm:$0xf0]  ;;  %v5819_v1 = vor.u32 %v6540_v56, %v5816_v58 }
  0xe2   :  { %3484 = vmatpush.bf16.msra.mxu0 %v5083_v39  ;;  %v6604_v62 = vld [vmem:[%s9898_s1 + $0xfc4] sm:$0xf]  ;;  %v6072_v63 = vld [vmem:[%s9898_s1 + $0xfd0] sm:$0xf0]  ;;  %v5947_v3 = vor.u32 %v6572_v60, %v5944_v61 }
  0xe3   :  { %3497 = vmatpush.bf16.msra.mxu1 %v5211_v46  ;;  %v6504_v5 = vld [vmem:[%s9898_s1 + $0xca4] sm:$0xf]  ;;  %v5672_v7 = vld [vmem:[%s9898_s1 + $0xcb0] sm:$0xf0]  ;;  %v6075_v9 = vor.u32 %v6604_v62, %v6072_v63 }
  0xe4   :  { %3510 = vmatpush.bf16.msra.mxu2 %v5339_v47  ;;  %v6536_v8 = vld [vmem:[%s9898_s1 + $0xda4] sm:$0xf]  ;;  %v5800_v10 = vld [vmem:[%s9898_s1 + $0xdb0] sm:$0xf0]  ;;  %v5675_v15 = vor.u32 %v6504_v5, %v5672_v7  ;;  %v3278_v34 = vpop.f32.mrf.mxu0 }
  0xe5   :  { %3523 = vmatpush.bf16.msra.mxu3 %v5467_v50  ;;  %3485 = vmatmul.bf16.vlgmr.msra.gmra.mxu0 %v7290_v25  ;;  %v6568_v11 = vld [vmem:[%s9898_s1 + $0xea4] sm:$0xf]  ;;  %v5928_v12 = vld [vmem:[%s9898_s1 + $0xeb0] sm:$0xf0]  ;;  %v5803_v16 = vor.u32 %v6536_v8, %v5800_v10  ;;  %v3279_v2 = vadd.f32 %v3278_v34, %v8018_v59  ;;  %v3291_v40 = vpop.f32.mrf.mxu1 }
  0xe6   :  { %3529 = vmatpush.bf16.msrb.mxu0 %v5707_v51  ;;  %3498 = vmatmul.bf16.vlgmr.msra.gmra.mxu1 %v7303_v30  ;;  %v6600_v13 = vld [vmem:[%s9898_s1 + $0xfa4] sm:$0xf]  ;;  %v6056_v14 = vld [vmem:[%s9898_s1 + $0xfb0] sm:$0xf0]  ;;  %v5931_v17 = vor.u32 %v6568_v11, %v5928_v12 }
  0xe7   :  { %3542 = vmatpush.bf16.msrb.mxu1 %v5835_v52  ;;  %3511 = vmatmul.bf16.vlgmr.msra.gmra.mxu2 %v7301_v29  ;;  %v6500_v18 = vld [vmem:[%s9898_s1 + $0xc84] sm:$0xf]  ;;  %v5656_v19 = vld [vmem:[%s9898_s1 + $0xc90] sm:$0xf0]  ;;  %v6059_v24 = vor.u32 %v6600_v13, %v6056_v14  ;;  %v3292_v49 = vadd.f32 %v3291_v40, %v3279_v2 }
  0xe8   :  { %3555 = vmatpush.bf16.msrb.mxu2 %v5963_v53  ;;  %3524 = vmatmul.bf16.vlgmr.msra.gmra.mxu3 %v7311_v33  ;;  %v6532_v22 = vld [vmem:[%s9898_s1 + $0xd84] sm:$0xf]  ;;  %v5784_v26 = vld [vmem:[%s9898_s1 + $0xd90] sm:$0xf0]  ;;  %v5659_v39 = vor.u32 %v6500_v18, %v5656_v19 }
  0xe9   :  { %3568 = vmatpush.bf16.msrb.mxu3 %v6091_v57  ;;  %v6564_v27 = vld [vmem:[%s9898_s1 + $0xe84] sm:$0xf]  ;;  %v5912_v32 = vld [vmem:[%s9898_s1 + $0xe90] sm:$0xf0]  ;;  %v5787_v43 = vor.u32 %v6532_v22, %v5784_v26  ;;  %v3304_v63 = vpop.f32.mrf.mxu2 }
  0xea   :  { %3530 = vmatpush.bf16.msrb.mxu0 %v5691_v0  ;;  %v6596_v36 = vld [vmem:[%s9898_s1 + $0xf84] sm:$0xf]  ;;  %v6040_v37 = vld [vmem:[%s9898_s1 + $0xf90] sm:$0xf0]  ;;  %v5915_v45 = vor.u32 %v6564_v27, %v5912_v32  ;;  %v3305_v5 = vadd.f32 %v3304_v63, %v3292_v49 }
  0xeb   :  { %3543 = vmatpush.bf16.msrb.mxu1 %v5819_v1  ;;  %v6496_v46 = vld [vmem:[%s9898_s1 + $0xc64] sm:$0xf]  ;;  %v5640_v47 = vld [vmem:[%s9898_s1 + $0xc70] sm:$0xf0]  ;;  %v6043_v59 = vor.u32 %v6596_v36, %v6040_v37 }
  0xec   :  { %3556 = vmatpush.bf16.msrb.mxu2 %v5947_v3  ;;  %v6528_v48 = vld [vmem:[%s9898_s1 + $0xd64] sm:$0xf]  ;;  %v5768_v50 = vld [vmem:[%s9898_s1 + $0xd70] sm:$0xf0]  ;;  %v5643_v55 = vor.u32 %v6496_v46, %v5640_v47  ;;  %v3280_v10 = vpop.f32.mrf.mxu0 }
  0xed   :  { %3569 = vmatpush.bf16.msrb.mxu3 %v6075_v9  ;;  %v6560_v51 = vld [vmem:[%s9898_s1 + $0xe64] sm:$0xf]  ;;  %v5896_v52 = vld [vmem:[%s9898_s1 + $0xe70] sm:$0xf0]  ;;  %v5771_v56 = vor.u32 %v6528_v48, %v5768_v50  ;;  %v3317_v7 = vpop.f32.mrf.mxu3  ;;  %v3293_v12 = vpop.f32.mrf.mxu1  ;;  %v4174_v50 = vld [vmem:[%s9898_s1 + $0xe8] sm:$0xf] }
  0xee   :  { %3531 = vmatpush.bf16.msrb.mxu0 %v5675_v15  ;;  %v6592_v53 = vld [vmem:[%s9898_s1 + $0xf64] sm:$0xf]  ;;  %v6024_v54 = vld [vmem:[%s9898_s1 + $0xf70] sm:$0xf0]  ;;  %v5899_v57 = vor.u32 %v6560_v51, %v5896_v52  ;;  %v8217_v13 = vadd.f32 %v3317_v7, %v3305_v5  ;;  %v6131_v51 = vld [vmem:[%s9898_s1 + $0xf4] sm:$0xf0] }
  0xef   :  { %3544 = vmatpush.bf16.msrb.mxu1 %v5803_v16  ;;  %v6492_v58 = vld [vmem:[%s9898_s1 + $0xc44] sm:$0xf]  ;;  %v5624_v60 = vld [vmem:[%s9898_s1 + $0xc50] sm:$0xf0]  ;;  %v6027_v62 = vor.u32 %v6592_v53, %v6024_v54  ;;  %v4302_v52 = vld [vmem:[%s9898_s1 + $0x1e8] sm:$0xf] }
  0xf0   :  { %3557 = vmatpush.bf16.msrb.mxu2 %v5931_v17  ;;  %v6524_v61 = vld [vmem:[%s9898_s1 + $0xd44] sm:$0xf]  ;;  %v5752_v0 = vld [vmem:[%s9898_s1 + $0xd50] sm:$0xf0]  ;;  %v5627_v11 = vor.u32 %v6492_v58, %v5624_v60  ;;  %v4158_v5 = vld [vmem:[%s9898_s1 + $0xc8] sm:$0xf] }
  0xf1   :  { %3570 = vmatpush.bf16.msrb.mxu3 %v6059_v24  ;;  %v6556_v1 = vld [vmem:[%s9898_s1 + $0xe44] sm:$0xf]  ;;  %v5880_v3 = vld [vmem:[%s9898_s1 + $0xe50] sm:$0xf0]  ;;  %v5755_v14 = vor.u32 %v6524_v61, %v5752_v0  ;;  %v3306_v49 = vpop.f32.mrf.mxu2  ;;  %v4558_v61 = vld [vmem:[%s9898_s1 + $0x3e8] sm:$0xf]  ;;  %v4175_v0 = vor.u32 %v6131_v51, %v4174_v50 }
  0xf2   :  { %3532 = vmatpush.bf16.msrb.mxu0 %v5659_v39  ;;  %v6588_v8 = vld [vmem:[%s9898_s1 + $0xf44] sm:$0xf]  ;;  %v6008_v9 = vld [vmem:[%s9898_s1 + $0xf50] sm:$0xf0]  ;;  %v5883_v15 = vor.u32 %v6556_v1, %v5880_v3  ;;  %v6127_v7 = vld [vmem:[%s9898_s1 + $0xd4] sm:$0xf0] }
  0xf3   :  { %3545 = vmatpush.bf16.msrb.mxu1 %v5787_v43  ;;  %v6488_v16 = vld [vmem:[%s9898_s1 + $0xc24] sm:$0xf]  ;;  %v5608_v17 = vld [vmem:[%s9898_s1 + $0xc30] sm:$0xf0]  ;;  %v6011_v19 = vor.u32 %v6588_v8, %v6008_v9  ;;  %v4286_v8 = vld [vmem:[%s9898_s1 + $0x1c8] sm:$0xf] }
  0xf4   :  { %3558 = vmatpush.bf16.msrb.mxu2 %v5915_v45  ;;  %v6520_v18 = vld [vmem:[%s9898_s1 + $0xd24] sm:$0xf]  ;;  %v5736_v22 = vld [vmem:[%s9898_s1 + $0xd30] sm:$0xf0]  ;;  %v5611_v34 = vor.u32 %v6488_v16, %v5608_v17  ;;  %v6159_v10 = vld [vmem:[%s9898_s1 + $0x1d4] sm:$0xf0]  ;;  %v4159_v16 = vor.u32 %v6127_v7, %v4158_v5 }
  0xf5   :  { %3571 = vmatpush.bf16.msrb.mxu3 %v6043_v59  ;;  %v6552_v24 = vld [vmem:[%s9898_s1 + $0xe24] sm:$0xf]  ;;  %v5864_v26 = vld [vmem:[%s9898_s1 + $0xe30] sm:$0xf0]  ;;  %v5739_v2 = vor.u32 %v6520_v18, %v5736_v22  ;;  %v3319_v53 = vpop.f32.mrf.mxu3  ;;  %v6191_v12 = vld [vmem:[%s9898_s1 + $0x2d4] sm:$0xf0]  ;;  %v4287_v17 = vor.u32 %v6159_v10, %v4286_v8 }
  0xf6   :  { %3533 = vmatpush.bf16.msrb.mxu0 %v5643_v55  ;;  %v6584_v27 = vld [vmem:[%s9898_s1 + $0xf24] sm:$0xf]  ;;  %v5992_v32 = vld [vmem:[%s9898_s1 + $0xf30] sm:$0xf0]  ;;  %v5867_v39 = vor.u32 %v6552_v24, %v5864_v26  ;;  %v6163_v55 = vld [vmem:[%s9898_s1 + $0x1f4] sm:$0xf0] }
  0xf7   :  { %3546 = vmatpush.bf16.msrb.mxu1 %v5771_v56  ;;  %v6484_v36 = vld [vmem:[%s9898_s1 + $0xc04] sm:$0xf]  ;;  %v5592_v37 = vld [vmem:[%s9898_s1 + $0xc10] sm:$0xf0]  ;;  %v5995_v46 = vor.u32 %v6584_v27, %v5992_v32  ;;  %v4430_v56 = vld [vmem:[%s9898_s1 + $0x2e8] sm:$0xf]  ;;  %v4303_v1 = vor.u32 %v6163_v55, %v4302_v52 }
  0xf8   :  { %3559 = vmatpush.bf16.msrb.mxu2 %v5899_v57  ;;  %v6516_v40 = vld [vmem:[%s9898_s1 + $0xd04] sm:$0xf]  ;;  %v5720_v43 = vld [vmem:[%s9898_s1 + $0xd10] sm:$0xf0]  ;;  %v5595_v54 = vor.u32 %v6484_v36, %v5592_v37  ;;  %v6195_v57 = vld [vmem:[%s9898_s1 + $0x2f4] sm:$0xf0] }
  0xf9   :  { %3572 = vmatpush.bf16.msrb.mxu3 %v6027_v62  ;;  %v6548_v45 = vld [vmem:[%s9898_s1 + $0xe04] sm:$0xf]  ;;  %v5848_v47 = vld [vmem:[%s9898_s1 + $0xe10] sm:$0xf0]  ;;  %v5723_v58 = vor.u32 %v6516_v40, %v5720_v43  ;;  %v6227_v62 = vld [vmem:[%s9898_s1 + $0x3f4] sm:$0xf0]  ;;  %v4431_v3 = vor.u32 %v6195_v57, %v4430_v56 }
  0xfa   :  { %3534 = vmatpush.bf16.msrb.mxu0 %v5627_v11  ;;  %v6580_v48 = vld [vmem:[%s9898_s1 + $0xf04] sm:$0xf]  ;;  %v5976_v59 = vld [vmem:[%s9898_s1 + $0xf10] sm:$0xf0]  ;;  %v5851_v60 = vor.u32 %v6548_v45, %v5848_v47  ;;  %v4559_v9 = vor.u32 %v6227_v62, %v4558_v61  ;;  %v4414_v11 = vld [vmem:[%s9898_s1 + $0x2c8] sm:$0xf] }
  0xfb   :  { %3547 = vmatpush.bf16.msrb.mxu1 %v5755_v14  ;;  %v5979_v63 = vor.u32 %v6580_v48, %v5976_v59  ;;  %v4542_v14 = vld [vmem:[%s9898_s1 + $0x3c8] sm:$0xf]  ;;  %v4415_v18 = vor.u32 %v6191_v12, %v4414_v11  ;;  %v6123_v22 = vld [vmem:[%s9898_s1 + $0xb4] sm:$0xf0] }
  0xfc   :  { %3560 = vmatpush.bf16.msrb.mxu2 %v5883_v15  ;;  %v6223_v15 = vld [vmem:[%s9898_s1 + $0x3d4] sm:$0xf0]  ;;  %v4270_v24 = vld [vmem:[%s9898_s1 + $0x1a8] sm:$0xf] }
  0xfd   :  { %3573 = vmatpush.bf16.msrb.mxu3 %v6011_v19  ;;  %v4142_v19 = vld [vmem:[%s9898_s1 + $0xa8] sm:$0xf]  ;;  %v4543_v26 = vor.u32 %v6223_v15, %v4542_v14  ;;  %v6155_v27 = vld [vmem:[%s9898_s1 + $0x1b4] sm:$0xf0] }
  0xfe   :  { %3535 = vmatpush.bf16.msrb.mxu0 %v5611_v34  ;;  %v4398_v32 = vld [vmem:[%s9898_s1 + $0x2a8] sm:$0xf]  ;;  %v6187_v34 = vld [vmem:[%s9898_s1 + $0x2b4] sm:$0xf0] }
  0xff   :  { %3548 = vmatpush.bf16.msrb.mxu1 %v5739_v2  ;;  %v4526_v36 = vld [vmem:[%s9898_s1 + $0x3a8] sm:$0xf]  ;;  %v6219_v37 = vld [vmem:[%s9898_s1 + $0x3b4] sm:$0xf0]  ;;  %v4143_v2 = vor.u32 %v6123_v22, %v4142_v19  ;;  %v4399_v40 = vor.u32 %v6187_v34, %v4398_v32 }
 0x100   :  { %3561 = vmatpush.bf16.msrb.mxu2 %v5867_v39  ;;  %v4271_v39 = vor.u32 %v6155_v27, %v4270_v24  ;;  %v4126_v43 = vld [vmem:[%s9898_s1 + $0x88] sm:$0xf]  ;;  %v6119_v45 = vld [vmem:[%s9898_s1 + $0x94] sm:$0xf0]  ;;  %v4527_v47 = vor.u32 %v6219_v37, %v4526_v36 }
 0x101   :  { %3574 = vmatpush.bf16.msrb.mxu3 %v5995_v46  ;;  %v4254_v46 = vld [vmem:[%s9898_s1 + $0x188] sm:$0xf]  ;;  %v6151_v48 = vld [vmem:[%s9898_s1 + $0x194] sm:$0xf0] }
 0x102   :  { %3536 = vmatpush.bf16.msrb.mxu0 %v5595_v54  ;;  %v4382_v59 = vld [vmem:[%s9898_s1 + $0x288] sm:$0xf]  ;;  %v6183_v49 = vld [vmem:[%s9898_s1 + $0x294] sm:$0xf0]  ;;  %v4127_v54 = vor.u32 %v6119_v45, %v4126_v43  ;;  %v4255_v56 = vor.u32 %v6151_v48, %v4254_v46 }
 0x103   :  { %3549 = vmatpush.bf16.msrb.mxu1 %v5723_v58  ;;  %v4510_v51 = vld [vmem:[%s9898_s1 + $0x388] sm:$0xf]  ;;  %v6215_v52 = vld [vmem:[%s9898_s1 + $0x394] sm:$0xf0]  ;;  %v3343_v55 = vpop.f32.mrf.mxu1  ;;  %v4383_v57 = vor.u32 %v6183_v49, %v4382_v59 }
 0x104   :  { %3562 = vmatpush.bf16.msrb.mxu2 %v5851_v60  ;;  %v3330_v50 = vpop.f32.mrf.mxu0  ;;  %v4110_v58 = vld [vmem:[%s9898_s1 + $0x68] sm:$0xf]  ;;  %v6115_v60 = vld [vmem:[%s9898_s1 + $0x74] sm:$0xf0] }
 0x105   :  { %3575 = vmatpush.bf16.msrb.mxu3 %v5979_v63  ;;  %3537 = vmatmul.bf16.vlgmr.msrb.gmra.mxu0 %v7500_v23  ;;  %v3331_v53 = vadd.f32 %v3330_v50, %v8217_v13  ;;  %v4238_v61 = vld [vmem:[%s9898_s1 + $0x168] sm:$0xf]  ;;  %v4511_v13 = vor.u32 %v6215_v52, %v4510_v51  ;;  %v6147_v63 = vld [vmem:[%s9898_s1 + $0x174] sm:$0xf0]  ;;  %v4111_v7 = vor.u32 %v6115_v60, %v4110_v58 }
 0x106   :  { %3581 = vmatpush.bf16.msra.mxu0 %v4175_v0  ;;  %3550 = vmatmul.bf16.vlgmr.msrb.gmra.mxu1 %v7513_v31  ;;  %v4366_v0 = vld [vmem:[%s9898_s1 + $0x268] sm:$0xf]  ;;  %v6211_v5 = vld [vmem:[%s9898_s1 + $0x374] sm:$0xf0]  ;;  %v4239_v8 = vor.u32 %v6147_v63, %v4238_v61 }
 0x107   :  { %3594 = vmatpush.bf16.msra.mxu1 %v4303_v1  ;;  %3563 = vmatmul.bf16.vlgmr.msrb.gmra.mxu2 %v7511_v28  ;;  %v3344_v62 = vadd.f32 %v3343_v55, %v3331_v53  ;;  %v6179_v1 = vld [vmem:[%s9898_s1 + $0x274] sm:$0xf0]  ;;  %v4094_v10 = vld [vmem:[%s9898_s1 + $0x48] sm:$0xf] }
 0x108   :  { %3607 = vmatpush.bf16.msra.mxu2 %v4431_v3  ;;  %3576 = vmatmul.bf16.vlgmr.msrb.gmra.mxu3 %v7521_v35  ;;  %v4494_v3 = vld [vmem:[%s9898_s1 + $0x368] sm:$0xf]  ;;  %v6111_v11 = vld [vmem:[%s9898_s1 + $0x54] sm:$0xf0] }
 0x109   :  { %3620 = vmatpush.bf16.msra.mxu3 %v4559_v9  ;;  %v4367_v9 = vor.u32 %v6179_v1, %v4366_v0  ;;  %v4222_v12 = vld [vmem:[%s9898_s1 + $0x148] sm:$0xf]  ;;  %v4495_v14 = vor.u32 %v6211_v5, %v4494_v3  ;;  %v4095_v32 = vor.u32 %v6111_v11, %v4094_v10  ;;  %v6139_v46 = vld [vmem:[%s9898_s1 + $0x134] sm:$0xf0] }
 0x10a   :  { %3582 = vmatpush.bf16.msra.mxu0 %v4159_v16  ;;  %v6143_v16 = vld [vmem:[%s9898_s1 + $0x154] sm:$0xf0]  ;;  %v4478_v24 = vld [vmem:[%s9898_s1 + $0x348] sm:$0xf] }
 0x10b   :  { %3595 = vmatpush.bf16.msra.mxu1 %v4287_v17  ;;  %v4350_v17 = vld [vmem:[%s9898_s1 + $0x248] sm:$0xf]  ;;  %v3369_v22 = vpop.f32.mrf.mxu3  ;;  %v3345_v34 = vpop.f32.mrf.mxu1  ;;  %v4223_v37 = vor.u32 %v6143_v16, %v4222_v12  ;;  %v6171_v48 = vld [vmem:[%s9898_s1 + $0x234] sm:$0xf0] }
 0x10c   :  { %3608 = vmatpush.bf16.msra.mxu2 %v4415_v18  ;;  %v3356_v15 = vpop.f32.mrf.mxu2  ;;  %v6175_v18 = vld [vmem:[%s9898_s1 + $0x254] sm:$0xf0]  ;;  %v3332_v27 = vpop.f32.mrf.mxu0  ;;  %v4206_v43 = vld [vmem:[%s9898_s1 + $0x128] sm:$0xf] }
 0x10d   :  { %3621 = vmatpush.bf16.msra.mxu3 %v4543_v26  ;;  %v3357_v19 = vadd.f32 %v3356_v15, %v3344_v62  ;;  %v6207_v26 = vld [vmem:[%s9898_s1 + $0x354] sm:$0xf0]  ;;  %v4462_v59 = vld [vmem:[%s9898_s1 + $0x328] sm:$0xf]  ;;  %v4207_v53 = vor.u32 %v6139_v46, %v4206_v43 }
 0x10e   :  { %3583 = vmatpush.bf16.msra.mxu0 %v4143_v2  ;;  %v4351_v2 = vor.u32 %v6175_v18, %v4350_v17  ;;  %v4479_v45 = vor.u32 %v6207_v26, %v4478_v24  ;;  %v6203_v49 = vld [vmem:[%s9898_s1 + $0x334] sm:$0xf0]  ;;  %v4062_v51 = vld [vmem:[%s9898_s1 + $0x8] sm:$0xf] }
 0x10f   :  { %3596 = vmatpush.bf16.msra.mxu1 %v4271_v39  ;;  %v8416_v36 = vadd.f32 %v3369_v22, %v3357_v19  ;;  %v4078_v39 = vld [vmem:[%s9898_s1 + $0x28] sm:$0xf]  ;;  %v6103_v52 = vld [vmem:[%s9898_s1 + $0x14] sm:$0xf0]  ;;  %v4463_v58 = vor.u32 %v6203_v49, %v4462_v59 }
 0x110   :  { %3609 = vmatpush.bf16.msra.mxu2 %v4399_v40  ;;  %v6107_v40 = vld [vmem:[%s9898_s1 + $0x34] sm:$0xf0]  ;;  %v4190_v55 = vld [vmem:[%s9898_s1 + $0x108] sm:$0xf]  ;;  %v4063_v5 = vor.u32 %v6103_v52, %v4062_v51 }
 0x111   :  { %3622 = vmatpush.bf16.msra.mxu3 %v4527_v47  ;;  %v4334_v47 = vld [vmem:[%s9898_s1 + $0x228] sm:$0xf]  ;;  %v4079_v50 = vor.u32 %v6107_v40, %v4078_v39  ;;  %v6167_v60 = vld [vmem:[%s9898_s1 + $0x214] sm:$0xf0] }
 0x112   :  { %3584 = vmatpush.bf16.msra.mxu0 %v4127_v54  ;;  %v4335_v54 = vor.u32 %v6171_v48, %v4334_v47  ;;  %v4446_v61 = vld [vmem:[%s9898_s1 + $0x308] sm:$0xf]  ;;  %v6259_v0 = vld [vmem:[%s9898_s1 + $0x4f4] sm:$0xf0] }
 0x113   :  { %3597 = vmatpush.bf16.msra.mxu1 %v4255_v56  ;;  %v6135_v56 = vld [vmem:[%s9898_s1 + $0x114] sm:$0xf0]  ;;  %v4686_v63 = vld [vmem:[%s9898_s1 + $0x4e8] sm:$0xf]  ;;  %v3371_v3 = vpop.f32.mrf.mxu3 }
 0x114   :  { %3610 = vmatpush.bf16.msra.mxu2 %v4383_v57  ;;  %v4318_v57 = vld [vmem:[%s9898_s1 + $0x208] sm:$0xf]  ;;  %v3358_v62 = vpop.f32.mrf.mxu2  ;;  %v4191_v10 = vor.u32 %v6135_v56, %v4190_v55  ;;  %v4687_v16 = vor.u32 %v6259_v0, %v4686_v63  ;;  %v6255_v22 = vld [vmem:[%s9898_s1 + $0x4d4] sm:$0xf0] }
 0x115   :  { %3623 = vmatpush.bf16.msra.mxu3 %v4511_v13  ;;  %v6199_v13 = vld [vmem:[%s9898_s1 + $0x314] sm:$0xf0]  ;;  %v4814_v1 = vld [vmem:[%s9898_s1 + $0x5e8] sm:$0xf]  ;;  %v4319_v11 = vor.u32 %v6167_v60, %v4318_v57 }
 0x116   :  { %3585 = vmatpush.bf16.msra.mxu0 %v4111_v7  ;;  %v6291_v7 = vld [vmem:[%s9898_s1 + $0x5f4] sm:$0xf0]  ;;  %v5070_v12 = vld [vmem:[%s9898_s1 + $0x7e8] sm:$0xf]  ;;  %v4447_v15 = vor.u32 %v6199_v13, %v4446_v61 }
 0x117   :  { %3598 = vmatpush.bf16.msra.mxu1 %v4239_v8  ;;  %v4942_v8 = vld [vmem:[%s9898_s1 + $0x6e8] sm:$0xf]  ;;  %v4815_v17 = vor.u32 %v6291_v7, %v4814_v1  ;;  %v6287_v27 = vld [vmem:[%s9898_s1 + $0x5d4] sm:$0xf0] }
 0x118   :  { %3611 = vmatpush.bf16.msra.mxu2 %v4367_v9  ;;  %v6323_v9 = vld [vmem:[%s9898_s1 + $0x6f4] sm:$0xf0]  ;;  %v4670_v19 = vld [vmem:[%s9898_s1 + $0x4c8] sm:$0xf] }
 0x119   :  { %3624 = vmatpush.bf16.msra.mxu3 %v4495_v14  ;;  %v6355_v14 = vld [vmem:[%s9898_s1 + $0x7f4] sm:$0xf0]  ;;  %v4943_v18 = vor.u32 %v6323_v9, %v4942_v8  ;;  %v4798_v24 = vld [vmem:[%s9898_s1 + $0x5c8] sm:$0xf]  ;;  %v4671_v39 = vor.u32 %v6255_v22, %v4670_v19 }
 0x11a   :  { %3586 = vmatpush.bf16.msra.mxu0 %v4095_v32  ;;  %v5071_v26 = vor.u32 %v6355_v14, %v5070_v12  ;;  %v4926_v32 = vld [vmem:[%s9898_s1 + $0x6c8] sm:$0xf]  ;;  %v6319_v34 = vld [vmem:[%s9898_s1 + $0x6d4] sm:$0xf0]  ;;  %v4799_v40 = vor.u32 %v6287_v27, %v4798_v24 }
 0x11b   :  { %3599 = vmatpush.bf16.msra.mxu1 %v4223_v37  ;;  %v5054_v37 = vld [vmem:[%s9898_s1 + $0x7c8] sm:$0xf]  ;;  %v4927_v43 = vor.u32 %v6319_v34, %v4926_v32  ;;  %v6251_v46 = vld [vmem:[%s9898_s1 + $0x4b4] sm:$0xf0] }
 0x11c   :  { %3612 = vmatpush.bf16.msra.mxu2 %v4351_v2  ;;  %v6351_v2 = vld [vmem:[%s9898_s1 + $0x7d4] sm:$0xf0]  ;;  %v4782_v47 = vld [vmem:[%s9898_s1 + $0x5a8] sm:$0xf] }
 0x11d   :  { %3625 = vmatpush.bf16.msra.mxu3 %v4479_v45  ;;  %v4654_v45 = vld [vmem:[%s9898_s1 + $0x4a8] sm:$0xf]  ;;  %v5055_v48 = vor.u32 %v6351_v2, %v5054_v37  ;;  %v6283_v59 = vld [vmem:[%s9898_s1 + $0x5b4] sm:$0xf0] }
 0x11e   :  { %3587 = vmatpush.bf16.msra.mxu0 %v4079_v50  ;;  %v4910_v49 = vld [vmem:[%s9898_s1 + $0x6a8] sm:$0xf]  ;;  %v6315_v50 = vld [vmem:[%s9898_s1 + $0x6b4] sm:$0xf0] }
 0x11f   :  { %3600 = vmatpush.bf16.msra.mxu1 %v4207_v53  ;;  %v5038_v51 = vld [vmem:[%s9898_s1 + $0x7a8] sm:$0xf]  ;;  %v6347_v52 = vld [vmem:[%s9898_s1 + $0x7b4] sm:$0xf0]  ;;  %v4655_v53 = vor.u32 %v6251_v46, %v4654_v45  ;;  %v4911_v55 = vor.u32 %v6315_v50, %v4910_v49 }
 0x120   :  { %3613 = vmatpush.bf16.msra.mxu2 %v4335_v54  ;;  %v4783_v54 = vor.u32 %v6283_v59, %v4782_v47  ;;  %v4638_v56 = vld [vmem:[%s9898_s1 + $0x488] sm:$0xf]  ;;  %v6247_v57 = vld [vmem:[%s9898_s1 + $0x494] sm:$0xf0]  ;;  %v5039_v60 = vor.u32 %v6347_v52, %v5038_v51 }
 0x121   :  { %3626 = vmatpush.bf16.msra.mxu3 %v4463_v58  ;;  %v4766_v58 = vld [vmem:[%s9898_s1 + $0x588] sm:$0xf]  ;;  %v6279_v61 = vld [vmem:[%s9898_s1 + $0x594] sm:$0xf0]  ;;  %v4639_v1 = vor.u32 %v6247_v57, %v4638_v56 }
 0x122   :  { %3588 = vmatpush.bf16.msra.mxu0 %v4063_v5  ;;  %v4894_v13 = vld [vmem:[%s9898_s1 + $0x688] sm:$0xf]  ;;  %v6311_v62 = vld [vmem:[%s9898_s1 + $0x694] sm:$0xf0]  ;;  %v3382_v3 = vpop.f32.mrf.mxu0  ;;  %v4767_v5 = vor.u32 %v6279_v61, %v4766_v58 }
 0x123   :  { %3601 = vmatpush.bf16.msra.mxu1 %v4191_v10  ;;  %v5022_v63 = vld [vmem:[%s9898_s1 + $0x788] sm:$0xf]  ;;  %v6343_v0 = vld [vmem:[%s9898_s1 + $0x794] sm:$0xf0]  ;;  %v4895_v7 = vor.u32 %v6311_v62, %v4894_v13 }
 0x124   :  { %3614 = vmatpush.bf16.msra.mxu2 %v4319_v11  ;;  %v4622_v8 = vld [vmem:[%s9898_s1 + $0x468] sm:$0xf]  ;;  %v6243_v9 = vld [vmem:[%s9898_s1 + $0x474] sm:$0xf0]  ;;  %v3395_v11 = vpop.f32.mrf.mxu1  ;;  %v5023_v12 = vor.u32 %v6343_v0, %v5022_v63 }
 0x125   :  { %3627 = vmatpush.bf16.msra.mxu3 %v4447_v15  ;;  %3589 = vmatmul.bf16.vlgmr.msra.gmra.mxu0 %v6938_v20  ;;  %v4750_v10 = vld [vmem:[%s9898_s1 + $0x568] sm:$0xf]  ;;  %v6275_v14 = vld [vmem:[%s9898_s1 + $0x574] sm:$0xf0]  ;;  %v4623_v22 = vor.u32 %v6243_v9, %v4622_v8 }
 0x126   :  { %3633 = vmatpush.bf16.msrb.mxu0 %v4687_v16  ;;  %3602 = vmatmul.bf16.vlgmr.msra.gmra.mxu1 %v6941_v21  ;;  %v4878_v15 = vld [vmem:[%s9898_s1 + $0x668] sm:$0xf]  ;;  %v6307_v16 = vld [vmem:[%s9898_s1 + $0x674] sm:$0xf0]  ;;  %v4751_v24 = vor.u32 %v6275_v14, %v4750_v10 }
 0x127   :  { %3646 = vmatpush.bf16.msrb.mxu1 %v4815_v17  ;;  %3615 = vmatmul.bf16.vlgmr.msra.gmra.mxu2 %v6906_v4  ;;  %v3396_v17 = vadd.f32 %v3395_v11, %v3382_v3  ;;  %v6339_v19 = vld [vmem:[%s9898_s1 + $0x774] sm:$0xf0]  ;;  %v4606_v27 = vld [vmem:[%s9898_s1 + $0x448] sm:$0xf] }
 0x128   :  { %3659 = vmatpush.bf16.msrb.mxu2 %v4943_v18  ;;  %3628 = vmatmul.bf16.vlgmr.msra.gmra.mxu3 %v6911_v6  ;;  %v5006_v18 = vld [vmem:[%s9898_s1 + $0x768] sm:$0xf]  ;;  %v6239_v32 = vld [vmem:[%s9898_s1 + $0x454] sm:$0xf0] }
 0x129   :  { %3672 = vmatpush.bf16.msrb.mxu3 %v5071_v26  ;;  %v4879_v26 = vor.u32 %v6307_v16, %v4878_v15  ;;  %v4734_v34 = vld [vmem:[%s9898_s1 + $0x548] sm:$0xf]  ;;  %v5007_v2 = vor.u32 %v6339_v19, %v5006_v18  ;;  %v4607_v59 = vor.u32 %v6239_v32, %v4606_v27  ;;  %v6267_v58 = vld [vmem:[%s9898_s1 + $0x534] sm:$0xf0] }
 0x12a   :  { %3634 = vmatpush.bf16.msrb.mxu0 %v4671_v39  ;;  %v3408_v37 = vpop.f32.mrf.mxu2  ;;  %v6271_v39 = vld [vmem:[%s9898_s1 + $0x554] sm:$0xf0]  ;;  %v4990_v47 = vld [vmem:[%s9898_s1 + $0x748] sm:$0xf]  ;;  %v3384_v50 = vpop.f32.mrf.mxu0 }
 0x12b   :  { %3647 = vmatpush.bf16.msrb.mxu1 %v4799_v40  ;;  %v4862_v40 = vld [vmem:[%s9898_s1 + $0x648] sm:$0xf]  ;;  %v3409_v45 = vadd.f32 %v3408_v37, %v3396_v17  ;;  %v3421_v46 = vpop.f32.mrf.mxu3  ;;  %v4735_v51 = vor.u32 %v6271_v39, %v4734_v34  ;;  %v6299_v61 = vld [vmem:[%s9898_s1 + $0x634] sm:$0xf0] }
 0x12c   :  { %3660 = vmatpush.bf16.msrb.mxu2 %v4927_v43  ;;  %v6303_v43 = vld [vmem:[%s9898_s1 + $0x654] sm:$0xf0]  ;;  %v3397_v56 = vpop.f32.mrf.mxu1  ;;  %v4974_v13 = vld [vmem:[%s9898_s1 + $0x728] sm:$0xf] }
 0x12d   :  { %3673 = vmatpush.bf16.msrb.mxu3 %v5055_v48  ;;  %v6335_v48 = vld [vmem:[%s9898_s1 + $0x754] sm:$0xf0]  ;;  %v8614_v49 = vadd.f32 %v3421_v46, %v3409_v45  ;;  %v4863_v52 = vor.u32 %v6303_v43, %v4862_v40  ;;  %v4574_v0 = vld [vmem:[%s9898_s1 + $0x408] sm:$0xf] }
 0x12e   :  { %3635 = vmatpush.bf16.msrb.mxu0 %v4655_v53  ;;  %v4590_v53 = vld [vmem:[%s9898_s1 + $0x428] sm:$0xf]  ;;  %v4991_v57 = vor.u32 %v6335_v48, %v4990_v47  ;;  %v6331_v62 = vld [vmem:[%s9898_s1 + $0x734] sm:$0xf0] }
 0x12f   :  { %3648 = vmatpush.bf16.msrb.mxu1 %v4783_v54  ;;  %v6235_v54 = vld [vmem:[%s9898_s1 + $0x434] sm:$0xf0]  ;;  %v4830_v9 = vld [vmem:[%s9898_s1 + $0x608] sm:$0xf]  ;;  %v4975_v11 = vor.u32 %v6331_v62, %v4974_v13 }
 0x130   :  { %3661 = vmatpush.bf16.msrb.mxu2 %v4911_v55  ;;  %v4718_v55 = vld [vmem:[%s9898_s1 + $0x528] sm:$0xf]  ;;  %v4591_v63 = vor.u32 %v6235_v54, %v4590_v53  ;;  %v6263_v8 = vld [vmem:[%s9898_s1 + $0x514] sm:$0xf0] }
 0x131   :  { %3674 = vmatpush.bf16.msrb.mxu3 %v5039_v60  ;;  %v4846_v60 = vld [vmem:[%s9898_s1 + $0x628] sm:$0xf]  ;;  %v4719_v3 = vor.u32 %v6267_v58, %v4718_v55  ;;  %v6327_v15 = vld [vmem:[%s9898_s1 + $0x714] sm:$0xf0] }
 0x132   :  { %3636 = vmatpush.bf16.msrb.mxu0 %v4639_v1  ;;  %v6231_v1 = vld [vmem:[%s9898_s1 + $0x414] sm:$0xf0]  ;;  %v3410_v10 = vpop.f32.mrf.mxu2  ;;  %v4958_v14 = vld [vmem:[%s9898_s1 + $0x708] sm:$0xf] }
 0x133   :  { %3649 = vmatpush.bf16.msrb.mxu1 %v4767_v5  ;;  %v4847_v5 = vor.u32 %v6299_v61, %v4846_v60  ;;  %v3423_v16 = vpop.f32.mrf.mxu3  ;;  %v5198_v17 = vld [vmem:[%s9898_s1 + $0x8e8] sm:$0xf]  ;;  %v6387_v18 = vld [vmem:[%s9898_s1 + $0x8f4] sm:$0xf0]  ;;  %v4959_v39 = vor.u32 %v6327_v15, %v4958_v14 }
 0x134   :  { %3662 = vmatpush.bf16.msrb.mxu2 %v4895_v7  ;;  %v4702_v7 = vld [vmem:[%s9898_s1 + $0x508] sm:$0xf]  ;;  %v6451_v27 = vld [vmem:[%s9898_s1 + $0xaf4] sm:$0xf0]  ;;  %v5199_v40 = vor.u32 %v6387_v18, %v5198_v17 }
 0x135   :  { %3675 = vmatpush.bf16.msrb.mxu3 %v5023_v12  ;;  %v6295_v12 = vld [vmem:[%s9898_s1 + $0x614] sm:$0xf0]  ;;  %v5326_v19 = vld [vmem:[%s9898_s1 + $0x9e8] sm:$0xf]  ;;  %v4703_v32 = vor.u32 %v6263_v8, %v4702_v7 }
 0x136   :  { %3637 = vmatpush.bf16.msrb.mxu0 %v4623_v22  ;;  %v4575_v22 = vor.u32 %v6231_v1, %v4574_v0  ;;  %v4831_v34 = vor.u32 %v6295_v12, %v4830_v9  ;;  %v5582_v37 = vld [vmem:[%s9898_s1 + $0xbe8] sm:$0xf]  ;;  %v6383_v47 = vld [vmem:[%s9898_s1 + $0x8d4] sm:$0xf0] }
 0x137   :  { %3650 = vmatpush.bf16.msrb.mxu1 %v4751_v24  ;;  %v6419_v24 = vld [vmem:[%s9898_s1 + $0x9f4] sm:$0xf0]  ;;  %v5182_v46 = vld [vmem:[%s9898_s1 + $0x8c8] sm:$0xf] }
 0x138   :  { %3663 = vmatpush.bf16.msrb.mxu2 %v4879_v26  ;;  %v5454_v26 = vld [vmem:[%s9898_s1 + $0xae8] sm:$0xf]  ;;  %v5327_v43 = vor.u32 %v6419_v24, %v5326_v19  ;;  %v6415_v50 = vld [vmem:[%s9898_s1 + $0x9d4] sm:$0xf0]  ;;  %v5183_v55 = vor.u32 %v6383_v47, %v5182_v46 }
 0x139   :  { %3676 = vmatpush.bf16.msrb.mxu3 %v5007_v2  ;;  %v6483_v2 = vld [vmem:[%s9898_s1 + $0xbf4] sm:$0xf0]  ;;  %v5455_v45 = vor.u32 %v6451_v27, %v5454_v26  ;;  %v5310_v48 = vld [vmem:[%s9898_s1 + $0x9c8] sm:$0xf] }
 0x13a   :  { %3638 = vmatpush.bf16.msrb.mxu0 %v4607_v59  ;;  %v5583_v59 = vor.u32 %v6483_v2, %v5582_v37  ;;  %v5566_v53 = vld [vmem:[%s9898_s1 + $0xbc8] sm:$0xf]  ;;  %v6479_v54 = vld [vmem:[%s9898_s1 + $0xbd4] sm:$0xf0]  ;;  %v5311_v56 = vor.u32 %v6415_v50, %v5310_v48 }
 0x13b   :  { %3651 = vmatpush.bf16.msrb.mxu1 %v4735_v51  ;;  %v5438_v51 = vld [vmem:[%s9898_s1 + $0xac8] sm:$0xf]  ;;  %v6379_v60 = vld [vmem:[%s9898_s1 + $0x8b4] sm:$0xf0]  ;;  %v5567_v13 = vor.u32 %v6479_v54, %v5566_v53 }
 0x13c   :  { %3664 = vmatpush.bf16.msrb.mxu2 %v4863_v52  ;;  %v6447_v52 = vld [vmem:[%s9898_s1 + $0xad4] sm:$0xf0]  ;;  %v5166_v58 = vld [vmem:[%s9898_s1 + $0x8a8] sm:$0xf] }
 0x13d   :  { %3677 = vmatpush.bf16.msrb.mxu3 %v4991_v57  ;;  %v5439_v57 = vor.u32 %v6447_v52, %v5438_v51  ;;  %v5294_v61 = vld [vmem:[%s9898_s1 + $0x9a8] sm:$0xf]  ;;  %v6411_v62 = vld [vmem:[%s9898_s1 + $0x9b4] sm:$0xf0] }
 0x13e   :  { %3639 = vmatpush.bf16.msrb.mxu0 %v4591_v63  ;;  %v5422_v63 = vld [vmem:[%s9898_s1 + $0xaa8] sm:$0xf]  ;;  %v6443_v0 = vld [vmem:[%s9898_s1 + $0xab4] sm:$0xf0]  ;;  %v5295_v7 = vor.u32 %v6411_v62, %v5294_v61 }
 0x13f   :  { %3652 = vmatpush.bf16.msrb.mxu1 %v4719_v3  ;;  %v5550_v1 = vld [vmem:[%s9898_s1 + $0xba8] sm:$0xf]  ;;  %v6475_v3 = vld [vmem:[%s9898_s1 + $0xbb4] sm:$0xf0]  ;;  %v5423_v8 = vor.u32 %v6443_v0, %v5422_v63 }
 0x140   :  { %3665 = vmatpush.bf16.msrb.mxu2 %v4847_v5  ;;  %v5167_v5 = vor.u32 %v6379_v60, %v5166_v58  ;;  %v5150_v9 = vld [vmem:[%s9898_s1 + $0x888] sm:$0xf]  ;;  %v6375_v10 = vld [vmem:[%s9898_s1 + $0x894] sm:$0xf0]  ;;  %v5551_v12 = vor.u32 %v6475_v3, %v5550_v1 }
 0x141   :  { %3678 = vmatpush.bf16.msrb.mxu3 %v4975_v11  ;;  %v5278_v11 = vld [vmem:[%s9898_s1 + $0x988] sm:$0xf]  ;;  %v6407_v14 = vld [vmem:[%s9898_s1 + $0x994] sm:$0xf0]  ;;  %v5151_v19 = vor.u32 %v6375_v10, %v5150_v9 }
 0x142   :  { %3640 = vmatpush.bf16.msrb.mxu0 %v4575_v22  ;;  %v5406_v15 = vld [vmem:[%s9898_s1 + $0xa88] sm:$0xf]  ;;  %v6439_v16 = vld [vmem:[%s9898_s1 + $0xa94] sm:$0xf0]  ;;  %v8764_v22 = vpop.f32.mrf.mxu0  ;;  %v5279_v24 = vor.u32 %v6407_v14, %v5278_v11 }
 0x143   :  { %3653 = vmatpush.bf16.msrb.mxu1 %v4703_v32  ;;  %v5534_v17 = vld [vmem:[%s9898_s1 + $0xb88] sm:$0xf]  ;;  %v6471_v18 = vld [vmem:[%s9898_s1 + $0xb94] sm:$0xf0]  ;;  %v5407_v26 = vor.u32 %v6439_v16, %v5406_v15  ;;  %v8775_v37 = vpop.f32.mrf.mxu1 }
 0x144   :  { %3666 = vmatpush.bf16.msrb.mxu2 %v4831_v34  ;;  %v5134_v27 = vld [vmem:[%s9898_s1 + $0x868] sm:$0xf]  ;;  %v6371_v32 = vld [vmem:[%s9898_s1 + $0x874] sm:$0xf0]  ;;  %v5535_v2 = vor.u32 %v6471_v18, %v5534_v17 }
 0x145   :  { %3679 = vmatpush.bf16.msrb.mxu3 %v4959_v39  ;;  %3641 = vmatmul.bf16.vlgmr.msrb.gmra.mxu0 %v7097_v41  ;;  %v5262_v34 = vld [vmem:[%s9898_s1 + $0x968] sm:$0xf]  ;;  %v6403_v39 = vld [vmem:[%s9898_s1 + $0x974] sm:$0xf0]  ;;  %v5135_v47 = vor.u32 %v6371_v32, %v5134_v27 }
 0x146   :  { %3685 = vmatpush.bf16.msra.mxu0 %v5199_v40  ;;  %3654 = vmatmul.bf16.vlgmr.msrb.gmra.mxu1 %v7101_v44  ;;  %v5390_v40 = vld [vmem:[%s9898_s1 + $0xa68] sm:$0xf]  ;;  %v6467_v46 = vld [vmem:[%s9898_s1 + $0xb74] sm:$0xf0]  ;;  %v5263_v48 = vor.u32 %v6403_v39, %v5262_v34 }
 0x147   :  { %3698 = vmatpush.bf16.msra.mxu1 %v5327_v43  ;;  %3667 = vmatmul.bf16.vlgmr.msrb.gmra.mxu2 %v7089_v38  ;;  %v6435_v43 = vld [vmem:[%s9898_s1 + $0xa74] sm:$0xf0]  ;;  %v5118_v50 = vld [vmem:[%s9898_s1 + $0x848] sm:$0xf] }
 0x148   :  { %3711 = vmatpush.bf16.msra.mxu2 %v5455_v45  ;;  %3680 = vmatmul.bf16.vlgmr.msrb.gmra.mxu3 %v7099_v42  ;;  %v5518_v45 = vld [vmem:[%s9898_s1 + $0xb68] sm:$0xf]  ;;  %v6367_v51 = vld [vmem:[%s9898_s1 + $0x854] sm:$0xf0] }
 0x149   :  { %3724 = vmatpush.bf16.msra.mxu3 %v5583_v59  ;;  %v5391_v59 = vor.u32 %v6435_v43, %v5390_v40  ;;  %v5246_v52 = vld [vmem:[%s9898_s1 + $0x948] sm:$0xf]  ;;  %v5519_v54 = vor.u32 %v6467_v46, %v5518_v45  ;;  %v6463_v61 = vld [vmem:[%s9898_s1 + $0xb54] sm:$0xf0] }
 0x14a   :  { %3686 = vmatpush.bf16.msra.mxu0 %v5183_v55  ;;  %v8801_v53 = vpop.f32.mrf.mxu2  ;;  %v6399_v55 = vld [vmem:[%s9898_s1 + $0x954] sm:$0xf0]  ;;  %v5502_v60 = vld [vmem:[%s9898_s1 + $0xb48] sm:$0xf]  ;;  %v3436_v62 = vpop.f32.mrf.mxu0 }
 0x14b   :  { %3699 = vmatpush.bf16.msra.mxu1 %v5311_v56  ;;  %v5374_v56 = vld [vmem:[%s9898_s1 + $0xa48] sm:$0xf]  ;;  %v8812_v58 = vpop.f32.mrf.mxu3  ;;  %v5247_v63 = vor.u32 %v6399_v55, %v5246_v52  ;;  %v6363_v3 = vld [vmem:[%s9898_s1 + $0x834] sm:$0xf0] }
 0x14c   :  { %3712 = vmatpush.bf16.msra.mxu2 %v5439_v57  ;;  %v6431_v57 = vld [vmem:[%s9898_s1 + $0xa54] sm:$0xf0]  ;;  %v5102_v1 = vld [vmem:[%s9898_s1 + $0x828] sm:$0xf] }
 0x14d   :  { %3725 = vmatpush.bf16.msra.mxu3 %v5567_v13  ;;  %v5119_v13 = vor.u32 %v6367_v51, %v5118_v50  ;;  %v5375_v0 = vor.u32 %v6431_v57, %v5374_v56  ;;  %v6395_v9 = vld [vmem:[%s9898_s1 + $0x934] sm:$0xf0]  ;;  %v5358_v10 = vld [vmem:[%s9898_s1 + $0xa28] sm:$0xf]  ;;  %v5103_v15 = vor.u32 %v6363_v3, %v5102_v1 }
 0x14e   :  { %3687 = vmatpush.bf16.msra.mxu0 %v5167_v5  ;;  %v5230_v5 = vld [vmem:[%s9898_s1 + $0x928] sm:$0xf]  ;;  %v6427_v11 = vld [vmem:[%s9898_s1 + $0xa34] sm:$0xf0] }
 0x14f   :  { %3700 = vmatpush.bf16.msra.mxu1 %v5295_v7  ;;  %v3449_v7 = vpop.f32.mrf.mxu1  ;;  %v6459_v14 = vld [vmem:[%s9898_s1 + $0xb34] sm:$0xf0]  ;;  %v5086_v16 = vld [vmem:[%s9898_s1 + $0x808] sm:$0xf]  ;;  %v5231_v18 = vor.u32 %v6395_v9, %v5230_v5 }
 0x150   :  { %3713 = vmatpush.bf16.msra.mxu2 %v5423_v8  ;;  %v5503_v8 = vor.u32 %v6463_v61, %v5502_v60  ;;  %v6359_v17 = vld [vmem:[%s9898_s1 + $0x814] sm:$0xf0]  ;;  %v5342_v27 = vld [vmem:[%s9898_s1 + $0xa08] sm:$0xf] }
 0x151   :  { %3726 = vmatpush.bf16.msra.mxu3 %v5551_v12  ;;  %v5486_v12 = vld [vmem:[%s9898_s1 + $0xb28] sm:$0xf]  ;;  %v6455_v40 = vld [vmem:[%s9898_s1 + $0xb14] sm:$0xf0] }
 0x152   :  { %3688 = vmatpush.bf16.msra.mxu0 %v5151_v19  ;;  %v5359_v19 = vor.u32 %v6427_v11, %v5358_v10  ;;  %v3462_v32 = vpop.f32.mrf.mxu2  ;;  %v5487_v34 = vor.u32 %v6459_v14, %v5486_v12  ;;  %v5470_v39 = vld [vmem:[%s9898_s1 + $0xb08] sm:$0xf]  ;;  %v6515_v46 = vld [vmem:[%s9898_s1 + $0xcf4] sm:$0xf0] }
 0x153   :  { %3701 = vmatpush.bf16.msra.mxu1 %v5279_v24  ;;  %v5214_v24 = vld [vmem:[%s9898_s1 + $0x908] sm:$0xf]  ;;  %v3475_v43 = vpop.f32.mrf.mxu3  ;;  %v6579_v51 = vld [vmem:[%s9898_s1 + $0xef4] sm:$0xf0]  ;;  %v5471_v57 = vor.u32 %v6455_v40, %v5470_v39 }
 0x154   :  { %3714 = vmatpush.bf16.msra.mxu2 %v5407_v26  ;;  %v6391_v26 = vld [vmem:[%s9898_s1 + $0x914] sm:$0xf0]  ;;  %v5710_v45 = vld [vmem:[%s9898_s1 + $0xce8] sm:$0xf] }
 0x155   :  { %3727 = vmatpush.bf16.msra.mxu3 %v5535_v2  ;;  %v6423_v2 = vld [vmem:[%s9898_s1 + $0xa14] sm:$0xf0]  ;;  %v5966_v50 = vld [vmem:[%s9898_s1 + $0xee8] sm:$0xf]  ;;  %v5215_v52 = vor.u32 %v6391_v26, %v5214_v24  ;;  %v5711_v60 = vor.u32 %v6515_v46, %v5710_v45 }
 0x156   :  { %3689 = vmatpush.bf16.msra.mxu0 %v5135_v47  ;;  %v5838_v47 = vld [vmem:[%s9898_s1 + $0xde8] sm:$0xf]  ;;  %v6611_v56 = vld [vmem:[%s9898_s1 + $0xff4] sm:$0xf0] }
 0x157   :  { %3702 = vmatpush.bf16.msra.mxu1 %v5263_v48  ;;  %v5087_v48 = vor.u32 %v6359_v17, %v5086_v16  ;;  %v6094_v55 = vld [vmem:[%s9898_s1 + $0xfe8] sm:$0xf]  ;;  %v6543_v3 = vld [vmem:[%s9898_s1 + $0xdd4] sm:$0xf0] }
 0x158   :  { %3715 = vmatpush.bf16.msra.mxu2 %v5391_v59  ;;  %v6547_v59 = vld [vmem:[%s9898_s1 + $0xdf4] sm:$0xf0]  ;;  %v5694_v62 = vld [vmem:[%s9898_s1 + $0xcc8] sm:$0xf]  ;;  %v6095_v1 = vor.u32 %v6611_v56, %v6094_v55 }
 0x159   :  { %3728 = vmatpush.bf16.msra.mxu3 %v5519_v54  ;;  %v5343_v54 = vor.u32 %v6423_v2, %v5342_v27  ;;  %v5839_v61 = vor.u32 %v6547_v59, %v5838_v47  ;;  %v5950_v5 = vld [vmem:[%s9898_s1 + $0xec8] sm:$0xf]  ;;  %v6575_v7 = vld [vmem:[%s9898_s1 + $0xed4] sm:$0xf0] }
 0x15a   :  { %3690 = vmatpush.bf16.msra.mxu0 %v5119_v13  ;;  %v5967_v13 = vor.u32 %v6579_v51, %v5966_v50  ;;  %v6607_v9 = vld [vmem:[%s9898_s1 + $0xfd4] sm:$0xf0]  ;;  %v5951_v12 = vor.u32 %v6575_v7, %v5950_v5  ;;  %v5678_v14 = vld [vmem:[%s9898_s1 + $0xca8] sm:$0xf]  ;;  %v3435_v7 = vadd.f32 %v8764_v22, %v8614_v49 }
 0x15b   :  { %3703 = vmatpush.bf16.msra.mxu1 %v5247_v63  ;;  %v6511_v63 = vld [vmem:[%s9898_s1 + $0xcd4] sm:$0xf0]  ;;  %v5806_v16 = vld [vmem:[%s9898_s1 + $0xda8] sm:$0xf] }
 0x15c   :  { %3716 = vmatpush.bf16.msra.mxu2 %v5375_v0  ;;  %v5822_v0 = vld [vmem:[%s9898_s1 + $0xdc8] sm:$0xf]  ;;  %v5695_v10 = vor.u32 %v6511_v63, %v5694_v62  ;;  %v6571_v24 = vld [vmem:[%s9898_s1 + $0xeb4] sm:$0xf0] }
 0x15d   :  { %3729 = vmatpush.bf16.msra.mxu3 %v5503_v8  ;;  %v6078_v8 = vld [vmem:[%s9898_s1 + $0xfc8] sm:$0xf]  ;;  %v5823_v11 = vor.u32 %v6543_v3, %v5822_v0  ;;  %v6603_v27 = vld [vmem:[%s9898_s1 + $0xfb4] sm:$0xf0] }
 0x15e   :  { %3691 = vmatpush.bf16.msra.mxu0 %v5103_v15  ;;  %v6507_v15 = vld [vmem:[%s9898_s1 + $0xcb4] sm:$0xf0]  ;;  %v6079_v17 = vor.u32 %v6607_v9, %v6078_v8  ;;  %v6062_v26 = vld [vmem:[%s9898_s1 + $0xfa8] sm:$0xf] }
 0x15f   :  { %3704 = vmatpush.bf16.msra.mxu1 %v5231_v18  ;;  %v6539_v18 = vld [vmem:[%s9898_s1 + $0xdb4] sm:$0xf0]  ;;  %v5679_v32 = vor.u32 %v6507_v15, %v5678_v14  ;;  %v5662_v39 = vld [vmem:[%s9898_s1 + $0xc88] sm:$0xf]  ;;  %v6063_v45 = vor.u32 %v6603_v27, %v6062_v26 }
 0x160   :  { %3717 = vmatpush.bf16.msra.mxu2 %v5359_v19  ;;  %v5934_v19 = vld [vmem:[%s9898_s1 + $0xea8] sm:$0xf]  ;;  %v6503_v40 = vld [vmem:[%s9898_s1 + $0xc94] sm:$0xf0] }
 0x161   :  { %3730 = vmatpush.bf16.msra.mxu3 %v5487_v34  ;;  %v5807_v34 = vor.u32 %v6539_v18, %v5806_v16  ;;  %v5935_v2 = vor.u32 %v6571_v24, %v5934_v19  ;;  %v5790_v43 = vld [vmem:[%s9898_s1 + $0xd88] sm:$0xf]  ;;  %v6535_v46 = vld [vmem:[%s9898_s1 + $0xd94] sm:$0xf0] }
 0x162   :  { %3692 = vmatpush.bf16.msra.mxu0 %v5087_v48  ;;  %v5918_v47 = vld [vmem:[%s9898_s1 + $0xe88] sm:$0xf]  ;;  %v6567_v48 = vld [vmem:[%s9898_s1 + $0xe94] sm:$0xf0]  ;;  %v8962_v59 = vpop.f32.mrf.mxu0  ;;  %v5791_v55 = vor.u32 %v6535_v46, %v5790_v43 }
 0x163   :  { %3705 = vmatpush.bf16.msra.mxu1 %v5215_v52  ;;  %v6046_v50 = vld [vmem:[%s9898_s1 + $0xf88] sm:$0xf]  ;;  %v6599_v51 = vld [vmem:[%s9898_s1 + $0xf94] sm:$0xf0]  ;;  %v5663_v52 = vor.u32 %v6503_v40, %v5662_v39  ;;  %v5919_v56 = vor.u32 %v6567_v48, %v5918_v47 }
 0x164   :  { %3718 = vmatpush.bf16.msra.mxu2 %v5343_v54  ;;  %v8970_v54 = vpop.f32.mrf.mxu1  ;;  %v6531_v62 = vld [vmem:[%s9898_s1 + $0xd74] sm:$0xf0]  ;;  %v5902_v63 = vld [vmem:[%s9898_s1 + $0xe68] sm:$0xf] }
 0x165   :  { %3731 = vmatpush.bf16.msra.mxu3 %v5471_v57  ;;  %3693 = vmatmul.bf16.vlgmr.msra.gmra.mxu0 %v7290_v25  ;;  %v5646_v57 = vld [vmem:[%s9898_s1 + $0xc68] sm:$0xf]  ;;  %v6563_v0 = vld [vmem:[%s9898_s1 + $0xe74] sm:$0xf0] }
 0x166   :  { %3737 = vmatpush.bf16.msrb.mxu0 %v5711_v60  ;;  %3706 = vmatmul.bf16.vlgmr.msra.gmra.mxu1 %v7303_v30  ;;  %v6499_v60 = vld [vmem:[%s9898_s1 + $0xc74] sm:$0xf0]  ;;  %v5903_v9 = vor.u32 %v6563_v0, %v5902_v63  ;;  %v5886_v22 = vld [vmem:[%s9898_s1 + $0xe48] sm:$0xf] }
 0x167   :  { %3750 = vmatpush.bf16.msrb.mxu1 %v5839_v61  ;;  %3719 = vmatmul.bf16.vlgmr.msra.gmra.mxu2 %v7301_v29  ;;  %v5774_v61 = vld [vmem:[%s9898_s1 + $0xd68] sm:$0xf]  ;;  %v6595_v3 = vld [vmem:[%s9898_s1 + $0xf74] sm:$0xf0]  ;;  %v5647_v5 = vor.u32 %v6499_v60, %v5646_v57 }
 0x168   :  { %3763 = vmatpush.bf16.msrb.mxu2 %v5967_v13  ;;  %3732 = vmatmul.bf16.vlgmr.msra.gmra.mxu3 %v7311_v33  ;;  %v6047_v13 = vor.u32 %v6599_v51, %v6046_v50  ;;  %v5775_v8 = vor.u32 %v6531_v62, %v5774_v61  ;;  %v6527_v49 = vld [vmem:[%s9898_s1 + $0xd54] sm:$0xf0]  ;;  %v6014_v18 = vld [vmem:[%s9898_s1 + $0xf48] sm:$0xf] }
 0x169   :  { %3776 = vmatpush.bf16.msrb.mxu3 %v6095_v1  ;;  %v6030_v1 = vld [vmem:[%s9898_s1 + $0xf68] sm:$0xf]  ;;  %v6559_v16 = vld [vmem:[%s9898_s1 + $0xe54] sm:$0xf0] }
 0x16a   :  { %3738 = vmatpush.bf16.msrb.mxu0 %v5695_v10  ;;  %v5630_v10 = vld [vmem:[%s9898_s1 + $0xc48] sm:$0xf]  ;;  %v6031_v14 = vor.u32 %v6595_v3, %v6030_v1  ;;  %v9007_v15 = vpop.f32.mrf.mxu2  ;;  %v6591_v19 = vld [vmem:[%s9898_s1 + $0xf54] sm:$0xf0]  ;;  %v3488_v24 = vpop.f32.mrf.mxu0 }
 0x16b   :  { %3751 = vmatpush.bf16.msrb.mxu1 %v5823_v11  ;;  %v6495_v11 = vld [vmem:[%s9898_s1 + $0xc54] sm:$0xf0]  ;;  %v5614_v39 = vld [vmem:[%s9898_s1 + $0xc28] sm:$0xf] }
 0x16c   :  { %3764 = vmatpush.bf16.msrb.mxu2 %v5951_v12  ;;  %v5758_v12 = vld [vmem:[%s9898_s1 + $0xd48] sm:$0xf]  ;;  %v5631_v26 = vor.u32 %v6495_v11, %v5630_v10  ;;  %v3501_v27 = vpop.f32.mrf.mxu1  ;;  %v6491_v40 = vld [vmem:[%s9898_s1 + $0xc34] sm:$0xf0]  ;;  %v4304_v11 = vld [vmem:[%s9898_s1 + $0x1f8] sm:$0xf0] }
 0x16d   :  { %3777 = vmatpush.bf16.msrb.mxu3 %v6079_v17  ;;  %v9018_v17 = vpop.f32.mrf.mxu3  ;;  %v5742_v43 = vld [vmem:[%s9898_s1 + $0xd28] sm:$0xf]  ;;  %v6555_v47 = vld [vmem:[%s9898_s1 + $0xe34] sm:$0xf0]  ;;  %v5615_v51 = vor.u32 %v6491_v40, %v5614_v39  ;;  %v6157_v39 = vld [vmem:[%s9898_s1 + $0x1cc] sm:$0xf] }
 0x16e   :  { %3739 = vmatpush.bf16.msrb.mxu0 %v5679_v32  ;;  %v3448_v32 = vadd.f32 %v8775_v37, %v3435_v7  ;;  %v6523_v37 = vld [vmem:[%s9898_s1 + $0xd34] sm:$0xf0]  ;;  %v5870_v46 = vld [vmem:[%s9898_s1 + $0xe28] sm:$0xf]  ;;  %v4176_v7 = vld [vmem:[%s9898_s1 + $0xf8] sm:$0xf0] }
 0x16f   :  { %3752 = vmatpush.bf16.msrb.mxu1 %v5807_v34  ;;  %v5759_v34 = vor.u32 %v6527_v49, %v5758_v12  ;;  %v5998_v48 = vld [vmem:[%s9898_s1 + $0xf28] sm:$0xf]  ;;  %v6587_v50 = vld [vmem:[%s9898_s1 + $0xf34] sm:$0xf0]  ;;  %v5743_v57 = vor.u32 %v6523_v37, %v5742_v43  ;;  %v5871_v60 = vor.u32 %v6555_v47, %v5870_v46  ;;  %v6193_v12 = vld [vmem:[%s9898_s1 + $0x2ec] sm:$0xf] }
 0x170   :  { %3765 = vmatpush.bf16.msrb.mxu2 %v5935_v2  ;;  %v5887_v2 = vor.u32 %v6559_v16, %v5886_v22  ;;  %v5726_v61 = vld [vmem:[%s9898_s1 + $0xd08] sm:$0xf]  ;;  %v5999_v63 = vor.u32 %v6587_v50, %v5998_v48  ;;  %v6583_v1 = vld [vmem:[%s9898_s1 + $0xf14] sm:$0xf0]  ;;  %v6189_v43 = vld [vmem:[%s9898_s1 + $0x2cc] sm:$0xf] }
 0x171   :  { %3778 = vmatpush.bf16.msrb.mxu3 %v6063_v45  ;;  %v6015_v45 = vor.u32 %v6591_v19, %v6014_v18  ;;  %v5854_v62 = vld [vmem:[%s9898_s1 + $0xe08] sm:$0xf]  ;;  %v6225_v18 = vld [vmem:[%s9898_s1 + $0x3ec] sm:$0xf]  ;;  %v4560_v19 = vld [vmem:[%s9898_s1 + $0x3f8] sm:$0xf0] }
 0x172   :  { %3740 = vmatpush.bf16.msrb.mxu0 %v5663_v52  ;;  %v5598_v52 = vld [vmem:[%s9898_s1 + $0xc08] sm:$0xf]  ;;  %v3514_v3 = vpop.f32.mrf.mxu2  ;;  %v4563_v40 = vor.u32 %v6225_v18, %v4560_v19  ;;  %v6221_v37 = vld [vmem:[%s9898_s1 + $0x3cc] sm:$0xf]  ;;  %v4544_v46 = vld [vmem:[%s9898_s1 + $0x3d8] sm:$0xf0] }
 0x173   :  { %3753 = vmatpush.bf16.msrb.mxu1 %v5791_v55  ;;  %v6487_v55 = vld [vmem:[%s9898_s1 + $0xc14] sm:$0xf0]  ;;  %v5982_v0 = vld [vmem:[%s9898_s1 + $0xf08] sm:$0xf]  ;;  %v4128_v3 = vld [vmem:[%s9898_s1 + $0x98] sm:$0xf0] }
 0x174   :  { %3766 = vmatpush.bf16.msrb.mxu2 %v5919_v56  ;;  %v3461_v56 = vadd.f32 %v8801_v53, %v3448_v32  ;;  %v6551_v53 = vld [vmem:[%s9898_s1 + $0xe14] sm:$0xf0]  ;;  %v5599_v10 = vor.u32 %v6487_v55, %v5598_v52  ;;  %v5983_v24 = vor.u32 %v6583_v1, %v5982_v0  ;;  %v6121_v52 = vld [vmem:[%s9898_s1 + $0xac] sm:$0xf]  ;;  %v4144_v55 = vld [vmem:[%s9898_s1 + $0xb8] sm:$0xf0] }
 0x175   :  { %3779 = vmatpush.bf16.msrb.mxu3 %v6047_v13  ;;  %v6519_v13 = vld [vmem:[%s9898_s1 + $0xd14] sm:$0xf0]  ;;  %v5855_v16 = vor.u32 %v6551_v53, %v5854_v62  ;;  %v6217_v62 = vld [vmem:[%s9898_s1 + $0x3ac] sm:$0xf]  ;;  %v4147_v53 = vor.u32 %v6121_v52, %v4144_v55 }
 0x176   :  { %3741 = vmatpush.bf16.msrb.mxu0 %v5647_v5  ;;  %v6129_v5 = vld [vmem:[%s9898_s1 + $0xec] sm:$0xf]  ;;  %v3474_v49 = vadd.f32 %v8812_v58, %v3461_v56  ;;  %v5727_v22 = vor.u32 %v6519_v13, %v5726_v61  ;;  %v4400_v61 = vld [vmem:[%s9898_s1 + $0x2b8] sm:$0xf0] }
 0x177   :  { %3754 = vmatpush.bf16.msrb.mxu1 %v5775_v8  ;;  %v6161_v8 = vld [vmem:[%s9898_s1 + $0x1ec] sm:$0xf] }
 0x178   :  { %3767 = vmatpush.bf16.msrb.mxu2 %v5903_v9  ;;  %v3527_v9 = vpop.f32.mrf.mxu3  ;;  %v3487_v27 = vadd.f32 %v8962_v59, %v3474_v49  ;;  %v4307_v32 = vor.u32 %v6161_v8, %v4304_v11  ;;  %v6125_v58 = vld [vmem:[%s9898_s1 + $0xcc] sm:$0xf]  ;;  %v4288_v59 = vld [vmem:[%s9898_s1 + $0x1d8] sm:$0xf0] }
 0x179   :  { %3780 = vmatpush.bf16.msrb.mxu3 %v6031_v14  ;;  %v4432_v14 = vld [vmem:[%s9898_s1 + $0x2f8] sm:$0xf0]  ;;  %v4291_v50 = vor.u32 %v6157_v39, %v4288_v59  ;;  %v6153_v56 = vld [vmem:[%s9898_s1 + $0x1ac] sm:$0xf] }
 0x17a   :  { %3742 = vmatpush.bf16.msrb.mxu0 %v5631_v26  ;;  %v4179_v26 = vor.u32 %v6129_v5, %v4176_v7  ;;  %v3500_v48 = vadd.f32 %v8970_v54, %v3487_v27  ;;  %v4547_v54 = vor.u32 %v6221_v37, %v4544_v46  ;;  %v6117_v1 = vld [vmem:[%s9898_s1 + $0x8c] sm:$0xf]  ;;  %v4256_v8 = vld [vmem:[%s9898_s1 + $0x198] sm:$0xf0] }
 0x17b   :  { %3755 = vmatpush.bf16.msrb.mxu1 %v5759_v34  ;;  %v4435_v34 = vor.u32 %v6193_v12, %v4432_v14  ;;  %v6149_v5 = vld [vmem:[%s9898_s1 + $0x18c] sm:$0xf]  ;;  %v4512_v49 = vld [vmem:[%s9898_s1 + $0x398] sm:$0xf0] }
 0x17c   :  { %3768 = vmatpush.bf16.msrb.mxu2 %v5887_v2  ;;  %v4160_v2 = vld [vmem:[%s9898_s1 + $0xd8] sm:$0xf0]  ;;  %v3513_v13 = vadd.f32 %v9007_v15, %v3500_v48  ;;  %v6181_v9 = vld [vmem:[%s9898_s1 + $0x28c] sm:$0xf]  ;;  %v4259_v19 = vor.u32 %v6149_v5, %v4256_v8 }
 0x17d   :  { %3781 = vmatpush.bf16.msrb.mxu3 %v6015_v45  ;;  %v4416_v45 = vld [vmem:[%s9898_s1 + $0x2d8] sm:$0xf0]  ;;  %v4163_v47 = vor.u32 %v6125_v58, %v4160_v2  ;;  %v6213_v14 = vld [vmem:[%s9898_s1 + $0x38c] sm:$0xf] }
 0x17e   :  { %3743 = vmatpush.bf16.msrb.mxu0 %v5615_v51  ;;  %v4419_v51 = vor.u32 %v6189_v43, %v4416_v45  ;;  %v3526_v11 = vadd.f32 %v9018_v17, %v3513_v13  ;;  %v4112_v27 = vld [vmem:[%s9898_s1 + $0x78] sm:$0xf0]  ;;  %v6177_v2 = vld [vmem:[%s9898_s1 + $0x26c] sm:$0xf]  ;;  %v4026_v45 = vld [vmem:[%s9901_s3] sm:$0xf] }
 0x17f   :  { %3756 = vmatpush.bf16.msrb.mxu1 %v5743_v57  ;;  %v4272_v57 = vld [vmem:[%s9898_s1 + $0x1b8] sm:$0xf0]  ;;  %v6209_v59 = vld [vmem:[%s9898_s1 + $0x36c] sm:$0xf]  ;;  %v4028_v13 = vperm.slane %v4026_v45, 0 }
 0x180   :  { %3769 = vmatpush.bf16.msrb.mxu2 %v5871_v60  ;;  %v6185_v60 = vld [vmem:[%s9898_s1 + $0x2ac] sm:$0xf]  ;;  %v4275_v0 = vor.u32 %v6153_v56, %v4272_v57  ;;  %v4240_v58 = vld [vmem:[%s9898_s1 + $0x178] sm:$0xf0] }
 0x181   :  { %3782 = vmatpush.bf16.msrb.mxu3 %v5999_v63  ;;  %v4528_v63 = vld [vmem:[%s9898_s1 + $0x3b8] sm:$0xf0]  ;;  %v4403_v15 = vor.u32 %v6185_v60, %v4400_v61  ;;  %v6141_v52 = vld [vmem:[%s9898_s1 + $0x14c] sm:$0xf] }
 0x182   :  { %3744 = vmatpush.bf16.msrb.mxu0 %v5599_v10  ;;  %v4531_v7 = vor.u32 %v6217_v62, %v4528_v63  ;;  %v4384_v10 = vld [vmem:[%s9898_s1 + $0x298] sm:$0xf0]  ;;  %v3538_v12 = vpop.f32.mrf.mxu0  ;;  %v6173_v57 = vld [vmem:[%s9898_s1 + $0x24c] sm:$0xf] }
 0x183   :  { %3757 = vmatpush.bf16.msrb.mxu1 %v5727_v22  ;;  %v9184_v22 = vld [vmem:[%s9900_s2] sm:$0xf]  ;;  %v3551_v18 = vpop.f32.mrf.mxu1  ;;  %v3539_v17 = vadd.f32 %v3538_v12, %v3526_v11  ;;  %v4368_v39 = vld [vmem:[%s9898_s1 + $0x278] sm:$0xf0]  ;;  %v6137_v12 = vld [vmem:[%s9898_s1 + $0x12c] sm:$0xf] }
 0x184   :  { %3770 = vmatpush.bf16.msrb.mxu2 %v5855_v16  ;;  %v4131_v16 = vor.u32 %v6117_v1, %v4128_v3  ;;  %v4496_v43 = vld [vmem:[%s9898_s1 + $0x378] sm:$0xf0]  ;;  %v4371_v48 = vor.u32 %v6177_v2, %v4368_v39  ;;  %v4029_v3 = vperm.slane %v4026_v45, 1 }
 0x185   :  { %3783 = vmatpush.bf16.msrb.mxu3 %v5983_v24  ;;  %3745 = vmatmul.bf16.vlgmr.msrb.gmra.mxu0 %v7500_v23  ;;  %v4387_v24 = vor.u32 %v6181_v9, %v4384_v10  ;;  %v3552_v46 = vadd.f32 %v3551_v18, %v3539_v17  ;;  %v4499_v55 = vor.u32 %v6209_v59, %v4496_v43  ;;  %v4352_v60 = vld [vmem:[%s9898_s1 + $0x258] sm:$0xf0]  ;;  %v6105_v10 = vld [vmem:[%s9898_s1 + $0x2c] sm:$0xf] }
 0x186   :  { %3789 = vmatpush.bf16.msra.mxu0 %v4179_v26  ;;  %3758 = vmatmul.bf16.vlgmr.msrb.gmra.mxu1 %v7513_v31  ;;  %v6113_v26 = vld [vmem:[%s9898_s1 + $0x6c] sm:$0xf]  ;;  %v4355_v9 = vor.u32 %v6173_v57, %v4352_v60  ;;  %v4080_v11 = vld [vmem:[%s9898_s1 + $0x38] sm:$0xf0] }
 0x187   :  { %3802 = vmatpush.bf16.msra.mxu1 %v4307_v32  ;;  %3771 = vmatmul.bf16.vlgmr.msrb.gmra.mxu2 %v7511_v28  ;;  %v6145_v32 = vld [vmem:[%s9898_s1 + $0x16c] sm:$0xf]  ;;  %v4115_v37 = vor.u32 %v6113_v26, %v4112_v27  ;;  %v4083_v26 = vor.u32 %v6105_v10, %v4080_v11  ;;  %v4320_v43 = vld [vmem:[%s9898_s1 + $0x218] sm:$0xf0] }
 0x188   :  { %3815 = vmatpush.bf16.msra.mxu2 %v4435_v34  ;;  %3784 = vmatmul.bf16.vlgmr.msrb.gmra.mxu3 %v7521_v35  ;;  %v4515_v34 = vor.u32 %v6213_v14, %v4512_v49  ;;  %v4208_v49 = vld [vmem:[%s9898_s1 + $0x138] sm:$0xf0]  ;;  %v6101_v27 = vld [vmem:[%s9898_s1 + $0xc] sm:$0xf] }
 0x189   :  { %3828 = vmatpush.bf16.msra.mxu3 %v4563_v40  ;;  %v4014_v40 = vperm.slane %v9184_v22, 0  ;;  %v4211_v2 = vor.u32 %v6137_v12, %v4208_v49  ;;  %v6165_v59 = vld [vmem:[%s9898_s1 + $0x20c] sm:$0xf]  ;;  %v4816_v57 = vld [vmem:[%s9898_s1 + $0x5f8] sm:$0xf0] }
 0x18a   :  { %3790 = vmatpush.bf16.msra.mxu0 %v4163_v47  ;;  %v4243_v47 = vor.u32 %v6145_v32, %v4240_v58  ;;  %v3564_v56 = vpop.f32.mrf.mxu2  ;;  %v3540_v1 = vpop.f32.mrf.mxu0  ;;  %v4064_v32 = vld [vmem:[%s9898_s1 + $0x18] sm:$0xf0]  ;;  %v6321_v60 = vld [vmem:[%s9898_s1 + $0x6ec] sm:$0xf] }
 0x18b   :  { %3803 = vmatpush.bf16.msra.mxu1 %v4291_v50  ;;  %v6109_v50 = vld [vmem:[%s9898_s1 + $0x4c] sm:$0xf]  ;;  %v4022_v61 = vmul.f32 %v4014_v40, %v8416_v36  ;;  %v3565_v62 = vadd.f32 %v3564_v56, %v3552_v46  ;;  %v3577_v63 = vpop.f32.mrf.mxu3  ;;  %v4192_v40 = vld [vmem:[%s9898_s1 + $0x118] sm:$0xf0] }
 0x18c   :  { %3816 = vmatpush.bf16.msra.mxu2 %v4419_v51  ;;  %v4096_v51 = vld [vmem:[%s9898_s1 + $0x58] sm:$0xf0]  ;;  %v6317_v11 = vld [vmem:[%s9898_s1 + $0x6cc] sm:$0xf] }
 0x18d   :  { %3829 = vmatpush.bf16.msra.mxu3 %v4547_v54  ;;  %v4224_v54 = vld [vmem:[%s9898_s1 + $0x158] sm:$0xf0]  ;;  %v4099_v5 = vor.u32 %v6109_v50, %v4096_v51  ;;  %v3578_v36 = vadd.f32 %v3577_v63, %v3565_v62  ;;  %v4036_v18 = vadd.f32 %v4028_v13, %v4022_v61  ;;  %v4323_v63 = vor.u32 %v6165_v59, %v4320_v43  ;;  %v6245_v59 = vld [vmem:[%s9898_s1 + $0x48c] sm:$0xf] }
 0x18e   :  { %3791 = vmatpush.bf16.msra.mxu0 %v4147_v53  ;;  %v4015_v53 = vperm.slane %v9184_v22, 1  ;;  %v4227_v8 = vor.u32 %v6141_v52, %v4224_v54  ;;  %v6169_v22 = vld [vmem:[%s9898_s1 + $0x22c] sm:$0xf]  ;;  %v4448_v46 = vld [vmem:[%s9898_s1 + $0x318] sm:$0xf0]  ;;  %v4067_v54 = vor.u32 %v6101_v27, %v4064_v32 }
 0x18f   :  { %3804 = vmatpush.bf16.msra.mxu1 %v4275_v0  ;;  %v6205_v0 = vld [vmem:[%s9898_s1 + $0x34c] sm:$0xf]  ;;  %v4040_v50 = vmax.f32 %v4036_v18, 0.0  ;;  %v4688_v52 = vld [vmem:[%s9898_s1 + $0x4f8] sm:$0xf0] }
 0x190   :  { %3817 = vmatpush.bf16.msra.mxu2 %v4403_v15  ;;  %v4480_v15 = vld [vmem:[%s9898_s1 + $0x358] sm:$0xf0]  ;;  %v4023_v17 = vmul.f32 %v4015_v53, %v3578_v36  ;;  %v6353_v53 = vld [vmem:[%s9898_s1 + $0x7ec] sm:$0xf] }
 0x191   :  { %3830 = vmatpush.bf16.msra.mxu3 %v4531_v7  ;;  %v3553_v7 = vpop.f32.mrf.mxu1  ;;  %v4483_v14 = vor.u32 %v6205_v0, %v4480_v15  ;;  %v4944_v61 = vld [vmem:[%s9898_s1 + $0x6f8] sm:$0xf0]  ;;  %v6313_v32 = vld [vmem:[%s9898_s1 + $0x6ac] sm:$0xf] }
 0x192   :  { %3792 = vmatpush.bf16.msra.mxu0 %v4131_v16  ;;  %v4336_v16 = vld [vmem:[%s9898_s1 + $0x238] sm:$0xf0]  ;;  %v4037_v58 = vadd.f32 %v4029_v3, %v4023_v17  ;;  %v6253_v7 = vld [vmem:[%s9898_s1 + $0x4cc] sm:$0xf] }
 0x193   :  { %3805 = vmatpush.bf16.msra.mxu1 %v4259_v19  ;;  %v6201_v19 = vld [vmem:[%s9898_s1 + $0x32c] sm:$0xf]  ;;  %v4339_v39 = vor.u32 %v6169_v22, %v4336_v16  ;;  %v3579_v56 = vpop.f32.mrf.mxu3  ;;  %v5072_v0 = vld [vmem:[%s9898_s1 + $0x7f8] sm:$0xf0] }
 0x194   :  { %3818 = vmatpush.bf16.msra.mxu2 %v4387_v24  ;;  %v4464_v24 = vld [vmem:[%s9898_s1 + $0x338] sm:$0xf0]  ;;  %v4041_v51 = vmax.f32 %v4037_v58, 0.0  ;;  %v6249_v17 = vld [vmem:[%s9898_s1 + $0x4ac] sm:$0xf] }
 0x195   :  { %3831 = vmatpush.bf16.msra.mxu3 %v4515_v34  ;;  %v6133_v34 = vld [vmem:[%s9898_s1 + $0x10c] sm:$0xf]  ;;  %v4467_v45 = vor.u32 %v6201_v19, %v4464_v24  ;;  %v4672_v36 = vld [vmem:[%s9898_s1 + $0x4d8] sm:$0xf0] }
 0x196   :  { %3793 = vmatpush.bf16.msra.mxu0 %v4115_v37  ;;  %v6197_v37 = vld [vmem:[%s9898_s1 + $0x30c] sm:$0xf]  ;;  %v4044_v13 = vpack.c.bf16 %v4041_v51, %v4040_v50  ;;  %v4195_v62 = vor.u32 %v6133_v34, %v4192_v40  ;;  %v4800_v10 = vld [vmem:[%s9898_s1 + $0x5d8] sm:$0xf0]  ;;  %v4675_v22 = vor.u32 %v6253_v7, %v4672_v36 }
 0x197   :  { %3806 = vmatpush.bf16.msra.mxu1 %v4243_v47  ;;  %v6257_v47 = vld [vmem:[%s9898_s1 + $0x4ec] sm:$0xf]  ;;  %v4451_v15 = vor.u32 %v6197_v37, %v4448_v46  ;;  %v4928_v12 = vld [vmem:[%s9898_s1 + $0x6d8] sm:$0xf0] }
 0x198   :  { %3819 = vmatpush.bf16.msra.mxu2 %v4371_v48  ;;  %v3566_v48 = vpop.f32.mrf.mxu2  ;;  %v4691_v1 = vor.u32 %v6257_v47, %v4688_v52  ;;  %4046 = vst [vmem:[%s9902_s4] sm:$0xff] %v4044_v13  ;;  %v5056_v49 = vld [vmem:[%s9898_s1 + $0x7d8] sm:$0xf0]  ;;  %v4931_v18 = vor.u32 %v6317_v11, %v4928_v12  ;;  %v6281_v24 = vld [vmem:[%s9898_s1 + $0x5ac] sm:$0xf] }
 0x199   :  { %3832 = vmatpush.bf16.msra.mxu3 %v4499_v55  ;;  %v6289_v55 = vld [vmem:[%s9898_s1 + $0x5ec] sm:$0xf]  ;;  %v4656_v19 = vld [vmem:[%s9898_s1 + $0x4b8] sm:$0xf0] }
 0x19a   :  { %3794 = vmatpush.bf16.msra.mxu0 %v4099_v5  ;;  %v4819_v3 = vor.u32 %v6289_v55, %v4816_v57  ;;  %v4947_v5 = vor.u32 %v6321_v60, %v4944_v61  ;;  %v4784_v27 = vld [vmem:[%s9898_s1 + $0x5b8] sm:$0xf0]  ;;  %v6345_v58 = vld [vmem:[%s9898_s1 + $0x7ac] sm:$0xf] }
 0x19b   :  { %3807 = vmatpush.bf16.msra.mxu1 %v4227_v8  ;;  %v6285_v8 = vld [vmem:[%s9898_s1 + $0x5cc] sm:$0xf]  ;;  %v4912_v34 = vld [vmem:[%s9898_s1 + $0x6b8] sm:$0xf0]  ;;  %v4787_v40 = vor.u32 %v6281_v24, %v4784_v27 }
 0x19c   :  { %3820 = vmatpush.bf16.msra.mxu2 %v4355_v9  ;;  %v5075_v9 = vor.u32 %v6353_v53, %v5072_v0  ;;  %v4803_v16 = vor.u32 %v6285_v8, %v4800_v10  ;;  %v4640_v43 = vld [vmem:[%s9898_s1 + $0x498] sm:$0xf0]  ;;  %v6341_v46 = vld [vmem:[%s9898_s1 + $0x78c] sm:$0xf] }
 0x19d   :  { %3833 = vmatpush.bf16.msra.mxu3 %v4483_v14  ;;  %v6349_v14 = vld [vmem:[%s9898_s1 + $0x7cc] sm:$0xf]  ;;  %v4896_v37 = vld [vmem:[%s9898_s1 + $0x698] sm:$0xf0]  ;;  %v4643_v48 = vor.u32 %v6245_v59, %v4640_v43 }
 0x19e   :  { %3795 = vmatpush.bf16.msra.mxu0 %v4083_v26  ;;  %v5059_v26 = vor.u32 %v6349_v14, %v5056_v49  ;;  %v5024_v47 = vld [vmem:[%s9898_s1 + $0x798] sm:$0xf0]  ;;  %v6241_v55 = vld [vmem:[%s9898_s1 + $0x46c] sm:$0xf] }
 0x19f   :  { %3808 = vmatpush.bf16.msra.mxu1 %v4211_v2  ;;  %v5040_v2 = vld [vmem:[%s9898_s1 + $0x7b8] sm:$0xf0]  ;;  %v5027_v60 = vor.u32 %v6341_v46, %v5024_v47  ;;  %v6305_v13 = vld [vmem:[%s9898_s1 + $0x66c] sm:$0xf] }
 0x1a0   :  { %3821 = vmatpush.bf16.msra.mxu2 %v4339_v39  ;;  %v4659_v39 = vor.u32 %v6249_v17, %v4656_v19  ;;  %v4624_v56 = vld [vmem:[%s9898_s1 + $0x478] sm:$0xf0]  ;;  %v6337_v53 = vld [vmem:[%s9898_s1 + $0x76c] sm:$0xf] }
 0x1a1   :  { %3834 = vmatpush.bf16.msra.mxu3 %v4467_v45  ;;  %v6309_v45 = vld [vmem:[%s9898_s1 + $0x68c] sm:$0xf]  ;;  %v4752_v61 = vld [vmem:[%s9898_s1 + $0x578] sm:$0xf0] }
 0x1a2   :  { %3796 = vmatpush.bf16.msra.mxu0 %v4067_v54  ;;  %v3590_v50 = vpop.f32.mrf.mxu0  ;;  %v4899_v52 = vor.u32 %v6309_v45, %v4896_v37  ;;  %v6273_v54 = vld [vmem:[%s9898_s1 + $0x56c] sm:$0xf]  ;;  %v5008_v0 = vld [vmem:[%s9898_s1 + $0x778] sm:$0xf0] }
 0x1a3   :  { %3809 = vmatpush.bf16.msra.mxu1 %v4195_v62  ;;  %v3603_v57 = vpop.f32.mrf.mxu1  ;;  %v4880_v62 = vld [vmem:[%s9898_s1 + $0x678] sm:$0xf0]  ;;  %v6269_v36 = vld [vmem:[%s9898_s1 + $0x54c] sm:$0xf] }
 0x1a4   :  { %3822 = vmatpush.bf16.msra.mxu2 %v4323_v63  ;;  %v3604_v63 = vadd.f32 %v3603_v57, %v3590_v50  ;;  %v4608_v7 = vld [vmem:[%s9898_s1 + $0x458] sm:$0xf0]  ;;  %v6301_v11 = vld [vmem:[%s9898_s1 + $0x64c] sm:$0xf] }
 0x1a5   :  { %3835 = vmatpush.bf16.msra.mxu3 %v4451_v15  ;;  %3797 = vmatmul.bf16.vlgmr.msra.gmra.mxu0 %v6938_v20  ;;  %v5043_v20 = vor.u32 %v6345_v58, %v5040_v2  ;;  %v4627_v15 = vor.u32 %v6241_v55, %v4624_v56  ;;  %v4736_v10 = vld [vmem:[%s9898_s1 + $0x558] sm:$0xf0]  ;;  %v6233_v27 = vld [vmem:[%s9898_s1 + $0x42c] sm:$0xf] }
 0x1a6   :  { %3841 = vmatpush.bf16.msrb.mxu0 %v4691_v1  ;;  %3810 = vmatmul.bf16.vlgmr.msra.gmra.mxu1 %v6941_v21  ;;  %v4768_v21 = vld [vmem:[%s9898_s1 + $0x598] sm:$0xf0]  ;;  %v4755_v1 = vor.u32 %v6273_v54, %v4752_v61  ;;  %v4739_v24 = vor.u32 %v6269_v36, %v4736_v10  ;;  %v6329_v59 = vld [vmem:[%s9898_s1 + $0x72c] sm:$0xf] }
 0x1a7   :  { %3854 = vmatpush.bf16.msrb.mxu1 %v4819_v3  ;;  %3823 = vmatmul.bf16.vlgmr.msra.gmra.mxu2 %v6906_v4  ;;  %v4915_v4 = vor.u32 %v6313_v32, %v4912_v34  ;;  %v4883_v3 = vor.u32 %v6305_v13, %v4880_v62  ;;  %v4864_v12 = vld [vmem:[%s9898_s1 + $0x658] sm:$0xf0]  ;;  %v6265_v34 = vld [vmem:[%s9898_s1 + $0x52c] sm:$0xf] }
 0x1a8   :  { %3867 = vmatpush.bf16.msrb.mxu2 %v4947_v5  ;;  %3836 = vmatmul.bf16.vlgmr.msra.gmra.mxu3 %v6911_v6  ;;  %v6277_v6 = vld [vmem:[%s9898_s1 + $0x58c] sm:$0xf]  ;;  %v4592_v32 = vld [vmem:[%s9898_s1 + $0x438] sm:$0xf0] }
 0x1a9   :  { %3880 = vmatpush.bf16.msrb.mxu3 %v5075_v9  ;;  %v4771_v51 = vor.u32 %v6277_v6, %v4768_v21  ;;  %v6237_v5 = vld [vmem:[%s9898_s1 + $0x44c] sm:$0xf]  ;;  %v5011_v9 = vor.u32 %v6337_v53, %v5008_v0  ;;  %v4976_v43 = vld [vmem:[%s9898_s1 + $0x738] sm:$0xf0]  ;;  %v4595_v6 = vor.u32 %v6233_v27, %v4592_v32 }
 0x1aa   :  { %3842 = vmatpush.bf16.msrb.mxu0 %v4675_v22  ;;  %v3616_v8 = vpop.f32.mrf.mxu2  ;;  %v6333_v22 = vld [vmem:[%s9898_s1 + $0x74c] sm:$0xf]  ;;  %v3592_v19 = vpop.f32.mrf.mxu0  ;;  %v4576_v21 = vld [vmem:[%s9898_s1 + $0x418] sm:$0xf0] }
 0x1ab   :  { %3855 = vmatpush.bf16.msrb.mxu1 %v4803_v16  ;;  %v3617_v14 = vadd.f32 %v3616_v8, %v3604_v63  ;;  %v3629_v49 = vpop.f32.mrf.mxu3  ;;  %v4992_v16 = vld [vmem:[%s9898_s1 + $0x758] sm:$0xf0]  ;;  %v3605_v58 = vpop.f32.mrf.mxu1  ;;  %v6261_v46 = vld [vmem:[%s9898_s1 + $0x50c] sm:$0xf] }
 0x1ac   :  { %3868 = vmatpush.bf16.msrb.mxu2 %v4931_v18  ;;  %v4611_v18 = vor.u32 %v6237_v5, %v4608_v7  ;;  %v4995_v2 = vor.u32 %v6333_v22, %v4992_v16  ;;  %v4704_v47 = vld [vmem:[%s9898_s1 + $0x518] sm:$0xf0]  ;;  %v6325_v55 = vld [vmem:[%s9898_s1 + $0x70c] sm:$0xf] }
 0x1ad   :  { %3881 = vmatpush.bf16.msrb.mxu3 %v5059_v26  ;;  %v9439_v17 = vadd.f32 %v3629_v49, %v3617_v14  ;;  %v4867_v26 = vor.u32 %v6301_v11, %v4864_v12  ;;  %v4960_v56 = vld [vmem:[%s9898_s1 + $0x718] sm:$0xf0]  ;;  %v6385_v57 = vld [vmem:[%s9898_s1 + $0x8ec] sm:$0xf]  ;;  %v4707_v0 = vor.u32 %v6261_v46, %v4704_v47 }
 0x1ae   :  { %3843 = vmatpush.bf16.msrb.mxu0 %v4659_v39  ;;  %v4720_v39 = vld [vmem:[%s9898_s1 + $0x538] sm:$0xf0]  ;;  %v6417_v61 = vld [vmem:[%s9898_s1 + $0x9ec] sm:$0xf]  ;;  %v4963_v5 = vor.u32 %v6325_v55, %v4960_v56 }
 0x1af   :  { %3856 = vmatpush.bf16.msrb.mxu1 %v4787_v40  ;;  %v6297_v40 = vld [vmem:[%s9898_s1 + $0x62c] sm:$0xf]  ;;  %v4723_v45 = vor.u32 %v6265_v34, %v4720_v39  ;;  %v5328_v62 = vld [vmem:[%s9898_s1 + $0x9f8] sm:$0xf0] }
 0x1b0   :  { %3869 = vmatpush.bf16.msrb.mxu2 %v4915_v4  ;;  %v4848_v4 = vld [vmem:[%s9898_s1 + $0x638] sm:$0xf0]  ;;  %v6449_v63 = vld [vmem:[%s9898_s1 + $0xaec] sm:$0xf]  ;;  %v5331_v36 = vor.u32 %v6417_v61, %v5328_v62 }
 0x1b1   :  { %3882 = vmatpush.bf16.msrb.mxu3 %v5043_v20  ;;  %v6229_v20 = vld [vmem:[%s9898_s1 + $0x40c] sm:$0xf]  ;;  %v4851_v37 = vor.u32 %v6297_v40, %v4848_v4  ;;  %v5456_v53 = vld [vmem:[%s9898_s1 + $0xaf8] sm:$0xf0] }
 0x1b2   :  { %3844 = vmatpush.bf16.msrb.mxu0 %v4643_v48  ;;  %v6293_v48 = vld [vmem:[%s9898_s1 + $0x60c] sm:$0xf]  ;;  %v3618_v50 = vpop.f32.mrf.mxu2  ;;  %v4579_v13 = vor.u32 %v6229_v20, %v4576_v21  ;;  %v5459_v8 = vor.u32 %v6449_v63, %v5456_v53  ;;  %v5184_v10 = vld [vmem:[%s9898_s1 + $0x8d8] sm:$0xf0] }
 0x1b3   :  { %3857 = vmatpush.bf16.msrb.mxu1 %v4771_v51  ;;  %v4979_v51 = vor.u32 %v6329_v59, %v4976_v43  ;;  %v3631_v54 = vpop.f32.mrf.mxu3  ;;  %v6413_v11 = vld [vmem:[%s9898_s1 + $0x9cc] sm:$0xf]  ;;  %v5312_v14 = vld [vmem:[%s9898_s1 + $0x9d8] sm:$0xf0] }
 0x1b4   :  { %3870 = vmatpush.bf16.msrb.mxu2 %v4899_v52  ;;  %v4832_v52 = vld [vmem:[%s9898_s1 + $0x618] sm:$0xf0]  ;;  %v6445_v49 = vld [vmem:[%s9898_s1 + $0xacc] sm:$0xf] }
 0x1b5   :  { %3883 = vmatpush.bf16.msrb.mxu3 %v5027_v60  ;;  %v5200_v60 = vld [vmem:[%s9898_s1 + $0x8f8] sm:$0xf0]  ;;  %v6477_v16 = vld [vmem:[%s9898_s1 + $0xbcc] sm:$0xf] }
 0x1b6   :  { %3845 = vmatpush.bf16.msrb.mxu0 %v4627_v15  ;;  %v4835_v15 = vor.u32 %v6293_v48, %v4832_v52  ;;  %v5203_v7 = vor.u32 %v6385_v57, %v5200_v60  ;;  %v5440_v22 = vld [vmem:[%s9898_s1 + $0xad8] sm:$0xf0]  ;;  %v6377_v27 = vld [vmem:[%s9898_s1 + $0x8ac] sm:$0xf] }
 0x1b7   :  { %3858 = vmatpush.bf16.msrb.mxu1 %v4755_v1  ;;  %v6481_v1 = vld [vmem:[%s9898_s1 + $0xbec] sm:$0xf]  ;;  %v5168_v32 = vld [vmem:[%s9898_s1 + $0x8b8] sm:$0xf0] }
 0x1b8   :  { %3871 = vmatpush.bf16.msrb.mxu2 %v4883_v3  ;;  %v5584_v3 = vld [vmem:[%s9898_s1 + $0xbf8] sm:$0xf0]  ;;  %v6409_v34 = vld [vmem:[%s9898_s1 + $0x9ac] sm:$0xf]  ;;  %v5171_v59 = vor.u32 %v6377_v27, %v5168_v32 }
 0x1b9   :  { %3884 = vmatpush.bf16.msrb.mxu3 %v5011_v9  ;;  %v6381_v9 = vld [vmem:[%s9898_s1 + $0x8cc] sm:$0xf]  ;;  %v5587_v12 = vor.u32 %v6481_v1, %v5584_v3  ;;  %v5424_v40 = vld [vmem:[%s9898_s1 + $0xab8] sm:$0xf0] }
 0x1ba   :  { %3846 = vmatpush.bf16.msrb.mxu0 %v4611_v18  ;;  %v5568_v18 = vld [vmem:[%s9898_s1 + $0xbd8] sm:$0xf0]  ;;  %v5187_v19 = vor.u32 %v6381_v9, %v5184_v10  ;;  %v6441_v39 = vld [vmem:[%s9898_s1 + $0xaac] sm:$0xf] }
 0x1bb   :  { %3859 = vmatpush.bf16.msrb.mxu1 %v4739_v24  ;;  %v5315_v24 = vor.u32 %v6413_v11, %v5312_v14  ;;  %v5571_v58 = vor.u32 %v6477_v16, %v5568_v18  ;;  %v5552_v4 = vld [vmem:[%s9898_s1 + $0xbb8] sm:$0xf0]  ;;  %v6405_v20 = vld [vmem:[%s9898_s1 + $0x98c] sm:$0xf] }
 0x1bc   :  { %3872 = vmatpush.bf16.msrb.mxu2 %v4867_v26  ;;  %v5443_v26 = vor.u32 %v6445_v49, %v5440_v22  ;;  %v6469_v46 = vld [vmem:[%s9898_s1 + $0xb8c] sm:$0xf]  ;;  %v5536_v47 = vld [vmem:[%s9898_s1 + $0xb98] sm:$0xf0] }
 0x1bd   :  { %3885 = vmatpush.bf16.msrb.mxu3 %v4995_v2  ;;  %v5296_v2 = vld [vmem:[%s9898_s1 + $0x9b8] sm:$0xf0]  ;;  %v6369_v55 = vld [vmem:[%s9898_s1 + $0x86c] sm:$0xf]  ;;  %v5539_v61 = vor.u32 %v6469_v46, %v5536_v47 }
 0x1be   :  { %3847 = vmatpush.bf16.msrb.mxu0 %v4595_v6  ;;  %v5299_v43 = vor.u32 %v6409_v34, %v5296_v2  ;;  %v5427_v6 = vor.u32 %v6441_v39, %v5424_v40  ;;  %v5136_v56 = vld [vmem:[%s9898_s1 + $0x878] sm:$0xf0]  ;;  %v6401_v54 = vld [vmem:[%s9898_s1 + $0x96c] sm:$0xf] }
 0x1bf   :  { %3860 = vmatpush.bf16.msrb.mxu1 %v4723_v45  ;;  %v6437_v45 = vld [vmem:[%s9898_s1 + $0xa8c] sm:$0xf]  ;;  %v5392_v63 = vld [vmem:[%s9898_s1 + $0xa78] sm:$0xf0] }
 0x1c0   :  { %3873 = vmatpush.bf16.msrb.mxu2 %v4851_v37  ;;  %v5408_v37 = vld [vmem:[%s9898_s1 + $0xa98] sm:$0xf0]  ;;  %v6433_v62 = vld [vmem:[%s9898_s1 + $0xa6c] sm:$0xf] }
 0x1c1   :  { %3886 = vmatpush.bf16.msrb.mxu3 %v4979_v51  ;;  %v5411_v52 = vor.u32 %v6437_v45, %v5408_v37  ;;  %v6465_v53 = vld [vmem:[%s9898_s1 + $0xb6c] sm:$0xf]  ;;  %v5395_v3 = vor.u32 %v6433_v62, %v5392_v63  ;;  %v5248_v10 = vld [vmem:[%s9898_s1 + $0x958] sm:$0xf0] }
 0x1c2   :  { %3848 = vmatpush.bf16.msrb.mxu0 %v4579_v13  ;;  %v3642_v50 = vpop.f32.mrf.mxu0  ;;  %v5264_v13 = vld [vmem:[%s9898_s1 + $0x978] sm:$0xf0]  ;;  %v6429_v11 = vld [vmem:[%s9898_s1 + $0xa4c] sm:$0xf] }
 0x1c3   :  { %3861 = vmatpush.bf16.msrb.mxu1 %v4707_v0  ;;  %v3643_v57 = vadd.f32 %v3642_v50, %v9439_v17  ;;  %v3655_v60 = vpop.f32.mrf.mxu1  ;;  %v5520_v17 = vld [vmem:[%s9898_s1 + $0xb78] sm:$0xf0]  ;;  %v5267_v1 = vor.u32 %v6401_v54, %v5264_v13  ;;  %v6461_v22 = vld [vmem:[%s9898_s1 + $0xb4c] sm:$0xf] }
 0x1c4   :  { %3874 = vmatpush.bf16.msrb.mxu2 %v4835_v15  ;;  %v5139_v15 = vor.u32 %v6369_v55, %v5136_v56  ;;  %v5523_v9 = vor.u32 %v6465_v53, %v5520_v17  ;;  %v5504_v16 = vld [vmem:[%s9898_s1 + $0xb58] sm:$0xf0]  ;;  %v6361_v32 = vld [vmem:[%s9898_s1 + $0x82c] sm:$0xf] }
 0x1c5   :  { %3887 = vmatpush.bf16.msrb.mxu3 %v4963_v5  ;;  %3849 = vmatmul.bf16.vlgmr.msrb.gmra.mxu0 %v7097_v41  ;;  %v6373_v41 = vld [vmem:[%s9898_s1 + $0x88c] sm:$0xf]  ;;  %v3656_v0 = vadd.f32 %v3655_v60, %v3643_v57  ;;  %v5104_v34 = vld [vmem:[%s9898_s1 + $0x838] sm:$0xf0]  ;;  %v5507_v39 = vor.u32 %v6461_v22, %v5504_v16 }
 0x1c6   :  { %3893 = vmatpush.bf16.msra.mxu0 %v5203_v7  ;;  %3862 = vmatmul.bf16.vlgmr.msrb.gmra.mxu1 %v7101_v44  ;;  %v5280_v44 = vld [vmem:[%s9898_s1 + $0x998] sm:$0xf0]  ;;  %v6365_v5 = vld [vmem:[%s9898_s1 + $0x84c] sm:$0xf] }
 0x1c7   :  { %3906 = vmatpush.bf16.msra.mxu1 %v5331_v36  ;;  %3875 = vmatmul.bf16.vlgmr.msrb.gmra.mxu2 %v7089_v38  ;;  %v6473_v38 = vld [vmem:[%s9898_s1 + $0xbac] sm:$0xf]  ;;  %v5283_v51 = vor.u32 %v6405_v20, %v5280_v44  ;;  %v5120_v7 = vld [vmem:[%s9898_s1 + $0x858] sm:$0xf0] }
 0x1c8   :  { %3919 = vmatpush.bf16.msra.mxu2 %v5459_v8  ;;  %3888 = vmatmul.bf16.vlgmr.msrb.gmra.mxu3 %v7099_v42  ;;  %v5152_v42 = vld [vmem:[%s9898_s1 + $0x898] sm:$0xf0]  ;;  %v5555_v21 = vor.u32 %v6473_v38, %v5552_v4  ;;  %v6397_v36 = vld [vmem:[%s9898_s1 + $0x94c] sm:$0xf]  ;;  %v5123_v18 = vor.u32 %v6365_v5, %v5120_v7 }
 0x1c9   :  { %3932 = vmatpush.bf16.msra.mxu3 %v5587_v12  ;;  %v5155_v48 = vor.u32 %v6373_v41, %v5152_v42  ;;  %v5376_v12 = vld [vmem:[%s9898_s1 + $0xa58] sm:$0xf0]  ;;  %v6425_v38 = vld [vmem:[%s9898_s1 + $0xa2c] sm:$0xf] }
 0x1ca   :  { %3894 = vmatpush.bf16.msra.mxu0 %v5187_v19  ;;  %v3668_v8 = vpop.f32.mrf.mxu2  ;;  %v5379_v27 = vor.u32 %v6429_v11, %v5376_v12  ;;  %v5232_v40 = vld [vmem:[%s9898_s1 + $0x938] sm:$0xf0]  ;;  %v6357_v41 = vld [vmem:[%s9898_s1 + $0x80c] sm:$0xf] }
 0x1cb   :  { %3907 = vmatpush.bf16.msra.mxu1 %v5315_v24  ;;  %v3669_v14 = vadd.f32 %v3668_v8, %v3656_v0  ;;  %v3681_v49 = vpop.f32.mrf.mxu3  ;;  %v3644_v24 = vpop.f32.mrf.mxu0  ;;  %v5360_v4 = vld [vmem:[%s9898_s1 + $0xa38] sm:$0xf0]  ;;  %v6389_v44 = vld [vmem:[%s9898_s1 + $0x90c] sm:$0xf] }
 0x1cc   :  { %3920 = vmatpush.bf16.msra.mxu2 %v5443_v26  ;;  %v5251_v26 = vor.u32 %v6397_v36, %v5248_v10  ;;  %v3657_v2 = vpop.f32.mrf.mxu1  ;;  %v5088_v42 = vld [vmem:[%s9898_s1 + $0x818] sm:$0xf0]  ;;  %v6421_v37 = vld [vmem:[%s9898_s1 + $0xa0c] sm:$0xf] }
 0x1cd   :  { %3933 = vmatpush.bf16.msra.mxu3 %v5571_v58  ;;  %v9638_v19 = vadd.f32 %v3681_v49, %v3669_v14  ;;  %v6393_v58 = vld [vmem:[%s9898_s1 + $0x92c] sm:$0xf]  ;;  %v5216_v45 = vld [vmem:[%s9898_s1 + $0x918] sm:$0xf0]  ;;  %v5091_v57 = vor.u32 %v6357_v41, %v5088_v42 }
 0x1ce   :  { %3895 = vmatpush.bf16.msra.mxu0 %v5171_v59  ;;  %v6457_v59 = vld [vmem:[%s9898_s1 + $0xb2c] sm:$0xf]  ;;  %v5235_v20 = vor.u32 %v6393_v58, %v5232_v40  ;;  %v5712_v56 = vld [vmem:[%s9898_s1 + $0xcf8] sm:$0xf0]  ;;  %v5219_v62 = vor.u32 %v6389_v44, %v5216_v45 }
 0x1cf   :  { %3908 = vmatpush.bf16.msra.mxu1 %v5299_v43  ;;  %v5488_v43 = vld [vmem:[%s9898_s1 + $0xb38] sm:$0xf0]  ;;  %v6453_v50 = vld [vmem:[%s9898_s1 + $0xb0c] sm:$0xf] }
 0x1d0   :  { %3921 = vmatpush.bf16.msra.mxu2 %v5427_v6  ;;  %v5107_v6 = vor.u32 %v6361_v32, %v5104_v34  ;;  %v5491_v47 = vor.u32 %v6457_v59, %v5488_v43  ;;  %v6513_v55 = vld [vmem:[%s9898_s1 + $0xcec] sm:$0xf]  ;;  %v5840_v60 = vld [vmem:[%s9898_s1 + $0xdf8] sm:$0xf0] }
 0x1d1   :  { %3934 = vmatpush.bf16.msra.mxu3 %v5555_v21  ;;  %v5363_v21 = vor.u32 %v6425_v38, %v5360_v4  ;;  %v6545_v54 = vld [vmem:[%s9898_s1 + $0xdec] sm:$0xf]  ;;  %v5968_v13 = vld [vmem:[%s9898_s1 + $0xef8] sm:$0xf0] }
 0x1d2   :  { %3896 = vmatpush.bf16.msra.mxu0 %v5155_v48  ;;  %v3670_v46 = vpop.f32.mrf.mxu2  ;;  %v5344_v48 = vld [vmem:[%s9898_s1 + $0xa18] sm:$0xf0]  ;;  %v6609_v53 = vld [vmem:[%s9898_s1 + $0xfec] sm:$0xf] }
 0x1d3   :  { %3909 = vmatpush.bf16.msra.mxu1 %v5283_v51  ;;  %v5472_v51 = vld [vmem:[%s9898_s1 + $0xb18] sm:$0xf0]  ;;  %v5347_v63 = vor.u32 %v6421_v37, %v5344_v48  ;;  %v6509_v5 = vld [vmem:[%s9898_s1 + $0xccc] sm:$0xf] }
 0x1d4   :  { %3922 = vmatpush.bf16.msra.mxu2 %v5411_v52  ;;  %v3683_v52 = vpop.f32.mrf.mxu3  ;;  %v6096_v17 = vld [vmem:[%s9898_s1 + $0xff8] sm:$0xf0]  ;;  %v5475_v0 = vor.u32 %v6453_v50, %v5472_v51  ;;  %v6541_v36 = vld [vmem:[%s9898_s1 + $0xdcc] sm:$0xf] }
 0x1d5   :  { %3935 = vmatpush.bf16.msra.mxu3 %v5539_v61  ;;  %v6577_v61 = vld [vmem:[%s9898_s1 + $0xeec] sm:$0xf]  ;;  %v5696_v7 = vld [vmem:[%s9898_s1 + $0xcd8] sm:$0xf0]  ;;  %v6099_v8 = vor.u32 %v6609_v53, %v6096_v17 }
 0x1d6   :  { %3897 = vmatpush.bf16.msra.mxu0 %v5139_v15  ;;  %v5715_v15 = vor.u32 %v6513_v55, %v5712_v56  ;;  %v6573_v10 = vld [vmem:[%s9898_s1 + $0xecc] sm:$0xf]  ;;  %v5952_v11 = vld [vmem:[%s9898_s1 + $0xed8] sm:$0xf0]  ;;  %v5699_v49 = vor.u32 %v6509_v5, %v5696_v7 }
 0x1d7   :  { %3910 = vmatpush.bf16.msra.mxu1 %v5267_v1  ;;  %v5843_v1 = vor.u32 %v6545_v54, %v5840_v60  ;;  %v6605_v12 = vld [vmem:[%s9898_s1 + $0xfcc] sm:$0xf]  ;;  %v6080_v14 = vld [vmem:[%s9898_s1 + $0xfd8] sm:$0xf0]  ;;  %v5955_v16 = vor.u32 %v6573_v10, %v5952_v11 }
 0x1d8   :  { %3923 = vmatpush.bf16.msra.mxu2 %v5395_v3  ;;  %v5971_v3 = vor.u32 %v6577_v61, %v5968_v13  ;;  %v5680_v24 = vld [vmem:[%s9898_s1 + $0xcb8] sm:$0xf0]  ;;  %v6569_v34 = vld [vmem:[%s9898_s1 + $0xeac] sm:$0xf] }
 0x1d9   :  { %3936 = vmatpush.bf16.msra.mxu3 %v5523_v9  ;;  %v5824_v9 = vld [vmem:[%s9898_s1 + $0xdd8] sm:$0xf0]  ;;  %v6533_v4 = vld [vmem:[%s9898_s1 + $0xd8c] sm:$0xf] }
 0x1da   :  { %3898 = vmatpush.bf16.msra.mxu0 %v5123_v18  ;;  %v5827_v22 = vor.u32 %v6541_v36, %v5824_v9  ;;  %v6505_v18 = vld [vmem:[%s9898_s1 + $0xcac] sm:$0xf]  ;;  %v5808_v32 = vld [vmem:[%s9898_s1 + $0xdb8] sm:$0xf0] }
 0x1db   :  { %3911 = vmatpush.bf16.msra.mxu1 %v5251_v26  ;;  %v6537_v26 = vld [vmem:[%s9898_s1 + $0xdac] sm:$0xf]  ;;  %v5936_v58 = vld [vmem:[%s9898_s1 + $0xeb8] sm:$0xf0] }
 0x1dc   :  { %3924 = vmatpush.bf16.msra.mxu2 %v5379_v27  ;;  %v6083_v27 = vor.u32 %v6605_v12, %v6080_v14  ;;  %v6064_v2 = vld [vmem:[%s9898_s1 + $0xfb8] sm:$0xf0]  ;;  %v5811_v40 = vor.u32 %v6537_v26, %v5808_v32  ;;  %v5939_v38 = vor.u32 %v6569_v34, %v5936_v58  ;;  %v6565_v43 = vld [vmem:[%s9898_s1 + $0xe8c] sm:$0xf] }
 0x1dd   :  { %3937 = vmatpush.bf16.msra.mxu3 %v5507_v39  ;;  %v5683_v39 = vor.u32 %v6505_v18, %v5680_v24  ;;  %v5792_v59 = vld [vmem:[%s9898_s1 + $0xd98] sm:$0xf0]  ;;  %v6597_v42 = vld [vmem:[%s9898_s1 + $0xf8c] sm:$0xf] }
 0x1de   :  { %3899 = vmatpush.bf16.msra.mxu0 %v5107_v6  ;;  %v5920_v6 = vld [vmem:[%s9898_s1 + $0xe98] sm:$0xf0]  ;;  %v5795_v37 = vor.u32 %v6533_v4, %v5792_v59  ;;  %v6529_v50 = vld [vmem:[%s9898_s1 + $0xd6c] sm:$0xf] }
 0x1df   :  { %3912 = vmatpush.bf16.msra.mxu1 %v5235_v20  ;;  %v6048_v20 = vld [vmem:[%s9898_s1 + $0xf98] sm:$0xf0]  ;;  %v5923_v46 = vor.u32 %v6565_v43, %v5920_v6  ;;  %v6561_v55 = vld [vmem:[%s9898_s1 + $0xe6c] sm:$0xf] }
 0x1e0   :  { %3925 = vmatpush.bf16.msra.mxu2 %v5363_v21  ;;  %v5648_v48 = vld [vmem:[%s9898_s1 + $0xc78] sm:$0xf0]  ;;  %v6593_v54 = vld [vmem:[%s9898_s1 + $0xf6c] sm:$0xf] }
 0x1e1   :  { %3938 = vmatpush.bf16.msra.mxu3 %v5491_v47  ;;  %v6497_v47 = vld [vmem:[%s9898_s1 + $0xc6c] sm:$0xf]  ;;  %v5776_v52 = vld [vmem:[%s9898_s1 + $0xd78] sm:$0xf0] }
 0x1e2   :  { %3900 = vmatpush.bf16.msra.mxu0 %v5091_v57  ;;  %v3694_v41 = vpop.f32.mrf.mxu0  ;;  %v5904_v56 = vld [vmem:[%s9898_s1 + $0xe78] sm:$0xf0]  ;;  %v5651_v60 = vor.u32 %v6497_v47, %v5648_v48  ;;  %v5779_v61 = vor.u32 %v6529_v50, %v5776_v52  ;;  %v6525_v53 = vld [vmem:[%s9898_s1 + $0xd4c] sm:$0xf] }
 0x1e3   :  { %3913 = vmatpush.bf16.msra.mxu1 %v5219_v62  ;;  %v3695_v21 = vadd.f32 %v3694_v41, %v9638_v19  ;;  %v3707_v45 = vpop.f32.mrf.mxu1  ;;  %v6051_v19 = vor.u32 %v6597_v42, %v6048_v20  ;;  %v6032_v57 = vld [vmem:[%s9898_s1 + $0xf78] sm:$0xf0]  ;;  %v5907_v13 = vor.u32 %v6561_v55, %v5904_v56  ;;  %v6493_v62 = vld [vmem:[%s9898_s1 + $0xc4c] sm:$0xf] }
 0x1e4   :  { %3926 = vmatpush.bf16.msra.mxu2 %v5347_v63  ;;  %v5632_v63 = vld [vmem:[%s9898_s1 + $0xc58] sm:$0xf0]  ;;  %v6035_v17 = vor.u32 %v6593_v54, %v6032_v57  ;;  %v6589_v36 = vld [vmem:[%s9898_s1 + $0xf4c] sm:$0xf] }
 0x1e5   :  { %3939 = vmatpush.bf16.msra.mxu3 %v5475_v0  ;;  %3901 = vmatmul.bf16.vlgmr.msra.gmra.mxu0 %v7290_v25  ;;  %v6601_v25 = vld [vmem:[%s9898_s1 + $0xfac] sm:$0xf]  ;;  %v3708_v51 = vadd.f32 %v3707_v45, %v3695_v21  ;;  %v5635_v10 = vor.u32 %v6493_v62, %v5632_v63  ;;  %v5744_v26 = vld [vmem:[%s9898_s1 + $0xd38] sm:$0xf0] }
 0x1e6   :  { %3945 = vmatpush.bf16.msrb.mxu0 %v5715_v15  ;;  %3914 = vmatmul.bf16.vlgmr.msra.gmra.mxu1 %v7303_v30  ;;  %v5664_v30 = vld [vmem:[%s9898_s1 + $0xc98] sm:$0xf0]  ;;  %v6521_v18 = vld [vmem:[%s9898_s1 + $0xd2c] sm:$0xf] }
 0x1e7   :  { %3958 = vmatpush.bf16.msrb.mxu1 %v5843_v1  ;;  %3927 = vmatmul.bf16.vlgmr.msra.gmra.mxu2 %v7301_v29  ;;  %v6501_v29 = vld [vmem:[%s9898_s1 + $0xc8c] sm:$0xf]  ;;  %v5760_v15 = vld [vmem:[%s9898_s1 + $0xd58] sm:$0xf0] }
 0x1e8   :  { %3971 = vmatpush.bf16.msrb.mxu2 %v5971_v3  ;;  %3940 = vmatmul.bf16.vlgmr.msra.gmra.mxu3 %v7311_v33  ;;  %v6067_v33 = vor.u32 %v6601_v25, %v6064_v2  ;;  %v5667_v44 = vor.u32 %v6501_v29, %v5664_v30  ;;  %v6557_v1 = vld [vmem:[%s9898_s1 + $0xe4c] sm:$0xf]  ;;  %v5888_v3 = vld [vmem:[%s9898_s1 + $0xe58] sm:$0xf0]  ;;  %v5763_v14 = vor.u32 %v6525_v53, %v5760_v15 }
 0x1e9   :  { %3984 = vmatpush.bf16.msrb.mxu3 %v6099_v8  ;;  %v6016_v8 = vld [vmem:[%s9898_s1 + $0xf58] sm:$0xf0]  ;;  %v6585_v34 = vld [vmem:[%s9898_s1 + $0xf2c] sm:$0xf]  ;;  %v5747_v2 = vor.u32 %v6521_v18, %v5744_v26 }
 0x1ea   :  { %3946 = vmatpush.bf16.msrb.mxu0 %v5699_v49  ;;  %v3720_v0 = vpop.f32.mrf.mxu2  ;;  %v3696_v9 = vpop.f32.mrf.mxu0  ;;  %v5891_v49 = vor.u32 %v6557_v1, %v5888_v3  ;;  %v6019_v24 = vor.u32 %v6589_v36, %v6016_v8  ;;  %v5872_v32 = vld [vmem:[%s9898_s1 + $0xe38] sm:$0xf0]  ;;  %v6517_v29 = vld [vmem:[%s9898_s1 + $0xd0c] sm:$0xf] }
 0x1eb   :  { %3959 = vmatpush.bf16.msrb.mxu1 %v5827_v22  ;;  %v3721_v5 = vadd.f32 %v3720_v0, %v3708_v51  ;;  %v3733_v7 = vpop.f32.mrf.mxu3  ;;  %v3709_v11 = vpop.f32.mrf.mxu1  ;;  %v6489_v22 = vld [vmem:[%s9898_s1 + $0xc2c] sm:$0xf]  ;;  %v6000_v58 = vld [vmem:[%s9898_s1 + $0xf38] sm:$0xf0] }
 0x1ec   :  { %3972 = vmatpush.bf16.msrb.mxu2 %v5955_v16  ;;  %v5616_v16 = vld [vmem:[%s9898_s1 + $0xc38] sm:$0xf0]  ;;  %v6003_v30 = vor.u32 %v6585_v34, %v6000_v58  ;;  %v6581_v6 = vld [vmem:[%s9898_s1 + $0xf0c] sm:$0xf] }
 0x1ed   :  { %3985 = vmatpush.bf16.msrb.mxu3 %v6083_v27  ;;  %v3734_v12 = vadd.f32 %v3733_v7, %v3721_v5  ;;  %v6553_v27 = vld [vmem:[%s9898_s1 + $0xe2c] sm:$0xf]  ;;  %v5619_v25 = vor.u32 %v6489_v22, %v5616_v16  ;;  %v5728_v4 = vld [vmem:[%s9898_s1 + $0xd18] sm:$0xf0] }
 0x1ee   :  { %3947 = vmatpush.bf16.msrb.mxu0 %v5683_v39  ;;  %v5875_v39 = vor.u32 %v6553_v27, %v5872_v32  ;;  %v5856_v59 = vld [vmem:[%s9898_s1 + $0xe18] sm:$0xf0]  ;;  %v5731_v21 = vor.u32 %v6517_v29, %v5728_v4 }
 0x1ef   :  { %3960 = vmatpush.bf16.msrb.mxu1 %v5811_v40  ;;  %v6485_v40 = vld [vmem:[%s9898_s1 + $0xc0c] sm:$0xf]  ;;  %v5984_v41 = vld [vmem:[%s9898_s1 + $0xf18] sm:$0xf0] }
 0x1f0   :  { %3973 = vmatpush.bf16.msrb.mxu2 %v5939_v38  ;;  %v5600_v38 = vld [vmem:[%s9898_s1 + $0xc18] sm:$0xf0]  ;;  %v5987_v45 = vor.u32 %v6581_v6, %v5984_v41 }
 0x1f1   :  { %3986 = vmatpush.bf16.msrb.mxu3 %v6067_v33  ;;  %v6549_v33 = vld [vmem:[%s9898_s1 + $0xe0c] sm:$0xf]  ;;  %v5603_v20 = vor.u32 %v6485_v40, %v5600_v38  ;;  %v6612_v38 = vld [vmem:[%s9900_s2] sm:$0xf] }
 0x1f2   :  { %3948 = vmatpush.bf16.msrb.mxu0 %v5667_v44  ;;  %v3722_v43 = vpop.f32.mrf.mxu2  ;;  %v5859_v44 = vor.u32 %v6549_v33, %v5856_v59  ;;  %v4016_v29 = vperm.slane %v6612_v38, 2  ;;  %v6613_v59 = vld [vmem:[%s9901_s3] sm:$0xf] }
 0x1f3   :  { %3961 = vmatpush.bf16.msrb.mxu1 %v5795_v37  ;;  %v3735_v42 = vpop.f32.mrf.mxu3  ;;  %v4030_v43 = vperm.slane %v6613_v59, 2 }
 0x1f4   :  { %3974 = vmatpush.bf16.msrb.mxu2 %v5923_v46  ;;  %v4017_v42 = vperm.slane %v6612_v38, 3 }
 0x1f5   :  { %3987 = vmatpush.bf16.msrb.mxu3 %v6051_v19 }
 0x1f6   :  { %3949 = vmatpush.bf16.msrb.mxu0 %v5651_v60 }
 0x1f7   :  { %3962 = vmatpush.bf16.msrb.mxu1 %v5779_v61 }
 0x1f8   :  { %3975 = vmatpush.bf16.msrb.mxu2 %v5907_v13 }
 0x1f9   :  { %3988 = vmatpush.bf16.msrb.mxu3 %v6035_v17 }
 0x1fa   :  { %3950 = vmatpush.bf16.msrb.mxu0 %v5635_v10 }
 0x1fb   :  { %3963 = vmatpush.bf16.msrb.mxu1 %v5763_v14 }
 0x1fc   :  { %3976 = vmatpush.bf16.msrb.mxu2 %v5891_v49 }
 0x1fd   :  { %3989 = vmatpush.bf16.msrb.mxu3 %v6019_v24 }
 0x1fe   :  { %3951 = vmatpush.bf16.msrb.mxu0 %v5619_v25 }
 0x1ff   :  { %3964 = vmatpush.bf16.msrb.mxu1 %v5747_v2 }
 0x200   :  { %3977 = vmatpush.bf16.msrb.mxu2 %v5875_v39 }
 0x201   :  { %3990 = vmatpush.bf16.msrb.mxu3 %v6003_v30 }
 0x202   :  { %3952 = vmatpush.bf16.msrb.mxu0 %v5603_v20  ;;  %v3746_v37 = vpop.f32.mrf.mxu0 }
 0x203   :  { %3965 = vmatpush.bf16.msrb.mxu1 %v5731_v21  ;;  %v3747_v46 = vadd.f32 %v3746_v37, %v3734_v12  ;;  %v3759_v47 = vpop.f32.mrf.mxu1 }
 0x204   :  { %3978 = vmatpush.bf16.msrb.mxu2 %v5859_v44 }
 0x205   :  { %3991 = vmatpush.bf16.msrb.mxu3 %v5987_v45  ;;  %3953 = vmatmul.bf16.vlgmr.msrb.gmra.mxu0 %v7500_v23  ;;  %v3760_v48 = vadd.f32 %v3759_v47, %v3747_v46  ;;  %v4031_v45 = vperm.slane %v6613_v59, 3 }
 0x206   :  { %3966 = vmatmul.bf16.vlgmr.msrb.gmra.mxu1 %v7513_v31 }
 0x207   :  { %3979 = vmatmul.bf16.vlgmr.msrb.gmra.mxu2 %v7511_v28 }
 0x208   :  { %3992 = vmatmul.bf16.vlgmr.msrb.gmra.mxu3 %v7521_v35 }
 0x20a   :  { %v3772_v50 = vpop.f32.mrf.mxu2  ;;  %v3748_v52 = vpop.f32.mrf.mxu0 }
 0x20b   :  { %v3773_v19 = vadd.f32 %v3772_v50, %v3760_v48  ;;  %v3785_v51 = vpop.f32.mrf.mxu3  ;;  %v3761_v55 = vpop.f32.mrf.mxu1 }
 0x20d   :  { %v3786_v56 = vadd.f32 %v3785_v51, %v3773_v19 }
 0x20f   :  { %v4024_v33 = vmul.f32 %v4016_v29, %v3786_v56 }
 0x211   :  { %v4038_v37 = vadd.f32 %v4030_v43, %v4024_v33 }
 0x212   :  { %v3774_v54 = vpop.f32.mrf.mxu2 }
 0x213   :  { %v3787_v57 = vpop.f32.mrf.mxu3  ;;  %v4042_v50 = vmax.f32 %v4038_v37, 0.0 }
 0x222   :  { %v3798_v60 = vpop.f32.mrf.mxu0 }
 0x223   :  { %v3811_v23 = vpop.f32.mrf.mxu1 }
 0x224   :  { %v3812_v61 = vadd.f32 %v3811_v23, %v3798_v60 }
 0x22a   :  { %v3824_v31 = vpop.f32.mrf.mxu2  ;;  %v3800_v35 = vpop.f32.mrf.mxu0 }
 0x22b   :  { %v3825_v13 = vadd.f32 %v3824_v31, %v3812_v61  ;;  %v3837_v28 = vpop.f32.mrf.mxu3  ;;  %v3813_v63 = vpop.f32.mrf.mxu1 }
 0x22d   :  { %v3838_v62 = vadd.f32 %v3837_v28, %v3825_v13 }
 0x232   :  { %v3826_v53 = vpop.f32.mrf.mxu2 }
 0x233   :  { %v3839_v17 = vpop.f32.mrf.mxu3 }
 0x242   :  { %v3850_v0 = vpop.f32.mrf.mxu0 }
 0x243   :  { %v3863_v15 = vpop.f32.mrf.mxu1  ;;  %v3851_v11 = vadd.f32 %v3850_v0, %v3838_v62 }
 0x245   :  { %v3864_v22 = vadd.f32 %v3863_v15, %v3851_v11 }
 0x24a   :  { %v3876_v1 = vpop.f32.mrf.mxu2  ;;  %v3852_v5 = vpop.f32.mrf.mxu0 }
 0x24b   :  { %v3889_v3 = vpop.f32.mrf.mxu3  ;;  %v3865_v7 = vpop.f32.mrf.mxu1  ;;  %v3877_v18 = vadd.f32 %v3876_v1, %v3864_v22 }
 0x24d   :  { %v3890_v27 = vadd.f32 %v3889_v3, %v3877_v18 }
 0x252   :  { %v3878_v36 = vpop.f32.mrf.mxu2 }
 0x253   :  { %v3891_v8 = vpop.f32.mrf.mxu3 }
 0x262   :  { %v3902_v9 = vpop.f32.mrf.mxu0 }
 0x263   :  { %v3915_v10 = vpop.f32.mrf.mxu1  ;;  %v3903_v32 = vadd.f32 %v3902_v9, %v3890_v27 }
 0x265   :  { %v3916_v34 = vadd.f32 %v3915_v10, %v3903_v32 }
 0x26a   :  { %v3928_v12 = vpop.f32.mrf.mxu2  ;;  %v3904_v49 = vpop.f32.mrf.mxu0 }
 0x26b   :  { %v3941_v14 = vpop.f32.mrf.mxu3  ;;  %v3917_v16 = vpop.f32.mrf.mxu1  ;;  %v3929_v58 = vadd.f32 %v3928_v12, %v3916_v34 }
 0x26d   :  { %v3942_v25 = vadd.f32 %v3941_v14, %v3929_v58 }
 0x272   :  { %v3930_v24 = vpop.f32.mrf.mxu2 }
 0x273   :  { %v3943_v26 = vpop.f32.mrf.mxu3 }
 0x282   :  { %v3954_v2 = vpop.f32.mrf.mxu0 }
 0x283   :  { %v3967_v39 = vpop.f32.mrf.mxu1  ;;  %v3955_v40 = vadd.f32 %v3954_v2, %v3942_v25 }
 0x285   :  { %v3968_v30 = vadd.f32 %v3967_v39, %v3955_v40 }
 0x28a   :  { %v3980_v4 = vpop.f32.mrf.mxu2  ;;  %v3956_v20 = vpop.f32.mrf.mxu0 }
 0x28b   :  { %v3981_v6 = vadd.f32 %v3980_v4, %v3968_v30  ;;  %v3993_v41 = vpop.f32.mrf.mxu3  ;;  %v3969_v21 = vpop.f32.mrf.mxu1 }
 0x28d   :  { %v3994_v44 = vadd.f32 %v3993_v41, %v3981_v6 }
 0x28f   :  { %v4025_v46 = vmul.f32 %v4017_v42, %v3994_v44 }
 0x291   :  { %v4039_v47 = vadd.f32 %v4031_v45, %v4025_v46 }
 0x292   :  { %v3982_v48 = vpop.f32.mrf.mxu2 }
 0x293   :  { %v4043_v19 = vmax.f32 %v4039_v47, 0.0  ;;  %v3995_v51 = vpop.f32.mrf.mxu3 }
 0x295   :  { %v4045_v52 = vpack.c.bf16 %v4043_v19, %v4042_v50 }
 0x297   :  { %4047 = vst [vmem:[%s9902_s4 + $0x8] sm:$0xff] %v4045_v52 }

</bundles_post_ra>
